<compile_context>
chip_gen: v5e
topology: v5e:2x2
jax: 0.10.0
libtpu: 0.0.40
codegen_flags: <defaults>
</compile_context>

<pallas_src>
import functools

import jax
import jax.numpy as jnp
from jax.experimental import pallas as pl
from jax.experimental.pallas import tpu as pltpu

# Small, module-consistent sizes (PyTorch uses 1024; scaled down for the demo).
ENCODER_DIM = 32
JOINER_DIM = 32
NUM_INPUTS = 16
NUM_LAYERS = 3


# ------------------------------- small helpers -------------------------------
def _row_tile(m, cap=512):
    """Largest power-of-two row tile <= cap that divides m (falls back to m)."""
    for t in (512, 256, 128, 64, 32, 16, 8):
        if t <= cap and m % t == 0:
            return t
    return m


def _time_chunk(t, cap=8):
    """Largest chunk <= cap that divides T."""
    for c in range(min(cap, t), 0, -1):
        if t % c == 0:
            return c
    return 1


# ------------- hoisted input projections (both dirs, gate-major) -------------
def gate_proj_single_kernel(x_ref, w_ref, b_ref, o_ref):
    # x: (tm, D) bf16, w: (D, H) bf16, b: (1, H) f32, o: (tm, H) f32
    o_ref[...] = jnp.dot(x_ref[...].astype(jnp.bfloat16), w_ref[...],
                         preferred_element_type=jnp.float32) + b_ref[...]


def gate_proj_single(x, w, b, *, row_tile):
    """gi[d, g] = x @ w[d, g] + b[d, g].  x:(M,D), w:(2,3,D,H) bf16, b:(2,3,1,H)."""
    M, D = x.shape
    ndir, G, _, H = w.shape
    return pl.pallas_call(
        gate_proj_single_kernel,
        out_shape=jax.ShapeDtypeStruct((ndir, G, M, H), jnp.float32),
        grid_spec=pl.GridSpec(
            grid=(ndir, G, M // row_tile),
            in_specs=[
                pl.BlockSpec((row_tile, D), lambda d, g, m: (m, 0)),
                pl.BlockSpec((None, None, D, H), lambda d, g, m: (d, g, 0, 0)),
                pl.BlockSpec((None, None, 1, H), lambda d, g, m: (d, g, 0, 0)),
            ],
            out_specs=pl.BlockSpec((None, None, row_tile, H),
                                   lambda d, g, m: (d, g, m, 0)),
        ),
        compiler_params=pltpu.CompilerParams(
            dimension_semantics=("parallel", "parallel", "parallel")),
    )(x, w, b)


def gate_proj_dual_kernel(xf_ref, xb_ref, w_ref, b_ref, o_ref):
    # xf/xb: (tm, Hin) bf16, w: (2, Hin, H) bf16, b: (1, H) f32, o: (tm, H) f32
    acc = jnp.dot(xf_ref[...].astype(jnp.bfloat16), w_ref[0],
                  preferred_element_type=jnp.float32)
    acc = acc + jnp.dot(xb_ref[...].astype(jnp.bfloat16), w_ref[1],
                        preferred_element_type=jnp.float32)
    o_ref[...] = acc + b_ref[...]


def gate_proj_dual(x_f, x_b, w, b, *, row_tile):
    """gi[d, g] = x_f @ w[d,g,0] + x_b @ w[d,g,1] + b[d,g]  (no concat of halves)."""
    M, Hin = x_f.shape
    ndir, G, _, _, H = w.shape
    return pl.pallas_call(
        gate_proj_dual_kernel,
        out_shape=jax.ShapeDtypeStruct((ndir, G, M, H), jnp.float32),
        grid_spec=pl.GridSpec(
            grid=(ndir, G, M // row_tile),
            in_specs=[
                pl.BlockSpec((row_tile, Hin), lambda d, g, m: (m, 0)),
                pl.BlockSpec((row_tile, Hin), lambda d, g, m: (m, 0)),
                pl.BlockSpec((None, None, 2, Hin, H),
                             lambda d, g, m: (d, g, 0, 0, 0)),
                pl.BlockSpec((None, None, 1, H), lambda d, g, m: (d, g, 0, 0)),
            ],
            out_specs=pl.BlockSpec((None, None, row_tile, H),
                                   lambda d, g, m: (d, g, m, 0)),
        ),
        compiler_params=pltpu.CompilerParams(
            dimension_semantics=("parallel", "parallel", "parallel")),
    )(x_f, x_b, w, b)


# ----------------- fused bidirectional GRU recurrence kernel -----------------
def bigru_chunk_kernel(gif_ref, gib_ref, whh_ref, bhh_ref,
                       of_ref, ob_ref, hf_ref, hb_ref, *, time_chunk):
    """Processes `time_chunk` timesteps of BOTH directions per grid step.

    gif_ref/gib_ref: (3, Tc, B, H) f32 precomputed input gates (fwd / reversed bwd)
    whh_ref:         (2, 3, H, H) bf16 recurrent weights (dir, gate, transposed)
    bhh_ref:         (2, 3, 1, H) f32
    of_ref/ob_ref:   (Tc, B, H) bf16 output hidden states for this chunk
    hf_ref/hb_ref:   (B, H) f32 VMEM scratch carrying h across grid steps
    """
    c = pl.program_id(0)

    @pl.when(c == 0)
    def _():
        hf_ref[...] = jnp.zeros_like(hf_ref)
        hb_ref[...] = jnp.zeros_like(hb_ref)

    def gru_cell(gi_r, gi_z, gi_n, h, d):
        # MXU dots in bf16; all elementwise math and h stay f32.
        hb16 = h.astype(jnp.bfloat16)
        h_r = jnp.dot(hb16, whh_ref[d, 0], preferred_element_type=jnp.float32) + bhh_ref[d, 0]
        h_z = jnp.dot(hb16, whh_ref[d, 1], preferred_element_type=jnp.float32) + bhh_ref[d, 1]
        h_n = jnp.dot(hb16, whh_ref[d, 2], preferred_element_type=jnp.float32) + bhh_ref[d, 2]
        r = jax.nn.sigmoid(gi_r + h_r)
        z = jax.nn.sigmoid(gi_z + h_z)
        n = jnp.tanh(gi_n + r * h_n)
        return (1.0 - z) * n + z * h

    # Static unrolled loop over the chunk (time_chunk is a compile-time const).
    for s in range(time_chunk):
        # forward direction: local timestep s of chunk c
        h_f = gru_cell(gif_ref[0, s], gif_ref[1, s], gif_ref[2, s],
                       hf_ref[...], 0)
        hf_ref[...] = h_f
        of_ref[s] = h_f.astype(of_ref.dtype)

        # backward direction: local timestep (Tc-1-s) of chunk (nc-1-c)
        sl = time_chunk - 1 - s
        h_b = gru_cell(gib_ref[0, sl], gib_ref[1, sl], gib_ref[2, sl],
                       hb_ref[...], 1)
        hb_ref[...] = h_b
        ob_ref[sl] = h_b.astype(ob_ref.dtype)


def bigru_recurrence(gi, w_hh, b_hh, *, time_chunk):
    """Fused bidirectional recurrence.  gi: (2, 3, T, B, H) f32.

    Returns (out_f, out_b), each (T, B, H) bf16.  The backward direction's time
    reversal is expressed only through index_maps (no data flips); the same gi
    array is bound twice with different direction/chunk index_maps.
    """
    _, _, T, B, H = gi.shape
    nc = T // time_chunk
    kernel = functools.partial(bigru_chunk_kernel, time_chunk=time_chunk)
    return pl.pallas_call(
        kernel,
        out_shape=(jax.ShapeDtypeStruct((T, B, H), jnp.bfloat16),
                   jax.ShapeDtypeStruct((T, B, H), jnp.bfloat16)),
        grid_spec=pltpu.PrefetchScalarGridSpec(
            num_scalar_prefetch=0,
            grid=(nc,),
            in_specs=[
                pl.BlockSpec((None, 3, time_chunk, B, H),
                             lambda c: (0, 0, c, 0, 0)),
                pl.BlockSpec((None, 3, time_chunk, B, H),
                             lambda c: (1, 0, nc - 1 - c, 0, 0)),
                pl.BlockSpec((2, 3, H, H), lambda c: (0, 0, 0, 0)),
                pl.BlockSpec((2, 3, 1, H), lambda c: (0, 0, 0, 0)),
            ],
            out_specs=[
                pl.BlockSpec((time_chunk, B, H), lambda c: (c, 0, 0)),
                pl.BlockSpec((time_chunk, B, H), lambda c: (nc - 1 - c, 0, 0)),
            ],
            scratch_shapes=[pltpu.VMEM((B, H), jnp.float32),
                            pltpu.VMEM((B, H), jnp.float32)],
        ),
        compiler_params=pltpu.CompilerParams(
            dimension_semantics=("arbitrary",)),  # sequential: h_t depends on h_{t-1}
    )(gi, gi, w_hh, b_hh)


# ------------------------------ final Linear ---------------------------------
def linear_dual_kernel(xf_ref, xb_ref, w_ref, b_ref, o_ref):
    # xf/xb: (tm, H) bf16, w: (2, H, J) bf16, b: (1, J) f32, o: (tm, J) f32
    acc = jnp.dot(xf_ref[...].astype(jnp.bfloat16), w_ref[0],
                  preferred_element_type=jnp.float32)
    acc = acc + jnp.dot(xb_ref[...].astype(jnp.bfloat16), w_ref[1],
                        preferred_element_type=jnp.float32)
    o_ref[...] = acc + b_ref[...]


def linear_dual(x_f, x_b, w, b, *, row_tile):
    """y = [x_f | x_b] @ W + b  without materializing the concat."""
    M, H = x_f.shape
    J = w.shape[2]
    return pl.pallas_call(
        linear_dual_kernel,
        out_shape=jax.ShapeDtypeStruct((M, J), jnp.float32),
        grid_spec=pl.GridSpec(
            grid=(M // row_tile,),
            in_specs=[
                pl.BlockSpec((row_tile, H), lambda m: (m, 0)),
                pl.BlockSpec((row_tile, H), lambda m: (m, 0)),
                pl.BlockSpec((2, H, J), lambda m: (0, 0, 0)),
                pl.BlockSpec((1, J), lambda m: (0, 0)),
            ],
            out_specs=pl.BlockSpec((row_tile, J), lambda m: (m, 0)),
        ),
        compiler_params=pltpu.CompilerParams(
            dimension_semantics=("parallel",)),
    )(x_f, x_b, w, b)


# ------------------------------ Encoder forward ------------------------------
def encoder_forward(x_ids, params):
    """x_ids: (B, T) int32 token indices.  Returns (B, T, JOINER_DIM) float32."""
    B, T = x_ids.shape
    B_pad = -(-B // 8) * 8              # pad batch to a multiple of 8 sublanes
    if B_pad != B:
        x_ids = jnp.pad(x_ids, ((0, B_pad - B), (0, 0)))

    # Embedding gather directly in time-major (T, B_pad, D): no activation transpose.
    emb = jnp.take(params["embed"], x_ids.T, axis=0).astype(jnp.bfloat16)
    H = ENCODER_DIM
    D = emb.shape[-1]
    M = T * B_pad
    tm = _row_tile(M)
    tc = _time_chunk(T)

    x_f = emb.reshape(M, D)
    x_b = None

    for layer in range(NUM_LAYERS):
        p = params["gru"][layer]
        # Hoisted, parallel input projections: both directions + all gates in
        # one call, emitted gate-major.
        if layer == 0:
            gi = gate_proj_single(x_f, p["w_ih"], p["b_ih"], row_tile=tm)
        else:
            gi = gate_proj_dual(x_f, x_b, p["w_ih"], p["b_ih"], row_tile=tm)
        gi = gi.reshape(2, 3, T, B_pad, H)   # contiguous reshape (free)

        # Fused fwd+bwd sequential recurrence; outputs kept as separate halves.
        out_f, out_b = bigru_recurrence(gi, p["w_hh"], p["b_hh"], time_chunk=tc)
        x_f = out_f.reshape(M, H)
        x_b = out_b.reshape(M, H)

    # Final row-tiled Linear over the two direction halves (no concat).
    y = linear_dual(x_f, x_b, params["lin_w"], params["lin_b"], row_tile=tm)
    # Single output-side layout fix-up to PyTorch's batch_first (B, T, J).
    y = y.reshape(T, B_pad, JOINER_DIM).transpose(1, 0, 2)
    return y[:B]


# ------------------------------- Param init ----------------------------------
def make_params(key):
    params = {}
    k_embed, k_lin_w, k_lin_b, k_gru = jax.random.split(key, 4)
    H = ENCODER_DIM
    J = JOINER_DIM

    # nn.Embedding: N(0, 1)
    params["embed"] = jax.random.normal(k_embed, (NUM_INPUTS, H), jnp.float32)

    # nn.Linear(2*encoder_dim, joiner_dim): U(-1/sqrt(fan_in), 1/sqrt(fan_in))
    # stored as (2, H, J): [fwd-half rows, bwd-half rows], bf16 for the MXU.
    kb = 1.0 / float(2 * H) ** 0.5
    params["lin_w"] = jax.random.uniform(
        k_lin_w, (2, H, J), jnp.float32, -kb, kb).astype(jnp.bfloat16)
    params["lin_b"] = jax.random.uniform(k_lin_b, (1, J), jnp.float32, -kb, kb)

    # GRU: U(-1/sqrt(H), 1/sqrt(H)); packed, direction+gate-major transposed layouts:
    #   layer 0:  w_ih (2, 3, D, H);  layers 1-2: w_ih (2, 3, 2, H, H) (fwd/bwd halves)
    #   w_hh (2, 3, H, H);  b_ih/b_hh (2, 3, 1, H).  Weights bf16, biases f32.
    kg = 1.0 / float(H) ** 0.5
    gkeys = jax.random.split(k_gru, NUM_LAYERS * 4)
    layers = []
    for layer in range(NUM_LAYERS):
        lk = gkeys[layer * 4:(layer + 1) * 4]
        wih_shape = (2, 3, ENCODER_DIM, H) if layer == 0 else (2, 3, 2, H, H)
        lp = {
            "w_ih": jax.random.uniform(
                lk[0], wih_shape, jnp.float32, -kg, kg).astype(jnp.bfloat16),
            "w_hh": jax.random.uniform(
                lk[1], (2, 3, H, H), jnp.float32, -kg, kg).astype(jnp.bfloat16),
            "b_ih": jax.random.uniform(lk[2], (2, 3, 1, H), jnp.float32, -kg, kg),
            "b_hh": jax.random.uniform(lk[3], (2, 3, 1, H), jnp.float32, -kg, kg),
        }
        layers.append(lp)
    params["gru"] = layers
    return params


if __name__ == "__main__":
    key = jax.random.PRNGKey(0)
    k_params, k_x = jax.random.split(key)
    params = make_params(k_params)

    B, T = 2, 8
    x_ids = jax.random.randint(k_x, (B, T), 0, NUM_INPUTS, dtype=jnp.int32)

    fwd = jax.jit(encoder_forward)
    out = fwd(x_ids, params)
    out = jax.block_until_ready(out)
    assert out.shape == (B, T, JOINER_DIM), out.shape
    assert out.dtype == jnp.float32
    print("KERNEL_OK")
</pallas_src>

<mosaic_0001>
module attributes {stable_mosaic.version = 11 : i64} {
  func.func @gate_proj_single_kernel(%arg0: i32, %arg1: i32, %arg2: i32, %arg3: memref<64x32xbf16, #tpu.memory_space<vmem>>, %arg4: memref<1x1x32x32xbf16, #tpu.memory_space<vmem>>, %arg5: memref<1x1x1x32xf32, #tpu.memory_space<vmem>>, %arg6: memref<1x1x64x32xf32, #tpu.memory_space<vmem>>) attributes {dimension_semantics = [#tpu.dimension_semantics<parallel>, #tpu.dimension_semantics<parallel>, #tpu.dimension_semantics<parallel>], iteration_bounds = array<i64: 2, 3, 1>, scalar_prefetch = 0 : i64, scratch_operands = 0 : i64, tpu.core_type = #tpu.core_type<tc>, window_params = [{transform_indices = @transform_0, window_bounds = array<i64: 64, 32>}, {transform_indices = @transform_1, window_bounds = array<i64: 1, 1, 32, 32>}, {transform_indices = @transform_2, window_bounds = array<i64: 1, 1, 1, 32>}, {transform_indices = @transform_3, window_bounds = array<i64: 1, 1, 64, 32>}]} {
    %c0 = arith.constant 0 : index
    %c0_0 = arith.constant 0 : index
    %0 = vector.load %arg3[%c0, %c0_0] : memref<64x32xbf16, #tpu.memory_space<vmem>>, vector<64x32xbf16>
    %c0_1 = arith.constant 0 : index
    %c0_2 = arith.constant 0 : index
    %c0_3 = arith.constant 0 : index
    %c0_4 = arith.constant 0 : index
    %1 = vector.load %arg4[%c0_1, %c0_2, %c0_3, %c0_4] : memref<1x1x32x32xbf16, #tpu.memory_space<vmem>>, vector<1x1x32x32xbf16>
    %2 = vector.shape_cast %1 : vector<1x1x32x32xbf16> to vector<32x32xbf16>
    %cst = arith.constant dense<0.000000e+00> : vector<64x32xf32>
    %3 = tpu.matmul %0, %2, %cst {dimension_numbers = #tpu.dot_dimension_numbers<[1], [0], [0], [1], [0, 0, 1, 1], [], []>} : vector<64x32xbf16>, vector<32x32xbf16>, vector<64x32xf32> -> vector<64x32xf32>
    %c0_5 = arith.constant 0 : index
    %c0_6 = arith.constant 0 : index
    %c0_7 = arith.constant 0 : index
    %c0_8 = arith.constant 0 : index
    %4 = vector.load %arg5[%c0_5, %c0_6, %c0_7, %c0_8] : memref<1x1x1x32xf32, #tpu.memory_space<vmem>>, vector<1x1x1x32xf32>
    %5 = vector.shape_cast %4 : vector<1x1x1x32xf32> to vector<1x32xf32>
    %6 = vector.broadcast %5 : vector<1x32xf32> to vector<64x32xf32>
    %7 = arith.addf %3, %6 : vector<64x32xf32>
    %c0_9 = arith.constant 0 : index
    %c0_10 = arith.constant 0 : index
    %c0_11 = arith.constant 0 : index
    %c0_12 = arith.constant 0 : index
    %8 = vector.load %arg6[%c0_9, %c0_10, %c0_11, %c0_12] : memref<1x1x64x32xf32, #tpu.memory_space<vmem>>, vector<1x1x64x32xf32>
    %9 = vector.shape_cast %8 : vector<1x1x64x32xf32> to vector<64x32xf32>
    %10 = vector.shape_cast %7 : vector<64x32xf32> to vector<1x1x64x32xf32>
    tpu.vector_store %arg6[%c0_9, %c0_10, %c0_11, %c0_12], %10 {strides = array<i32>} : memref<1x1x64x32xf32, #tpu.memory_space<vmem>>, vector<1x1x64x32xf32>,
    return
  }
  func.func @transform_0(%arg0: i32, %arg1: i32, %arg2: i32) -> (i32, i32) {
    %c0_i32 = arith.constant 0 : i32
    %c0_i32_0 = arith.constant 0 : i32
    return %arg2, %c0_i32 : i32, i32
  }
  func.func @transform_1(%arg0: i32, %arg1: i32, %arg2: i32) -> (i32, i32, i32, i32) {
    %c0_i32 = arith.constant 0 : i32
    %c0_i32_0 = arith.constant 0 : i32
    %c0_i32_1 = arith.constant 0 : i32
    return %arg0, %arg1, %c0_i32, %c0_i32_0 : i32, i32, i32, i32
  }
  func.func @transform_2(%arg0: i32, %arg1: i32, %arg2: i32) -> (i32, i32, i32, i32) {
    %c0_i32 = arith.constant 0 : i32
    %c0_i32_0 = arith.constant 0 : i32
    %c0_i32_1 = arith.constant 0 : i32
    return %arg0, %arg1, %c0_i32, %c0_i32_0 : i32, i32, i32, i32
  }
  func.func @transform_3(%arg0: i32, %arg1: i32, %arg2: i32) -> (i32, i32, i32, i32) {
    %c0_i32 = arith.constant 0 : i32
    %c0_i32_0 = arith.constant 0 : i32
    return %arg0, %arg1, %arg2, %c0_i32 : i32, i32, i32, i32
  }
}

module attributes {stable_mosaic.version = 11 : i64} {
  func.func @gate_proj_dual_kernel(%arg0: i32, %arg1: i32, %arg2: i32, %arg3: memref<64x32xbf16, #tpu.memory_space<vmem>>, %arg4: memref<64x32xbf16, #tpu.memory_space<vmem>>, %arg5: memref<1x1x2x32x32xbf16, #tpu.memory_space<vmem>>, %arg6: memref<1x1x1x32xf32, #tpu.memory_space<vmem>>, %arg7: memref<1x1x64x32xf32, #tpu.memory_space<vmem>>) attributes {dimension_semantics = [#tpu.dimension_semantics<parallel>, #tpu.dimension_semantics<parallel>, #tpu.dimension_semantics<parallel>], iteration_bounds = array<i64: 2, 3, 1>, scalar_prefetch = 0 : i64, scratch_operands = 0 : i64, tpu.core_type = #tpu.core_type<tc>, window_params = [{transform_indices = @transform_0, window_bounds = array<i64: 64, 32>}, {transform_indices = @transform_1, window_bounds = array<i64: 64, 32>}, {transform_indices = @transform_2, window_bounds = array<i64: 1, 1, 2, 32, 32>}, {transform_indices = @transform_3, window_bounds = array<i64: 1, 1, 1, 32>}, {transform_indices = @transform_4, window_bounds = array<i64: 1, 1, 64, 32>}]} {
    %c0 = arith.constant 0 : index
    %c0_0 = arith.constant 0 : index
    %0 = vector.load %arg3[%c0, %c0_0] : memref<64x32xbf16, #tpu.memory_space<vmem>>, vector<64x32xbf16>
    %c0_1 = arith.constant 0 : index
    %c0_2 = arith.constant 0 : index
    %c0_3 = arith.constant 0 : index
    %c0_4 = arith.constant 0 : index
    %c0_5 = arith.constant 0 : index
    %1 = vector.load %arg5[%c0_1, %c0_2, %c0_3, %c0_4, %c0_5] : memref<1x1x2x32x32xbf16, #tpu.memory_space<vmem>>, vector<1x1x1x32x32xbf16>
    %2 = vector.shape_cast %1 : vector<1x1x1x32x32xbf16> to vector<32x32xbf16>
    %cst = arith.constant dense<0.000000e+00> : vector<64x32xf32>
    %3 = tpu.matmul %0, %2, %cst {dimension_numbers = #tpu.dot_dimension_numbers<[1], [0], [0], [1], [0, 0, 1, 1], [], []>} : vector<64x32xbf16>, vector<32x32xbf16>, vector<64x32xf32> -> vector<64x32xf32>
    %c0_6 = arith.constant 0 : index
    %c0_7 = arith.constant 0 : index
    %4 = vector.load %arg4[%c0_6, %c0_7] : memref<64x32xbf16, #tpu.memory_space<vmem>>, vector<64x32xbf16>
    %c0_8 = arith.constant 0 : index
    %c0_9 = arith.constant 0 : index
    %c1 = arith.constant 1 : index
    %c0_10 = arith.constant 0 : index
    %c0_11 = arith.constant 0 : index
    %5 = vector.load %arg5[%c0_8, %c0_9, %c1, %c0_10, %c0_11] : memref<1x1x2x32x32xbf16, #tpu.memory_space<vmem>>, vector<1x1x1x32x32xbf16>
    %6 = vector.shape_cast %5 : vector<1x1x1x32x32xbf16> to vector<32x32xbf16>
    %cst_12 = arith.constant dense<0.000000e+00> : vector<64x32xf32>
    %7 = tpu.matmul %4, %6, %cst_12 {dimension_numbers = #tpu.dot_dimension_numbers<[1], [0], [0], [1], [0, 0, 1, 1], [], []>} : vector<64x32xbf16>, vector<32x32xbf16>, vector<64x32xf32> -> vector<64x32xf32>
    %8 = arith.addf %3, %7 : vector<64x32xf32>
    %c0_13 = arith.constant 0 : index
    %c0_14 = arith.constant 0 : index
    %c0_15 = arith.constant 0 : index
    %c0_16 = arith.constant 0 : index
    %9 = vector.load %arg6[%c0_13, %c0_14, %c0_15, %c0_16] : memref<1x1x1x32xf32, #tpu.memory_space<vmem>>, vector<1x1x1x32xf32>
    %10 = vector.shape_cast %9 : vector<1x1x1x32xf32> to vector<1x32xf32>
    %11 = vector.broadcast %10 : vector<1x32xf32> to vector<64x32xf32>
    %12 = arith.addf %8, %11 : vector<64x32xf32>
    %c0_17 = arith.constant 0 : index
    %c0_18 = arith.constant 0 : index
    %c0_19 = arith.constant 0 : index
    %c0_20 = arith.constant 0 : index
    %13 = vector.load %arg7[%c0_17, %c0_18, %c0_19, %c0_20] : memref<1x1x64x32xf32, #tpu.memory_space<vmem>>, vector<1x1x64x32xf32>
    %14 = vector.shape_cast %13 : vector<1x1x64x32xf32> to vector<64x32xf32>
    %15 = vector.shape_cast %12 : vector<64x32xf32> to vector<1x1x64x32xf32>
    tpu.vector_store %arg7[%c0_17, %c0_18, %c0_19, %c0_20], %15 {strides = array<i32>} : memref<1x1x64x32xf32, #tpu.memory_space<vmem>>, vector<1x1x64x32xf32>,
    return
  }
  func.func @transform_0(%arg0: i32, %arg1: i32, %arg2: i32) -> (i32, i32) {
    %c0_i32 = arith.constant 0 : i32
    %c0_i32_0 = arith.constant 0 : i32
    return %arg2, %c0_i32 : i32, i32
  }
  func.func @transform_1(%arg0: i32, %arg1: i32, %arg2: i32) -> (i32, i32) {
    %c0_i32 = arith.constant 0 : i32
    %c0_i32_0 = arith.constant 0 : i32
    return %arg2, %c0_i32 : i32, i32
  }
  func.func @transform_2(%arg0: i32, %arg1: i32, %arg2: i32) -> (i32, i32, i32, i32, i32) {
    %c0_i32 = arith.constant 0 : i32
    %c0_i32_0 = arith.constant 0 : i32
    %c0_i32_1 = arith.constant 0 : i32
    %c0_i32_2 = arith.constant 0 : i32
    return %arg0, %arg1, %c0_i32, %c0_i32_0, %c0_i32_1 : i32, i32, i32, i32, i32
  }
  func.func @transform_3(%arg0: i32, %arg1: i32, %arg2: i32) -> (i32, i32, i32, i32) {
    %c0_i32 = arith.constant 0 : i32
    %c0_i32_0 = arith.constant 0 : i32
    %c0_i32_1 = arith.constant 0 : i32
    return %arg0, %arg1, %c0_i32, %c0_i32_0 : i32, i32, i32, i32
  }
  func.func @transform_4(%arg0: i32, %arg1: i32, %arg2: i32) -> (i32, i32, i32, i32) {
    %c0_i32 = arith.constant 0 : i32
    %c0_i32_0 = arith.constant 0 : i32
    return %arg0, %arg1, %arg2, %c0_i32 : i32, i32, i32, i32
  }
}

module attributes {stable_mosaic.version = 11 : i64} {
  func.func @bigru_chunk_kernel(%arg0: i32, %arg1: memref<1x3x8x8x32xf32, #tpu.memory_space<vmem>>, %arg2: memref<1x3x8x8x32xf32, #tpu.memory_space<vmem>>, %arg3: memref<2x3x32x32xbf16, #tpu.memory_space<vmem>>, %arg4: memref<2x3x1x32xf32, #tpu.memory_space<vmem>>, %arg5: memref<8x8x32xbf16, #tpu.memory_space<vmem>>, %arg6: memref<8x8x32xbf16, #tpu.memory_space<vmem>>, %arg7: memref<8x32xf32, #tpu.memory_space<vmem>>, %arg8: memref<8x32xf32, #tpu.memory_space<vmem>>) attributes {dimension_semantics = [#tpu.dimension_semantics<arbitrary>], iteration_bounds = array<i64: 1>, scalar_prefetch = 0 : i64, scratch_operands = 2 : i64, tpu.core_type = #tpu.core_type<tc>, window_params = [{transform_indices = @transform_0, window_bounds = array<i64: 1, 3, 8, 8, 32>}, {transform_indices = @transform_1, window_bounds = array<i64: 1, 3, 8, 8, 32>}, {pipeline_mode = #tpu.pipeline_mode<synchronous>, transform_indices = @transform_2, window_bounds = array<i64: 2, 3, 32, 32>}, {pipeline_mode = #tpu.pipeline_mode<synchronous>, transform_indices = @transform_3, window_bounds = array<i64: 2, 3, 1, 32>}, {transform_indices = @transform_4, window_bounds = array<i64: 8, 8, 32>}, {transform_indices = @transform_5, window_bounds = array<i64: 8, 8, 32>}]} {
    %c0_i32 = arith.constant 0 : i32
    %0 = arith.cmpi eq, %arg0, %c0_i32 : i32
    %1 = arith.extui %0 : i1 to i32
    %c0_i32_0 = arith.constant 0 : i32
    %2 = arith.cmpi ne, %1, %c0_i32_0 : i32
    scf.if %2 {
      %cst_824 = arith.constant 0.000000e+00 : f32
      %867 = vector.broadcast %cst_824 : f32 to vector<8x32xf32>
      %c0_825 = arith.constant 0 : index
      %c0_826 = arith.constant 0 : index
      %868 = vector.load %arg7[%c0_825, %c0_826] : memref<8x32xf32, #tpu.memory_space<vmem>>, vector<8x32xf32>
      tpu.vector_store %arg7[%c0_825, %c0_826], %867 {strides = array<i32>} : memref<8x32xf32, #tpu.memory_space<vmem>>, vector<8x32xf32>,
      %cst_827 = arith.constant 0.000000e+00 : f32
      %869 = vector.broadcast %cst_827 : f32 to vector<8x32xf32>
      %c0_828 = arith.constant 0 : index
      %c0_829 = arith.constant 0 : index
      %870 = vector.load %arg8[%c0_828, %c0_829] : memref<8x32xf32, #tpu.memory_space<vmem>>, vector<8x32xf32>
      tpu.vector_store %arg8[%c0_828, %c0_829], %869 {strides = array<i32>} : memref<8x32xf32, #tpu.memory_space<vmem>>, vector<8x32xf32>,
    } else {
    }
    %c0 = arith.constant 0 : index
    %c0_1 = arith.constant 0 : index
    %c0_2 = arith.constant 0 : index
    %c0_3 = arith.constant 0 : index
    %c0_4 = arith.constant 0 : index
    %3 = vector.load %arg1[%c0, %c0_1, %c0_2, %c0_3, %c0_4] : memref<1x3x8x8x32xf32, #tpu.memory_space<vmem>>, vector<1x1x1x8x32xf32>
    %4 = vector.shape_cast %3 : vector<1x1x1x8x32xf32> to vector<8x32xf32>
    %c0_5 = arith.constant 0 : index
    %c1 = arith.constant 1 : index
    %c0_6 = arith.constant 0 : index
    %c0_7 = arith.constant 0 : index
    %c0_8 = arith.constant 0 : index
    %5 = vector.load %arg1[%c0_5, %c1, %c0_6, %c0_7, %c0_8] : memref<1x3x8x8x32xf32, #tpu.memory_space<vmem>>, vector<1x1x1x8x32xf32>
    %6 = vector.shape_cast %5 : vector<1x1x1x8x32xf32> to vector<8x32xf32>
    %c0_9 = arith.constant 0 : index
    %c2 = arith.constant 2 : index
    %c0_10 = arith.constant 0 : index
    %c0_11 = arith.constant 0 : index
    %c0_12 = arith.constant 0 : index
    %7 = vector.load %arg1[%c0_9, %c2, %c0_10, %c0_11, %c0_12] : memref<1x3x8x8x32xf32, #tpu.memory_space<vmem>>, vector<1x1x1x8x32xf32>
    %8 = vector.shape_cast %7 : vector<1x1x1x8x32xf32> to vector<8x32xf32>
    %c0_13 = arith.constant 0 : index
    %c0_14 = arith.constant 0 : index
    %9 = vector.load %arg7[%c0_13, %c0_14] : memref<8x32xf32, #tpu.memory_space<vmem>>, vector<8x32xf32>
    %10 = arith.truncf %9 : vector<8x32xf32> to vector<8x32xbf16>
    %c0_15 = arith.constant 0 : index
    %c0_16 = arith.constant 0 : index
    %c0_17 = arith.constant 0 : index
    %c0_18 = arith.constant 0 : index
    %11 = vector.load %arg3[%c0_15, %c0_16, %c0_17, %c0_18] : memref<2x3x32x32xbf16, #tpu.memory_space<vmem>>, vector<1x1x32x32xbf16>
    %12 = vector.shape_cast %11 : vector<1x1x32x32xbf16> to vector<32x32xbf16>
    %cst = arith.constant dense<0.000000e+00> : vector<8x32xf32>
    %13 = tpu.matmul %10, %12, %cst {dimension_numbers = #tpu.dot_dimension_numbers<[1], [0], [0], [1], [0, 0, 1, 1], [], []>} : vector<8x32xbf16>, vector<32x32xbf16>, vector<8x32xf32> -> vector<8x32xf32>
    %c0_19 = arith.constant 0 : index
    %c0_20 = arith.constant 0 : index
    %c0_21 = arith.constant 0 : index
    %c0_22 = arith.constant 0 : index
    %14 = vector.load %arg4[%c0_19, %c0_20, %c0_21, %c0_22] : memref<2x3x1x32xf32, #tpu.memory_space<vmem>>, vector<1x1x1x32xf32>
    %15 = vector.shape_cast %14 : vector<1x1x1x32xf32> to vector<1x32xf32>
    %16 = vector.broadcast %15 : vector<1x32xf32> to vector<8x32xf32>
    %17 = arith.addf %13, %16 : vector<8x32xf32>
    %c0_23 = arith.constant 0 : index
    %c1_24 = arith.constant 1 : index
    %c0_25 = arith.constant 0 : index
    %c0_26 = arith.constant 0 : index
    %18 = vector.load %arg3[%c0_23, %c1_24, %c0_25, %c0_26] : memref<2x3x32x32xbf16, #tpu.memory_space<vmem>>, vector<1x1x32x32xbf16>
    %19 = vector.shape_cast %18 : vector<1x1x32x32xbf16> to vector<32x32xbf16>
    %cst_27 = arith.constant dense<0.000000e+00> : vector<8x32xf32>
    %20 = tpu.matmul %10, %19, %cst_27 {dimension_numbers = #tpu.dot_dimension_numbers<[1], [0], [0], [1], [0, 0, 1, 1], [], []>} : vector<8x32xbf16>, vector<32x32xbf16>, vector<8x32xf32> -> vector<8x32xf32>
    %c0_28 = arith.constant 0 : index
    %c1_29 = arith.constant 1 : index
    %c0_30 = arith.constant 0 : index
    %c0_31 = arith.constant 0 : index
    %21 = vector.load %arg4[%c0_28, %c1_29, %c0_30, %c0_31] : memref<2x3x1x32xf32, #tpu.memory_space<vmem>>, vector<1x1x1x32xf32>
    %22 = vector.shape_cast %21 : vector<1x1x1x32xf32> to vector<1x32xf32>
    %23 = vector.broadcast %22 : vector<1x32xf32> to vector<8x32xf32>
    %24 = arith.addf %20, %23 : vector<8x32xf32>
    %c0_32 = arith.constant 0 : index
    %c2_33 = arith.constant 2 : index
    %c0_34 = arith.constant 0 : index
    %c0_35 = arith.constant 0 : index
    %25 = vector.load %arg3[%c0_32, %c2_33, %c0_34, %c0_35] : memref<2x3x32x32xbf16, #tpu.memory_space<vmem>>, vector<1x1x32x32xbf16>
    %26 = vector.shape_cast %25 : vector<1x1x32x32xbf16> to vector<32x32xbf16>
    %cst_36 = arith.constant dense<0.000000e+00> : vector<8x32xf32>
    %27 = tpu.matmul %10, %26, %cst_36 {dimension_numbers = #tpu.dot_dimension_numbers<[1], [0], [0], [1], [0, 0, 1, 1], [], []>} : vector<8x32xbf16>, vector<32x32xbf16>, vector<8x32xf32> -> vector<8x32xf32>
    %c0_37 = arith.constant 0 : index
    %c2_38 = arith.constant 2 : index
    %c0_39 = arith.constant 0 : index
    %c0_40 = arith.constant 0 : index
    %28 = vector.load %arg4[%c0_37, %c2_38, %c0_39, %c0_40] : memref<2x3x1x32xf32, #tpu.memory_space<vmem>>, vector<1x1x1x32xf32>
    %29 = vector.shape_cast %28 : vector<1x1x1x32xf32> to vector<1x32xf32>
    %30 = vector.broadcast %29 : vector<1x32xf32> to vector<8x32xf32>
    %31 = arith.addf %27, %30 : vector<8x32xf32>
    %32 = arith.addf %4, %17 : vector<8x32xf32>
    %33 = arith.negf %32 : vector<8x32xf32>
    %34 = math.exp %33 : vector<8x32xf32>
    %cst_41 = arith.constant 1.000000e+00 : f32
    %35 = vector.broadcast %cst_41 : f32 to vector<8x32xf32>
    %36 = arith.addf %35, %34 : vector<8x32xf32>
    %37 = arith.divf %35, %36 : vector<8x32xf32>
    %38 = arith.addf %6, %24 : vector<8x32xf32>
    %39 = arith.negf %38 : vector<8x32xf32>
    %40 = math.exp %39 : vector<8x32xf32>
    %cst_42 = arith.constant 1.000000e+00 : f32
    %41 = vector.broadcast %cst_42 : f32 to vector<8x32xf32>
    %42 = arith.addf %41, %40 : vector<8x32xf32>
    %43 = arith.divf %41, %42 : vector<8x32xf32>
    %44 = arith.mulf %37, %31 : vector<8x32xf32>
    %45 = arith.addf %8, %44 : vector<8x32xf32>
    %46 = math.tanh %45 : vector<8x32xf32>
    %cst_43 = arith.constant 1.000000e+00 : f32
    %47 = vector.broadcast %cst_43 : f32 to vector<8x32xf32>
    %48 = arith.subf %47, %43 : vector<8x32xf32>
    %49 = arith.mulf %48, %46 : vector<8x32xf32>
    %50 = arith.mulf %43, %9 : vector<8x32xf32>
    %51 = arith.addf %49, %50 : vector<8x32xf32>
    %c0_44 = arith.constant 0 : index
    %c0_45 = arith.constant 0 : index
    %52 = vector.load %arg7[%c0_44, %c0_45] : memref<8x32xf32, #tpu.memory_space<vmem>>, vector<8x32xf32>
    tpu.vector_store %arg7[%c0_44, %c0_45], %51 {strides = array<i32>} : memref<8x32xf32, #tpu.memory_space<vmem>>, vector<8x32xf32>,
    %53 = arith.truncf %51 : vector<8x32xf32> to vector<8x32xbf16>
    %c0_46 = arith.constant 0 : index
    %c0_47 = arith.constant 0 : index
    %c0_48 = arith.constant 0 : index
    %54 = vector.load %arg5[%c0_46, %c0_47, %c0_48] : memref<8x8x32xbf16, #tpu.memory_space<vmem>>, vector<1x8x32xbf16>
    %55 = vector.shape_cast %54 : vector<1x8x32xbf16> to vector<8x32xbf16>
    %56 = vector.shape_cast %53 : vector<8x32xbf16> to vector<1x8x32xbf16>
    tpu.vector_store %arg5[%c0_46, %c0_47, %c0_48], %56 {strides = array<i32>} : memref<8x8x32xbf16, #tpu.memory_space<vmem>>, vector<1x8x32xbf16>,
    %c0_49 = arith.constant 0 : index
    %c0_50 = arith.constant 0 : index
    %c7 = arith.constant 7 : index
    %c0_51 = arith.constant 0 : index
    %c0_52 = arith.constant 0 : index
    %57 = vector.load %arg2[%c0_49, %c0_50, %c7, %c0_51, %c0_52] : memref<1x3x8x8x32xf32, #tpu.memory_space<vmem>>, vector<1x1x1x8x32xf32>
    %58 = vector.shape_cast %57 : vector<1x1x1x8x32xf32> to vector<8x32xf32>
    %c0_53 = arith.constant 0 : index
    %c1_54 = arith.constant 1 : index
    %c7_55 = arith.constant 7 : index
    %c0_56 = arith.constant 0 : index
    %c0_57 = arith.constant 0 : index
    %59 = vector.load %arg2[%c0_53, %c1_54, %c7_55, %c0_56, %c0_57] : memref<1x3x8x8x32xf32, #tpu.memory_space<vmem>>, vector<1x1x1x8x32xf32>
    %60 = vector.shape_cast %59 : vector<1x1x1x8x32xf32> to vector<8x32xf32>
    %c0_58 = arith.constant 0 : index
    %c2_59 = arith.constant 2 : index
    %c7_60 = arith.constant 7 : index
    %c0_61 = arith.constant 0 : index
    %c0_62 = arith.constant 0 : index
    %61 = vector.load %arg2[%c0_58, %c2_59, %c7_60, %c0_61, %c0_62] : memref<1x3x8x8x32xf32, #tpu.memory_space<vmem>>, vector<1x1x1x8x32xf32>
    %62 = vector.shape_cast %61 : vector<1x1x1x8x32xf32> to vector<8x32xf32>
    %c0_63 = arith.constant 0 : index
    %c0_64 = arith.constant 0 : index
    %63 = vector.load %arg8[%c0_63, %c0_64] : memref<8x32xf32, #tpu.memory_space<vmem>>, vector<8x32xf32>
    %64 = arith.truncf %63 : vector<8x32xf32> to vector<8x32xbf16>
    %c1_65 = arith.constant 1 : index
    %c0_66 = arith.constant 0 : index
    %c0_67 = arith.constant 0 : index
    %c0_68 = arith.constant 0 : index
    %65 = vector.load %arg3[%c1_65, %c0_66, %c0_67, %c0_68] : memref<2x3x32x32xbf16, #tpu.memory_space<vmem>>, vector<1x1x32x32xbf16>
    %66 = vector.shape_cast %65 : vector<1x1x32x32xbf16> to vector<32x32xbf16>
    %cst_69 = arith.constant dense<0.000000e+00> : vector<8x32xf32>
    %67 = tpu.matmul %64, %66, %cst_69 {dimension_numbers = #tpu.dot_dimension_numbers<[1], [0], [0], [1], [0, 0, 1, 1], [], []>} : vector<8x32xbf16>, vector<32x32xbf16>, vector<8x32xf32> -> vector<8x32xf32>
    %c1_70 = arith.constant 1 : index
    %c0_71 = arith.constant 0 : index
    %c0_72 = arith.constant 0 : index
    %c0_73 = arith.constant 0 : index
    %68 = vector.load %arg4[%c1_70, %c0_71, %c0_72, %c0_73] : memref<2x3x1x32xf32, #tpu.memory_space<vmem>>, vector<1x1x1x32xf32>
    %69 = vector.shape_cast %68 : vector<1x1x1x32xf32> to vector<1x32xf32>
    %70 = vector.broadcast %69 : vector<1x32xf32> to vector<8x32xf32>
    %71 = arith.addf %67, %70 : vector<8x32xf32>
    %c1_74 = arith.constant 1 : index
    %c1_75 = arith.constant 1 : index
    %c0_76 = arith.constant 0 : index
    %c0_77 = arith.constant 0 : index
    %72 = vector.load %arg3[%c1_74, %c1_75, %c0_76, %c0_77] : memref<2x3x32x32xbf16, #tpu.memory_space<vmem>>, vector<1x1x32x32xbf16>
    %73 = vector.shape_cast %72 : vector<1x1x32x32xbf16> to vector<32x32xbf16>
    %cst_78 = arith.constant dense<0.000000e+00> : vector<8x32xf32>
    %74 = tpu.matmul %64, %73, %cst_78 {dimension_numbers = #tpu.dot_dimension_numbers<[1], [0], [0], [1], [0, 0, 1, 1], [], []>} : vector<8x32xbf16>, vector<32x32xbf16>, vector<8x32xf32> -> vector<8x32xf32>
    %c1_79 = arith.constant 1 : index
    %c1_80 = arith.constant 1 : index
    %c0_81 = arith.constant 0 : index
    %c0_82 = arith.constant 0 : index
    %75 = vector.load %arg4[%c1_79, %c1_80, %c0_81, %c0_82] : memref<2x3x1x32xf32, #tpu.memory_space<vmem>>, vector<1x1x1x32xf32>
    %76 = vector.shape_cast %75 : vector<1x1x1x32xf32> to vector<1x32xf32>
    %77 = vector.broadcast %76 : vector<1x32xf32> to vector<8x32xf32>
    %78 = arith.addf %74, %77 : vector<8x32xf32>
    %c1_83 = arith.constant 1 : index
    %c2_84 = arith.constant 2 : index
    %c0_85 = arith.constant 0 : index
    %c0_86 = arith.constant 0 : index
    %79 = vector.load %arg3[%c1_83, %c2_84, %c0_85, %c0_86] : memref<2x3x32x32xbf16, #tpu.memory_space<vmem>>, vector<1x1x32x32xbf16>
    %80 = vector.shape_cast %79 : vector<1x1x32x32xbf16> to vector<32x32xbf16>
    %cst_87 = arith.constant dense<0.000000e+00> : vector<8x32xf32>
    %81 = tpu.matmul %64, %80, %cst_87 {dimension_numbers = #tpu.dot_dimension_numbers<[1], [0], [0], [1], [0, 0, 1, 1], [], []>} : vector<8x32xbf16>, vector<32x32xbf16>, vector<8x32xf32> -> vector<8x32xf32>
    %c1_88 = arith.constant 1 : index
    %c2_89 = arith.constant 2 : index
    %c0_90 = arith.constant 0 : index
    %c0_91 = arith.constant 0 : index
    %82 = vector.load %arg4[%c1_88, %c2_89, %c0_90, %c0_91] : memref<2x3x1x32xf32, #tpu.memory_space<vmem>>, vector<1x1x1x32xf32>
    %83 = vector.shape_cast %82 : vector<1x1x1x32xf32> to vector<1x32xf32>
    %84 = vector.broadcast %83 : vector<1x32xf32> to vector<8x32xf32>
    %85 = arith.addf %81, %84 : vector<8x32xf32>
    %86 = arith.addf %58, %71 : vector<8x32xf32>
    %87 = arith.negf %86 : vector<8x32xf32>
    %88 = math.exp %87 : vector<8x32xf32>
    %cst_92 = arith.constant 1.000000e+00 : f32
    %89 = vector.broadcast %cst_92 : f32 to vector<8x32xf32>
    %90 = arith.addf %89, %88 : vector<8x32xf32>
    %91 = arith.divf %89, %90 : vector<8x32xf32>
    %92 = arith.addf %60, %78 : vector<8x32xf32>
    %93 = arith.negf %92 : vector<8x32xf32>
    %94 = math.exp %93 : vector<8x32xf32>
    %cst_93 = arith.constant 1.000000e+00 : f32
    %95 = vector.broadcast %cst_93 : f32 to vector<8x32xf32>
    %96 = arith.addf %95, %94 : vector<8x32xf32>
    %97 = arith.divf %95, %96 : vector<8x32xf32>
    %98 = arith.mulf %91, %85 : vector<8x32xf32>
    %99 = arith.addf %62, %98 : vector<8x32xf32>
    %100 = math.tanh %99 : vector<8x32xf32>
    %cst_94 = arith.constant 1.000000e+00 : f32
    %101 = vector.broadcast %cst_94 : f32 to vector<8x32xf32>
    %102 = arith.subf %101, %97 : vector<8x32xf32>
    %103 = arith.mulf %102, %100 : vector<8x32xf32>
    %104 = arith.mulf %97, %63 : vector<8x32xf32>
    %105 = arith.addf %103, %104 : vector<8x32xf32>
    %c0_95 = arith.constant 0 : index
    %c0_96 = arith.constant 0 : index
    %106 = vector.load %arg8[%c0_95, %c0_96] : memref<8x32xf32, #tpu.memory_space<vmem>>, vector<8x32xf32>
    tpu.vector_store %arg8[%c0_95, %c0_96], %105 {strides = array<i32>} : memref<8x32xf32, #tpu.memory_space<vmem>>, vector<8x32xf32>,
    %107 = arith.truncf %105 : vector<8x32xf32> to vector<8x32xbf16>
    %c7_97 = arith.constant 7 : index
    %c0_98 = arith.constant 0 : index
    %c0_99 = arith.constant 0 : index
    %108 = vector.load %arg6[%c7_97, %c0_98, %c0_99] : memref<8x8x32xbf16, #tpu.memory_space<vmem>>, vector<1x8x32xbf16>
    %109 = vector.shape_cast %108 : vector<1x8x32xbf16> to vector<8x32xbf16>
    %110 = vector.shape_cast %107 : vector<8x32xbf16> to vector<1x8x32xbf16>
    tpu.vector_store %arg6[%c7_97, %c0_98, %c0_99], %110 {strides = array<i32>} : memref<8x8x32xbf16, #tpu.memory_space<vmem>>, vector<1x8x32xbf16>,
    %c0_100 = arith.constant 0 : index
    %c0_101 = arith.constant 0 : index
    %c1_102 = arith.constant 1 : index
    %c0_103 = arith.constant 0 : index
    %c0_104 = arith.constant 0 : index
    %111 = vector.load %arg1[%c0_100, %c0_101, %c1_102, %c0_103, %c0_104] : memref<1x3x8x8x32xf32, #tpu.memory_space<vmem>>, vector<1x1x1x8x32xf32>
    %112 = vector.shape_cast %111 : vector<1x1x1x8x32xf32> to vector<8x32xf32>
    %c0_105 = arith.constant 0 : index
    %c1_106 = arith.constant 1 : index
    %c1_107 = arith.constant 1 : index
    %c0_108 = arith.constant 0 : index
    %c0_109 = arith.constant 0 : index
    %113 = vector.load %arg1[%c0_105, %c1_106, %c1_107, %c0_108, %c0_109] : memref<1x3x8x8x32xf32, #tpu.memory_space<vmem>>, vector<1x1x1x8x32xf32>
    %114 = vector.shape_cast %113 : vector<1x1x1x8x32xf32> to vector<8x32xf32>
    %c0_110 = arith.constant 0 : index
    %c2_111 = arith.constant 2 : index
    %c1_112 = arith.constant 1 : index
    %c0_113 = arith.constant 0 : index
    %c0_114 = arith.constant 0 : index
    %115 = vector.load %arg1[%c0_110, %c2_111, %c1_112, %c0_113, %c0_114] : memref<1x3x8x8x32xf32, #tpu.memory_space<vmem>>, vector<1x1x1x8x32xf32>
    %116 = vector.shape_cast %115 : vector<1x1x1x8x32xf32> to vector<8x32xf32>
    %c0_115 = arith.constant 0 : index
    %c0_116 = arith.constant 0 : index
    %117 = vector.load %arg7[%c0_115, %c0_116] : memref<8x32xf32, #tpu.memory_space<vmem>>, vector<8x32xf32>
    %118 = arith.truncf %117 : vector<8x32xf32> to vector<8x32xbf16>
    %c0_117 = arith.constant 0 : index
    %c0_118 = arith.constant 0 : index
    %c0_119 = arith.constant 0 : index
    %c0_120 = arith.constant 0 : index
    %119 = vector.load %arg3[%c0_117, %c0_118, %c0_119, %c0_120] : memref<2x3x32x32xbf16, #tpu.memory_space<vmem>>, vector<1x1x32x32xbf16>
    %120 = vector.shape_cast %119 : vector<1x1x32x32xbf16> to vector<32x32xbf16>
    %cst_121 = arith.constant dense<0.000000e+00> : vector<8x32xf32>
    %121 = tpu.matmul %118, %120, %cst_121 {dimension_numbers = #tpu.dot_dimension_numbers<[1], [0], [0], [1], [0, 0, 1, 1], [], []>} : vector<8x32xbf16>, vector<32x32xbf16>, vector<8x32xf32> -> vector<8x32xf32>
    %c0_122 = arith.constant 0 : index
    %c0_123 = arith.constant 0 : index
    %c0_124 = arith.constant 0 : index
    %c0_125 = arith.constant 0 : index
    %122 = vector.load %arg4[%c0_122, %c0_123, %c0_124, %c0_125] : memref<2x3x1x32xf32, #tpu.memory_space<vmem>>, vector<1x1x1x32xf32>
    %123 = vector.shape_cast %122 : vector<1x1x1x32xf32> to vector<1x32xf32>
    %124 = vector.broadcast %123 : vector<1x32xf32> to vector<8x32xf32>
    %125 = arith.addf %121, %124 : vector<8x32xf32>
    %c0_126 = arith.constant 0 : index
    %c1_127 = arith.constant 1 : index
    %c0_128 = arith.constant 0 : index
    %c0_129 = arith.constant 0 : index
    %126 = vector.load %arg3[%c0_126, %c1_127, %c0_128, %c0_129] : memref<2x3x32x32xbf16, #tpu.memory_space<vmem>>, vector<1x1x32x32xbf16>
    %127 = vector.shape_cast %126 : vector<1x1x32x32xbf16> to vector<32x32xbf16>
    %cst_130 = arith.constant dense<0.000000e+00> : vector<8x32xf32>
    %128 = tpu.matmul %118, %127, %cst_130 {dimension_numbers = #tpu.dot_dimension_numbers<[1], [0], [0], [1], [0, 0, 1, 1], [], []>} : vector<8x32xbf16>, vector<32x32xbf16>, vector<8x32xf32> -> vector<8x32xf32>
    %c0_131 = arith.constant 0 : index
    %c1_132 = arith.constant 1 : index
    %c0_133 = arith.constant 0 : index
    %c0_134 = arith.constant 0 : index
    %129 = vector.load %arg4[%c0_131, %c1_132, %c0_133, %c0_134] : memref<2x3x1x32xf32, #tpu.memory_space<vmem>>, vector<1x1x1x32xf32>
    %130 = vector.shape_cast %129 : vector<1x1x1x32xf32> to vector<1x32xf32>
    %131 = vector.broadcast %130 : vector<1x32xf32> to vector<8x32xf32>
    %132 = arith.addf %128, %131 : vector<8x32xf32>
    %c0_135 = arith.constant 0 : index
    %c2_136 = arith.constant 2 : index
    %c0_137 = arith.constant 0 : index
    %c0_138 = arith.constant 0 : index
    %133 = vector.load %arg3[%c0_135, %c2_136, %c0_137, %c0_138] : memref<2x3x32x32xbf16, #tpu.memory_space<vmem>>, vector<1x1x32x32xbf16>
    %134 = vector.shape_cast %133 : vector<1x1x32x32xbf16> to vector<32x32xbf16>
    %cst_139 = arith.constant dense<0.000000e+00> : vector<8x32xf32>
    %135 = tpu.matmul %118, %134, %cst_139 {dimension_numbers = #tpu.dot_dimension_numbers<[1], [0], [0], [1], [0, 0, 1, 1], [], []>} : vector<8x32xbf16>, vector<32x32xbf16>, vector<8x32xf32> -> vector<8x32xf32>
    %c0_140 = arith.constant 0 : index
    %c2_141 = arith.constant 2 : index
    %c0_142 = arith.constant 0 : index
    %c0_143 = arith.constant 0 : index
    %136 = vector.load %arg4[%c0_140, %c2_141, %c0_142, %c0_143] : memref<2x3x1x32xf32, #tpu.memory_space<vmem>>, vector<1x1x1x32xf32>
    %137 = vector.shape_cast %136 : vector<1x1x1x32xf32> to vector<1x32xf32>
    %138 = vector.broadcast %137 : vector<1x32xf32> to vector<8x32xf32>
    %139 = arith.addf %135, %138 : vector<8x32xf32>
    %140 = arith.addf %112, %125 : vector<8x32xf32>
    %141 = arith.negf %140 : vector<8x32xf32>
    %142 = math.exp %141 : vector<8x32xf32>
    %cst_144 = arith.constant 1.000000e+00 : f32
    %143 = vector.broadcast %cst_144 : f32 to vector<8x32xf32>
    %144 = arith.addf %143, %142 : vector<8x32xf32>
    %145 = arith.divf %143, %144 : vector<8x32xf32>
    %146 = arith.addf %114, %132 : vector<8x32xf32>
    %147 = arith.negf %146 : vector<8x32xf32>
    %148 = math.exp %147 : vector<8x32xf32>
    %cst_145 = arith.constant 1.000000e+00 : f32
    %149 = vector.broadcast %cst_145 : f32 to vector<8x32xf32>
    %150 = arith.addf %149, %148 : vector<8x32xf32>
    %151 = arith.divf %149, %150 : vector<8x32xf32>
    %152 = arith.mulf %145, %139 : vector<8x32xf32>
    %153 = arith.addf %116, %152 : vector<8x32xf32>
    %154 = math.tanh %153 : vector<8x32xf32>
    %cst_146 = arith.constant 1.000000e+00 : f32
    %155 = vector.broadcast %cst_146 : f32 to vector<8x32xf32>
    %156 = arith.subf %155, %151 : vector<8x32xf32>
    %157 = arith.mulf %156, %154 : vector<8x32xf32>
    %158 = arith.mulf %151, %117 : vector<8x32xf32>
    %159 = arith.addf %157, %158 : vector<8x32xf32>
    %c0_147 = arith.constant 0 : index
    %c0_148 = arith.constant 0 : index
    %160 = vector.load %arg7[%c0_147, %c0_148] : memref<8x32xf32, #tpu.memory_space<vmem>>, vector<8x32xf32>
    tpu.vector_store %arg7[%c0_147, %c0_148], %159 {strides = array<i32>} : memref<8x32xf32, #tpu.memory_space<vmem>>, vector<8x32xf32>,
    %161 = arith.truncf %159 : vector<8x32xf32> to vector<8x32xbf16>
    %c1_149 = arith.constant 1 : index
    %c0_150 = arith.constant 0 : index
    %c0_151 = arith.constant 0 : index
    %162 = vector.load %arg5[%c1_149, %c0_150, %c0_151] : memref<8x8x32xbf16, #tpu.memory_space<vmem>>, vector<1x8x32xbf16>
    %163 = vector.shape_cast %162 : vector<1x8x32xbf16> to vector<8x32xbf16>
    %164 = vector.shape_cast %161 : vector<8x32xbf16> to vector<1x8x32xbf16>
    tpu.vector_store %arg5[%c1_149, %c0_150, %c0_151], %164 {strides = array<i32>} : memref<8x8x32xbf16, #tpu.memory_space<vmem>>, vector<1x8x32xbf16>,
    %c0_152 = arith.constant 0 : index
    %c0_153 = arith.constant 0 : index
    %c6 = arith.constant 6 : index
    %c0_154 = arith.constant 0 : index
    %c0_155 = arith.constant 0 : index
    %165 = vector.load %arg2[%c0_152, %c0_153, %c6, %c0_154, %c0_155] : memref<1x3x8x8x32xf32, #tpu.memory_space<vmem>>, vector<1x1x1x8x32xf32>
    %166 = vector.shape_cast %165 : vector<1x1x1x8x32xf32> to vector<8x32xf32>
    %c0_156 = arith.constant 0 : index
    %c1_157 = arith.constant 1 : index
    %c6_158 = arith.constant 6 : index
    %c0_159 = arith.constant 0 : index
    %c0_160 = arith.constant 0 : index
    %167 = vector.load %arg2[%c0_156, %c1_157, %c6_158, %c0_159, %c0_160] : memref<1x3x8x8x32xf32, #tpu.memory_space<vmem>>, vector<1x1x1x8x32xf32>
    %168 = vector.shape_cast %167 : vector<1x1x1x8x32xf32> to vector<8x32xf32>
    %c0_161 = arith.constant 0 : index
    %c2_162 = arith.constant 2 : index
    %c6_163 = arith.constant 6 : index
    %c0_164 = arith.constant 0 : index
    %c0_165 = arith.constant 0 : index
    %169 = vector.load %arg2[%c0_161, %c2_162, %c6_163, %c0_164, %c0_165] : memref<1x3x8x8x32xf32, #tpu.memory_space<vmem>>, vector<1x1x1x8x32xf32>
    %170 = vector.shape_cast %169 : vector<1x1x1x8x32xf32> to vector<8x32xf32>
    %c0_166 = arith.constant 0 : index
    %c0_167 = arith.constant 0 : index
    %171 = vector.load %arg8[%c0_166, %c0_167] : memref<8x32xf32, #tpu.memory_space<vmem>>, vector<8x32xf32>
    %172 = arith.truncf %171 : vector<8x32xf32> to vector<8x32xbf16>
    %c1_168 = arith.constant 1 : index
    %c0_169 = arith.constant 0 : index
    %c0_170 = arith.constant 0 : index
    %c0_171 = arith.constant 0 : index
    %173 = vector.load %arg3[%c1_168, %c0_169, %c0_170, %c0_171] : memref<2x3x32x32xbf16, #tpu.memory_space<vmem>>, vector<1x1x32x32xbf16>
    %174 = vector.shape_cast %173 : vector<1x1x32x32xbf16> to vector<32x32xbf16>
    %cst_172 = arith.constant dense<0.000000e+00> : vector<8x32xf32>
    %175 = tpu.matmul %172, %174, %cst_172 {dimension_numbers = #tpu.dot_dimension_numbers<[1], [0], [0], [1], [0, 0, 1, 1], [], []>} : vector<8x32xbf16>, vector<32x32xbf16>, vector<8x32xf32> -> vector<8x32xf32>
    %c1_173 = arith.constant 1 : index
    %c0_174 = arith.constant 0 : index
    %c0_175 = arith.constant 0 : index
    %c0_176 = arith.constant 0 : index
    %176 = vector.load %arg4[%c1_173, %c0_174, %c0_175, %c0_176] : memref<2x3x1x32xf32, #tpu.memory_space<vmem>>, vector<1x1x1x32xf32>
    %177 = vector.shape_cast %176 : vector<1x1x1x32xf32> to vector<1x32xf32>
    %178 = vector.broadcast %177 : vector<1x32xf32> to vector<8x32xf32>
    %179 = arith.addf %175, %178 : vector<8x32xf32>
    %c1_177 = arith.constant 1 : index
    %c1_178 = arith.constant 1 : index
    %c0_179 = arith.constant 0 : index
    %c0_180 = arith.constant 0 : index
    %180 = vector.load %arg3[%c1_177, %c1_178, %c0_179, %c0_180] : memref<2x3x32x32xbf16, #tpu.memory_space<vmem>>, vector<1x1x32x32xbf16>
    %181 = vector.shape_cast %180 : vector<1x1x32x32xbf16> to vector<32x32xbf16>
    %cst_181 = arith.constant dense<0.000000e+00> : vector<8x32xf32>
    %182 = tpu.matmul %172, %181, %cst_181 {dimension_numbers = #tpu.dot_dimension_numbers<[1], [0], [0], [1], [0, 0, 1, 1], [], []>} : vector<8x32xbf16>, vector<32x32xbf16>, vector<8x32xf32> -> vector<8x32xf32>
    %c1_182 = arith.constant 1 : index
    %c1_183 = arith.constant 1 : index
    %c0_184 = arith.constant 0 : index
    %c0_185 = arith.constant 0 : index
    %183 = vector.load %arg4[%c1_182, %c1_183, %c0_184, %c0_185] : memref<2x3x1x32xf32, #tpu.memory_space<vmem>>, vector<1x1x1x32xf32>
    %184 = vector.shape_cast %183 : vector<1x1x1x32xf32> to vector<1x32xf32>
    %185 = vector.broadcast %184 : vector<1x32xf32> to vector<8x32xf32>
    %186 = arith.addf %182, %185 : vector<8x32xf32>
    %c1_186 = arith.constant 1 : index
    %c2_187 = arith.constant 2 : index
    %c0_188 = arith.constant 0 : index
    %c0_189 = arith.constant 0 : index
    %187 = vector.load %arg3[%c1_186, %c2_187, %c0_188, %c0_189] : memref<2x3x32x32xbf16, #tpu.memory_space<vmem>>, vector<1x1x32x32xbf16>
    %188 = vector.shape_cast %187 : vector<1x1x32x32xbf16> to vector<32x32xbf16>
    %cst_190 = arith.constant dense<0.000000e+00> : vector<8x32xf32>
    %189 = tpu.matmul %172, %188, %cst_190 {dimension_numbers = #tpu.dot_dimension_numbers<[1], [0], [0], [1], [0, 0, 1, 1], [], []>} : vector<8x32xbf16>, vector<32x32xbf16>, vector<8x32xf32> -> vector<8x32xf32>
    %c1_191 = arith.constant 1 : index
    %c2_192 = arith.constant 2 : index
    %c0_193 = arith.constant 0 : index
    %c0_194 = arith.constant 0 : index
    %190 = vector.load %arg4[%c1_191, %c2_192, %c0_193, %c0_194] : memref<2x3x1x32xf32, #tpu.memory_space<vmem>>, vector<1x1x1x32xf32>
    %191 = vector.shape_cast %190 : vector<1x1x1x32xf32> to vector<1x32xf32>
    %192 = vector.broadcast %191 : vector<1x32xf32> to vector<8x32xf32>
    %193 = arith.addf %189, %192 : vector<8x32xf32>
    %194 = arith.addf %166, %179 : vector<8x32xf32>
    %195 = arith.negf %194 : vector<8x32xf32>
    %196 = math.exp %195 : vector<8x32xf32>
    %cst_195 = arith.constant 1.000000e+00 : f32
    %197 = vector.broadcast %cst_195 : f32 to vector<8x32xf32>
    %198 = arith.addf %197, %196 : vector<8x32xf32>
    %199 = arith.divf %197, %198 : vector<8x32xf32>
    %200 = arith.addf %168, %186 : vector<8x32xf32>
    %201 = arith.negf %200 : vector<8x32xf32>
    %202 = math.exp %201 : vector<8x32xf32>
    %cst_196 = arith.constant 1.000000e+00 : f32
    %203 = vector.broadcast %cst_196 : f32 to vector<8x32xf32>
    %204 = arith.addf %203, %202 : vector<8x32xf32>
    %205 = arith.divf %203, %204 : vector<8x32xf32>
    %206 = arith.mulf %199, %193 : vector<8x32xf32>
    %207 = arith.addf %170, %206 : vector<8x32xf32>
    %208 = math.tanh %207 : vector<8x32xf32>
    %cst_197 = arith.constant 1.000000e+00 : f32
    %209 = vector.broadcast %cst_197 : f32 to vector<8x32xf32>
    %210 = arith.subf %209, %205 : vector<8x32xf32>
    %211 = arith.mulf %210, %208 : vector<8x32xf32>
    %212 = arith.mulf %205, %171 : vector<8x32xf32>
    %213 = arith.addf %211, %212 : vector<8x32xf32>
    %c0_198 = arith.constant 0 : index
    %c0_199 = arith.constant 0 : index
    %214 = vector.load %arg8[%c0_198, %c0_199] : memref<8x32xf32, #tpu.memory_space<vmem>>, vector<8x32xf32>
    tpu.vector_store %arg8[%c0_198, %c0_199], %213 {strides = array<i32>} : memref<8x32xf32, #tpu.memory_space<vmem>>, vector<8x32xf32>,
    %215 = arith.truncf %213 : vector<8x32xf32> to vector<8x32xbf16>
    %c6_200 = arith.constant 6 : index
    %c0_201 = arith.constant 0 : index
    %c0_202 = arith.constant 0 : index
    %216 = vector.load %arg6[%c6_200, %c0_201, %c0_202] : memref<8x8x32xbf16, #tpu.memory_space<vmem>>, vector<1x8x32xbf16>
    %217 = vector.shape_cast %216 : vector<1x8x32xbf16> to vector<8x32xbf16>
    %218 = vector.shape_cast %215 : vector<8x32xbf16> to vector<1x8x32xbf16>
    tpu.vector_store %arg6[%c6_200, %c0_201, %c0_202], %218 {strides = array<i32>} : memref<8x8x32xbf16, #tpu.memory_space<vmem>>, vector<1x8x32xbf16>,
    %c0_203 = arith.constant 0 : index
    %c0_204 = arith.constant 0 : index
    %c2_205 = arith.constant 2 : index
    %c0_206 = arith.constant 0 : index
    %c0_207 = arith.constant 0 : index
    %219 = vector.load %arg1[%c0_203, %c0_204, %c2_205, %c0_206, %c0_207] : memref<1x3x8x8x32xf32, #tpu.memory_space<vmem>>, vector<1x1x1x8x32xf32>
    %220 = vector.shape_cast %219 : vector<1x1x1x8x32xf32> to vector<8x32xf32>
    %c0_208 = arith.constant 0 : index
    %c1_209 = arith.constant 1 : index
    %c2_210 = arith.constant 2 : index
    %c0_211 = arith.constant 0 : index
    %c0_212 = arith.constant 0 : index
    %221 = vector.load %arg1[%c0_208, %c1_209, %c2_210, %c0_211, %c0_212] : memref<1x3x8x8x32xf32, #tpu.memory_space<vmem>>, vector<1x1x1x8x32xf32>
    %222 = vector.shape_cast %221 : vector<1x1x1x8x32xf32> to vector<8x32xf32>
    %c0_213 = arith.constant 0 : index
    %c2_214 = arith.constant 2 : index
    %c2_215 = arith.constant 2 : index
    %c0_216 = arith.constant 0 : index
    %c0_217 = arith.constant 0 : index
    %223 = vector.load %arg1[%c0_213, %c2_214, %c2_215, %c0_216, %c0_217] : memref<1x3x8x8x32xf32, #tpu.memory_space<vmem>>, vector<1x1x1x8x32xf32>
    %224 = vector.shape_cast %223 : vector<1x1x1x8x32xf32> to vector<8x32xf32>
    %c0_218 = arith.constant 0 : index
    %c0_219 = arith.constant 0 : index
    %225 = vector.load %arg7[%c0_218, %c0_219] : memref<8x32xf32, #tpu.memory_space<vmem>>, vector<8x32xf32>
    %226 = arith.truncf %225 : vector<8x32xf32> to vector<8x32xbf16>
    %c0_220 = arith.constant 0 : index
    %c0_221 = arith.constant 0 : index
    %c0_222 = arith.constant 0 : index
    %c0_223 = arith.constant 0 : index
    %227 = vector.load %arg3[%c0_220, %c0_221, %c0_222, %c0_223] : memref<2x3x32x32xbf16, #tpu.memory_space<vmem>>, vector<1x1x32x32xbf16>
    %228 = vector.shape_cast %227 : vector<1x1x32x32xbf16> to vector<32x32xbf16>
    %cst_224 = arith.constant dense<0.000000e+00> : vector<8x32xf32>
    %229 = tpu.matmul %226, %228, %cst_224 {dimension_numbers = #tpu.dot_dimension_numbers<[1], [0], [0], [1], [0, 0, 1, 1], [], []>} : vector<8x32xbf16>, vector<32x32xbf16>, vector<8x32xf32> -> vector<8x32xf32>
    %c0_225 = arith.constant 0 : index
    %c0_226 = arith.constant 0 : index
    %c0_227 = arith.constant 0 : index
    %c0_228 = arith.constant 0 : index
    %230 = vector.load %arg4[%c0_225, %c0_226, %c0_227, %c0_228] : memref<2x3x1x32xf32, #tpu.memory_space<vmem>>, vector<1x1x1x32xf32>
    %231 = vector.shape_cast %230 : vector<1x1x1x32xf32> to vector<1x32xf32>
    %232 = vector.broadcast %231 : vector<1x32xf32> to vector<8x32xf32>
    %233 = arith.addf %229, %232 : vector<8x32xf32>
    %c0_229 = arith.constant 0 : index
    %c1_230 = arith.constant 1 : index
    %c0_231 = arith.constant 0 : index
    %c0_232 = arith.constant 0 : index
    %234 = vector.load %arg3[%c0_229, %c1_230, %c0_231, %c0_232] : memref<2x3x32x32xbf16, #tpu.memory_space<vmem>>, vector<1x1x32x32xbf16>
    %235 = vector.shape_cast %234 : vector<1x1x32x32xbf16> to vector<32x32xbf16>
    %cst_233 = arith.constant dense<0.000000e+00> : vector<8x32xf32>
    %236 = tpu.matmul %226, %235, %cst_233 {dimension_numbers = #tpu.dot_dimension_numbers<[1], [0], [0], [1], [0, 0, 1, 1], [], []>} : vector<8x32xbf16>, vector<32x32xbf16>, vector<8x32xf32> -> vector<8x32xf32>
    %c0_234 = arith.constant 0 : index
    %c1_235 = arith.constant 1 : index
    %c0_236 = arith.constant 0 : index
    %c0_237 = arith.constant 0 : index
    %237 = vector.load %arg4[%c0_234, %c1_235, %c0_236, %c0_237] : memref<2x3x1x32xf32, #tpu.memory_space<vmem>>, vector<1x1x1x32xf32>
    %238 = vector.shape_cast %237 : vector<1x1x1x32xf32> to vector<1x32xf32>
    %239 = vector.broadcast %238 : vector<1x32xf32> to vector<8x32xf32>
    %240 = arith.addf %236, %239 : vector<8x32xf32>
    %c0_238 = arith.constant 0 : index
    %c2_239 = arith.constant 2 : index
    %c0_240 = arith.constant 0 : index
    %c0_241 = arith.constant 0 : index
    %241 = vector.load %arg3[%c0_238, %c2_239, %c0_240, %c0_241] : memref<2x3x32x32xbf16, #tpu.memory_space<vmem>>, vector<1x1x32x32xbf16>
    %242 = vector.shape_cast %241 : vector<1x1x32x32xbf16> to vector<32x32xbf16>
    %cst_242 = arith.constant dense<0.000000e+00> : vector<8x32xf32>
    %243 = tpu.matmul %226, %242, %cst_242 {dimension_numbers = #tpu.dot_dimension_numbers<[1], [0], [0], [1], [0, 0, 1, 1], [], []>} : vector<8x32xbf16>, vector<32x32xbf16>, vector<8x32xf32> -> vector<8x32xf32>
    %c0_243 = arith.constant 0 : index
    %c2_244 = arith.constant 2 : index
    %c0_245 = arith.constant 0 : index
    %c0_246 = arith.constant 0 : index
    %244 = vector.load %arg4[%c0_243, %c2_244, %c0_245, %c0_246] : memref<2x3x1x32xf32, #tpu.memory_space<vmem>>, vector<1x1x1x32xf32>
    %245 = vector.shape_cast %244 : vector<1x1x1x32xf32> to vector<1x32xf32>
    %246 = vector.broadcast %245 : vector<1x32xf32> to vector<8x32xf32>
    %247 = arith.addf %243, %246 : vector<8x32xf32>
    %248 = arith.addf %220, %233 : vector<8x32xf32>
    %249 = arith.negf %248 : vector<8x32xf32>
    %250 = math.exp %249 : vector<8x32xf32>
    %cst_247 = arith.constant 1.000000e+00 : f32
    %251 = vector.broadcast %cst_247 : f32 to vector<8x32xf32>
    %252 = arith.addf %251, %250 : vector<8x32xf32>
    %253 = arith.divf %251, %252 : vector<8x32xf32>
    %254 = arith.addf %222, %240 : vector<8x32xf32>
    %255 = arith.negf %254 : vector<8x32xf32>
    %256 = math.exp %255 : vector<8x32xf32>
    %cst_248 = arith.constant 1.000000e+00 : f32
    %257 = vector.broadcast %cst_248 : f32 to vector<8x32xf32>
    %258 = arith.addf %257, %256 : vector<8x32xf32>
    %259 = arith.divf %257, %258 : vector<8x32xf32>
    %260 = arith.mulf %253, %247 : vector<8x32xf32>
    %261 = arith.addf %224, %260 : vector<8x32xf32>
    %262 = math.tanh %261 : vector<8x32xf32>
    %cst_249 = arith.constant 1.000000e+00 : f32
    %263 = vector.broadcast %cst_249 : f32 to vector<8x32xf32>
    %264 = arith.subf %263, %259 : vector<8x32xf32>
    %265 = arith.mulf %264, %262 : vector<8x32xf32>
    %266 = arith.mulf %259, %225 : vector<8x32xf32>
    %267 = arith.addf %265, %266 : vector<8x32xf32>
    %c0_250 = arith.constant 0 : index
    %c0_251 = arith.constant 0 : index
    %268 = vector.load %arg7[%c0_250, %c0_251] : memref<8x32xf32, #tpu.memory_space<vmem>>, vector<8x32xf32>
    tpu.vector_store %arg7[%c0_250, %c0_251], %267 {strides = array<i32>} : memref<8x32xf32, #tpu.memory_space<vmem>>, vector<8x32xf32>,
    %269 = arith.truncf %267 : vector<8x32xf32> to vector<8x32xbf16>
    %c2_252 = arith.constant 2 : index
    %c0_253 = arith.constant 0 : index
    %c0_254 = arith.constant 0 : index
    %270 = vector.load %arg5[%c2_252, %c0_253, %c0_254] : memref<8x8x32xbf16, #tpu.memory_space<vmem>>, vector<1x8x32xbf16>
    %271 = vector.shape_cast %270 : vector<1x8x32xbf16> to vector<8x32xbf16>
    %272 = vector.shape_cast %269 : vector<8x32xbf16> to vector<1x8x32xbf16>
    tpu.vector_store %arg5[%c2_252, %c0_253, %c0_254], %272 {strides = array<i32>} : memref<8x8x32xbf16, #tpu.memory_space<vmem>>, vector<1x8x32xbf16>,
    %c0_255 = arith.constant 0 : index
    %c0_256 = arith.constant 0 : index
    %c5 = arith.constant 5 : index
    %c0_257 = arith.constant 0 : index
    %c0_258 = arith.constant 0 : index
    %273 = vector.load %arg2[%c0_255, %c0_256, %c5, %c0_257, %c0_258] : memref<1x3x8x8x32xf32, #tpu.memory_space<vmem>>, vector<1x1x1x8x32xf32>
    %274 = vector.shape_cast %273 : vector<1x1x1x8x32xf32> to vector<8x32xf32>
    %c0_259 = arith.constant 0 : index
    %c1_260 = arith.constant 1 : index
    %c5_261 = arith.constant 5 : index
    %c0_262 = arith.constant 0 : index
    %c0_263 = arith.constant 0 : index
    %275 = vector.load %arg2[%c0_259, %c1_260, %c5_261, %c0_262, %c0_263] : memref<1x3x8x8x32xf32, #tpu.memory_space<vmem>>, vector<1x1x1x8x32xf32>
    %276 = vector.shape_cast %275 : vector<1x1x1x8x32xf32> to vector<8x32xf32>
    %c0_264 = arith.constant 0 : index
    %c2_265 = arith.constant 2 : index
    %c5_266 = arith.constant 5 : index
    %c0_267 = arith.constant 0 : index
    %c0_268 = arith.constant 0 : index
    %277 = vector.load %arg2[%c0_264, %c2_265, %c5_266, %c0_267, %c0_268] : memref<1x3x8x8x32xf32, #tpu.memory_space<vmem>>, vector<1x1x1x8x32xf32>
    %278 = vector.shape_cast %277 : vector<1x1x1x8x32xf32> to vector<8x32xf32>
    %c0_269 = arith.constant 0 : index
    %c0_270 = arith.constant 0 : index
    %279 = vector.load %arg8[%c0_269, %c0_270] : memref<8x32xf32, #tpu.memory_space<vmem>>, vector<8x32xf32>
    %280 = arith.truncf %279 : vector<8x32xf32> to vector<8x32xbf16>
    %c1_271 = arith.constant 1 : index
    %c0_272 = arith.constant 0 : index
    %c0_273 = arith.constant 0 : index
    %c0_274 = arith.constant 0 : index
    %281 = vector.load %arg3[%c1_271, %c0_272, %c0_273, %c0_274] : memref<2x3x32x32xbf16, #tpu.memory_space<vmem>>, vector<1x1x32x32xbf16>
    %282 = vector.shape_cast %281 : vector<1x1x32x32xbf16> to vector<32x32xbf16>
    %cst_275 = arith.constant dense<0.000000e+00> : vector<8x32xf32>
    %283 = tpu.matmul %280, %282, %cst_275 {dimension_numbers = #tpu.dot_dimension_numbers<[1], [0], [0], [1], [0, 0, 1, 1], [], []>} : vector<8x32xbf16>, vector<32x32xbf16>, vector<8x32xf32> -> vector<8x32xf32>
    %c1_276 = arith.constant 1 : index
    %c0_277 = arith.constant 0 : index
    %c0_278 = arith.constant 0 : index
    %c0_279 = arith.constant 0 : index
    %284 = vector.load %arg4[%c1_276, %c0_277, %c0_278, %c0_279] : memref<2x3x1x32xf32, #tpu.memory_space<vmem>>, vector<1x1x1x32xf32>
    %285 = vector.shape_cast %284 : vector<1x1x1x32xf32> to vector<1x32xf32>
    %286 = vector.broadcast %285 : vector<1x32xf32> to vector<8x32xf32>
    %287 = arith.addf %283, %286 : vector<8x32xf32>
    %c1_280 = arith.constant 1 : index
    %c1_281 = arith.constant 1 : index
    %c0_282 = arith.constant 0 : index
    %c0_283 = arith.constant 0 : index
    %288 = vector.load %arg3[%c1_280, %c1_281, %c0_282, %c0_283] : memref<2x3x32x32xbf16, #tpu.memory_space<vmem>>, vector<1x1x32x32xbf16>
    %289 = vector.shape_cast %288 : vector<1x1x32x32xbf16> to vector<32x32xbf16>
    %cst_284 = arith.constant dense<0.000000e+00> : vector<8x32xf32>
    %290 = tpu.matmul %280, %289, %cst_284 {dimension_numbers = #tpu.dot_dimension_numbers<[1], [0], [0], [1], [0, 0, 1, 1], [], []>} : vector<8x32xbf16>, vector<32x32xbf16>, vector<8x32xf32> -> vector<8x32xf32>
    %c1_285 = arith.constant 1 : index
    %c1_286 = arith.constant 1 : index
    %c0_287 = arith.constant 0 : index
    %c0_288 = arith.constant 0 : index
    %291 = vector.load %arg4[%c1_285, %c1_286, %c0_287, %c0_288] : memref<2x3x1x32xf32, #tpu.memory_space<vmem>>, vector<1x1x1x32xf32>
    %292 = vector.shape_cast %291 : vector<1x1x1x32xf32> to vector<1x32xf32>
    %293 = vector.broadcast %292 : vector<1x32xf32> to vector<8x32xf32>
    %294 = arith.addf %290, %293 : vector<8x32xf32>
    %c1_289 = arith.constant 1 : index
    %c2_290 = arith.constant 2 : index
    %c0_291 = arith.constant 0 : index
    %c0_292 = arith.constant 0 : index
    %295 = vector.load %arg3[%c1_289, %c2_290, %c0_291, %c0_292] : memref<2x3x32x32xbf16, #tpu.memory_space<vmem>>, vector<1x1x32x32xbf16>
    %296 = vector.shape_cast %295 : vector<1x1x32x32xbf16> to vector<32x32xbf16>
    %cst_293 = arith.constant dense<0.000000e+00> : vector<8x32xf32>
    %297 = tpu.matmul %280, %296, %cst_293 {dimension_numbers = #tpu.dot_dimension_numbers<[1], [0], [0], [1], [0, 0, 1, 1], [], []>} : vector<8x32xbf16>, vector<32x32xbf16>, vector<8x32xf32> -> vector<8x32xf32>
    %c1_294 = arith.constant 1 : index
    %c2_295 = arith.constant 2 : index
    %c0_296 = arith.constant 0 : index
    %c0_297 = arith.constant 0 : index
    %298 = vector.load %arg4[%c1_294, %c2_295, %c0_296, %c0_297] : memref<2x3x1x32xf32, #tpu.memory_space<vmem>>, vector<1x1x1x32xf32>
    %299 = vector.shape_cast %298 : vector<1x1x1x32xf32> to vector<1x32xf32>
    %300 = vector.broadcast %299 : vector<1x32xf32> to vector<8x32xf32>
    %301 = arith.addf %297, %300 : vector<8x32xf32>
    %302 = arith.addf %274, %287 : vector<8x32xf32>
    %303 = arith.negf %302 : vector<8x32xf32>
    %304 = math.exp %303 : vector<8x32xf32>
    %cst_298 = arith.constant 1.000000e+00 : f32
    %305 = vector.broadcast %cst_298 : f32 to vector<8x32xf32>
    %306 = arith.addf %305, %304 : vector<8x32xf32>
    %307 = arith.divf %305, %306 : vector<8x32xf32>
    %308 = arith.addf %276, %294 : vector<8x32xf32>
    %309 = arith.negf %308 : vector<8x32xf32>
    %310 = math.exp %309 : vector<8x32xf32>
    %cst_299 = arith.constant 1.000000e+00 : f32
    %311 = vector.broadcast %cst_299 : f32 to vector<8x32xf32>
    %312 = arith.addf %311, %310 : vector<8x32xf32>
    %313 = arith.divf %311, %312 : vector<8x32xf32>
    %314 = arith.mulf %307, %301 : vector<8x32xf32>
    %315 = arith.addf %278, %314 : vector<8x32xf32>
    %316 = math.tanh %315 : vector<8x32xf32>
    %cst_300 = arith.constant 1.000000e+00 : f32
    %317 = vector.broadcast %cst_300 : f32 to vector<8x32xf32>
    %318 = arith.subf %317, %313 : vector<8x32xf32>
    %319 = arith.mulf %318, %316 : vector<8x32xf32>
    %320 = arith.mulf %313, %279 : vector<8x32xf32>
    %321 = arith.addf %319, %320 : vector<8x32xf32>
    %c0_301 = arith.constant 0 : index
    %c0_302 = arith.constant 0 : index
    %322 = vector.load %arg8[%c0_301, %c0_302] : memref<8x32xf32, #tpu.memory_space<vmem>>, vector<8x32xf32>
    tpu.vector_store %arg8[%c0_301, %c0_302], %321 {strides = array<i32>} : memref<8x32xf32, #tpu.memory_space<vmem>>, vector<8x32xf32>,
    %323 = arith.truncf %321 : vector<8x32xf32> to vector<8x32xbf16>
    %c5_303 = arith.constant 5 : index
    %c0_304 = arith.constant 0 : index
    %c0_305 = arith.constant 0 : index
    %324 = vector.load %arg6[%c5_303, %c0_304, %c0_305] : memref<8x8x32xbf16, #tpu.memory_space<vmem>>, vector<1x8x32xbf16>
    %325 = vector.shape_cast %324 : vector<1x8x32xbf16> to vector<8x32xbf16>
    %326 = vector.shape_cast %323 : vector<8x32xbf16> to vector<1x8x32xbf16>
    tpu.vector_store %arg6[%c5_303, %c0_304, %c0_305], %326 {strides = array<i32>} : memref<8x8x32xbf16, #tpu.memory_space<vmem>>, vector<1x8x32xbf16>,
    %c0_306 = arith.constant 0 : index
    %c0_307 = arith.constant 0 : index
    %c3 = arith.constant 3 : index
    %c0_308 = arith.constant 0 : index
    %c0_309 = arith.constant 0 : index
    %327 = vector.load %arg1[%c0_306, %c0_307, %c3, %c0_308, %c0_309] : memref<1x3x8x8x32xf32, #tpu.memory_space<vmem>>, vector<1x1x1x8x32xf32>
    %328 = vector.shape_cast %327 : vector<1x1x1x8x32xf32> to vector<8x32xf32>
    %c0_310 = arith.constant 0 : index
    %c1_311 = arith.constant 1 : index
    %c3_312 = arith.constant 3 : index
    %c0_313 = arith.constant 0 : index
    %c0_314 = arith.constant 0 : index
    %329 = vector.load %arg1[%c0_310, %c1_311, %c3_312, %c0_313, %c0_314] : memref<1x3x8x8x32xf32, #tpu.memory_space<vmem>>, vector<1x1x1x8x32xf32>
    %330 = vector.shape_cast %329 : vector<1x1x1x8x32xf32> to vector<8x32xf32>
    %c0_315 = arith.constant 0 : index
    %c2_316 = arith.constant 2 : index
    %c3_317 = arith.constant 3 : index
    %c0_318 = arith.constant 0 : index
    %c0_319 = arith.constant 0 : index
    %331 = vector.load %arg1[%c0_315, %c2_316, %c3_317, %c0_318, %c0_319] : memref<1x3x8x8x32xf32, #tpu.memory_space<vmem>>, vector<1x1x1x8x32xf32>
    %332 = vector.shape_cast %331 : vector<1x1x1x8x32xf32> to vector<8x32xf32>
    %c0_320 = arith.constant 0 : index
    %c0_321 = arith.constant 0 : index
    %333 = vector.load %arg7[%c0_320, %c0_321] : memref<8x32xf32, #tpu.memory_space<vmem>>, vector<8x32xf32>
    %334 = arith.truncf %333 : vector<8x32xf32> to vector<8x32xbf16>
    %c0_322 = arith.constant 0 : index
    %c0_323 = arith.constant 0 : index
    %c0_324 = arith.constant 0 : index
    %c0_325 = arith.constant 0 : index
    %335 = vector.load %arg3[%c0_322, %c0_323, %c0_324, %c0_325] : memref<2x3x32x32xbf16, #tpu.memory_space<vmem>>, vector<1x1x32x32xbf16>
    %336 = vector.shape_cast %335 : vector<1x1x32x32xbf16> to vector<32x32xbf16>
    %cst_326 = arith.constant dense<0.000000e+00> : vector<8x32xf32>
    %337 = tpu.matmul %334, %336, %cst_326 {dimension_numbers = #tpu.dot_dimension_numbers<[1], [0], [0], [1], [0, 0, 1, 1], [], []>} : vector<8x32xbf16>, vector<32x32xbf16>, vector<8x32xf32> -> vector<8x32xf32>
    %c0_327 = arith.constant 0 : index
    %c0_328 = arith.constant 0 : index
    %c0_329 = arith.constant 0 : index
    %c0_330 = arith.constant 0 : index
    %338 = vector.load %arg4[%c0_327, %c0_328, %c0_329, %c0_330] : memref<2x3x1x32xf32, #tpu.memory_space<vmem>>, vector<1x1x1x32xf32>
    %339 = vector.shape_cast %338 : vector<1x1x1x32xf32> to vector<1x32xf32>
    %340 = vector.broadcast %339 : vector<1x32xf32> to vector<8x32xf32>
    %341 = arith.addf %337, %340 : vector<8x32xf32>
    %c0_331 = arith.constant 0 : index
    %c1_332 = arith.constant 1 : index
    %c0_333 = arith.constant 0 : index
    %c0_334 = arith.constant 0 : index
    %342 = vector.load %arg3[%c0_331, %c1_332, %c0_333, %c0_334] : memref<2x3x32x32xbf16, #tpu.memory_space<vmem>>, vector<1x1x32x32xbf16>
    %343 = vector.shape_cast %342 : vector<1x1x32x32xbf16> to vector<32x32xbf16>
    %cst_335 = arith.constant dense<0.000000e+00> : vector<8x32xf32>
    %344 = tpu.matmul %334, %343, %cst_335 {dimension_numbers = #tpu.dot_dimension_numbers<[1], [0], [0], [1], [0, 0, 1, 1], [], []>} : vector<8x32xbf16>, vector<32x32xbf16>, vector<8x32xf32> -> vector<8x32xf32>
    %c0_336 = arith.constant 0 : index
    %c1_337 = arith.constant 1 : index
    %c0_338 = arith.constant 0 : index
    %c0_339 = arith.constant 0 : index
    %345 = vector.load %arg4[%c0_336, %c1_337, %c0_338, %c0_339] : memref<2x3x1x32xf32, #tpu.memory_space<vmem>>, vector<1x1x1x32xf32>
    %346 = vector.shape_cast %345 : vector<1x1x1x32xf32> to vector<1x32xf32>
    %347 = vector.broadcast %346 : vector<1x32xf32> to vector<8x32xf32>
    %348 = arith.addf %344, %347 : vector<8x32xf32>
    %c0_340 = arith.constant 0 : index
    %c2_341 = arith.constant 2 : index
    %c0_342 = arith.constant 0 : index
    %c0_343 = arith.constant 0 : index
    %349 = vector.load %arg3[%c0_340, %c2_341, %c0_342, %c0_343] : memref<2x3x32x32xbf16, #tpu.memory_space<vmem>>, vector<1x1x32x32xbf16>
    %350 = vector.shape_cast %349 : vector<1x1x32x32xbf16> to vector<32x32xbf16>
    %cst_344 = arith.constant dense<0.000000e+00> : vector<8x32xf32>
    %351 = tpu.matmul %334, %350, %cst_344 {dimension_numbers = #tpu.dot_dimension_numbers<[1], [0], [0], [1], [0, 0, 1, 1], [], []>} : vector<8x32xbf16>, vector<32x32xbf16>, vector<8x32xf32> -> vector<8x32xf32>
    %c0_345 = arith.constant 0 : index
    %c2_346 = arith.constant 2 : index
    %c0_347 = arith.constant 0 : index
    %c0_348 = arith.constant 0 : index
    %352 = vector.load %arg4[%c0_345, %c2_346, %c0_347, %c0_348] : memref<2x3x1x32xf32, #tpu.memory_space<vmem>>, vector<1x1x1x32xf32>
    %353 = vector.shape_cast %352 : vector<1x1x1x32xf32> to vector<1x32xf32>
    %354 = vector.broadcast %353 : vector<1x32xf32> to vector<8x32xf32>
    %355 = arith.addf %351, %354 : vector<8x32xf32>
    %356 = arith.addf %328, %341 : vector<8x32xf32>
    %357 = arith.negf %356 : vector<8x32xf32>
    %358 = math.exp %357 : vector<8x32xf32>
    %cst_349 = arith.constant 1.000000e+00 : f32
    %359 = vector.broadcast %cst_349 : f32 to vector<8x32xf32>
    %360 = arith.addf %359, %358 : vector<8x32xf32>
    %361 = arith.divf %359, %360 : vector<8x32xf32>
    %362 = arith.addf %330, %348 : vector<8x32xf32>
    %363 = arith.negf %362 : vector<8x32xf32>
    %364 = math.exp %363 : vector<8x32xf32>
    %cst_350 = arith.constant 1.000000e+00 : f32
    %365 = vector.broadcast %cst_350 : f32 to vector<8x32xf32>
    %366 = arith.addf %365, %364 : vector<8x32xf32>
    %367 = arith.divf %365, %366 : vector<8x32xf32>
    %368 = arith.mulf %361, %355 : vector<8x32xf32>
    %369 = arith.addf %332, %368 : vector<8x32xf32>
    %370 = math.tanh %369 : vector<8x32xf32>
    %cst_351 = arith.constant 1.000000e+00 : f32
    %371 = vector.broadcast %cst_351 : f32 to vector<8x32xf32>
    %372 = arith.subf %371, %367 : vector<8x32xf32>
    %373 = arith.mulf %372, %370 : vector<8x32xf32>
    %374 = arith.mulf %367, %333 : vector<8x32xf32>
    %375 = arith.addf %373, %374 : vector<8x32xf32>
    %c0_352 = arith.constant 0 : index
    %c0_353 = arith.constant 0 : index
    %376 = vector.load %arg7[%c0_352, %c0_353] : memref<8x32xf32, #tpu.memory_space<vmem>>, vector<8x32xf32>
    tpu.vector_store %arg7[%c0_352, %c0_353], %375 {strides = array<i32>} : memref<8x32xf32, #tpu.memory_space<vmem>>, vector<8x32xf32>,
    %377 = arith.truncf %375 : vector<8x32xf32> to vector<8x32xbf16>
    %c3_354 = arith.constant 3 : index
    %c0_355 = arith.constant 0 : index
    %c0_356 = arith.constant 0 : index
    %378 = vector.load %arg5[%c3_354, %c0_355, %c0_356] : memref<8x8x32xbf16, #tpu.memory_space<vmem>>, vector<1x8x32xbf16>
    %379 = vector.shape_cast %378 : vector<1x8x32xbf16> to vector<8x32xbf16>
    %380 = vector.shape_cast %377 : vector<8x32xbf16> to vector<1x8x32xbf16>
    tpu.vector_store %arg5[%c3_354, %c0_355, %c0_356], %380 {strides = array<i32>} : memref<8x8x32xbf16, #tpu.memory_space<vmem>>, vector<1x8x32xbf16>,
    %c0_357 = arith.constant 0 : index
    %c0_358 = arith.constant 0 : index
    %c4 = arith.constant 4 : index
    %c0_359 = arith.constant 0 : index
    %c0_360 = arith.constant 0 : index
    %381 = vector.load %arg2[%c0_357, %c0_358, %c4, %c0_359, %c0_360] : memref<1x3x8x8x32xf32, #tpu.memory_space<vmem>>, vector<1x1x1x8x32xf32>
    %382 = vector.shape_cast %381 : vector<1x1x1x8x32xf32> to vector<8x32xf32>
    %c0_361 = arith.constant 0 : index
    %c1_362 = arith.constant 1 : index
    %c4_363 = arith.constant 4 : index
    %c0_364 = arith.constant 0 : index
    %c0_365 = arith.constant 0 : index
    %383 = vector.load %arg2[%c0_361, %c1_362, %c4_363, %c0_364, %c0_365] : memref<1x3x8x8x32xf32, #tpu.memory_space<vmem>>, vector<1x1x1x8x32xf32>
    %384 = vector.shape_cast %383 : vector<1x1x1x8x32xf32> to vector<8x32xf32>
    %c0_366 = arith.constant 0 : index
    %c2_367 = arith.constant 2 : index
    %c4_368 = arith.constant 4 : index
    %c0_369 = arith.constant 0 : index
    %c0_370 = arith.constant 0 : index
    %385 = vector.load %arg2[%c0_366, %c2_367, %c4_368, %c0_369, %c0_370] : memref<1x3x8x8x32xf32, #tpu.memory_space<vmem>>, vector<1x1x1x8x32xf32>
    %386 = vector.shape_cast %385 : vector<1x1x1x8x32xf32> to vector<8x32xf32>
    %c0_371 = arith.constant 0 : index
    %c0_372 = arith.constant 0 : index
    %387 = vector.load %arg8[%c0_371, %c0_372] : memref<8x32xf32, #tpu.memory_space<vmem>>, vector<8x32xf32>
    %388 = arith.truncf %387 : vector<8x32xf32> to vector<8x32xbf16>
    %c1_373 = arith.constant 1 : index
    %c0_374 = arith.constant 0 : index
    %c0_375 = arith.constant 0 : index
    %c0_376 = arith.constant 0 : index
    %389 = vector.load %arg3[%c1_373, %c0_374, %c0_375, %c0_376] : memref<2x3x32x32xbf16, #tpu.memory_space<vmem>>, vector<1x1x32x32xbf16>
    %390 = vector.shape_cast %389 : vector<1x1x32x32xbf16> to vector<32x32xbf16>
    %cst_377 = arith.constant dense<0.000000e+00> : vector<8x32xf32>
    %391 = tpu.matmul %388, %390, %cst_377 {dimension_numbers = #tpu.dot_dimension_numbers<[1], [0], [0], [1], [0, 0, 1, 1], [], []>} : vector<8x32xbf16>, vector<32x32xbf16>, vector<8x32xf32> -> vector<8x32xf32>
    %c1_378 = arith.constant 1 : index
    %c0_379 = arith.constant 0 : index
    %c0_380 = arith.constant 0 : index
    %c0_381 = arith.constant 0 : index
    %392 = vector.load %arg4[%c1_378, %c0_379, %c0_380, %c0_381] : memref<2x3x1x32xf32, #tpu.memory_space<vmem>>, vector<1x1x1x32xf32>
    %393 = vector.shape_cast %392 : vector<1x1x1x32xf32> to vector<1x32xf32>
    %394 = vector.broadcast %393 : vector<1x32xf32> to vector<8x32xf32>
    %395 = arith.addf %391, %394 : vector<8x32xf32>
    %c1_382 = arith.constant 1 : index
    %c1_383 = arith.constant 1 : index
    %c0_384 = arith.constant 0 : index
    %c0_385 = arith.constant 0 : index
    %396 = vector.load %arg3[%c1_382, %c1_383, %c0_384, %c0_385] : memref<2x3x32x32xbf16, #tpu.memory_space<vmem>>, vector<1x1x32x32xbf16>
    %397 = vector.shape_cast %396 : vector<1x1x32x32xbf16> to vector<32x32xbf16>
    %cst_386 = arith.constant dense<0.000000e+00> : vector<8x32xf32>
    %398 = tpu.matmul %388, %397, %cst_386 {dimension_numbers = #tpu.dot_dimension_numbers<[1], [0], [0], [1], [0, 0, 1, 1], [], []>} : vector<8x32xbf16>, vector<32x32xbf16>, vector<8x32xf32> -> vector<8x32xf32>
    %c1_387 = arith.constant 1 : index
    %c1_388 = arith.constant 1 : index
    %c0_389 = arith.constant 0 : index
    %c0_390 = arith.constant 0 : index
    %399 = vector.load %arg4[%c1_387, %c1_388, %c0_389, %c0_390] : memref<2x3x1x32xf32, #tpu.memory_space<vmem>>, vector<1x1x1x32xf32>
    %400 = vector.shape_cast %399 : vector<1x1x1x32xf32> to vector<1x32xf32>
    %401 = vector.broadcast %400 : vector<1x32xf32> to vector<8x32xf32>
    %402 = arith.addf %398, %401 : vector<8x32xf32>
    %c1_391 = arith.constant 1 : index
    %c2_392 = arith.constant 2 : index
    %c0_393 = arith.constant 0 : index
    %c0_394 = arith.constant 0 : index
    %403 = vector.load %arg3[%c1_391, %c2_392, %c0_393, %c0_394] : memref<2x3x32x32xbf16, #tpu.memory_space<vmem>>, vector<1x1x32x32xbf16>
    %404 = vector.shape_cast %403 : vector<1x1x32x32xbf16> to vector<32x32xbf16>
    %cst_395 = arith.constant dense<0.000000e+00> : vector<8x32xf32>
    %405 = tpu.matmul %388, %404, %cst_395 {dimension_numbers = #tpu.dot_dimension_numbers<[1], [0], [0], [1], [0, 0, 1, 1], [], []>} : vector<8x32xbf16>, vector<32x32xbf16>, vector<8x32xf32> -> vector<8x32xf32>
    %c1_396 = arith.constant 1 : index
    %c2_397 = arith.constant 2 : index
    %c0_398 = arith.constant 0 : index
    %c0_399 = arith.constant 0 : index
    %406 = vector.load %arg4[%c1_396, %c2_397, %c0_398, %c0_399] : memref<2x3x1x32xf32, #tpu.memory_space<vmem>>, vector<1x1x1x32xf32>
    %407 = vector.shape_cast %406 : vector<1x1x1x32xf32> to vector<1x32xf32>
    %408 = vector.broadcast %407 : vector<1x32xf32> to vector<8x32xf32>
    %409 = arith.addf %405, %408 : vector<8x32xf32>
    %410 = arith.addf %382, %395 : vector<8x32xf32>
    %411 = arith.negf %410 : vector<8x32xf32>
    %412 = math.exp %411 : vector<8x32xf32>
    %cst_400 = arith.constant 1.000000e+00 : f32
    %413 = vector.broadcast %cst_400 : f32 to vector<8x32xf32>
    %414 = arith.addf %413, %412 : vector<8x32xf32>
    %415 = arith.divf %413, %414 : vector<8x32xf32>
    %416 = arith.addf %384, %402 : vector<8x32xf32>
    %417 = arith.negf %416 : vector<8x32xf32>
    %418 = math.exp %417 : vector<8x32xf32>
    %cst_401 = arith.constant 1.000000e+00 : f32
    %419 = vector.broadcast %cst_401 : f32 to vector<8x32xf32>
    %420 = arith.addf %419, %418 : vector<8x32xf32>
    %421 = arith.divf %419, %420 : vector<8x32xf32>
    %422 = arith.mulf %415, %409 : vector<8x32xf32>
    %423 = arith.addf %386, %422 : vector<8x32xf32>
    %424 = math.tanh %423 : vector<8x32xf32>
    %cst_402 = arith.constant 1.000000e+00 : f32
    %425 = vector.broadcast %cst_402 : f32 to vector<8x32xf32>
    %426 = arith.subf %425, %421 : vector<8x32xf32>
    %427 = arith.mulf %426, %424 : vector<8x32xf32>
    %428 = arith.mulf %421, %387 : vector<8x32xf32>
    %429 = arith.addf %427, %428 : vector<8x32xf32>
    %c0_403 = arith.constant 0 : index
    %c0_404 = arith.constant 0 : index
    %430 = vector.load %arg8[%c0_403, %c0_404] : memref<8x32xf32, #tpu.memory_space<vmem>>, vector<8x32xf32>
    tpu.vector_store %arg8[%c0_403, %c0_404], %429 {strides = array<i32>} : memref<8x32xf32, #tpu.memory_space<vmem>>, vector<8x32xf32>,
    %431 = arith.truncf %429 : vector<8x32xf32> to vector<8x32xbf16>
    %c4_405 = arith.constant 4 : index
    %c0_406 = arith.constant 0 : index
    %c0_407 = arith.constant 0 : index
    %432 = vector.load %arg6[%c4_405, %c0_406, %c0_407] : memref<8x8x32xbf16, #tpu.memory_space<vmem>>, vector<1x8x32xbf16>
    %433 = vector.shape_cast %432 : vector<1x8x32xbf16> to vector<8x32xbf16>
    %434 = vector.shape_cast %431 : vector<8x32xbf16> to vector<1x8x32xbf16>
    tpu.vector_store %arg6[%c4_405, %c0_406, %c0_407], %434 {strides = array<i32>} : memref<8x8x32xbf16, #tpu.memory_space<vmem>>, vector<1x8x32xbf16>,
    %c0_408 = arith.constant 0 : index
    %c0_409 = arith.constant 0 : index
    %c4_410 = arith.constant 4 : index
    %c0_411 = arith.constant 0 : index
    %c0_412 = arith.constant 0 : index
    %435 = vector.load %arg1[%c0_408, %c0_409, %c4_410, %c0_411, %c0_412] : memref<1x3x8x8x32xf32, #tpu.memory_space<vmem>>, vector<1x1x1x8x32xf32>
    %436 = vector.shape_cast %435 : vector<1x1x1x8x32xf32> to vector<8x32xf32>
    %c0_413 = arith.constant 0 : index
    %c1_414 = arith.constant 1 : index
    %c4_415 = arith.constant 4 : index
    %c0_416 = arith.constant 0 : index
    %c0_417 = arith.constant 0 : index
    %437 = vector.load %arg1[%c0_413, %c1_414, %c4_415, %c0_416, %c0_417] : memref<1x3x8x8x32xf32, #tpu.memory_space<vmem>>, vector<1x1x1x8x32xf32>
    %438 = vector.shape_cast %437 : vector<1x1x1x8x32xf32> to vector<8x32xf32>
    %c0_418 = arith.constant 0 : index
    %c2_419 = arith.constant 2 : index
    %c4_420 = arith.constant 4 : index
    %c0_421 = arith.constant 0 : index
    %c0_422 = arith.constant 0 : index
    %439 = vector.load %arg1[%c0_418, %c2_419, %c4_420, %c0_421, %c0_422] : memref<1x3x8x8x32xf32, #tpu.memory_space<vmem>>, vector<1x1x1x8x32xf32>
    %440 = vector.shape_cast %439 : vector<1x1x1x8x32xf32> to vector<8x32xf32>
    %c0_423 = arith.constant 0 : index
    %c0_424 = arith.constant 0 : index
    %441 = vector.load %arg7[%c0_423, %c0_424] : memref<8x32xf32, #tpu.memory_space<vmem>>, vector<8x32xf32>
    %442 = arith.truncf %441 : vector<8x32xf32> to vector<8x32xbf16>
    %c0_425 = arith.constant 0 : index
    %c0_426 = arith.constant 0 : index
    %c0_427 = arith.constant 0 : index
    %c0_428 = arith.constant 0 : index
    %443 = vector.load %arg3[%c0_425, %c0_426, %c0_427, %c0_428] : memref<2x3x32x32xbf16, #tpu.memory_space<vmem>>, vector<1x1x32x32xbf16>
    %444 = vector.shape_cast %443 : vector<1x1x32x32xbf16> to vector<32x32xbf16>
    %cst_429 = arith.constant dense<0.000000e+00> : vector<8x32xf32>
    %445 = tpu.matmul %442, %444, %cst_429 {dimension_numbers = #tpu.dot_dimension_numbers<[1], [0], [0], [1], [0, 0, 1, 1], [], []>} : vector<8x32xbf16>, vector<32x32xbf16>, vector<8x32xf32> -> vector<8x32xf32>
    %c0_430 = arith.constant 0 : index
    %c0_431 = arith.constant 0 : index
    %c0_432 = arith.constant 0 : index
    %c0_433 = arith.constant 0 : index
    %446 = vector.load %arg4[%c0_430, %c0_431, %c0_432, %c0_433] : memref<2x3x1x32xf32, #tpu.memory_space<vmem>>, vector<1x1x1x32xf32>
    %447 = vector.shape_cast %446 : vector<1x1x1x32xf32> to vector<1x32xf32>
    %448 = vector.broadcast %447 : vector<1x32xf32> to vector<8x32xf32>
    %449 = arith.addf %445, %448 : vector<8x32xf32>
    %c0_434 = arith.constant 0 : index
    %c1_435 = arith.constant 1 : index
    %c0_436 = arith.constant 0 : index
    %c0_437 = arith.constant 0 : index
    %450 = vector.load %arg3[%c0_434, %c1_435, %c0_436, %c0_437] : memref<2x3x32x32xbf16, #tpu.memory_space<vmem>>, vector<1x1x32x32xbf16>
    %451 = vector.shape_cast %450 : vector<1x1x32x32xbf16> to vector<32x32xbf16>
    %cst_438 = arith.constant dense<0.000000e+00> : vector<8x32xf32>
    %452 = tpu.matmul %442, %451, %cst_438 {dimension_numbers = #tpu.dot_dimension_numbers<[1], [0], [0], [1], [0, 0, 1, 1], [], []>} : vector<8x32xbf16>, vector<32x32xbf16>, vector<8x32xf32> -> vector<8x32xf32>
    %c0_439 = arith.constant 0 : index
    %c1_440 = arith.constant 1 : index
    %c0_441 = arith.constant 0 : index
    %c0_442 = arith.constant 0 : index
    %453 = vector.load %arg4[%c0_439, %c1_440, %c0_441, %c0_442] : memref<2x3x1x32xf32, #tpu.memory_space<vmem>>, vector<1x1x1x32xf32>
    %454 = vector.shape_cast %453 : vector<1x1x1x32xf32> to vector<1x32xf32>
    %455 = vector.broadcast %454 : vector<1x32xf32> to vector<8x32xf32>
    %456 = arith.addf %452, %455 : vector<8x32xf32>
    %c0_443 = arith.constant 0 : index
    %c2_444 = arith.constant 2 : index
    %c0_445 = arith.constant 0 : index
    %c0_446 = arith.constant 0 : index
    %457 = vector.load %arg3[%c0_443, %c2_444, %c0_445, %c0_446] : memref<2x3x32x32xbf16, #tpu.memory_space<vmem>>, vector<1x1x32x32xbf16>
    %458 = vector.shape_cast %457 : vector<1x1x32x32xbf16> to vector<32x32xbf16>
    %cst_447 = arith.constant dense<0.000000e+00> : vector<8x32xf32>
    %459 = tpu.matmul %442, %458, %cst_447 {dimension_numbers = #tpu.dot_dimension_numbers<[1], [0], [0], [1], [0, 0, 1, 1], [], []>} : vector<8x32xbf16>, vector<32x32xbf16>, vector<8x32xf32> -> vector<8x32xf32>
    %c0_448 = arith.constant 0 : index
    %c2_449 = arith.constant 2 : index
    %c0_450 = arith.constant 0 : index
    %c0_451 = arith.constant 0 : index
    %460 = vector.load %arg4[%c0_448, %c2_449, %c0_450, %c0_451] : memref<2x3x1x32xf32, #tpu.memory_space<vmem>>, vector<1x1x1x32xf32>
    %461 = vector.shape_cast %460 : vector<1x1x1x32xf32> to vector<1x32xf32>
    %462 = vector.broadcast %461 : vector<1x32xf32> to vector<8x32xf32>
    %463 = arith.addf %459, %462 : vector<8x32xf32>
    %464 = arith.addf %436, %449 : vector<8x32xf32>
    %465 = arith.negf %464 : vector<8x32xf32>
    %466 = math.exp %465 : vector<8x32xf32>
    %cst_452 = arith.constant 1.000000e+00 : f32
    %467 = vector.broadcast %cst_452 : f32 to vector<8x32xf32>
    %468 = arith.addf %467, %466 : vector<8x32xf32>
    %469 = arith.divf %467, %468 : vector<8x32xf32>
    %470 = arith.addf %438, %456 : vector<8x32xf32>
    %471 = arith.negf %470 : vector<8x32xf32>
    %472 = math.exp %471 : vector<8x32xf32>
    %cst_453 = arith.constant 1.000000e+00 : f32
    %473 = vector.broadcast %cst_453 : f32 to vector<8x32xf32>
    %474 = arith.addf %473, %472 : vector<8x32xf32>
    %475 = arith.divf %473, %474 : vector<8x32xf32>
    %476 = arith.mulf %469, %463 : vector<8x32xf32>
    %477 = arith.addf %440, %476 : vector<8x32xf32>
    %478 = math.tanh %477 : vector<8x32xf32>
    %cst_454 = arith.constant 1.000000e+00 : f32
    %479 = vector.broadcast %cst_454 : f32 to vector<8x32xf32>
    %480 = arith.subf %479, %475 : vector<8x32xf32>
    %481 = arith.mulf %480, %478 : vector<8x32xf32>
    %482 = arith.mulf %475, %441 : vector<8x32xf32>
    %483 = arith.addf %481, %482 : vector<8x32xf32>
    %c0_455 = arith.constant 0 : index
    %c0_456 = arith.constant 0 : index
    %484 = vector.load %arg7[%c0_455, %c0_456] : memref<8x32xf32, #tpu.memory_space<vmem>>, vector<8x32xf32>
    tpu.vector_store %arg7[%c0_455, %c0_456], %483 {strides = array<i32>} : memref<8x32xf32, #tpu.memory_space<vmem>>, vector<8x32xf32>,
    %485 = arith.truncf %483 : vector<8x32xf32> to vector<8x32xbf16>
    %c4_457 = arith.constant 4 : index
    %c0_458 = arith.constant 0 : index
    %c0_459 = arith.constant 0 : index
    %486 = vector.load %arg5[%c4_457, %c0_458, %c0_459] : memref<8x8x32xbf16, #tpu.memory_space<vmem>>, vector<1x8x32xbf16>
    %487 = vector.shape_cast %486 : vector<1x8x32xbf16> to vector<8x32xbf16>
    %488 = vector.shape_cast %485 : vector<8x32xbf16> to vector<1x8x32xbf16>
    tpu.vector_store %arg5[%c4_457, %c0_458, %c0_459], %488 {strides = array<i32>} : memref<8x8x32xbf16, #tpu.memory_space<vmem>>, vector<1x8x32xbf16>,
    %c0_460 = arith.constant 0 : index
    %c0_461 = arith.constant 0 : index
    %c3_462 = arith.constant 3 : index
    %c0_463 = arith.constant 0 : index
    %c0_464 = arith.constant 0 : index
    %489 = vector.load %arg2[%c0_460, %c0_461, %c3_462, %c0_463, %c0_464] : memref<1x3x8x8x32xf32, #tpu.memory_space<vmem>>, vector<1x1x1x8x32xf32>
    %490 = vector.shape_cast %489 : vector<1x1x1x8x32xf32> to vector<8x32xf32>
    %c0_465 = arith.constant 0 : index
    %c1_466 = arith.constant 1 : index
    %c3_467 = arith.constant 3 : index
    %c0_468 = arith.constant 0 : index
    %c0_469 = arith.constant 0 : index
    %491 = vector.load %arg2[%c0_465, %c1_466, %c3_467, %c0_468, %c0_469] : memref<1x3x8x8x32xf32, #tpu.memory_space<vmem>>, vector<1x1x1x8x32xf32>
    %492 = vector.shape_cast %491 : vector<1x1x1x8x32xf32> to vector<8x32xf32>
    %c0_470 = arith.constant 0 : index
    %c2_471 = arith.constant 2 : index
    %c3_472 = arith.constant 3 : index
    %c0_473 = arith.constant 0 : index
    %c0_474 = arith.constant 0 : index
    %493 = vector.load %arg2[%c0_470, %c2_471, %c3_472, %c0_473, %c0_474] : memref<1x3x8x8x32xf32, #tpu.memory_space<vmem>>, vector<1x1x1x8x32xf32>
    %494 = vector.shape_cast %493 : vector<1x1x1x8x32xf32> to vector<8x32xf32>
    %c0_475 = arith.constant 0 : index
    %c0_476 = arith.constant 0 : index
    %495 = vector.load %arg8[%c0_475, %c0_476] : memref<8x32xf32, #tpu.memory_space<vmem>>, vector<8x32xf32>
    %496 = arith.truncf %495 : vector<8x32xf32> to vector<8x32xbf16>
    %c1_477 = arith.constant 1 : index
    %c0_478 = arith.constant 0 : index
    %c0_479 = arith.constant 0 : index
    %c0_480 = arith.constant 0 : index
    %497 = vector.load %arg3[%c1_477, %c0_478, %c0_479, %c0_480] : memref<2x3x32x32xbf16, #tpu.memory_space<vmem>>, vector<1x1x32x32xbf16>
    %498 = vector.shape_cast %497 : vector<1x1x32x32xbf16> to vector<32x32xbf16>
    %cst_481 = arith.constant dense<0.000000e+00> : vector<8x32xf32>
    %499 = tpu.matmul %496, %498, %cst_481 {dimension_numbers = #tpu.dot_dimension_numbers<[1], [0], [0], [1], [0, 0, 1, 1], [], []>} : vector<8x32xbf16>, vector<32x32xbf16>, vector<8x32xf32> -> vector<8x32xf32>
    %c1_482 = arith.constant 1 : index
    %c0_483 = arith.constant 0 : index
    %c0_484 = arith.constant 0 : index
    %c0_485 = arith.constant 0 : index
    %500 = vector.load %arg4[%c1_482, %c0_483, %c0_484, %c0_485] : memref<2x3x1x32xf32, #tpu.memory_space<vmem>>, vector<1x1x1x32xf32>
    %501 = vector.shape_cast %500 : vector<1x1x1x32xf32> to vector<1x32xf32>
    %502 = vector.broadcast %501 : vector<1x32xf32> to vector<8x32xf32>
    %503 = arith.addf %499, %502 : vector<8x32xf32>
    %c1_486 = arith.constant 1 : index
    %c1_487 = arith.constant 1 : index
    %c0_488 = arith.constant 0 : index
    %c0_489 = arith.constant 0 : index
    %504 = vector.load %arg3[%c1_486, %c1_487, %c0_488, %c0_489] : memref<2x3x32x32xbf16, #tpu.memory_space<vmem>>, vector<1x1x32x32xbf16>
    %505 = vector.shape_cast %504 : vector<1x1x32x32xbf16> to vector<32x32xbf16>
    %cst_490 = arith.constant dense<0.000000e+00> : vector<8x32xf32>
    %506 = tpu.matmul %496, %505, %cst_490 {dimension_numbers = #tpu.dot_dimension_numbers<[1], [0], [0], [1], [0, 0, 1, 1], [], []>} : vector<8x32xbf16>, vector<32x32xbf16>, vector<8x32xf32> -> vector<8x32xf32>
    %c1_491 = arith.constant 1 : index
    %c1_492 = arith.constant 1 : index
    %c0_493 = arith.constant 0 : index
    %c0_494 = arith.constant 0 : index
    %507 = vector.load %arg4[%c1_491, %c1_492, %c0_493, %c0_494] : memref<2x3x1x32xf32, #tpu.memory_space<vmem>>, vector<1x1x1x32xf32>
    %508 = vector.shape_cast %507 : vector<1x1x1x32xf32> to vector<1x32xf32>
    %509 = vector.broadcast %508 : vector<1x32xf32> to vector<8x32xf32>
    %510 = arith.addf %506, %509 : vector<8x32xf32>
    %c1_495 = arith.constant 1 : index
    %c2_496 = arith.constant 2 : index
    %c0_497 = arith.constant 0 : index
    %c0_498 = arith.constant 0 : index
    %511 = vector.load %arg3[%c1_495, %c2_496, %c0_497, %c0_498] : memref<2x3x32x32xbf16, #tpu.memory_space<vmem>>, vector<1x1x32x32xbf16>
    %512 = vector.shape_cast %511 : vector<1x1x32x32xbf16> to vector<32x32xbf16>
    %cst_499 = arith.constant dense<0.000000e+00> : vector<8x32xf32>
    %513 = tpu.matmul %496, %512, %cst_499 {dimension_numbers = #tpu.dot_dimension_numbers<[1], [0], [0], [1], [0, 0, 1, 1], [], []>} : vector<8x32xbf16>, vector<32x32xbf16>, vector<8x32xf32> -> vector<8x32xf32>
    %c1_500 = arith.constant 1 : index
    %c2_501 = arith.constant 2 : index
    %c0_502 = arith.constant 0 : index
    %c0_503 = arith.constant 0 : index
    %514 = vector.load %arg4[%c1_500, %c2_501, %c0_502, %c0_503] : memref<2x3x1x32xf32, #tpu.memory_space<vmem>>, vector<1x1x1x32xf32>
    %515 = vector.shape_cast %514 : vector<1x1x1x32xf32> to vector<1x32xf32>
    %516 = vector.broadcast %515 : vector<1x32xf32> to vector<8x32xf32>
    %517 = arith.addf %513, %516 : vector<8x32xf32>
    %518 = arith.addf %490, %503 : vector<8x32xf32>
    %519 = arith.negf %518 : vector<8x32xf32>
    %520 = math.exp %519 : vector<8x32xf32>
    %cst_504 = arith.constant 1.000000e+00 : f32
    %521 = vector.broadcast %cst_504 : f32 to vector<8x32xf32>
    %522 = arith.addf %521, %520 : vector<8x32xf32>
    %523 = arith.divf %521, %522 : vector<8x32xf32>
    %524 = arith.addf %492, %510 : vector<8x32xf32>
    %525 = arith.negf %524 : vector<8x32xf32>
    %526 = math.exp %525 : vector<8x32xf32>
    %cst_505 = arith.constant 1.000000e+00 : f32
    %527 = vector.broadcast %cst_505 : f32 to vector<8x32xf32>
    %528 = arith.addf %527, %526 : vector<8x32xf32>
    %529 = arith.divf %527, %528 : vector<8x32xf32>
    %530 = arith.mulf %523, %517 : vector<8x32xf32>
    %531 = arith.addf %494, %530 : vector<8x32xf32>
    %532 = math.tanh %531 : vector<8x32xf32>
    %cst_506 = arith.constant 1.000000e+00 : f32
    %533 = vector.broadcast %cst_506 : f32 to vector<8x32xf32>
    %534 = arith.subf %533, %529 : vector<8x32xf32>
    %535 = arith.mulf %534, %532 : vector<8x32xf32>
    %536 = arith.mulf %529, %495 : vector<8x32xf32>
    %537 = arith.addf %535, %536 : vector<8x32xf32>
    %c0_507 = arith.constant 0 : index
    %c0_508 = arith.constant 0 : index
    %538 = vector.load %arg8[%c0_507, %c0_508] : memref<8x32xf32, #tpu.memory_space<vmem>>, vector<8x32xf32>
    tpu.vector_store %arg8[%c0_507, %c0_508], %537 {strides = array<i32>} : memref<8x32xf32, #tpu.memory_space<vmem>>, vector<8x32xf32>,
    %539 = arith.truncf %537 : vector<8x32xf32> to vector<8x32xbf16>
    %c3_509 = arith.constant 3 : index
    %c0_510 = arith.constant 0 : index
    %c0_511 = arith.constant 0 : index
    %540 = vector.load %arg6[%c3_509, %c0_510, %c0_511] : memref<8x8x32xbf16, #tpu.memory_space<vmem>>, vector<1x8x32xbf16>
    %541 = vector.shape_cast %540 : vector<1x8x32xbf16> to vector<8x32xbf16>
    %542 = vector.shape_cast %539 : vector<8x32xbf16> to vector<1x8x32xbf16>
    tpu.vector_store %arg6[%c3_509, %c0_510, %c0_511], %542 {strides = array<i32>} : memref<8x8x32xbf16, #tpu.memory_space<vmem>>, vector<1x8x32xbf16>,
    %c0_512 = arith.constant 0 : index
    %c0_513 = arith.constant 0 : index
    %c5_514 = arith.constant 5 : index
    %c0_515 = arith.constant 0 : index
    %c0_516 = arith.constant 0 : index
    %543 = vector.load %arg1[%c0_512, %c0_513, %c5_514, %c0_515, %c0_516] : memref<1x3x8x8x32xf32, #tpu.memory_space<vmem>>, vector<1x1x1x8x32xf32>
    %544 = vector.shape_cast %543 : vector<1x1x1x8x32xf32> to vector<8x32xf32>
    %c0_517 = arith.constant 0 : index
    %c1_518 = arith.constant 1 : index
    %c5_519 = arith.constant 5 : index
    %c0_520 = arith.constant 0 : index
    %c0_521 = arith.constant 0 : index
    %545 = vector.load %arg1[%c0_517, %c1_518, %c5_519, %c0_520, %c0_521] : memref<1x3x8x8x32xf32, #tpu.memory_space<vmem>>, vector<1x1x1x8x32xf32>
    %546 = vector.shape_cast %545 : vector<1x1x1x8x32xf32> to vector<8x32xf32>
    %c0_522 = arith.constant 0 : index
    %c2_523 = arith.constant 2 : index
    %c5_524 = arith.constant 5 : index
    %c0_525 = arith.constant 0 : index
    %c0_526 = arith.constant 0 : index
    %547 = vector.load %arg1[%c0_522, %c2_523, %c5_524, %c0_525, %c0_526] : memref<1x3x8x8x32xf32, #tpu.memory_space<vmem>>, vector<1x1x1x8x32xf32>
    %548 = vector.shape_cast %547 : vector<1x1x1x8x32xf32> to vector<8x32xf32>
    %c0_527 = arith.constant 0 : index
    %c0_528 = arith.constant 0 : index
    %549 = vector.load %arg7[%c0_527, %c0_528] : memref<8x32xf32, #tpu.memory_space<vmem>>, vector<8x32xf32>
    %550 = arith.truncf %549 : vector<8x32xf32> to vector<8x32xbf16>
    %c0_529 = arith.constant 0 : index
    %c0_530 = arith.constant 0 : index
    %c0_531 = arith.constant 0 : index
    %c0_532 = arith.constant 0 : index
    %551 = vector.load %arg3[%c0_529, %c0_530, %c0_531, %c0_532] : memref<2x3x32x32xbf16, #tpu.memory_space<vmem>>, vector<1x1x32x32xbf16>
    %552 = vector.shape_cast %551 : vector<1x1x32x32xbf16> to vector<32x32xbf16>
    %cst_533 = arith.constant dense<0.000000e+00> : vector<8x32xf32>
    %553 = tpu.matmul %550, %552, %cst_533 {dimension_numbers = #tpu.dot_dimension_numbers<[1], [0], [0], [1], [0, 0, 1, 1], [], []>} : vector<8x32xbf16>, vector<32x32xbf16>, vector<8x32xf32> -> vector<8x32xf32>
    %c0_534 = arith.constant 0 : index
    %c0_535 = arith.constant 0 : index
    %c0_536 = arith.constant 0 : index
    %c0_537 = arith.constant 0 : index
    %554 = vector.load %arg4[%c0_534, %c0_535, %c0_536, %c0_537] : memref<2x3x1x32xf32, #tpu.memory_space<vmem>>, vector<1x1x1x32xf32>
    %555 = vector.shape_cast %554 : vector<1x1x1x32xf32> to vector<1x32xf32>
    %556 = vector.broadcast %555 : vector<1x32xf32> to vector<8x32xf32>
    %557 = arith.addf %553, %556 : vector<8x32xf32>
    %c0_538 = arith.constant 0 : index
    %c1_539 = arith.constant 1 : index
    %c0_540 = arith.constant 0 : index
    %c0_541 = arith.constant 0 : index
    %558 = vector.load %arg3[%c0_538, %c1_539, %c0_540, %c0_541] : memref<2x3x32x32xbf16, #tpu.memory_space<vmem>>, vector<1x1x32x32xbf16>
    %559 = vector.shape_cast %558 : vector<1x1x32x32xbf16> to vector<32x32xbf16>
    %cst_542 = arith.constant dense<0.000000e+00> : vector<8x32xf32>
    %560 = tpu.matmul %550, %559, %cst_542 {dimension_numbers = #tpu.dot_dimension_numbers<[1], [0], [0], [1], [0, 0, 1, 1], [], []>} : vector<8x32xbf16>, vector<32x32xbf16>, vector<8x32xf32> -> vector<8x32xf32>
    %c0_543 = arith.constant 0 : index
    %c1_544 = arith.constant 1 : index
    %c0_545 = arith.constant 0 : index
    %c0_546 = arith.constant 0 : index
    %561 = vector.load %arg4[%c0_543, %c1_544, %c0_545, %c0_546] : memref<2x3x1x32xf32, #tpu.memory_space<vmem>>, vector<1x1x1x32xf32>
    %562 = vector.shape_cast %561 : vector<1x1x1x32xf32> to vector<1x32xf32>
    %563 = vector.broadcast %562 : vector<1x32xf32> to vector<8x32xf32>
    %564 = arith.addf %560, %563 : vector<8x32xf32>
    %c0_547 = arith.constant 0 : index
    %c2_548 = arith.constant 2 : index
    %c0_549 = arith.constant 0 : index
    %c0_550 = arith.constant 0 : index
    %565 = vector.load %arg3[%c0_547, %c2_548, %c0_549, %c0_550] : memref<2x3x32x32xbf16, #tpu.memory_space<vmem>>, vector<1x1x32x32xbf16>
    %566 = vector.shape_cast %565 : vector<1x1x32x32xbf16> to vector<32x32xbf16>
    %cst_551 = arith.constant dense<0.000000e+00> : vector<8x32xf32>
    %567 = tpu.matmul %550, %566, %cst_551 {dimension_numbers = #tpu.dot_dimension_numbers<[1], [0], [0], [1], [0, 0, 1, 1], [], []>} : vector<8x32xbf16>, vector<32x32xbf16>, vector<8x32xf32> -> vector<8x32xf32>
    %c0_552 = arith.constant 0 : index
    %c2_553 = arith.constant 2 : index
    %c0_554 = arith.constant 0 : index
    %c0_555 = arith.constant 0 : index
    %568 = vector.load %arg4[%c0_552, %c2_553, %c0_554, %c0_555] : memref<2x3x1x32xf32, #tpu.memory_space<vmem>>, vector<1x1x1x32xf32>
    %569 = vector.shape_cast %568 : vector<1x1x1x32xf32> to vector<1x32xf32>
    %570 = vector.broadcast %569 : vector<1x32xf32> to vector<8x32xf32>
    %571 = arith.addf %567, %570 : vector<8x32xf32>
    %572 = arith.addf %544, %557 : vector<8x32xf32>
    %573 = arith.negf %572 : vector<8x32xf32>
    %574 = math.exp %573 : vector<8x32xf32>
    %cst_556 = arith.constant 1.000000e+00 : f32
    %575 = vector.broadcast %cst_556 : f32 to vector<8x32xf32>
    %576 = arith.addf %575, %574 : vector<8x32xf32>
    %577 = arith.divf %575, %576 : vector<8x32xf32>
    %578 = arith.addf %546, %564 : vector<8x32xf32>
    %579 = arith.negf %578 : vector<8x32xf32>
    %580 = math.exp %579 : vector<8x32xf32>
    %cst_557 = arith.constant 1.000000e+00 : f32
    %581 = vector.broadcast %cst_557 : f32 to vector<8x32xf32>
    %582 = arith.addf %581, %580 : vector<8x32xf32>
    %583 = arith.divf %581, %582 : vector<8x32xf32>
    %584 = arith.mulf %577, %571 : vector<8x32xf32>
    %585 = arith.addf %548, %584 : vector<8x32xf32>
    %586 = math.tanh %585 : vector<8x32xf32>
    %cst_558 = arith.constant 1.000000e+00 : f32
    %587 = vector.broadcast %cst_558 : f32 to vector<8x32xf32>
    %588 = arith.subf %587, %583 : vector<8x32xf32>
    %589 = arith.mulf %588, %586 : vector<8x32xf32>
    %590 = arith.mulf %583, %549 : vector<8x32xf32>
    %591 = arith.addf %589, %590 : vector<8x32xf32>
    %c0_559 = arith.constant 0 : index
    %c0_560 = arith.constant 0 : index
    %592 = vector.load %arg7[%c0_559, %c0_560] : memref<8x32xf32, #tpu.memory_space<vmem>>, vector<8x32xf32>
    tpu.vector_store %arg7[%c0_559, %c0_560], %591 {strides = array<i32>} : memref<8x32xf32, #tpu.memory_space<vmem>>, vector<8x32xf32>,
    %593 = arith.truncf %591 : vector<8x32xf32> to vector<8x32xbf16>
    %c5_561 = arith.constant 5 : index
    %c0_562 = arith.constant 0 : index
    %c0_563 = arith.constant 0 : index
    %594 = vector.load %arg5[%c5_561, %c0_562, %c0_563] : memref<8x8x32xbf16, #tpu.memory_space<vmem>>, vector<1x8x32xbf16>
    %595 = vector.shape_cast %594 : vector<1x8x32xbf16> to vector<8x32xbf16>
    %596 = vector.shape_cast %593 : vector<8x32xbf16> to vector<1x8x32xbf16>
    tpu.vector_store %arg5[%c5_561, %c0_562, %c0_563], %596 {strides = array<i32>} : memref<8x8x32xbf16, #tpu.memory_space<vmem>>, vector<1x8x32xbf16>,
    %c0_564 = arith.constant 0 : index
    %c0_565 = arith.constant 0 : index
    %c2_566 = arith.constant 2 : index
    %c0_567 = arith.constant 0 : index
    %c0_568 = arith.constant 0 : index
    %597 = vector.load %arg2[%c0_564, %c0_565, %c2_566, %c0_567, %c0_568] : memref<1x3x8x8x32xf32, #tpu.memory_space<vmem>>, vector<1x1x1x8x32xf32>
    %598 = vector.shape_cast %597 : vector<1x1x1x8x32xf32> to vector<8x32xf32>
    %c0_569 = arith.constant 0 : index
    %c1_570 = arith.constant 1 : index
    %c2_571 = arith.constant 2 : index
    %c0_572 = arith.constant 0 : index
    %c0_573 = arith.constant 0 : index
    %599 = vector.load %arg2[%c0_569, %c1_570, %c2_571, %c0_572, %c0_573] : memref<1x3x8x8x32xf32, #tpu.memory_space<vmem>>, vector<1x1x1x8x32xf32>
    %600 = vector.shape_cast %599 : vector<1x1x1x8x32xf32> to vector<8x32xf32>
    %c0_574 = arith.constant 0 : index
    %c2_575 = arith.constant 2 : index
    %c2_576 = arith.constant 2 : index
    %c0_577 = arith.constant 0 : index
    %c0_578 = arith.constant 0 : index
    %601 = vector.load %arg2[%c0_574, %c2_575, %c2_576, %c0_577, %c0_578] : memref<1x3x8x8x32xf32, #tpu.memory_space<vmem>>, vector<1x1x1x8x32xf32>
    %602 = vector.shape_cast %601 : vector<1x1x1x8x32xf32> to vector<8x32xf32>
    %c0_579 = arith.constant 0 : index
    %c0_580 = arith.constant 0 : index
    %603 = vector.load %arg8[%c0_579, %c0_580] : memref<8x32xf32, #tpu.memory_space<vmem>>, vector<8x32xf32>
    %604 = arith.truncf %603 : vector<8x32xf32> to vector<8x32xbf16>
    %c1_581 = arith.constant 1 : index
    %c0_582 = arith.constant 0 : index
    %c0_583 = arith.constant 0 : index
    %c0_584 = arith.constant 0 : index
    %605 = vector.load %arg3[%c1_581, %c0_582, %c0_583, %c0_584] : memref<2x3x32x32xbf16, #tpu.memory_space<vmem>>, vector<1x1x32x32xbf16>
    %606 = vector.shape_cast %605 : vector<1x1x32x32xbf16> to vector<32x32xbf16>
    %cst_585 = arith.constant dense<0.000000e+00> : vector<8x32xf32>
    %607 = tpu.matmul %604, %606, %cst_585 {dimension_numbers = #tpu.dot_dimension_numbers<[1], [0], [0], [1], [0, 0, 1, 1], [], []>} : vector<8x32xbf16>, vector<32x32xbf16>, vector<8x32xf32> -> vector<8x32xf32>
    %c1_586 = arith.constant 1 : index
    %c0_587 = arith.constant 0 : index
    %c0_588 = arith.constant 0 : index
    %c0_589 = arith.constant 0 : index
    %608 = vector.load %arg4[%c1_586, %c0_587, %c0_588, %c0_589] : memref<2x3x1x32xf32, #tpu.memory_space<vmem>>, vector<1x1x1x32xf32>
    %609 = vector.shape_cast %608 : vector<1x1x1x32xf32> to vector<1x32xf32>
    %610 = vector.broadcast %609 : vector<1x32xf32> to vector<8x32xf32>
    %611 = arith.addf %607, %610 : vector<8x32xf32>
    %c1_590 = arith.constant 1 : index
    %c1_591 = arith.constant 1 : index
    %c0_592 = arith.constant 0 : index
    %c0_593 = arith.constant 0 : index
    %612 = vector.load %arg3[%c1_590, %c1_591, %c0_592, %c0_593] : memref<2x3x32x32xbf16, #tpu.memory_space<vmem>>, vector<1x1x32x32xbf16>
    %613 = vector.shape_cast %612 : vector<1x1x32x32xbf16> to vector<32x32xbf16>
    %cst_594 = arith.constant dense<0.000000e+00> : vector<8x32xf32>
    %614 = tpu.matmul %604, %613, %cst_594 {dimension_numbers = #tpu.dot_dimension_numbers<[1], [0], [0], [1], [0, 0, 1, 1], [], []>} : vector<8x32xbf16>, vector<32x32xbf16>, vector<8x32xf32> -> vector<8x32xf32>
    %c1_595 = arith.constant 1 : index
    %c1_596 = arith.constant 1 : index
    %c0_597 = arith.constant 0 : index
    %c0_598 = arith.constant 0 : index
    %615 = vector.load %arg4[%c1_595, %c1_596, %c0_597, %c0_598] : memref<2x3x1x32xf32, #tpu.memory_space<vmem>>, vector<1x1x1x32xf32>
    %616 = vector.shape_cast %615 : vector<1x1x1x32xf32> to vector<1x32xf32>
    %617 = vector.broadcast %616 : vector<1x32xf32> to vector<8x32xf32>
    %618 = arith.addf %614, %617 : vector<8x32xf32>
    %c1_599 = arith.constant 1 : index
    %c2_600 = arith.constant 2 : index
    %c0_601 = arith.constant 0 : index
    %c0_602 = arith.constant 0 : index
    %619 = vector.load %arg3[%c1_599, %c2_600, %c0_601, %c0_602] : memref<2x3x32x32xbf16, #tpu.memory_space<vmem>>, vector<1x1x32x32xbf16>
    %620 = vector.shape_cast %619 : vector<1x1x32x32xbf16> to vector<32x32xbf16>
    %cst_603 = arith.constant dense<0.000000e+00> : vector<8x32xf32>
    %621 = tpu.matmul %604, %620, %cst_603 {dimension_numbers = #tpu.dot_dimension_numbers<[1], [0], [0], [1], [0, 0, 1, 1], [], []>} : vector<8x32xbf16>, vector<32x32xbf16>, vector<8x32xf32> -> vector<8x32xf32>
    %c1_604 = arith.constant 1 : index
    %c2_605 = arith.constant 2 : index
    %c0_606 = arith.constant 0 : index
    %c0_607 = arith.constant 0 : index
    %622 = vector.load %arg4[%c1_604, %c2_605, %c0_606, %c0_607] : memref<2x3x1x32xf32, #tpu.memory_space<vmem>>, vector<1x1x1x32xf32>
    %623 = vector.shape_cast %622 : vector<1x1x1x32xf32> to vector<1x32xf32>
    %624 = vector.broadcast %623 : vector<1x32xf32> to vector<8x32xf32>
    %625 = arith.addf %621, %624 : vector<8x32xf32>
    %626 = arith.addf %598, %611 : vector<8x32xf32>
    %627 = arith.negf %626 : vector<8x32xf32>
    %628 = math.exp %627 : vector<8x32xf32>
    %cst_608 = arith.constant 1.000000e+00 : f32
    %629 = vector.broadcast %cst_608 : f32 to vector<8x32xf32>
    %630 = arith.addf %629, %628 : vector<8x32xf32>
    %631 = arith.divf %629, %630 : vector<8x32xf32>
    %632 = arith.addf %600, %618 : vector<8x32xf32>
    %633 = arith.negf %632 : vector<8x32xf32>
    %634 = math.exp %633 : vector<8x32xf32>
    %cst_609 = arith.constant 1.000000e+00 : f32
    %635 = vector.broadcast %cst_609 : f32 to vector<8x32xf32>
    %636 = arith.addf %635, %634 : vector<8x32xf32>
    %637 = arith.divf %635, %636 : vector<8x32xf32>
    %638 = arith.mulf %631, %625 : vector<8x32xf32>
    %639 = arith.addf %602, %638 : vector<8x32xf32>
    %640 = math.tanh %639 : vector<8x32xf32>
    %cst_610 = arith.constant 1.000000e+00 : f32
    %641 = vector.broadcast %cst_610 : f32 to vector<8x32xf32>
    %642 = arith.subf %641, %637 : vector<8x32xf32>
    %643 = arith.mulf %642, %640 : vector<8x32xf32>
    %644 = arith.mulf %637, %603 : vector<8x32xf32>
    %645 = arith.addf %643, %644 : vector<8x32xf32>
    %c0_611 = arith.constant 0 : index
    %c0_612 = arith.constant 0 : index
    %646 = vector.load %arg8[%c0_611, %c0_612] : memref<8x32xf32, #tpu.memory_space<vmem>>, vector<8x32xf32>
    tpu.vector_store %arg8[%c0_611, %c0_612], %645 {strides = array<i32>} : memref<8x32xf32, #tpu.memory_space<vmem>>, vector<8x32xf32>,
    %647 = arith.truncf %645 : vector<8x32xf32> to vector<8x32xbf16>
    %c2_613 = arith.constant 2 : index
    %c0_614 = arith.constant 0 : index
    %c0_615 = arith.constant 0 : index
    %648 = vector.load %arg6[%c2_613, %c0_614, %c0_615] : memref<8x8x32xbf16, #tpu.memory_space<vmem>>, vector<1x8x32xbf16>
    %649 = vector.shape_cast %648 : vector<1x8x32xbf16> to vector<8x32xbf16>
    %650 = vector.shape_cast %647 : vector<8x32xbf16> to vector<1x8x32xbf16>
    tpu.vector_store %arg6[%c2_613, %c0_614, %c0_615], %650 {strides = array<i32>} : memref<8x8x32xbf16, #tpu.memory_space<vmem>>, vector<1x8x32xbf16>,
    %c0_616 = arith.constant 0 : index
    %c0_617 = arith.constant 0 : index
    %c6_618 = arith.constant 6 : index
    %c0_619 = arith.constant 0 : index
    %c0_620 = arith.constant 0 : index
    %651 = vector.load %arg1[%c0_616, %c0_617, %c6_618, %c0_619, %c0_620] : memref<1x3x8x8x32xf32, #tpu.memory_space<vmem>>, vector<1x1x1x8x32xf32>
    %652 = vector.shape_cast %651 : vector<1x1x1x8x32xf32> to vector<8x32xf32>
    %c0_621 = arith.constant 0 : index
    %c1_622 = arith.constant 1 : index
    %c6_623 = arith.constant 6 : index
    %c0_624 = arith.constant 0 : index
    %c0_625 = arith.constant 0 : index
    %653 = vector.load %arg1[%c0_621, %c1_622, %c6_623, %c0_624, %c0_625] : memref<1x3x8x8x32xf32, #tpu.memory_space<vmem>>, vector<1x1x1x8x32xf32>
    %654 = vector.shape_cast %653 : vector<1x1x1x8x32xf32> to vector<8x32xf32>
    %c0_626 = arith.constant 0 : index
    %c2_627 = arith.constant 2 : index
    %c6_628 = arith.constant 6 : index
    %c0_629 = arith.constant 0 : index
    %c0_630 = arith.constant 0 : index
    %655 = vector.load %arg1[%c0_626, %c2_627, %c6_628, %c0_629, %c0_630] : memref<1x3x8x8x32xf32, #tpu.memory_space<vmem>>, vector<1x1x1x8x32xf32>
    %656 = vector.shape_cast %655 : vector<1x1x1x8x32xf32> to vector<8x32xf32>
    %c0_631 = arith.constant 0 : index
    %c0_632 = arith.constant 0 : index
    %657 = vector.load %arg7[%c0_631, %c0_632] : memref<8x32xf32, #tpu.memory_space<vmem>>, vector<8x32xf32>
    %658 = arith.truncf %657 : vector<8x32xf32> to vector<8x32xbf16>
    %c0_633 = arith.constant 0 : index
    %c0_634 = arith.constant 0 : index
    %c0_635 = arith.constant 0 : index
    %c0_636 = arith.constant 0 : index
    %659 = vector.load %arg3[%c0_633, %c0_634, %c0_635, %c0_636] : memref<2x3x32x32xbf16, #tpu.memory_space<vmem>>, vector<1x1x32x32xbf16>
    %660 = vector.shape_cast %659 : vector<1x1x32x32xbf16> to vector<32x32xbf16>
    %cst_637 = arith.constant dense<0.000000e+00> : vector<8x32xf32>
    %661 = tpu.matmul %658, %660, %cst_637 {dimension_numbers = #tpu.dot_dimension_numbers<[1], [0], [0], [1], [0, 0, 1, 1], [], []>} : vector<8x32xbf16>, vector<32x32xbf16>, vector<8x32xf32> -> vector<8x32xf32>
    %c0_638 = arith.constant 0 : index
    %c0_639 = arith.constant 0 : index
    %c0_640 = arith.constant 0 : index
    %c0_641 = arith.constant 0 : index
    %662 = vector.load %arg4[%c0_638, %c0_639, %c0_640, %c0_641] : memref<2x3x1x32xf32, #tpu.memory_space<vmem>>, vector<1x1x1x32xf32>
    %663 = vector.shape_cast %662 : vector<1x1x1x32xf32> to vector<1x32xf32>
    %664 = vector.broadcast %663 : vector<1x32xf32> to vector<8x32xf32>
    %665 = arith.addf %661, %664 : vector<8x32xf32>
    %c0_642 = arith.constant 0 : index
    %c1_643 = arith.constant 1 : index
    %c0_644 = arith.constant 0 : index
    %c0_645 = arith.constant 0 : index
    %666 = vector.load %arg3[%c0_642, %c1_643, %c0_644, %c0_645] : memref<2x3x32x32xbf16, #tpu.memory_space<vmem>>, vector<1x1x32x32xbf16>
    %667 = vector.shape_cast %666 : vector<1x1x32x32xbf16> to vector<32x32xbf16>
    %cst_646 = arith.constant dense<0.000000e+00> : vector<8x32xf32>
    %668 = tpu.matmul %658, %667, %cst_646 {dimension_numbers = #tpu.dot_dimension_numbers<[1], [0], [0], [1], [0, 0, 1, 1], [], []>} : vector<8x32xbf16>, vector<32x32xbf16>, vector<8x32xf32> -> vector<8x32xf32>
    %c0_647 = arith.constant 0 : index
    %c1_648 = arith.constant 1 : index
    %c0_649 = arith.constant 0 : index
    %c0_650 = arith.constant 0 : index
    %669 = vector.load %arg4[%c0_647, %c1_648, %c0_649, %c0_650] : memref<2x3x1x32xf32, #tpu.memory_space<vmem>>, vector<1x1x1x32xf32>
    %670 = vector.shape_cast %669 : vector<1x1x1x32xf32> to vector<1x32xf32>
    %671 = vector.broadcast %670 : vector<1x32xf32> to vector<8x32xf32>
    %672 = arith.addf %668, %671 : vector<8x32xf32>
    %c0_651 = arith.constant 0 : index
    %c2_652 = arith.constant 2 : index
    %c0_653 = arith.constant 0 : index
    %c0_654 = arith.constant 0 : index
    %673 = vector.load %arg3[%c0_651, %c2_652, %c0_653, %c0_654] : memref<2x3x32x32xbf16, #tpu.memory_space<vmem>>, vector<1x1x32x32xbf16>
    %674 = vector.shape_cast %673 : vector<1x1x32x32xbf16> to vector<32x32xbf16>
    %cst_655 = arith.constant dense<0.000000e+00> : vector<8x32xf32>
    %675 = tpu.matmul %658, %674, %cst_655 {dimension_numbers = #tpu.dot_dimension_numbers<[1], [0], [0], [1], [0, 0, 1, 1], [], []>} : vector<8x32xbf16>, vector<32x32xbf16>, vector<8x32xf32> -> vector<8x32xf32>
    %c0_656 = arith.constant 0 : index
    %c2_657 = arith.constant 2 : index
    %c0_658 = arith.constant 0 : index
    %c0_659 = arith.constant 0 : index
    %676 = vector.load %arg4[%c0_656, %c2_657, %c0_658, %c0_659] : memref<2x3x1x32xf32, #tpu.memory_space<vmem>>, vector<1x1x1x32xf32>
    %677 = vector.shape_cast %676 : vector<1x1x1x32xf32> to vector<1x32xf32>
    %678 = vector.broadcast %677 : vector<1x32xf32> to vector<8x32xf32>
    %679 = arith.addf %675, %678 : vector<8x32xf32>
    %680 = arith.addf %652, %665 : vector<8x32xf32>
    %681 = arith.negf %680 : vector<8x32xf32>
    %682 = math.exp %681 : vector<8x32xf32>
    %cst_660 = arith.constant 1.000000e+00 : f32
    %683 = vector.broadcast %cst_660 : f32 to vector<8x32xf32>
    %684 = arith.addf %683, %682 : vector<8x32xf32>
    %685 = arith.divf %683, %684 : vector<8x32xf32>
    %686 = arith.addf %654, %672 : vector<8x32xf32>
    %687 = arith.negf %686 : vector<8x32xf32>
    %688 = math.exp %687 : vector<8x32xf32>
    %cst_661 = arith.constant 1.000000e+00 : f32
    %689 = vector.broadcast %cst_661 : f32 to vector<8x32xf32>
    %690 = arith.addf %689, %688 : vector<8x32xf32>
    %691 = arith.divf %689, %690 : vector<8x32xf32>
    %692 = arith.mulf %685, %679 : vector<8x32xf32>
    %693 = arith.addf %656, %692 : vector<8x32xf32>
    %694 = math.tanh %693 : vector<8x32xf32>
    %cst_662 = arith.constant 1.000000e+00 : f32
    %695 = vector.broadcast %cst_662 : f32 to vector<8x32xf32>
    %696 = arith.subf %695, %691 : vector<8x32xf32>
    %697 = arith.mulf %696, %694 : vector<8x32xf32>
    %698 = arith.mulf %691, %657 : vector<8x32xf32>
    %699 = arith.addf %697, %698 : vector<8x32xf32>
    %c0_663 = arith.constant 0 : index
    %c0_664 = arith.constant 0 : index
    %700 = vector.load %arg7[%c0_663, %c0_664] : memref<8x32xf32, #tpu.memory_space<vmem>>, vector<8x32xf32>
    tpu.vector_store %arg7[%c0_663, %c0_664], %699 {strides = array<i32>} : memref<8x32xf32, #tpu.memory_space<vmem>>, vector<8x32xf32>,
    %701 = arith.truncf %699 : vector<8x32xf32> to vector<8x32xbf16>
    %c6_665 = arith.constant 6 : index
    %c0_666 = arith.constant 0 : index
    %c0_667 = arith.constant 0 : index
    %702 = vector.load %arg5[%c6_665, %c0_666, %c0_667] : memref<8x8x32xbf16, #tpu.memory_space<vmem>>, vector<1x8x32xbf16>
    %703 = vector.shape_cast %702 : vector<1x8x32xbf16> to vector<8x32xbf16>
    %704 = vector.shape_cast %701 : vector<8x32xbf16> to vector<1x8x32xbf16>
    tpu.vector_store %arg5[%c6_665, %c0_666, %c0_667], %704 {strides = array<i32>} : memref<8x8x32xbf16, #tpu.memory_space<vmem>>, vector<1x8x32xbf16>,
    %c0_668 = arith.constant 0 : index
    %c0_669 = arith.constant 0 : index
    %c1_670 = arith.constant 1 : index
    %c0_671 = arith.constant 0 : index
    %c0_672 = arith.constant 0 : index
    %705 = vector.load %arg2[%c0_668, %c0_669, %c1_670, %c0_671, %c0_672] : memref<1x3x8x8x32xf32, #tpu.memory_space<vmem>>, vector<1x1x1x8x32xf32>
    %706 = vector.shape_cast %705 : vector<1x1x1x8x32xf32> to vector<8x32xf32>
    %c0_673 = arith.constant 0 : index
    %c1_674 = arith.constant 1 : index
    %c1_675 = arith.constant 1 : index
    %c0_676 = arith.constant 0 : index
    %c0_677 = arith.constant 0 : index
    %707 = vector.load %arg2[%c0_673, %c1_674, %c1_675, %c0_676, %c0_677] : memref<1x3x8x8x32xf32, #tpu.memory_space<vmem>>, vector<1x1x1x8x32xf32>
    %708 = vector.shape_cast %707 : vector<1x1x1x8x32xf32> to vector<8x32xf32>
    %c0_678 = arith.constant 0 : index
    %c2_679 = arith.constant 2 : index
    %c1_680 = arith.constant 1 : index
    %c0_681 = arith.constant 0 : index
    %c0_682 = arith.constant 0 : index
    %709 = vector.load %arg2[%c0_678, %c2_679, %c1_680, %c0_681, %c0_682] : memref<1x3x8x8x32xf32, #tpu.memory_space<vmem>>, vector<1x1x1x8x32xf32>
    %710 = vector.shape_cast %709 : vector<1x1x1x8x32xf32> to vector<8x32xf32>
    %c0_683 = arith.constant 0 : index
    %c0_684 = arith.constant 0 : index
    %711 = vector.load %arg8[%c0_683, %c0_684] : memref<8x32xf32, #tpu.memory_space<vmem>>, vector<8x32xf32>
    %712 = arith.truncf %711 : vector<8x32xf32> to vector<8x32xbf16>
    %c1_685 = arith.constant 1 : index
    %c0_686 = arith.constant 0 : index
    %c0_687 = arith.constant 0 : index
    %c0_688 = arith.constant 0 : index
    %713 = vector.load %arg3[%c1_685, %c0_686, %c0_687, %c0_688] : memref<2x3x32x32xbf16, #tpu.memory_space<vmem>>, vector<1x1x32x32xbf16>
    %714 = vector.shape_cast %713 : vector<1x1x32x32xbf16> to vector<32x32xbf16>
    %cst_689 = arith.constant dense<0.000000e+00> : vector<8x32xf32>
    %715 = tpu.matmul %712, %714, %cst_689 {dimension_numbers = #tpu.dot_dimension_numbers<[1], [0], [0], [1], [0, 0, 1, 1], [], []>} : vector<8x32xbf16>, vector<32x32xbf16>, vector<8x32xf32> -> vector<8x32xf32>
    %c1_690 = arith.constant 1 : index
    %c0_691 = arith.constant 0 : index
    %c0_692 = arith.constant 0 : index
    %c0_693 = arith.constant 0 : index
    %716 = vector.load %arg4[%c1_690, %c0_691, %c0_692, %c0_693] : memref<2x3x1x32xf32, #tpu.memory_space<vmem>>, vector<1x1x1x32xf32>
    %717 = vector.shape_cast %716 : vector<1x1x1x32xf32> to vector<1x32xf32>
    %718 = vector.broadcast %717 : vector<1x32xf32> to vector<8x32xf32>
    %719 = arith.addf %715, %718 : vector<8x32xf32>
    %c1_694 = arith.constant 1 : index
    %c1_695 = arith.constant 1 : index
    %c0_696 = arith.constant 0 : index
    %c0_697 = arith.constant 0 : index
    %720 = vector.load %arg3[%c1_694, %c1_695, %c0_696, %c0_697] : memref<2x3x32x32xbf16, #tpu.memory_space<vmem>>, vector<1x1x32x32xbf16>
    %721 = vector.shape_cast %720 : vector<1x1x32x32xbf16> to vector<32x32xbf16>
    %cst_698 = arith.constant dense<0.000000e+00> : vector<8x32xf32>
    %722 = tpu.matmul %712, %721, %cst_698 {dimension_numbers = #tpu.dot_dimension_numbers<[1], [0], [0], [1], [0, 0, 1, 1], [], []>} : vector<8x32xbf16>, vector<32x32xbf16>, vector<8x32xf32> -> vector<8x32xf32>
    %c1_699 = arith.constant 1 : index
    %c1_700 = arith.constant 1 : index
    %c0_701 = arith.constant 0 : index
    %c0_702 = arith.constant 0 : index
    %723 = vector.load %arg4[%c1_699, %c1_700, %c0_701, %c0_702] : memref<2x3x1x32xf32, #tpu.memory_space<vmem>>, vector<1x1x1x32xf32>
    %724 = vector.shape_cast %723 : vector<1x1x1x32xf32> to vector<1x32xf32>
    %725 = vector.broadcast %724 : vector<1x32xf32> to vector<8x32xf32>
    %726 = arith.addf %722, %725 : vector<8x32xf32>
    %c1_703 = arith.constant 1 : index
    %c2_704 = arith.constant 2 : index
    %c0_705 = arith.constant 0 : index
    %c0_706 = arith.constant 0 : index
    %727 = vector.load %arg3[%c1_703, %c2_704, %c0_705, %c0_706] : memref<2x3x32x32xbf16, #tpu.memory_space<vmem>>, vector<1x1x32x32xbf16>
    %728 = vector.shape_cast %727 : vector<1x1x32x32xbf16> to vector<32x32xbf16>
    %cst_707 = arith.constant dense<0.000000e+00> : vector<8x32xf32>
    %729 = tpu.matmul %712, %728, %cst_707 {dimension_numbers = #tpu.dot_dimension_numbers<[1], [0], [0], [1], [0, 0, 1, 1], [], []>} : vector<8x32xbf16>, vector<32x32xbf16>, vector<8x32xf32> -> vector<8x32xf32>
    %c1_708 = arith.constant 1 : index
    %c2_709 = arith.constant 2 : index
    %c0_710 = arith.constant 0 : index
    %c0_711 = arith.constant 0 : index
    %730 = vector.load %arg4[%c1_708, %c2_709, %c0_710, %c0_711] : memref<2x3x1x32xf32, #tpu.memory_space<vmem>>, vector<1x1x1x32xf32>
    %731 = vector.shape_cast %730 : vector<1x1x1x32xf32> to vector<1x32xf32>
    %732 = vector.broadcast %731 : vector<1x32xf32> to vector<8x32xf32>
    %733 = arith.addf %729, %732 : vector<8x32xf32>
    %734 = arith.addf %706, %719 : vector<8x32xf32>
    %735 = arith.negf %734 : vector<8x32xf32>
    %736 = math.exp %735 : vector<8x32xf32>
    %cst_712 = arith.constant 1.000000e+00 : f32
    %737 = vector.broadcast %cst_712 : f32 to vector<8x32xf32>
    %738 = arith.addf %737, %736 : vector<8x32xf32>
    %739 = arith.divf %737, %738 : vector<8x32xf32>
    %740 = arith.addf %708, %726 : vector<8x32xf32>
    %741 = arith.negf %740 : vector<8x32xf32>
    %742 = math.exp %741 : vector<8x32xf32>
    %cst_713 = arith.constant 1.000000e+00 : f32
    %743 = vector.broadcast %cst_713 : f32 to vector<8x32xf32>
    %744 = arith.addf %743, %742 : vector<8x32xf32>
    %745 = arith.divf %743, %744 : vector<8x32xf32>
    %746 = arith.mulf %739, %733 : vector<8x32xf32>
    %747 = arith.addf %710, %746 : vector<8x32xf32>
    %748 = math.tanh %747 : vector<8x32xf32>
    %cst_714 = arith.constant 1.000000e+00 : f32
    %749 = vector.broadcast %cst_714 : f32 to vector<8x32xf32>
    %750 = arith.subf %749, %745 : vector<8x32xf32>
    %751 = arith.mulf %750, %748 : vector<8x32xf32>
    %752 = arith.mulf %745, %711 : vector<8x32xf32>
    %753 = arith.addf %751, %752 : vector<8x32xf32>
    %c0_715 = arith.constant 0 : index
    %c0_716 = arith.constant 0 : index
    %754 = vector.load %arg8[%c0_715, %c0_716] : memref<8x32xf32, #tpu.memory_space<vmem>>, vector<8x32xf32>
    tpu.vector_store %arg8[%c0_715, %c0_716], %753 {strides = array<i32>} : memref<8x32xf32, #tpu.memory_space<vmem>>, vector<8x32xf32>,
    %755 = arith.truncf %753 : vector<8x32xf32> to vector<8x32xbf16>
    %c1_717 = arith.constant 1 : index
    %c0_718 = arith.constant 0 : index
    %c0_719 = arith.constant 0 : index
    %756 = vector.load %arg6[%c1_717, %c0_718, %c0_719] : memref<8x8x32xbf16, #tpu.memory_space<vmem>>, vector<1x8x32xbf16>
    %757 = vector.shape_cast %756 : vector<1x8x32xbf16> to vector<8x32xbf16>
    %758 = vector.shape_cast %755 : vector<8x32xbf16> to vector<1x8x32xbf16>
    tpu.vector_store %arg6[%c1_717, %c0_718, %c0_719], %758 {strides = array<i32>} : memref<8x8x32xbf16, #tpu.memory_space<vmem>>, vector<1x8x32xbf16>,
    %c0_720 = arith.constant 0 : index
    %c0_721 = arith.constant 0 : index
    %c7_722 = arith.constant 7 : index
    %c0_723 = arith.constant 0 : index
    %c0_724 = arith.constant 0 : index
    %759 = vector.load %arg1[%c0_720, %c0_721, %c7_722, %c0_723, %c0_724] : memref<1x3x8x8x32xf32, #tpu.memory_space<vmem>>, vector<1x1x1x8x32xf32>
    %760 = vector.shape_cast %759 : vector<1x1x1x8x32xf32> to vector<8x32xf32>
    %c0_725 = arith.constant 0 : index
    %c1_726 = arith.constant 1 : index
    %c7_727 = arith.constant 7 : index
    %c0_728 = arith.constant 0 : index
    %c0_729 = arith.constant 0 : index
    %761 = vector.load %arg1[%c0_725, %c1_726, %c7_727, %c0_728, %c0_729] : memref<1x3x8x8x32xf32, #tpu.memory_space<vmem>>, vector<1x1x1x8x32xf32>
    %762 = vector.shape_cast %761 : vector<1x1x1x8x32xf32> to vector<8x32xf32>
    %c0_730 = arith.constant 0 : index
    %c2_731 = arith.constant 2 : index
    %c7_732 = arith.constant 7 : index
    %c0_733 = arith.constant 0 : index
    %c0_734 = arith.constant 0 : index
    %763 = vector.load %arg1[%c0_730, %c2_731, %c7_732, %c0_733, %c0_734] : memref<1x3x8x8x32xf32, #tpu.memory_space<vmem>>, vector<1x1x1x8x32xf32>
    %764 = vector.shape_cast %763 : vector<1x1x1x8x32xf32> to vector<8x32xf32>
    %c0_735 = arith.constant 0 : index
    %c0_736 = arith.constant 0 : index
    %765 = vector.load %arg7[%c0_735, %c0_736] : memref<8x32xf32, #tpu.memory_space<vmem>>, vector<8x32xf32>
    %766 = arith.truncf %765 : vector<8x32xf32> to vector<8x32xbf16>
    %c0_737 = arith.constant 0 : index
    %c0_738 = arith.constant 0 : index
    %c0_739 = arith.constant 0 : index
    %c0_740 = arith.constant 0 : index
    %767 = vector.load %arg3[%c0_737, %c0_738, %c0_739, %c0_740] : memref<2x3x32x32xbf16, #tpu.memory_space<vmem>>, vector<1x1x32x32xbf16>
    %768 = vector.shape_cast %767 : vector<1x1x32x32xbf16> to vector<32x32xbf16>
    %cst_741 = arith.constant dense<0.000000e+00> : vector<8x32xf32>
    %769 = tpu.matmul %766, %768, %cst_741 {dimension_numbers = #tpu.dot_dimension_numbers<[1], [0], [0], [1], [0, 0, 1, 1], [], []>} : vector<8x32xbf16>, vector<32x32xbf16>, vector<8x32xf32> -> vector<8x32xf32>
    %c0_742 = arith.constant 0 : index
    %c0_743 = arith.constant 0 : index
    %c0_744 = arith.constant 0 : index
    %c0_745 = arith.constant 0 : index
    %770 = vector.load %arg4[%c0_742, %c0_743, %c0_744, %c0_745] : memref<2x3x1x32xf32, #tpu.memory_space<vmem>>, vector<1x1x1x32xf32>
    %771 = vector.shape_cast %770 : vector<1x1x1x32xf32> to vector<1x32xf32>
    %772 = vector.broadcast %771 : vector<1x32xf32> to vector<8x32xf32>
    %773 = arith.addf %769, %772 : vector<8x32xf32>
    %c0_746 = arith.constant 0 : index
    %c1_747 = arith.constant 1 : index
    %c0_748 = arith.constant 0 : index
    %c0_749 = arith.constant 0 : index
    %774 = vector.load %arg3[%c0_746, %c1_747, %c0_748, %c0_749] : memref<2x3x32x32xbf16, #tpu.memory_space<vmem>>, vector<1x1x32x32xbf16>
    %775 = vector.shape_cast %774 : vector<1x1x32x32xbf16> to vector<32x32xbf16>
    %cst_750 = arith.constant dense<0.000000e+00> : vector<8x32xf32>
    %776 = tpu.matmul %766, %775, %cst_750 {dimension_numbers = #tpu.dot_dimension_numbers<[1], [0], [0], [1], [0, 0, 1, 1], [], []>} : vector<8x32xbf16>, vector<32x32xbf16>, vector<8x32xf32> -> vector<8x32xf32>
    %c0_751 = arith.constant 0 : index
    %c1_752 = arith.constant 1 : index
    %c0_753 = arith.constant 0 : index
    %c0_754 = arith.constant 0 : index
    %777 = vector.load %arg4[%c0_751, %c1_752, %c0_753, %c0_754] : memref<2x3x1x32xf32, #tpu.memory_space<vmem>>, vector<1x1x1x32xf32>
    %778 = vector.shape_cast %777 : vector<1x1x1x32xf32> to vector<1x32xf32>
    %779 = vector.broadcast %778 : vector<1x32xf32> to vector<8x32xf32>
    %780 = arith.addf %776, %779 : vector<8x32xf32>
    %c0_755 = arith.constant 0 : index
    %c2_756 = arith.constant 2 : index
    %c0_757 = arith.constant 0 : index
    %c0_758 = arith.constant 0 : index
    %781 = vector.load %arg3[%c0_755, %c2_756, %c0_757, %c0_758] : memref<2x3x32x32xbf16, #tpu.memory_space<vmem>>, vector<1x1x32x32xbf16>
    %782 = vector.shape_cast %781 : vector<1x1x32x32xbf16> to vector<32x32xbf16>
    %cst_759 = arith.constant dense<0.000000e+00> : vector<8x32xf32>
    %783 = tpu.matmul %766, %782, %cst_759 {dimension_numbers = #tpu.dot_dimension_numbers<[1], [0], [0], [1], [0, 0, 1, 1], [], []>} : vector<8x32xbf16>, vector<32x32xbf16>, vector<8x32xf32> -> vector<8x32xf32>
    %c0_760 = arith.constant 0 : index
    %c2_761 = arith.constant 2 : index
    %c0_762 = arith.constant 0 : index
    %c0_763 = arith.constant 0 : index
    %784 = vector.load %arg4[%c0_760, %c2_761, %c0_762, %c0_763] : memref<2x3x1x32xf32, #tpu.memory_space<vmem>>, vector<1x1x1x32xf32>
    %785 = vector.shape_cast %784 : vector<1x1x1x32xf32> to vector<1x32xf32>
    %786 = vector.broadcast %785 : vector<1x32xf32> to vector<8x32xf32>
    %787 = arith.addf %783, %786 : vector<8x32xf32>
    %788 = arith.addf %760, %773 : vector<8x32xf32>
    %789 = arith.negf %788 : vector<8x32xf32>
    %790 = math.exp %789 : vector<8x32xf32>
    %cst_764 = arith.constant 1.000000e+00 : f32
    %791 = vector.broadcast %cst_764 : f32 to vector<8x32xf32>
    %792 = arith.addf %791, %790 : vector<8x32xf32>
    %793 = arith.divf %791, %792 : vector<8x32xf32>
    %794 = arith.addf %762, %780 : vector<8x32xf32>
    %795 = arith.negf %794 : vector<8x32xf32>
    %796 = math.exp %795 : vector<8x32xf32>
    %cst_765 = arith.constant 1.000000e+00 : f32
    %797 = vector.broadcast %cst_765 : f32 to vector<8x32xf32>
    %798 = arith.addf %797, %796 : vector<8x32xf32>
    %799 = arith.divf %797, %798 : vector<8x32xf32>
    %800 = arith.mulf %793, %787 : vector<8x32xf32>
    %801 = arith.addf %764, %800 : vector<8x32xf32>
    %802 = math.tanh %801 : vector<8x32xf32>
    %cst_766 = arith.constant 1.000000e+00 : f32
    %803 = vector.broadcast %cst_766 : f32 to vector<8x32xf32>
    %804 = arith.subf %803, %799 : vector<8x32xf32>
    %805 = arith.mulf %804, %802 : vector<8x32xf32>
    %806 = arith.mulf %799, %765 : vector<8x32xf32>
    %807 = arith.addf %805, %806 : vector<8x32xf32>
    %c0_767 = arith.constant 0 : index
    %c0_768 = arith.constant 0 : index
    %808 = vector.load %arg7[%c0_767, %c0_768] : memref<8x32xf32, #tpu.memory_space<vmem>>, vector<8x32xf32>
    tpu.vector_store %arg7[%c0_767, %c0_768], %807 {strides = array<i32>} : memref<8x32xf32, #tpu.memory_space<vmem>>, vector<8x32xf32>,
    %809 = arith.truncf %807 : vector<8x32xf32> to vector<8x32xbf16>
    %c7_769 = arith.constant 7 : index
    %c0_770 = arith.constant 0 : index
    %c0_771 = arith.constant 0 : index
    %810 = vector.load %arg5[%c7_769, %c0_770, %c0_771] : memref<8x8x32xbf16, #tpu.memory_space<vmem>>, vector<1x8x32xbf16>
    %811 = vector.shape_cast %810 : vector<1x8x32xbf16> to vector<8x32xbf16>
    %812 = vector.shape_cast %809 : vector<8x32xbf16> to vector<1x8x32xbf16>
    tpu.vector_store %arg5[%c7_769, %c0_770, %c0_771], %812 {strides = array<i32>} : memref<8x8x32xbf16, #tpu.memory_space<vmem>>, vector<1x8x32xbf16>,
    %c0_772 = arith.constant 0 : index
    %c0_773 = arith.constant 0 : index
    %c0_774 = arith.constant 0 : index
    %c0_775 = arith.constant 0 : index
    %c0_776 = arith.constant 0 : index
    %813 = vector.load %arg2[%c0_772, %c0_773, %c0_774, %c0_775, %c0_776] : memref<1x3x8x8x32xf32, #tpu.memory_space<vmem>>, vector<1x1x1x8x32xf32>
    %814 = vector.shape_cast %813 : vector<1x1x1x8x32xf32> to vector<8x32xf32>
    %c0_777 = arith.constant 0 : index
    %c1_778 = arith.constant 1 : index
    %c0_779 = arith.constant 0 : index
    %c0_780 = arith.constant 0 : index
    %c0_781 = arith.constant 0 : index
    %815 = vector.load %arg2[%c0_777, %c1_778, %c0_779, %c0_780, %c0_781] : memref<1x3x8x8x32xf32, #tpu.memory_space<vmem>>, vector<1x1x1x8x32xf32>
    %816 = vector.shape_cast %815 : vector<1x1x1x8x32xf32> to vector<8x32xf32>
    %c0_782 = arith.constant 0 : index
    %c2_783 = arith.constant 2 : index
    %c0_784 = arith.constant 0 : index
    %c0_785 = arith.constant 0 : index
    %c0_786 = arith.constant 0 : index
    %817 = vector.load %arg2[%c0_782, %c2_783, %c0_784, %c0_785, %c0_786] : memref<1x3x8x8x32xf32, #tpu.memory_space<vmem>>, vector<1x1x1x8x32xf32>
    %818 = vector.shape_cast %817 : vector<1x1x1x8x32xf32> to vector<8x32xf32>
    %c0_787 = arith.constant 0 : index
    %c0_788 = arith.constant 0 : index
    %819 = vector.load %arg8[%c0_787, %c0_788] : memref<8x32xf32, #tpu.memory_space<vmem>>, vector<8x32xf32>
    %820 = arith.truncf %819 : vector<8x32xf32> to vector<8x32xbf16>
    %c1_789 = arith.constant 1 : index
    %c0_790 = arith.constant 0 : index
    %c0_791 = arith.constant 0 : index
    %c0_792 = arith.constant 0 : index
    %821 = vector.load %arg3[%c1_789, %c0_790, %c0_791, %c0_792] : memref<2x3x32x32xbf16, #tpu.memory_space<vmem>>, vector<1x1x32x32xbf16>
    %822 = vector.shape_cast %821 : vector<1x1x32x32xbf16> to vector<32x32xbf16>
    %cst_793 = arith.constant dense<0.000000e+00> : vector<8x32xf32>
    %823 = tpu.matmul %820, %822, %cst_793 {dimension_numbers = #tpu.dot_dimension_numbers<[1], [0], [0], [1], [0, 0, 1, 1], [], []>} : vector<8x32xbf16>, vector<32x32xbf16>, vector<8x32xf32> -> vector<8x32xf32>
    %c1_794 = arith.constant 1 : index
    %c0_795 = arith.constant 0 : index
    %c0_796 = arith.constant 0 : index
    %c0_797 = arith.constant 0 : index
    %824 = vector.load %arg4[%c1_794, %c0_795, %c0_796, %c0_797] : memref<2x3x1x32xf32, #tpu.memory_space<vmem>>, vector<1x1x1x32xf32>
    %825 = vector.shape_cast %824 : vector<1x1x1x32xf32> to vector<1x32xf32>
    %826 = vector.broadcast %825 : vector<1x32xf32> to vector<8x32xf32>
    %827 = arith.addf %823, %826 : vector<8x32xf32>
    %c1_798 = arith.constant 1 : index
    %c1_799 = arith.constant 1 : index
    %c0_800 = arith.constant 0 : index
    %c0_801 = arith.constant 0 : index
    %828 = vector.load %arg3[%c1_798, %c1_799, %c0_800, %c0_801] : memref<2x3x32x32xbf16, #tpu.memory_space<vmem>>, vector<1x1x32x32xbf16>
    %829 = vector.shape_cast %828 : vector<1x1x32x32xbf16> to vector<32x32xbf16>
    %cst_802 = arith.constant dense<0.000000e+00> : vector<8x32xf32>
    %830 = tpu.matmul %820, %829, %cst_802 {dimension_numbers = #tpu.dot_dimension_numbers<[1], [0], [0], [1], [0, 0, 1, 1], [], []>} : vector<8x32xbf16>, vector<32x32xbf16>, vector<8x32xf32> -> vector<8x32xf32>
    %c1_803 = arith.constant 1 : index
    %c1_804 = arith.constant 1 : index
    %c0_805 = arith.constant 0 : index
    %c0_806 = arith.constant 0 : index
    %831 = vector.load %arg4[%c1_803, %c1_804, %c0_805, %c0_806] : memref<2x3x1x32xf32, #tpu.memory_space<vmem>>, vector<1x1x1x32xf32>
    %832 = vector.shape_cast %831 : vector<1x1x1x32xf32> to vector<1x32xf32>
    %833 = vector.broadcast %832 : vector<1x32xf32> to vector<8x32xf32>
    %834 = arith.addf %830, %833 : vector<8x32xf32>
    %c1_807 = arith.constant 1 : index
    %c2_808 = arith.constant 2 : index
    %c0_809 = arith.constant 0 : index
    %c0_810 = arith.constant 0 : index
    %835 = vector.load %arg3[%c1_807, %c2_808, %c0_809, %c0_810] : memref<2x3x32x32xbf16, #tpu.memory_space<vmem>>, vector<1x1x32x32xbf16>
    %836 = vector.shape_cast %835 : vector<1x1x32x32xbf16> to vector<32x32xbf16>
    %cst_811 = arith.constant dense<0.000000e+00> : vector<8x32xf32>
    %837 = tpu.matmul %820, %836, %cst_811 {dimension_numbers = #tpu.dot_dimension_numbers<[1], [0], [0], [1], [0, 0, 1, 1], [], []>} : vector<8x32xbf16>, vector<32x32xbf16>, vector<8x32xf32> -> vector<8x32xf32>
    %c1_812 = arith.constant 1 : index
    %c2_813 = arith.constant 2 : index
    %c0_814 = arith.constant 0 : index
    %c0_815 = arith.constant 0 : index
    %838 = vector.load %arg4[%c1_812, %c2_813, %c0_814, %c0_815] : memref<2x3x1x32xf32, #tpu.memory_space<vmem>>, vector<1x1x1x32xf32>
    %839 = vector.shape_cast %838 : vector<1x1x1x32xf32> to vector<1x32xf32>
    %840 = vector.broadcast %839 : vector<1x32xf32> to vector<8x32xf32>
    %841 = arith.addf %837, %840 : vector<8x32xf32>
    %842 = arith.addf %814, %827 : vector<8x32xf32>
    %843 = arith.negf %842 : vector<8x32xf32>
    %844 = math.exp %843 : vector<8x32xf32>
    %cst_816 = arith.constant 1.000000e+00 : f32
    %845 = vector.broadcast %cst_816 : f32 to vector<8x32xf32>
    %846 = arith.addf %845, %844 : vector<8x32xf32>
    %847 = arith.divf %845, %846 : vector<8x32xf32>
    %848 = arith.addf %816, %834 : vector<8x32xf32>
    %849 = arith.negf %848 : vector<8x32xf32>
    %850 = math.exp %849 : vector<8x32xf32>
    %cst_817 = arith.constant 1.000000e+00 : f32
    %851 = vector.broadcast %cst_817 : f32 to vector<8x32xf32>
    %852 = arith.addf %851, %850 : vector<8x32xf32>
    %853 = arith.divf %851, %852 : vector<8x32xf32>
    %854 = arith.mulf %847, %841 : vector<8x32xf32>
    %855 = arith.addf %818, %854 : vector<8x32xf32>
    %856 = math.tanh %855 : vector<8x32xf32>
    %cst_818 = arith.constant 1.000000e+00 : f32
    %857 = vector.broadcast %cst_818 : f32 to vector<8x32xf32>
    %858 = arith.subf %857, %853 : vector<8x32xf32>
    %859 = arith.mulf %858, %856 : vector<8x32xf32>
    %860 = arith.mulf %853, %819 : vector<8x32xf32>
    %861 = arith.addf %859, %860 : vector<8x32xf32>
    %c0_819 = arith.constant 0 : index
    %c0_820 = arith.constant 0 : index
    %862 = vector.load %arg8[%c0_819, %c0_820] : memref<8x32xf32, #tpu.memory_space<vmem>>, vector<8x32xf32>
    tpu.vector_store %arg8[%c0_819, %c0_820], %861 {strides = array<i32>} : memref<8x32xf32, #tpu.memory_space<vmem>>, vector<8x32xf32>,
    %863 = arith.truncf %861 : vector<8x32xf32> to vector<8x32xbf16>
    %c0_821 = arith.constant 0 : index
    %c0_822 = arith.constant 0 : index
    %c0_823 = arith.constant 0 : index
    %864 = vector.load %arg6[%c0_821, %c0_822, %c0_823] : memref<8x8x32xbf16, #tpu.memory_space<vmem>>, vector<1x8x32xbf16>
    %865 = vector.shape_cast %864 : vector<1x8x32xbf16> to vector<8x32xbf16>
    %866 = vector.shape_cast %863 : vector<8x32xbf16> to vector<1x8x32xbf16>
    tpu.vector_store %arg6[%c0_821, %c0_822, %c0_823], %866 {strides = array<i32>} : memref<8x8x32xbf16, #tpu.memory_space<vmem>>, vector<1x8x32xbf16>,
    return
  }
  func.func @transform_0(%arg0: i32) -> (i32, i32, i32, i32, i32) {
    %c0_i32 = arith.constant 0 : i32
    %c0_i32_0 = arith.constant 0 : i32
    %c0_i32_1 = arith.constant 0 : i32
    %c0_i32_2 = arith.constant 0 : i32
    %c0_i32_3 = arith.constant 0 : i32
    return %c0_i32, %c0_i32_0, %arg0, %c0_i32_1, %c0_i32_2 : i32, i32, i32, i32, i32
  }
  func.func @transform_1(%arg0: i32) -> (i32, i32, i32, i32, i32) {
    %c0_i32 = arith.constant 0 : i32
    %0 = arith.subi %c0_i32, %arg0 : i32
    %c1_i32 = arith.constant 1 : i32
    %c0_i32_0 = arith.constant 0 : i32
    %c0_i32_1 = arith.constant 0 : i32
    %c0_i32_2 = arith.constant 0 : i32
    %c0_i32_3 = arith.constant 0 : i32
    return %c1_i32, %c0_i32_0, %0, %c0_i32_1, %c0_i32_2 : i32, i32, i32, i32, i32
  }
  func.func @transform_2(%arg0: i32) -> (i32, i32, i32, i32) {
    %c0_i32 = arith.constant 0 : i32
    %c0_i32_0 = arith.constant 0 : i32
    %c0_i32_1 = arith.constant 0 : i32
    %c0_i32_2 = arith.constant 0 : i32
    %c0_i32_3 = arith.constant 0 : i32
    return %c0_i32, %c0_i32_0, %c0_i32_1, %c0_i32_2 : i32, i32, i32, i32
  }
  func.func @transform_3(%arg0: i32) -> (i32, i32, i32, i32) {
    %c0_i32 = arith.constant 0 : i32
    %c0_i32_0 = arith.constant 0 : i32
    %c0_i32_1 = arith.constant 0 : i32
    %c0_i32_2 = arith.constant 0 : i32
    %c0_i32_3 = arith.constant 0 : i32
    return %c0_i32, %c0_i32_0, %c0_i32_1, %c0_i32_2 : i32, i32, i32, i32
  }
  func.func @transform_4(%arg0: i32) -> (i32, i32, i32) {
    %c0_i32 = arith.constant 0 : i32
    %c0_i32_0 = arith.constant 0 : i32
    %c0_i32_1 = arith.constant 0 : i32
    return %arg0, %c0_i32, %c0_i32_0 : i32, i32, i32
  }
  func.func @transform_5(%arg0: i32) -> (i32, i32, i32) {
    %c0_i32 = arith.constant 0 : i32
    %0 = arith.subi %c0_i32, %arg0 : i32
    %c0_i32_0 = arith.constant 0 : i32
    %c0_i32_1 = arith.constant 0 : i32
    %c0_i32_2 = arith.constant 0 : i32
    return %0, %c0_i32_0, %c0_i32_1 : i32, i32, i32
  }
}

module attributes {stable_mosaic.version = 11 : i64} {
  func.func @bigru_chunk_kernel(%arg0: i32, %arg1: memref<1x3x8x8x32xf32, #tpu.memory_space<vmem>>, %arg2: memref<1x3x8x8x32xf32, #tpu.memory_space<vmem>>, %arg3: memref<2x3x32x32xbf16, #tpu.memory_space<vmem>>, %arg4: memref<2x3x1x32xf32, #tpu.memory_space<vmem>>, %arg5: memref<8x8x32xbf16, #tpu.memory_space<vmem>>, %arg6: memref<8x8x32xbf16, #tpu.memory_space<vmem>>, %arg7: memref<8x32xf32, #tpu.memory_space<vmem>>, %arg8: memref<8x32xf32, #tpu.memory_space<vmem>>) attributes {dimension_semantics = [#tpu.dimension_semantics<arbitrary>], iteration_bounds = array<i64: 1>, scalar_prefetch = 0 : i64, scratch_operands = 2 : i64, tpu.core_type = #tpu.core_type<tc>, window_params = [{transform_indices = @transform_0, window_bounds = array<i64: 1, 3, 8, 8, 32>}, {transform_indices = @transform_1, window_bounds = array<i64: 1, 3, 8, 8, 32>}, {pipeline_mode = #tpu.pipeline_mode<synchronous>, transform_indices = @transform_2, window_bounds = array<i64: 2, 3, 32, 32>}, {pipeline_mode = #tpu.pipeline_mode<synchronous>, transform_indices = @transform_3, window_bounds = array<i64: 2, 3, 1, 32>}, {transform_indices = @transform_4, window_bounds = array<i64: 8, 8, 32>}, {transform_indices = @transform_5, window_bounds = array<i64: 8, 8, 32>}]} {
    %c0_i32 = arith.constant 0 : i32
    %0 = arith.cmpi eq, %arg0, %c0_i32 : i32
    %1 = arith.extui %0 : i1 to i32
    %c0_i32_0 = arith.constant 0 : i32
    %2 = arith.cmpi ne, %1, %c0_i32_0 : i32
    scf.if %2 {
      %cst_824 = arith.constant 0.000000e+00 : f32
      %867 = vector.broadcast %cst_824 : f32 to vector<8x32xf32>
      %c0_825 = arith.constant 0 : index
      %c0_826 = arith.constant 0 : index
      %868 = vector.load %arg7[%c0_825, %c0_826] : memref<8x32xf32, #tpu.memory_space<vmem>>, vector<8x32xf32>
      tpu.vector_store %arg7[%c0_825, %c0_826], %867 {strides = array<i32>} : memref<8x32xf32, #tpu.memory_space<vmem>>, vector<8x32xf32>,
      %cst_827 = arith.constant 0.000000e+00 : f32
      %869 = vector.broadcast %cst_827 : f32 to vector<8x32xf32>
      %c0_828 = arith.constant 0 : index
      %c0_829 = arith.constant 0 : index
      %870 = vector.load %arg8[%c0_828, %c0_829] : memref<8x32xf32, #tpu.memory_space<vmem>>, vector<8x32xf32>
      tpu.vector_store %arg8[%c0_828, %c0_829], %869 {strides = array<i32>} : memref<8x32xf32, #tpu.memory_space<vmem>>, vector<8x32xf32>,
    } else {
    }
    %c0 = arith.constant 0 : index
    %c0_1 = arith.constant 0 : index
    %c0_2 = arith.constant 0 : index
    %c0_3 = arith.constant 0 : index
    %c0_4 = arith.constant 0 : index
    %3 = vector.load %arg1[%c0, %c0_1, %c0_2, %c0_3, %c0_4] : memref<1x3x8x8x32xf32, #tpu.memory_space<vmem>>, vector<1x1x1x8x32xf32>
    %4 = vector.shape_cast %3 : vector<1x1x1x8x32xf32> to vector<8x32xf32>
    %c0_5 = arith.constant 0 : index
    %c1 = arith.constant 1 : index
    %c0_6 = arith.constant 0 : index
    %c0_7 = arith.constant 0 : index
    %c0_8 = arith.constant 0 : index
    %5 = vector.load %arg1[%c0_5, %c1, %c0_6, %c0_7, %c0_8] : memref<1x3x8x8x32xf32, #tpu.memory_space<vmem>>, vector<1x1x1x8x32xf32>
    %6 = vector.shape_cast %5 : vector<1x1x1x8x32xf32> to vector<8x32xf32>
    %c0_9 = arith.constant 0 : index
    %c2 = arith.constant 2 : index
    %c0_10 = arith.constant 0 : index
    %c0_11 = arith.constant 0 : index
    %c0_12 = arith.constant 0 : index
    %7 = vector.load %arg1[%c0_9, %c2, %c0_10, %c0_11, %c0_12] : memref<1x3x8x8x32xf32, #tpu.memory_space<vmem>>, vector<1x1x1x8x32xf32>
    %8 = vector.shape_cast %7 : vector<1x1x1x8x32xf32> to vector<8x32xf32>
    %c0_13 = arith.constant 0 : index
    %c0_14 = arith.constant 0 : index
    %9 = vector.load %arg7[%c0_13, %c0_14] : memref<8x32xf32, #tpu.memory_space<vmem>>, vector<8x32xf32>
    %10 = arith.truncf %9 : vector<8x32xf32> to vector<8x32xbf16>
    %c0_15 = arith.constant 0 : index
    %c0_16 = arith.constant 0 : index
    %c0_17 = arith.constant 0 : index
    %c0_18 = arith.constant 0 : index
    %11 = vector.load %arg3[%c0_15, %c0_16, %c0_17, %c0_18] : memref<2x3x32x32xbf16, #tpu.memory_space<vmem>>, vector<1x1x32x32xbf16>
    %12 = vector.shape_cast %11 : vector<1x1x32x32xbf16> to vector<32x32xbf16>
    %cst = arith.constant dense<0.000000e+00> : vector<8x32xf32>
    %13 = tpu.matmul %10, %12, %cst {dimension_numbers = #tpu.dot_dimension_numbers<[1], [0], [0], [1], [0, 0, 1, 1], [], []>} : vector<8x32xbf16>, vector<32x32xbf16>, vector<8x32xf32> -> vector<8x32xf32>
    %c0_19 = arith.constant 0 : index
    %c0_20 = arith.constant 0 : index
    %c0_21 = arith.constant 0 : index
    %c0_22 = arith.constant 0 : index
    %14 = vector.load %arg4[%c0_19, %c0_20, %c0_21, %c0_22] : memref<2x3x1x32xf32, #tpu.memory_space<vmem>>, vector<1x1x1x32xf32>
    %15 = vector.shape_cast %14 : vector<1x1x1x32xf32> to vector<1x32xf32>
    %16 = vector.broadcast %15 : vector<1x32xf32> to vector<8x32xf32>
    %17 = arith.addf %13, %16 : vector<8x32xf32>
    %c0_23 = arith.constant 0 : index
    %c1_24 = arith.constant 1 : index
    %c0_25 = arith.constant 0 : index
    %c0_26 = arith.constant 0 : index
    %18 = vector.load %arg3[%c0_23, %c1_24, %c0_25, %c0_26] : memref<2x3x32x32xbf16, #tpu.memory_space<vmem>>, vector<1x1x32x32xbf16>
    %19 = vector.shape_cast %18 : vector<1x1x32x32xbf16> to vector<32x32xbf16>
    %cst_27 = arith.constant dense<0.000000e+00> : vector<8x32xf32>
    %20 = tpu.matmul %10, %19, %cst_27 {dimension_numbers = #tpu.dot_dimension_numbers<[1], [0], [0], [1], [0, 0, 1, 1], [], []>} : vector<8x32xbf16>, vector<32x32xbf16>, vector<8x32xf32> -> vector<8x32xf32>
    %c0_28 = arith.constant 0 : index
    %c1_29 = arith.constant 1 : index
    %c0_30 = arith.constant 0 : index
    %c0_31 = arith.constant 0 : index
    %21 = vector.load %arg4[%c0_28, %c1_29, %c0_30, %c0_31] : memref<2x3x1x32xf32, #tpu.memory_space<vmem>>, vector<1x1x1x32xf32>
    %22 = vector.shape_cast %21 : vector<1x1x1x32xf32> to vector<1x32xf32>
    %23 = vector.broadcast %22 : vector<1x32xf32> to vector<8x32xf32>
    %24 = arith.addf %20, %23 : vector<8x32xf32>
    %c0_32 = arith.constant 0 : index
    %c2_33 = arith.constant 2 : index
    %c0_34 = arith.constant 0 : index
    %c0_35 = arith.constant 0 : index
    %25 = vector.load %arg3[%c0_32, %c2_33, %c0_34, %c0_35] : memref<2x3x32x32xbf16, #tpu.memory_space<vmem>>, vector<1x1x32x32xbf16>
    %26 = vector.shape_cast %25 : vector<1x1x32x32xbf16> to vector<32x32xbf16>
    %cst_36 = arith.constant dense<0.000000e+00> : vector<8x32xf32>
    %27 = tpu.matmul %10, %26, %cst_36 {dimension_numbers = #tpu.dot_dimension_numbers<[1], [0], [0], [1], [0, 0, 1, 1], [], []>} : vector<8x32xbf16>, vector<32x32xbf16>, vector<8x32xf32> -> vector<8x32xf32>
    %c0_37 = arith.constant 0 : index
    %c2_38 = arith.constant 2 : index
    %c0_39 = arith.constant 0 : index
    %c0_40 = arith.constant 0 : index
    %28 = vector.load %arg4[%c0_37, %c2_38, %c0_39, %c0_40] : memref<2x3x1x32xf32, #tpu.memory_space<vmem>>, vector<1x1x1x32xf32>
    %29 = vector.shape_cast %28 : vector<1x1x1x32xf32> to vector<1x32xf32>
    %30 = vector.broadcast %29 : vector<1x32xf32> to vector<8x32xf32>
    %31 = arith.addf %27, %30 : vector<8x32xf32>
    %32 = arith.addf %4, %17 : vector<8x32xf32>
    %33 = arith.negf %32 : vector<8x32xf32>
    %34 = math.exp %33 : vector<8x32xf32>
    %cst_41 = arith.constant 1.000000e+00 : f32
    %35 = vector.broadcast %cst_41 : f32 to vector<8x32xf32>
    %36 = arith.addf %35, %34 : vector<8x32xf32>
    %37 = arith.divf %35, %36 : vector<8x32xf32>
    %38 = arith.addf %6, %24 : vector<8x32xf32>
    %39 = arith.negf %38 : vector<8x32xf32>
    %40 = math.exp %39 : vector<8x32xf32>
    %cst_42 = arith.constant 1.000000e+00 : f32
    %41 = vector.broadcast %cst_42 : f32 to vector<8x32xf32>
    %42 = arith.addf %41, %40 : vector<8x32xf32>
    %43 = arith.divf %41, %42 : vector<8x32xf32>
    %44 = arith.mulf %37, %31 : vector<8x32xf32>
    %45 = arith.addf %8, %44 : vector<8x32xf32>
    %46 = math.tanh %45 : vector<8x32xf32>
    %cst_43 = arith.constant 1.000000e+00 : f32
    %47 = vector.broadcast %cst_43 : f32 to vector<8x32xf32>
    %48 = arith.subf %47, %43 : vector<8x32xf32>
    %49 = arith.mulf %48, %46 : vector<8x32xf32>
    %50 = arith.mulf %43, %9 : vector<8x32xf32>
    %51 = arith.addf %49, %50 : vector<8x32xf32>
    %c0_44 = arith.constant 0 : index
    %c0_45 = arith.constant 0 : index
    %52 = vector.load %arg7[%c0_44, %c0_45] : memref<8x32xf32, #tpu.memory_space<vmem>>, vector<8x32xf32>
    tpu.vector_store %arg7[%c0_44, %c0_45], %51 {strides = array<i32>} : memref<8x32xf32, #tpu.memory_space<vmem>>, vector<8x32xf32>,
    %53 = arith.truncf %51 : vector<8x32xf32> to vector<8x32xbf16>
    %c0_46 = arith.constant 0 : index
    %c0_47 = arith.constant 0 : index
    %c0_48 = arith.constant 0 : index
    %54 = vector.load %arg5[%c0_46, %c0_47, %c0_48] : memref<8x8x32xbf16, #tpu.memory_space<vmem>>, vector<1x8x32xbf16>
    %55 = vector.shape_cast %54 : vector<1x8x32xbf16> to vector<8x32xbf16>
    %56 = vector.shape_cast %53 : vector<8x32xbf16> to vector<1x8x32xbf16>
    tpu.vector_store %arg5[%c0_46, %c0_47, %c0_48], %56 {strides = array<i32>} : memref<8x8x32xbf16, #tpu.memory_space<vmem>>, vector<1x8x32xbf16>,
    %c0_49 = arith.constant 0 : index
    %c0_50 = arith.constant 0 : index
    %c7 = arith.constant 7 : index
    %c0_51 = arith.constant 0 : index
    %c0_52 = arith.constant 0 : index
    %57 = vector.load %arg2[%c0_49, %c0_50, %c7, %c0_51, %c0_52] : memref<1x3x8x8x32xf32, #tpu.memory_space<vmem>>, vector<1x1x1x8x32xf32>
    %58 = vector.shape_cast %57 : vector<1x1x1x8x32xf32> to vector<8x32xf32>
    %c0_53 = arith.constant 0 : index
    %c1_54 = arith.constant 1 : index
    %c7_55 = arith.constant 7 : index
    %c0_56 = arith.constant 0 : index
    %c0_57 = arith.constant 0 : index
    %59 = vector.load %arg2[%c0_53, %c1_54, %c7_55, %c0_56, %c0_57] : memref<1x3x8x8x32xf32, #tpu.memory_space<vmem>>, vector<1x1x1x8x32xf32>
    %60 = vector.shape_cast %59 : vector<1x1x1x8x32xf32> to vector<8x32xf32>
    %c0_58 = arith.constant 0 : index
    %c2_59 = arith.constant 2 : index
    %c7_60 = arith.constant 7 : index
    %c0_61 = arith.constant 0 : index
    %c0_62 = arith.constant 0 : index
    %61 = vector.load %arg2[%c0_58, %c2_59, %c7_60, %c0_61, %c0_62] : memref<1x3x8x8x32xf32, #tpu.memory_space<vmem>>, vector<1x1x1x8x32xf32>
    %62 = vector.shape_cast %61 : vector<1x1x1x8x32xf32> to vector<8x32xf32>
    %c0_63 = arith.constant 0 : index
    %c0_64 = arith.constant 0 : index
    %63 = vector.load %arg8[%c0_63, %c0_64] : memref<8x32xf32, #tpu.memory_space<vmem>>, vector<8x32xf32>
    %64 = arith.truncf %63 : vector<8x32xf32> to vector<8x32xbf16>
    %c1_65 = arith.constant 1 : index
    %c0_66 = arith.constant 0 : index
    %c0_67 = arith.constant 0 : index
    %c0_68 = arith.constant 0 : index
    %65 = vector.load %arg3[%c1_65, %c0_66, %c0_67, %c0_68] : memref<2x3x32x32xbf16, #tpu.memory_space<vmem>>, vector<1x1x32x32xbf16>
    %66 = vector.shape_cast %65 : vector<1x1x32x32xbf16> to vector<32x32xbf16>
    %cst_69 = arith.constant dense<0.000000e+00> : vector<8x32xf32>
    %67 = tpu.matmul %64, %66, %cst_69 {dimension_numbers = #tpu.dot_dimension_numbers<[1], [0], [0], [1], [0, 0, 1, 1], [], []>} : vector<8x32xbf16>, vector<32x32xbf16>, vector<8x32xf32> -> vector<8x32xf32>
    %c1_70 = arith.constant 1 : index
    %c0_71 = arith.constant 0 : index
    %c0_72 = arith.constant 0 : index
    %c0_73 = arith.constant 0 : index
    %68 = vector.load %arg4[%c1_70, %c0_71, %c0_72, %c0_73] : memref<2x3x1x32xf32, #tpu.memory_space<vmem>>, vector<1x1x1x32xf32>
    %69 = vector.shape_cast %68 : vector<1x1x1x32xf32> to vector<1x32xf32>
    %70 = vector.broadcast %69 : vector<1x32xf32> to vector<8x32xf32>
    %71 = arith.addf %67, %70 : vector<8x32xf32>
    %c1_74 = arith.constant 1 : index
    %c1_75 = arith.constant 1 : index
    %c0_76 = arith.constant 0 : index
    %c0_77 = arith.constant 0 : index
    %72 = vector.load %arg3[%c1_74, %c1_75, %c0_76, %c0_77] : memref<2x3x32x32xbf16, #tpu.memory_space<vmem>>, vector<1x1x32x32xbf16>
    %73 = vector.shape_cast %72 : vector<1x1x32x32xbf16> to vector<32x32xbf16>
    %cst_78 = arith.constant dense<0.000000e+00> : vector<8x32xf32>
    %74 = tpu.matmul %64, %73, %cst_78 {dimension_numbers = #tpu.dot_dimension_numbers<[1], [0], [0], [1], [0, 0, 1, 1], [], []>} : vector<8x32xbf16>, vector<32x32xbf16>, vector<8x32xf32> -> vector<8x32xf32>
    %c1_79 = arith.constant 1 : index
    %c1_80 = arith.constant 1 : index
    %c0_81 = arith.constant 0 : index
    %c0_82 = arith.constant 0 : index
    %75 = vector.load %arg4[%c1_79, %c1_80, %c0_81, %c0_82] : memref<2x3x1x32xf32, #tpu.memory_space<vmem>>, vector<1x1x1x32xf32>
    %76 = vector.shape_cast %75 : vector<1x1x1x32xf32> to vector<1x32xf32>
    %77 = vector.broadcast %76 : vector<1x32xf32> to vector<8x32xf32>
    %78 = arith.addf %74, %77 : vector<8x32xf32>
    %c1_83 = arith.constant 1 : index
    %c2_84 = arith.constant 2 : index
    %c0_85 = arith.constant 0 : index
    %c0_86 = arith.constant 0 : index
    %79 = vector.load %arg3[%c1_83, %c2_84, %c0_85, %c0_86] : memref<2x3x32x32xbf16, #tpu.memory_space<vmem>>, vector<1x1x32x32xbf16>
    %80 = vector.shape_cast %79 : vector<1x1x32x32xbf16> to vector<32x32xbf16>
    %cst_87 = arith.constant dense<0.000000e+00> : vector<8x32xf32>
    %81 = tpu.matmul %64, %80, %cst_87 {dimension_numbers = #tpu.dot_dimension_numbers<[1], [0], [0], [1], [0, 0, 1, 1], [], []>} : vector<8x32xbf16>, vector<32x32xbf16>, vector<8x32xf32> -> vector<8x32xf32>
    %c1_88 = arith.constant 1 : index
    %c2_89 = arith.constant 2 : index
    %c0_90 = arith.constant 0 : index
    %c0_91 = arith.constant 0 : index
    %82 = vector.load %arg4[%c1_88, %c2_89, %c0_90, %c0_91] : memref<2x3x1x32xf32, #tpu.memory_space<vmem>>, vector<1x1x1x32xf32>
    %83 = vector.shape_cast %82 : vector<1x1x1x32xf32> to vector<1x32xf32>
    %84 = vector.broadcast %83 : vector<1x32xf32> to vector<8x32xf32>
    %85 = arith.addf %81, %84 : vector<8x32xf32>
    %86 = arith.addf %58, %71 : vector<8x32xf32>
    %87 = arith.negf %86 : vector<8x32xf32>
    %88 = math.exp %87 : vector<8x32xf32>
    %cst_92 = arith.constant 1.000000e+00 : f32
    %89 = vector.broadcast %cst_92 : f32 to vector<8x32xf32>
    %90 = arith.addf %89, %88 : vector<8x32xf32>
    %91 = arith.divf %89, %90 : vector<8x32xf32>
    %92 = arith.addf %60, %78 : vector<8x32xf32>
    %93 = arith.negf %92 : vector<8x32xf32>
    %94 = math.exp %93 : vector<8x32xf32>
    %cst_93 = arith.constant 1.000000e+00 : f32
    %95 = vector.broadcast %cst_93 : f32 to vector<8x32xf32>
    %96 = arith.addf %95, %94 : vector<8x32xf32>
    %97 = arith.divf %95, %96 : vector<8x32xf32>
    %98 = arith.mulf %91, %85 : vector<8x32xf32>
    %99 = arith.addf %62, %98 : vector<8x32xf32>
    %100 = math.tanh %99 : vector<8x32xf32>
    %cst_94 = arith.constant 1.000000e+00 : f32
    %101 = vector.broadcast %cst_94 : f32 to vector<8x32xf32>
    %102 = arith.subf %101, %97 : vector<8x32xf32>
    %103 = arith.mulf %102, %100 : vector<8x32xf32>
    %104 = arith.mulf %97, %63 : vector<8x32xf32>
    %105 = arith.addf %103, %104 : vector<8x32xf32>
    %c0_95 = arith.constant 0 : index
    %c0_96 = arith.constant 0 : index
    %106 = vector.load %arg8[%c0_95, %c0_96] : memref<8x32xf32, #tpu.memory_space<vmem>>, vector<8x32xf32>
    tpu.vector_store %arg8[%c0_95, %c0_96], %105 {strides = array<i32>} : memref<8x32xf32, #tpu.memory_space<vmem>>, vector<8x32xf32>,
    %107 = arith.truncf %105 : vector<8x32xf32> to vector<8x32xbf16>
    %c7_97 = arith.constant 7 : index
    %c0_98 = arith.constant 0 : index
    %c0_99 = arith.constant 0 : index
    %108 = vector.load %arg6[%c7_97, %c0_98, %c0_99] : memref<8x8x32xbf16, #tpu.memory_space<vmem>>, vector<1x8x32xbf16>
    %109 = vector.shape_cast %108 : vector<1x8x32xbf16> to vector<8x32xbf16>
    %110 = vector.shape_cast %107 : vector<8x32xbf16> to vector<1x8x32xbf16>
    tpu.vector_store %arg6[%c7_97, %c0_98, %c0_99], %110 {strides = array<i32>} : memref<8x8x32xbf16, #tpu.memory_space<vmem>>, vector<1x8x32xbf16>,
    %c0_100 = arith.constant 0 : index
    %c0_101 = arith.constant 0 : index
    %c1_102 = arith.constant 1 : index
    %c0_103 = arith.constant 0 : index
    %c0_104 = arith.constant 0 : index
    %111 = vector.load %arg1[%c0_100, %c0_101, %c1_102, %c0_103, %c0_104] : memref<1x3x8x8x32xf32, #tpu.memory_space<vmem>>, vector<1x1x1x8x32xf32>
    %112 = vector.shape_cast %111 : vector<1x1x1x8x32xf32> to vector<8x32xf32>
    %c0_105 = arith.constant 0 : index
    %c1_106 = arith.constant 1 : index
    %c1_107 = arith.constant 1 : index
    %c0_108 = arith.constant 0 : index
    %c0_109 = arith.constant 0 : index
    %113 = vector.load %arg1[%c0_105, %c1_106, %c1_107, %c0_108, %c0_109] : memref<1x3x8x8x32xf32, #tpu.memory_space<vmem>>, vector<1x1x1x8x32xf32>
    %114 = vector.shape_cast %113 : vector<1x1x1x8x32xf32> to vector<8x32xf32>
    %c0_110 = arith.constant 0 : index
    %c2_111 = arith.constant 2 : index
    %c1_112 = arith.constant 1 : index
    %c0_113 = arith.constant 0 : index
    %c0_114 = arith.constant 0 : index
    %115 = vector.load %arg1[%c0_110, %c2_111, %c1_112, %c0_113, %c0_114] : memref<1x3x8x8x32xf32, #tpu.memory_space<vmem>>, vector<1x1x1x8x32xf32>
    %116 = vector.shape_cast %115 : vector<1x1x1x8x32xf32> to vector<8x32xf32>
    %c0_115 = arith.constant 0 : index
    %c0_116 = arith.constant 0 : index
    %117 = vector.load %arg7[%c0_115, %c0_116] : memref<8x32xf32, #tpu.memory_space<vmem>>, vector<8x32xf32>
    %118 = arith.truncf %117 : vector<8x32xf32> to vector<8x32xbf16>
    %c0_117 = arith.constant 0 : index
    %c0_118 = arith.constant 0 : index
    %c0_119 = arith.constant 0 : index
    %c0_120 = arith.constant 0 : index
    %119 = vector.load %arg3[%c0_117, %c0_118, %c0_119, %c0_120] : memref<2x3x32x32xbf16, #tpu.memory_space<vmem>>, vector<1x1x32x32xbf16>
    %120 = vector.shape_cast %119 : vector<1x1x32x32xbf16> to vector<32x32xbf16>
    %cst_121 = arith.constant dense<0.000000e+00> : vector<8x32xf32>
    %121 = tpu.matmul %118, %120, %cst_121 {dimension_numbers = #tpu.dot_dimension_numbers<[1], [0], [0], [1], [0, 0, 1, 1], [], []>} : vector<8x32xbf16>, vector<32x32xbf16>, vector<8x32xf32> -> vector<8x32xf32>
    %c0_122 = arith.constant 0 : index
    %c0_123 = arith.constant 0 : index
    %c0_124 = arith.constant 0 : index
    %c0_125 = arith.constant 0 : index
    %122 = vector.load %arg4[%c0_122, %c0_123, %c0_124, %c0_125] : memref<2x3x1x32xf32, #tpu.memory_space<vmem>>, vector<1x1x1x32xf32>
    %123 = vector.shape_cast %122 : vector<1x1x1x32xf32> to vector<1x32xf32>
    %124 = vector.broadcast %123 : vector<1x32xf32> to vector<8x32xf32>
    %125 = arith.addf %121, %124 : vector<8x32xf32>
    %c0_126 = arith.constant 0 : index
    %c1_127 = arith.constant 1 : index
    %c0_128 = arith.constant 0 : index
    %c0_129 = arith.constant 0 : index
    %126 = vector.load %arg3[%c0_126, %c1_127, %c0_128, %c0_129] : memref<2x3x32x32xbf16, #tpu.memory_space<vmem>>, vector<1x1x32x32xbf16>
    %127 = vector.shape_cast %126 : vector<1x1x32x32xbf16> to vector<32x32xbf16>
    %cst_130 = arith.constant dense<0.000000e+00> : vector<8x32xf32>
    %128 = tpu.matmul %118, %127, %cst_130 {dimension_numbers = #tpu.dot_dimension_numbers<[1], [0], [0], [1], [0, 0, 1, 1], [], []>} : vector<8x32xbf16>, vector<32x32xbf16>, vector<8x32xf32> -> vector<8x32xf32>
    %c0_131 = arith.constant 0 : index
    %c1_132 = arith.constant 1 : index
    %c0_133 = arith.constant 0 : index
    %c0_134 = arith.constant 0 : index
    %129 = vector.load %arg4[%c0_131, %c1_132, %c0_133, %c0_134] : memref<2x3x1x32xf32, #tpu.memory_space<vmem>>, vector<1x1x1x32xf32>
    %130 = vector.shape_cast %129 : vector<1x1x1x32xf32> to vector<1x32xf32>
    %131 = vector.broadcast %130 : vector<1x32xf32> to vector<8x32xf32>
    %132 = arith.addf %128, %131 : vector<8x32xf32>
    %c0_135 = arith.constant 0 : index
    %c2_136 = arith.constant 2 : index
    %c0_137 = arith.constant 0 : index
    %c0_138 = arith.constant 0 : index
    %133 = vector.load %arg3[%c0_135, %c2_136, %c0_137, %c0_138] : memref<2x3x32x32xbf16, #tpu.memory_space<vmem>>, vector<1x1x32x32xbf16>
    %134 = vector.shape_cast %133 : vector<1x1x32x32xbf16> to vector<32x32xbf16>
    %cst_139 = arith.constant dense<0.000000e+00> : vector<8x32xf32>
    %135 = tpu.matmul %118, %134, %cst_139 {dimension_numbers = #tpu.dot_dimension_numbers<[1], [0], [0], [1], [0, 0, 1, 1], [], []>} : vector<8x32xbf16>, vector<32x32xbf16>, vector<8x32xf32> -> vector<8x32xf32>
    %c0_140 = arith.constant 0 : index
    %c2_141 = arith.constant 2 : index
    %c0_142 = arith.constant 0 : index
    %c0_143 = arith.constant 0 : index
    %136 = vector.load %arg4[%c0_140, %c2_141, %c0_142, %c0_143] : memref<2x3x1x32xf32, #tpu.memory_space<vmem>>, vector<1x1x1x32xf32>
    %137 = vector.shape_cast %136 : vector<1x1x1x32xf32> to vector<1x32xf32>
    %138 = vector.broadcast %137 : vector<1x32xf32> to vector<8x32xf32>
    %139 = arith.addf %135, %138 : vector<8x32xf32>
    %140 = arith.addf %112, %125 : vector<8x32xf32>
    %141 = arith.negf %140 : vector<8x32xf32>
    %142 = math.exp %141 : vector<8x32xf32>
    %cst_144 = arith.constant 1.000000e+00 : f32
    %143 = vector.broadcast %cst_144 : f32 to vector<8x32xf32>
    %144 = arith.addf %143, %142 : vector<8x32xf32>
    %145 = arith.divf %143, %144 : vector<8x32xf32>
    %146 = arith.addf %114, %132 : vector<8x32xf32>
    %147 = arith.negf %146 : vector<8x32xf32>
    %148 = math.exp %147 : vector<8x32xf32>
    %cst_145 = arith.constant 1.000000e+00 : f32
    %149 = vector.broadcast %cst_145 : f32 to vector<8x32xf32>
    %150 = arith.addf %149, %148 : vector<8x32xf32>
    %151 = arith.divf %149, %150 : vector<8x32xf32>
    %152 = arith.mulf %145, %139 : vector<8x32xf32>
    %153 = arith.addf %116, %152 : vector<8x32xf32>
    %154 = math.tanh %153 : vector<8x32xf32>
    %cst_146 = arith.constant 1.000000e+00 : f32
    %155 = vector.broadcast %cst_146 : f32 to vector<8x32xf32>
    %156 = arith.subf %155, %151 : vector<8x32xf32>
    %157 = arith.mulf %156, %154 : vector<8x32xf32>
    %158 = arith.mulf %151, %117 : vector<8x32xf32>
    %159 = arith.addf %157, %158 : vector<8x32xf32>
    %c0_147 = arith.constant 0 : index
    %c0_148 = arith.constant 0 : index
    %160 = vector.load %arg7[%c0_147, %c0_148] : memref<8x32xf32, #tpu.memory_space<vmem>>, vector<8x32xf32>
    tpu.vector_store %arg7[%c0_147, %c0_148], %159 {strides = array<i32>} : memref<8x32xf32, #tpu.memory_space<vmem>>, vector<8x32xf32>,
    %161 = arith.truncf %159 : vector<8x32xf32> to vector<8x32xbf16>
    %c1_149 = arith.constant 1 : index
    %c0_150 = arith.constant 0 : index
    %c0_151 = arith.constant 0 : index
    %162 = vector.load %arg5[%c1_149, %c0_150, %c0_151] : memref<8x8x32xbf16, #tpu.memory_space<vmem>>, vector<1x8x32xbf16>
    %163 = vector.shape_cast %162 : vector<1x8x32xbf16> to vector<8x32xbf16>
    %164 = vector.shape_cast %161 : vector<8x32xbf16> to vector<1x8x32xbf16>
    tpu.vector_store %arg5[%c1_149, %c0_150, %c0_151], %164 {strides = array<i32>} : memref<8x8x32xbf16, #tpu.memory_space<vmem>>, vector<1x8x32xbf16>,
    %c0_152 = arith.constant 0 : index
    %c0_153 = arith.constant 0 : index
    %c6 = arith.constant 6 : index
    %c0_154 = arith.constant 0 : index
    %c0_155 = arith.constant 0 : index
    %165 = vector.load %arg2[%c0_152, %c0_153, %c6, %c0_154, %c0_155] : memref<1x3x8x8x32xf32, #tpu.memory_space<vmem>>, vector<1x1x1x8x32xf32>
    %166 = vector.shape_cast %165 : vector<1x1x1x8x32xf32> to vector<8x32xf32>
    %c0_156 = arith.constant 0 : index
    %c1_157 = arith.constant 1 : index
    %c6_158 = arith.constant 6 : index
    %c0_159 = arith.constant 0 : index
    %c0_160 = arith.constant 0 : index
    %167 = vector.load %arg2[%c0_156, %c1_157, %c6_158, %c0_159, %c0_160] : memref<1x3x8x8x32xf32, #tpu.memory_space<vmem>>, vector<1x1x1x8x32xf32>
    %168 = vector.shape_cast %167 : vector<1x1x1x8x32xf32> to vector<8x32xf32>
    %c0_161 = arith.constant 0 : index
    %c2_162 = arith.constant 2 : index
    %c6_163 = arith.constant 6 : index
    %c0_164 = arith.constant 0 : index
    %c0_165 = arith.constant 0 : index
    %169 = vector.load %arg2[%c0_161, %c2_162, %c6_163, %c0_164, %c0_165] : memref<1x3x8x8x32xf32, #tpu.memory_space<vmem>>, vector<1x1x1x8x32xf32>
    %170 = vector.shape_cast %169 : vector<1x1x1x8x32xf32> to vector<8x32xf32>
    %c0_166 = arith.constant 0 : index
    %c0_167 = arith.constant 0 : index
    %171 = vector.load %arg8[%c0_166, %c0_167] : memref<8x32xf32, #tpu.memory_space<vmem>>, vector<8x32xf32>
    %172 = arith.truncf %171 : vector<8x32xf32> to vector<8x32xbf16>
    %c1_168 = arith.constant 1 : index
    %c0_169 = arith.constant 0 : index
    %c0_170 = arith.constant 0 : index
    %c0_171 = arith.constant 0 : index
    %173 = vector.load %arg3[%c1_168, %c0_169, %c0_170, %c0_171] : memref<2x3x32x32xbf16, #tpu.memory_space<vmem>>, vector<1x1x32x32xbf16>
    %174 = vector.shape_cast %173 : vector<1x1x32x32xbf16> to vector<32x32xbf16>
    %cst_172 = arith.constant dense<0.000000e+00> : vector<8x32xf32>
    %175 = tpu.matmul %172, %174, %cst_172 {dimension_numbers = #tpu.dot_dimension_numbers<[1], [0], [0], [1], [0, 0, 1, 1], [], []>} : vector<8x32xbf16>, vector<32x32xbf16>, vector<8x32xf32> -> vector<8x32xf32>
    %c1_173 = arith.constant 1 : index
    %c0_174 = arith.constant 0 : index
    %c0_175 = arith.constant 0 : index
    %c0_176 = arith.constant 0 : index
    %176 = vector.load %arg4[%c1_173, %c0_174, %c0_175, %c0_176] : memref<2x3x1x32xf32, #tpu.memory_space<vmem>>, vector<1x1x1x32xf32>
    %177 = vector.shape_cast %176 : vector<1x1x1x32xf32> to vector<1x32xf32>
    %178 = vector.broadcast %177 : vector<1x32xf32> to vector<8x32xf32>
    %179 = arith.addf %175, %178 : vector<8x32xf32>
    %c1_177 = arith.constant 1 : index
    %c1_178 = arith.constant 1 : index
    %c0_179 = arith.constant 0 : index
    %c0_180 = arith.constant 0 : index
    %180 = vector.load %arg3[%c1_177, %c1_178, %c0_179, %c0_180] : memref<2x3x32x32xbf16, #tpu.memory_space<vmem>>, vector<1x1x32x32xbf16>
    %181 = vector.shape_cast %180 : vector<1x1x32x32xbf16> to vector<32x32xbf16>
    %cst_181 = arith.constant dense<0.000000e+00> : vector<8x32xf32>
    %182 = tpu.matmul %172, %181, %cst_181 {dimension_numbers = #tpu.dot_dimension_numbers<[1], [0], [0], [1], [0, 0, 1, 1], [], []>} : vector<8x32xbf16>, vector<32x32xbf16>, vector<8x32xf32> -> vector<8x32xf32>
    %c1_182 = arith.constant 1 : index
    %c1_183 = arith.constant 1 : index
    %c0_184 = arith.constant 0 : index
    %c0_185 = arith.constant 0 : index
    %183 = vector.load %arg4[%c1_182, %c1_183, %c0_184, %c0_185] : memref<2x3x1x32xf32, #tpu.memory_space<vmem>>, vector<1x1x1x32xf32>
    %184 = vector.shape_cast %183 : vector<1x1x1x32xf32> to vector<1x32xf32>
    %185 = vector.broadcast %184 : vector<1x32xf32> to vector<8x32xf32>
    %186 = arith.addf %182, %185 : vector<8x32xf32>
    %c1_186 = arith.constant 1 : index
    %c2_187 = arith.constant 2 : index
    %c0_188 = arith.constant 0 : index
    %c0_189 = arith.constant 0 : index
    %187 = vector.load %arg3[%c1_186, %c2_187, %c0_188, %c0_189] : memref<2x3x32x32xbf16, #tpu.memory_space<vmem>>, vector<1x1x32x32xbf16>
    %188 = vector.shape_cast %187 : vector<1x1x32x32xbf16> to vector<32x32xbf16>
    %cst_190 = arith.constant dense<0.000000e+00> : vector<8x32xf32>
    %189 = tpu.matmul %172, %188, %cst_190 {dimension_numbers = #tpu.dot_dimension_numbers<[1], [0], [0], [1], [0, 0, 1, 1], [], []>} : vector<8x32xbf16>, vector<32x32xbf16>, vector<8x32xf32> -> vector<8x32xf32>
    %c1_191 = arith.constant 1 : index
    %c2_192 = arith.constant 2 : index
    %c0_193 = arith.constant 0 : index
    %c0_194 = arith.constant 0 : index
    %190 = vector.load %arg4[%c1_191, %c2_192, %c0_193, %c0_194] : memref<2x3x1x32xf32, #tpu.memory_space<vmem>>, vector<1x1x1x32xf32>
    %191 = vector.shape_cast %190 : vector<1x1x1x32xf32> to vector<1x32xf32>
    %192 = vector.broadcast %191 : vector<1x32xf32> to vector<8x32xf32>
    %193 = arith.addf %189, %192 : vector<8x32xf32>
    %194 = arith.addf %166, %179 : vector<8x32xf32>
    %195 = arith.negf %194 : vector<8x32xf32>
    %196 = math.exp %195 : vector<8x32xf32>
    %cst_195 = arith.constant 1.000000e+00 : f32
    %197 = vector.broadcast %cst_195 : f32 to vector<8x32xf32>
    %198 = arith.addf %197, %196 : vector<8x32xf32>
    %199 = arith.divf %197, %198 : vector<8x32xf32>
    %200 = arith.addf %168, %186 : vector<8x32xf32>
    %201 = arith.negf %200 : vector<8x32xf32>
    %202 = math.exp %201 : vector<8x32xf32>
    %cst_196 = arith.constant 1.000000e+00 : f32
    %203 = vector.broadcast %cst_196 : f32 to vector<8x32xf32>
    %204 = arith.addf %203, %202 : vector<8x32xf32>
    %205 = arith.divf %203, %204 : vector<8x32xf32>
    %206 = arith.mulf %199, %193 : vector<8x32xf32>
    %207 = arith.addf %170, %206 : vector<8x32xf32>
    %208 = math.tanh %207 : vector<8x32xf32>
    %cst_197 = arith.constant 1.000000e+00 : f32
    %209 = vector.broadcast %cst_197 : f32 to vector<8x32xf32>
    %210 = arith.subf %209, %205 : vector<8x32xf32>
    %211 = arith.mulf %210, %208 : vector<8x32xf32>
    %212 = arith.mulf %205, %171 : vector<8x32xf32>
    %213 = arith.addf %211, %212 : vector<8x32xf32>
    %c0_198 = arith.constant 0 : index
    %c0_199 = arith.constant 0 : index
    %214 = vector.load %arg8[%c0_198, %c0_199] : memref<8x32xf32, #tpu.memory_space<vmem>>, vector<8x32xf32>
    tpu.vector_store %arg8[%c0_198, %c0_199], %213 {strides = array<i32>} : memref<8x32xf32, #tpu.memory_space<vmem>>, vector<8x32xf32>,
    %215 = arith.truncf %213 : vector<8x32xf32> to vector<8x32xbf16>
    %c6_200 = arith.constant 6 : index
    %c0_201 = arith.constant 0 : index
    %c0_202 = arith.constant 0 : index
    %216 = vector.load %arg6[%c6_200, %c0_201, %c0_202] : memref<8x8x32xbf16, #tpu.memory_space<vmem>>, vector<1x8x32xbf16>
    %217 = vector.shape_cast %216 : vector<1x8x32xbf16> to vector<8x32xbf16>
    %218 = vector.shape_cast %215 : vector<8x32xbf16> to vector<1x8x32xbf16>
    tpu.vector_store %arg6[%c6_200, %c0_201, %c0_202], %218 {strides = array<i32>} : memref<8x8x32xbf16, #tpu.memory_space<vmem>>, vector<1x8x32xbf16>,
    %c0_203 = arith.constant 0 : index
    %c0_204 = arith.constant 0 : index
    %c2_205 = arith.constant 2 : index
    %c0_206 = arith.constant 0 : index
    %c0_207 = arith.constant 0 : index
    %219 = vector.load %arg1[%c0_203, %c0_204, %c2_205, %c0_206, %c0_207] : memref<1x3x8x8x32xf32, #tpu.memory_space<vmem>>, vector<1x1x1x8x32xf32>
    %220 = vector.shape_cast %219 : vector<1x1x1x8x32xf32> to vector<8x32xf32>
    %c0_208 = arith.constant 0 : index
    %c1_209 = arith.constant 1 : index
    %c2_210 = arith.constant 2 : index
    %c0_211 = arith.constant 0 : index
    %c0_212 = arith.constant 0 : index
    %221 = vector.load %arg1[%c0_208, %c1_209, %c2_210, %c0_211, %c0_212] : memref<1x3x8x8x32xf32, #tpu.memory_space<vmem>>, vector<1x1x1x8x32xf32>
    %222 = vector.shape_cast %221 : vector<1x1x1x8x32xf32> to vector<8x32xf32>
    %c0_213 = arith.constant 0 : index
    %c2_214 = arith.constant 2 : index
    %c2_215 = arith.constant 2 : index
    %c0_216 = arith.constant 0 : index
    %c0_217 = arith.constant 0 : index
    %223 = vector.load %arg1[%c0_213, %c2_214, %c2_215, %c0_216, %c0_217] : memref<1x3x8x8x32xf32, #tpu.memory_space<vmem>>, vector<1x1x1x8x32xf32>
    %224 = vector.shape_cast %223 : vector<1x1x1x8x32xf32> to vector<8x32xf32>
    %c0_218 = arith.constant 0 : index
    %c0_219 = arith.constant 0 : index
    %225 = vector.load %arg7[%c0_218, %c0_219] : memref<8x32xf32, #tpu.memory_space<vmem>>, vector<8x32xf32>
    %226 = arith.truncf %225 : vector<8x32xf32> to vector<8x32xbf16>
    %c0_220 = arith.constant 0 : index
    %c0_221 = arith.constant 0 : index
    %c0_222 = arith.constant 0 : index
    %c0_223 = arith.constant 0 : index
    %227 = vector.load %arg3[%c0_220, %c0_221, %c0_222, %c0_223] : memref<2x3x32x32xbf16, #tpu.memory_space<vmem>>, vector<1x1x32x32xbf16>
    %228 = vector.shape_cast %227 : vector<1x1x32x32xbf16> to vector<32x32xbf16>
    %cst_224 = arith.constant dense<0.000000e+00> : vector<8x32xf32>
    %229 = tpu.matmul %226, %228, %cst_224 {dimension_numbers = #tpu.dot_dimension_numbers<[1], [0], [0], [1], [0, 0, 1, 1], [], []>} : vector<8x32xbf16>, vector<32x32xbf16>, vector<8x32xf32> -> vector<8x32xf32>
    %c0_225 = arith.constant 0 : index
    %c0_226 = arith.constant 0 : index
    %c0_227 = arith.constant 0 : index
    %c0_228 = arith.constant 0 : index
    %230 = vector.load %arg4[%c0_225, %c0_226, %c0_227, %c0_228] : memref<2x3x1x32xf32, #tpu.memory_space<vmem>>, vector<1x1x1x32xf32>
    %231 = vector.shape_cast %230 : vector<1x1x1x32xf32> to vector<1x32xf32>
    %232 = vector.broadcast %231 : vector<1x32xf32> to vector<8x32xf32>
    %233 = arith.addf %229, %232 : vector<8x32xf32>
    %c0_229 = arith.constant 0 : index
    %c1_230 = arith.constant 1 : index
    %c0_231 = arith.constant 0 : index
    %c0_232 = arith.constant 0 : index
    %234 = vector.load %arg3[%c0_229, %c1_230, %c0_231, %c0_232] : memref<2x3x32x32xbf16, #tpu.memory_space<vmem>>, vector<1x1x32x32xbf16>
    %235 = vector.shape_cast %234 : vector<1x1x32x32xbf16> to vector<32x32xbf16>
    %cst_233 = arith.constant dense<0.000000e+00> : vector<8x32xf32>
    %236 = tpu.matmul %226, %235, %cst_233 {dimension_numbers = #tpu.dot_dimension_numbers<[1], [0], [0], [1], [0, 0, 1, 1], [], []>} : vector<8x32xbf16>, vector<32x32xbf16>, vector<8x32xf32> -> vector<8x32xf32>
    %c0_234 = arith.constant 0 : index
    %c1_235 = arith.constant 1 : index
    %c0_236 = arith.constant 0 : index
    %c0_237 = arith.constant 0 : index
    %237 = vector.load %arg4[%c0_234, %c1_235, %c0_236, %c0_237] : memref<2x3x1x32xf32, #tpu.memory_space<vmem>>, vector<1x1x1x32xf32>
    %238 = vector.shape_cast %237 : vector<1x1x1x32xf32> to vector<1x32xf32>
    %239 = vector.broadcast %238 : vector<1x32xf32> to vector<8x32xf32>
    %240 = arith.addf %236, %239 : vector<8x32xf32>
    %c0_238 = arith.constant 0 : index
    %c2_239 = arith.constant 2 : index
    %c0_240 = arith.constant 0 : index
    %c0_241 = arith.constant 0 : index
    %241 = vector.load %arg3[%c0_238, %c2_239, %c0_240, %c0_241] : memref<2x3x32x32xbf16, #tpu.memory_space<vmem>>, vector<1x1x32x32xbf16>
    %242 = vector.shape_cast %241 : vector<1x1x32x32xbf16> to vector<32x32xbf16>
    %cst_242 = arith.constant dense<0.000000e+00> : vector<8x32xf32>
    %243 = tpu.matmul %226, %242, %cst_242 {dimension_numbers = #tpu.dot_dimension_numbers<[1], [0], [0], [1], [0, 0, 1, 1], [], []>} : vector<8x32xbf16>, vector<32x32xbf16>, vector<8x32xf32> -> vector<8x32xf32>
    %c0_243 = arith.constant 0 : index
    %c2_244 = arith.constant 2 : index
    %c0_245 = arith.constant 0 : index
    %c0_246 = arith.constant 0 : index
    %244 = vector.load %arg4[%c0_243, %c2_244, %c0_245, %c0_246] : memref<2x3x1x32xf32, #tpu.memory_space<vmem>>, vector<1x1x1x32xf32>
    %245 = vector.shape_cast %244 : vector<1x1x1x32xf32> to vector<1x32xf32>
    %246 = vector.broadcast %245 : vector<1x32xf32> to vector<8x32xf32>
    %247 = arith.addf %243, %246 : vector<8x32xf32>
    %248 = arith.addf %220, %233 : vector<8x32xf32>
    %249 = arith.negf %248 : vector<8x32xf32>
    %250 = math.exp %249 : vector<8x32xf32>
    %cst_247 = arith.constant 1.000000e+00 : f32
    %251 = vector.broadcast %cst_247 : f32 to vector<8x32xf32>
    %252 = arith.addf %251, %250 : vector<8x32xf32>
    %253 = arith.divf %251, %252 : vector<8x32xf32>
    %254 = arith.addf %222, %240 : vector<8x32xf32>
    %255 = arith.negf %254 : vector<8x32xf32>
    %256 = math.exp %255 : vector<8x32xf32>
    %cst_248 = arith.constant 1.000000e+00 : f32
    %257 = vector.broadcast %cst_248 : f32 to vector<8x32xf32>
    %258 = arith.addf %257, %256 : vector<8x32xf32>
    %259 = arith.divf %257, %258 : vector<8x32xf32>
    %260 = arith.mulf %253, %247 : vector<8x32xf32>
    %261 = arith.addf %224, %260 : vector<8x32xf32>
    %262 = math.tanh %261 : vector<8x32xf32>
    %cst_249 = arith.constant 1.000000e+00 : f32
    %263 = vector.broadcast %cst_249 : f32 to vector<8x32xf32>
    %264 = arith.subf %263, %259 : vector<8x32xf32>
    %265 = arith.mulf %264, %262 : vector<8x32xf32>
    %266 = arith.mulf %259, %225 : vector<8x32xf32>
    %267 = arith.addf %265, %266 : vector<8x32xf32>
    %c0_250 = arith.constant 0 : index
    %c0_251 = arith.constant 0 : index
    %268 = vector.load %arg7[%c0_250, %c0_251] : memref<8x32xf32, #tpu.memory_space<vmem>>, vector<8x32xf32>
    tpu.vector_store %arg7[%c0_250, %c0_251], %267 {strides = array<i32>} : memref<8x32xf32, #tpu.memory_space<vmem>>, vector<8x32xf32>,
    %269 = arith.truncf %267 : vector<8x32xf32> to vector<8x32xbf16>
    %c2_252 = arith.constant 2 : index
    %c0_253 = arith.constant 0 : index
    %c0_254 = arith.constant 0 : index
    %270 = vector.load %arg5[%c2_252, %c0_253, %c0_254] : memref<8x8x32xbf16, #tpu.memory_space<vmem>>, vector<1x8x32xbf16>
    %271 = vector.shape_cast %270 : vector<1x8x32xbf16> to vector<8x32xbf16>
    %272 = vector.shape_cast %269 : vector<8x32xbf16> to vector<1x8x32xbf16>
    tpu.vector_store %arg5[%c2_252, %c0_253, %c0_254], %272 {strides = array<i32>} : memref<8x8x32xbf16, #tpu.memory_space<vmem>>, vector<1x8x32xbf16>,
    %c0_255 = arith.constant 0 : index
    %c0_256 = arith.constant 0 : index
    %c5 = arith.constant 5 : index
    %c0_257 = arith.constant 0 : index
    %c0_258 = arith.constant 0 : index
    %273 = vector.load %arg2[%c0_255, %c0_256, %c5, %c0_257, %c0_258] : memref<1x3x8x8x32xf32, #tpu.memory_space<vmem>>, vector<1x1x1x8x32xf32>
    %274 = vector.shape_cast %273 : vector<1x1x1x8x32xf32> to vector<8x32xf32>
    %c0_259 = arith.constant 0 : index
    %c1_260 = arith.constant 1 : index
    %c5_261 = arith.constant 5 : index
    %c0_262 = arith.constant 0 : index
    %c0_263 = arith.constant 0 : index
    %275 = vector.load %arg2[%c0_259, %c1_260, %c5_261, %c0_262, %c0_263] : memref<1x3x8x8x32xf32, #tpu.memory_space<vmem>>, vector<1x1x1x8x32xf32>
    %276 = vector.shape_cast %275 : vector<1x1x1x8x32xf32> to vector<8x32xf32>
    %c0_264 = arith.constant 0 : index
    %c2_265 = arith.constant 2 : index
    %c5_266 = arith.constant 5 : index
    %c0_267 = arith.constant 0 : index
    %c0_268 = arith.constant 0 : index
    %277 = vector.load %arg2[%c0_264, %c2_265, %c5_266, %c0_267, %c0_268] : memref<1x3x8x8x32xf32, #tpu.memory_space<vmem>>, vector<1x1x1x8x32xf32>
    %278 = vector.shape_cast %277 : vector<1x1x1x8x32xf32> to vector<8x32xf32>
    %c0_269 = arith.constant 0 : index
    %c0_270 = arith.constant 0 : index
    %279 = vector.load %arg8[%c0_269, %c0_270] : memref<8x32xf32, #tpu.memory_space<vmem>>, vector<8x32xf32>
    %280 = arith.truncf %279 : vector<8x32xf32> to vector<8x32xbf16>
    %c1_271 = arith.constant 1 : index
    %c0_272 = arith.constant 0 : index
    %c0_273 = arith.constant 0 : index
    %c0_274 = arith.constant 0 : index
    %281 = vector.load %arg3[%c1_271, %c0_272, %c0_273, %c0_274] : memref<2x3x32x32xbf16, #tpu.memory_space<vmem>>, vector<1x1x32x32xbf16>
    %282 = vector.shape_cast %281 : vector<1x1x32x32xbf16> to vector<32x32xbf16>
    %cst_275 = arith.constant dense<0.000000e+00> : vector<8x32xf32>
    %283 = tpu.matmul %280, %282, %cst_275 {dimension_numbers = #tpu.dot_dimension_numbers<[1], [0], [0], [1], [0, 0, 1, 1], [], []>} : vector<8x32xbf16>, vector<32x32xbf16>, vector<8x32xf32> -> vector<8x32xf32>
    %c1_276 = arith.constant 1 : index
    %c0_277 = arith.constant 0 : index
    %c0_278 = arith.constant 0 : index
    %c0_279 = arith.constant 0 : index
    %284 = vector.load %arg4[%c1_276, %c0_277, %c0_278, %c0_279] : memref<2x3x1x32xf32, #tpu.memory_space<vmem>>, vector<1x1x1x32xf32>
    %285 = vector.shape_cast %284 : vector<1x1x1x32xf32> to vector<1x32xf32>
    %286 = vector.broadcast %285 : vector<1x32xf32> to vector<8x32xf32>
    %287 = arith.addf %283, %286 : vector<8x32xf32>
    %c1_280 = arith.constant 1 : index
    %c1_281 = arith.constant 1 : index
    %c0_282 = arith.constant 0 : index
    %c0_283 = arith.constant 0 : index
    %288 = vector.load %arg3[%c1_280, %c1_281, %c0_282, %c0_283] : memref<2x3x32x32xbf16, #tpu.memory_space<vmem>>, vector<1x1x32x32xbf16>
    %289 = vector.shape_cast %288 : vector<1x1x32x32xbf16> to vector<32x32xbf16>
    %cst_284 = arith.constant dense<0.000000e+00> : vector<8x32xf32>
    %290 = tpu.matmul %280, %289, %cst_284 {dimension_numbers = #tpu.dot_dimension_numbers<[1], [0], [0], [1], [0, 0, 1, 1], [], []>} : vector<8x32xbf16>, vector<32x32xbf16>, vector<8x32xf32> -> vector<8x32xf32>
    %c1_285 = arith.constant 1 : index
    %c1_286 = arith.constant 1 : index
    %c0_287 = arith.constant 0 : index
    %c0_288 = arith.constant 0 : index
    %291 = vector.load %arg4[%c1_285, %c1_286, %c0_287, %c0_288] : memref<2x3x1x32xf32, #tpu.memory_space<vmem>>, vector<1x1x1x32xf32>
    %292 = vector.shape_cast %291 : vector<1x1x1x32xf32> to vector<1x32xf32>
    %293 = vector.broadcast %292 : vector<1x32xf32> to vector<8x32xf32>
    %294 = arith.addf %290, %293 : vector<8x32xf32>
    %c1_289 = arith.constant 1 : index
    %c2_290 = arith.constant 2 : index
    %c0_291 = arith.constant 0 : index
    %c0_292 = arith.constant 0 : index
    %295 = vector.load %arg3[%c1_289, %c2_290, %c0_291, %c0_292] : memref<2x3x32x32xbf16, #tpu.memory_space<vmem>>, vector<1x1x32x32xbf16>
    %296 = vector.shape_cast %295 : vector<1x1x32x32xbf16> to vector<32x32xbf16>
    %cst_293 = arith.constant dense<0.000000e+00> : vector<8x32xf32>
    %297 = tpu.matmul %280, %296, %cst_293 {dimension_numbers = #tpu.dot_dimension_numbers<[1], [0], [0], [1], [0, 0, 1, 1], [], []>} : vector<8x32xbf16>, vector<32x32xbf16>, vector<8x32xf32> -> vector<8x32xf32>
    %c1_294 = arith.constant 1 : index
    %c2_295 = arith.constant 2 : index
    %c0_296 = arith.constant 0 : index
    %c0_297 = arith.constant 0 : index
    %298 = vector.load %arg4[%c1_294, %c2_295, %c0_296, %c0_297] : memref<2x3x1x32xf32, #tpu.memory_space<vmem>>, vector<1x1x1x32xf32>
    %299 = vector.shape_cast %298 : vector<1x1x1x32xf32> to vector<1x32xf32>
    %300 = vector.broadcast %299 : vector<1x32xf32> to vector<8x32xf32>
    %301 = arith.addf %297, %300 : vector<8x32xf32>
    %302 = arith.addf %274, %287 : vector<8x32xf32>
    %303 = arith.negf %302 : vector<8x32xf32>
    %304 = math.exp %303 : vector<8x32xf32>
    %cst_298 = arith.constant 1.000000e+00 : f32
    %305 = vector.broadcast %cst_298 : f32 to vector<8x32xf32>
    %306 = arith.addf %305, %304 : vector<8x32xf32>
    %307 = arith.divf %305, %306 : vector<8x32xf32>
    %308 = arith.addf %276, %294 : vector<8x32xf32>
    %309 = arith.negf %308 : vector<8x32xf32>
    %310 = math.exp %309 : vector<8x32xf32>
    %cst_299 = arith.constant 1.000000e+00 : f32
    %311 = vector.broadcast %cst_299 : f32 to vector<8x32xf32>
    %312 = arith.addf %311, %310 : vector<8x32xf32>
    %313 = arith.divf %311, %312 : vector<8x32xf32>
    %314 = arith.mulf %307, %301 : vector<8x32xf32>
    %315 = arith.addf %278, %314 : vector<8x32xf32>
    %316 = math.tanh %315 : vector<8x32xf32>
    %cst_300 = arith.constant 1.000000e+00 : f32
    %317 = vector.broadcast %cst_300 : f32 to vector<8x32xf32>
    %318 = arith.subf %317, %313 : vector<8x32xf32>
    %319 = arith.mulf %318, %316 : vector<8x32xf32>
    %320 = arith.mulf %313, %279 : vector<8x32xf32>
    %321 = arith.addf %319, %320 : vector<8x32xf32>
    %c0_301 = arith.constant 0 : index
    %c0_302 = arith.constant 0 : index
    %322 = vector.load %arg8[%c0_301, %c0_302] : memref<8x32xf32, #tpu.memory_space<vmem>>, vector<8x32xf32>
    tpu.vector_store %arg8[%c0_301, %c0_302], %321 {strides = array<i32>} : memref<8x32xf32, #tpu.memory_space<vmem>>, vector<8x32xf32>,
    %323 = arith.truncf %321 : vector<8x32xf32> to vector<8x32xbf16>
    %c5_303 = arith.constant 5 : index
    %c0_304 = arith.constant 0 : index
    %c0_305 = arith.constant 0 : index
    %324 = vector.load %arg6[%c5_303, %c0_304, %c0_305] : memref<8x8x32xbf16, #tpu.memory_space<vmem>>, vector<1x8x32xbf16>
    %325 = vector.shape_cast %324 : vector<1x8x32xbf16> to vector<8x32xbf16>
    %326 = vector.shape_cast %323 : vector<8x32xbf16> to vector<1x8x32xbf16>
    tpu.vector_store %arg6[%c5_303, %c0_304, %c0_305], %326 {strides = array<i32>} : memref<8x8x32xbf16, #tpu.memory_space<vmem>>, vector<1x8x32xbf16>,
    %c0_306 = arith.constant 0 : index
    %c0_307 = arith.constant 0 : index
    %c3 = arith.constant 3 : index
    %c0_308 = arith.constant 0 : index
    %c0_309 = arith.constant 0 : index
    %327 = vector.load %arg1[%c0_306, %c0_307, %c3, %c0_308, %c0_309] : memref<1x3x8x8x32xf32, #tpu.memory_space<vmem>>, vector<1x1x1x8x32xf32>
    %328 = vector.shape_cast %327 : vector<1x1x1x8x32xf32> to vector<8x32xf32>
    %c0_310 = arith.constant 0 : index
    %c1_311 = arith.constant 1 : index
    %c3_312 = arith.constant 3 : index
    %c0_313 = arith.constant 0 : index
    %c0_314 = arith.constant 0 : index
    %329 = vector.load %arg1[%c0_310, %c1_311, %c3_312, %c0_313, %c0_314] : memref<1x3x8x8x32xf32, #tpu.memory_space<vmem>>, vector<1x1x1x8x32xf32>
    %330 = vector.shape_cast %329 : vector<1x1x1x8x32xf32> to vector<8x32xf32>
    %c0_315 = arith.constant 0 : index
    %c2_316 = arith.constant 2 : index
    %c3_317 = arith.constant 3 : index
    %c0_318 = arith.constant 0 : index
    %c0_319 = arith.constant 0 : index
    %331 = vector.load %arg1[%c0_315, %c2_316, %c3_317, %c0_318, %c0_319] : memref<1x3x8x8x32xf32, #tpu.memory_space<vmem>>, vector<1x1x1x8x32xf32>
    %332 = vector.shape_cast %331 : vector<1x1x1x8x32xf32> to vector<8x32xf32>
    %c0_320 = arith.constant 0 : index
    %c0_321 = arith.constant 0 : index
    %333 = vector.load %arg7[%c0_320, %c0_321] : memref<8x32xf32, #tpu.memory_space<vmem>>, vector<8x32xf32>
    %334 = arith.truncf %333 : vector<8x32xf32> to vector<8x32xbf16>
    %c0_322 = arith.constant 0 : index
    %c0_323 = arith.constant 0 : index
    %c0_324 = arith.constant 0 : index
    %c0_325 = arith.constant 0 : index
    %335 = vector.load %arg3[%c0_322, %c0_323, %c0_324, %c0_325] : memref<2x3x32x32xbf16, #tpu.memory_space<vmem>>, vector<1x1x32x32xbf16>
    %336 = vector.shape_cast %335 : vector<1x1x32x32xbf16> to vector<32x32xbf16>
    %cst_326 = arith.constant dense<0.000000e+00> : vector<8x32xf32>
    %337 = tpu.matmul %334, %336, %cst_326 {dimension_numbers = #tpu.dot_dimension_numbers<[1], [0], [0], [1], [0, 0, 1, 1], [], []>} : vector<8x32xbf16>, vector<32x32xbf16>, vector<8x32xf32> -> vector<8x32xf32>
    %c0_327 = arith.constant 0 : index
    %c0_328 = arith.constant 0 : index
    %c0_329 = arith.constant 0 : index
    %c0_330 = arith.constant 0 : index
    %338 = vector.load %arg4[%c0_327, %c0_328, %c0_329, %c0_330] : memref<2x3x1x32xf32, #tpu.memory_space<vmem>>, vector<1x1x1x32xf32>
    %339 = vector.shape_cast %338 : vector<1x1x1x32xf32> to vector<1x32xf32>
    %340 = vector.broadcast %339 : vector<1x32xf32> to vector<8x32xf32>
    %341 = arith.addf %337, %340 : vector<8x32xf32>
    %c0_331 = arith.constant 0 : index
    %c1_332 = arith.constant 1 : index
    %c0_333 = arith.constant 0 : index
    %c0_334 = arith.constant 0 : index
    %342 = vector.load %arg3[%c0_331, %c1_332, %c0_333, %c0_334] : memref<2x3x32x32xbf16, #tpu.memory_space<vmem>>, vector<1x1x32x32xbf16>
    %343 = vector.shape_cast %342 : vector<1x1x32x32xbf16> to vector<32x32xbf16>
    %cst_335 = arith.constant dense<0.000000e+00> : vector<8x32xf32>
    %344 = tpu.matmul %334, %343, %cst_335 {dimension_numbers = #tpu.dot_dimension_numbers<[1], [0], [0], [1], [0, 0, 1, 1], [], []>} : vector<8x32xbf16>, vector<32x32xbf16>, vector<8x32xf32> -> vector<8x32xf32>
    %c0_336 = arith.constant 0 : index
    %c1_337 = arith.constant 1 : index
    %c0_338 = arith.constant 0 : index
    %c0_339 = arith.constant 0 : index
    %345 = vector.load %arg4[%c0_336, %c1_337, %c0_338, %c0_339] : memref<2x3x1x32xf32, #tpu.memory_space<vmem>>, vector<1x1x1x32xf32>
    %346 = vector.shape_cast %345 : vector<1x1x1x32xf32> to vector<1x32xf32>
    %347 = vector.broadcast %346 : vector<1x32xf32> to vector<8x32xf32>
    %348 = arith.addf %344, %347 : vector<8x32xf32>
    %c0_340 = arith.constant 0 : index
    %c2_341 = arith.constant 2 : index
    %c0_342 = arith.constant 0 : index
    %c0_343 = arith.constant 0 : index
    %349 = vector.load %arg3[%c0_340, %c2_341, %c0_342, %c0_343] : memref<2x3x32x32xbf16, #tpu.memory_space<vmem>>, vector<1x1x32x32xbf16>
    %350 = vector.shape_cast %349 : vector<1x1x32x32xbf16> to vector<32x32xbf16>
    %cst_344 = arith.constant dense<0.000000e+00> : vector<8x32xf32>
    %351 = tpu.matmul %334, %350, %cst_344 {dimension_numbers = #tpu.dot_dimension_numbers<[1], [0], [0], [1], [0, 0, 1, 1], [], []>} : vector<8x32xbf16>, vector<32x32xbf16>, vector<8x32xf32> -> vector<8x32xf32>
    %c0_345 = arith.constant 0 : index
    %c2_346 = arith.constant 2 : index
    %c0_347 = arith.constant 0 : index
    %c0_348 = arith.constant 0 : index
    %352 = vector.load %arg4[%c0_345, %c2_346, %c0_347, %c0_348] : memref<2x3x1x32xf32, #tpu.memory_space<vmem>>, vector<1x1x1x32xf32>
    %353 = vector.shape_cast %352 : vector<1x1x1x32xf32> to vector<1x32xf32>
    %354 = vector.broadcast %353 : vector<1x32xf32> to vector<8x32xf32>
    %355 = arith.addf %351, %354 : vector<8x32xf32>
    %356 = arith.addf %328, %341 : vector<8x32xf32>
    %357 = arith.negf %356 : vector<8x32xf32>
    %358 = math.exp %357 : vector<8x32xf32>
    %cst_349 = arith.constant 1.000000e+00 : f32
    %359 = vector.broadcast %cst_349 : f32 to vector<8x32xf32>
    %360 = arith.addf %359, %358 : vector<8x32xf32>
    %361 = arith.divf %359, %360 : vector<8x32xf32>
    %362 = arith.addf %330, %348 : vector<8x32xf32>
    %363 = arith.negf %362 : vector<8x32xf32>
    %364 = math.exp %363 : vector<8x32xf32>
    %cst_350 = arith.constant 1.000000e+00 : f32
    %365 = vector.broadcast %cst_350 : f32 to vector<8x32xf32>
    %366 = arith.addf %365, %364 : vector<8x32xf32>
    %367 = arith.divf %365, %366 : vector<8x32xf32>
    %368 = arith.mulf %361, %355 : vector<8x32xf32>
    %369 = arith.addf %332, %368 : vector<8x32xf32>
    %370 = math.tanh %369 : vector<8x32xf32>
    %cst_351 = arith.constant 1.000000e+00 : f32
    %371 = vector.broadcast %cst_351 : f32 to vector<8x32xf32>
    %372 = arith.subf %371, %367 : vector<8x32xf32>
    %373 = arith.mulf %372, %370 : vector<8x32xf32>
    %374 = arith.mulf %367, %333 : vector<8x32xf32>
    %375 = arith.addf %373, %374 : vector<8x32xf32>
    %c0_352 = arith.constant 0 : index
    %c0_353 = arith.constant 0 : index
    %376 = vector.load %arg7[%c0_352, %c0_353] : memref<8x32xf32, #tpu.memory_space<vmem>>, vector<8x32xf32>
    tpu.vector_store %arg7[%c0_352, %c0_353], %375 {strides = array<i32>} : memref<8x32xf32, #tpu.memory_space<vmem>>, vector<8x32xf32>,
    %377 = arith.truncf %375 : vector<8x32xf32> to vector<8x32xbf16>
    %c3_354 = arith.constant 3 : index
    %c0_355 = arith.constant 0 : index
    %c0_356 = arith.constant 0 : index
    %378 = vector.load %arg5[%c3_354, %c0_355, %c0_356] : memref<8x8x32xbf16, #tpu.memory_space<vmem>>, vector<1x8x32xbf16>
    %379 = vector.shape_cast %378 : vector<1x8x32xbf16> to vector<8x32xbf16>
    %380 = vector.shape_cast %377 : vector<8x32xbf16> to vector<1x8x32xbf16>
    tpu.vector_store %arg5[%c3_354, %c0_355, %c0_356], %380 {strides = array<i32>} : memref<8x8x32xbf16, #tpu.memory_space<vmem>>, vector<1x8x32xbf16>,
    %c0_357 = arith.constant 0 : index
    %c0_358 = arith.constant 0 : index
    %c4 = arith.constant 4 : index
    %c0_359 = arith.constant 0 : index
    %c0_360 = arith.constant 0 : index
    %381 = vector.load %arg2[%c0_357, %c0_358, %c4, %c0_359, %c0_360] : memref<1x3x8x8x32xf32, #tpu.memory_space<vmem>>, vector<1x1x1x8x32xf32>
    %382 = vector.shape_cast %381 : vector<1x1x1x8x32xf32> to vector<8x32xf32>
    %c0_361 = arith.constant 0 : index
    %c1_362 = arith.constant 1 : index
    %c4_363 = arith.constant 4 : index
    %c0_364 = arith.constant 0 : index
    %c0_365 = arith.constant 0 : index
    %383 = vector.load %arg2[%c0_361, %c1_362, %c4_363, %c0_364, %c0_365] : memref<1x3x8x8x32xf32, #tpu.memory_space<vmem>>, vector<1x1x1x8x32xf32>
    %384 = vector.shape_cast %383 : vector<1x1x1x8x32xf32> to vector<8x32xf32>
    %c0_366 = arith.constant 0 : index
    %c2_367 = arith.constant 2 : index
    %c4_368 = arith.constant 4 : index
    %c0_369 = arith.constant 0 : index
    %c0_370 = arith.constant 0 : index
    %385 = vector.load %arg2[%c0_366, %c2_367, %c4_368, %c0_369, %c0_370] : memref<1x3x8x8x32xf32, #tpu.memory_space<vmem>>, vector<1x1x1x8x32xf32>
    %386 = vector.shape_cast %385 : vector<1x1x1x8x32xf32> to vector<8x32xf32>
    %c0_371 = arith.constant 0 : index
    %c0_372 = arith.constant 0 : index
    %387 = vector.load %arg8[%c0_371, %c0_372] : memref<8x32xf32, #tpu.memory_space<vmem>>, vector<8x32xf32>
    %388 = arith.truncf %387 : vector<8x32xf32> to vector<8x32xbf16>
    %c1_373 = arith.constant 1 : index
    %c0_374 = arith.constant 0 : index
    %c0_375 = arith.constant 0 : index
    %c0_376 = arith.constant 0 : index
    %389 = vector.load %arg3[%c1_373, %c0_374, %c0_375, %c0_376] : memref<2x3x32x32xbf16, #tpu.memory_space<vmem>>, vector<1x1x32x32xbf16>
    %390 = vector.shape_cast %389 : vector<1x1x32x32xbf16> to vector<32x32xbf16>
    %cst_377 = arith.constant dense<0.000000e+00> : vector<8x32xf32>
    %391 = tpu.matmul %388, %390, %cst_377 {dimension_numbers = #tpu.dot_dimension_numbers<[1], [0], [0], [1], [0, 0, 1, 1], [], []>} : vector<8x32xbf16>, vector<32x32xbf16>, vector<8x32xf32> -> vector<8x32xf32>
    %c1_378 = arith.constant 1 : index
    %c0_379 = arith.constant 0 : index
    %c0_380 = arith.constant 0 : index
    %c0_381 = arith.constant 0 : index
    %392 = vector.load %arg4[%c1_378, %c0_379, %c0_380, %c0_381] : memref<2x3x1x32xf32, #tpu.memory_space<vmem>>, vector<1x1x1x32xf32>
    %393 = vector.shape_cast %392 : vector<1x1x1x32xf32> to vector<1x32xf32>
    %394 = vector.broadcast %393 : vector<1x32xf32> to vector<8x32xf32>
    %395 = arith.addf %391, %394 : vector<8x32xf32>
    %c1_382 = arith.constant 1 : index
    %c1_383 = arith.constant 1 : index
    %c0_384 = arith.constant 0 : index
    %c0_385 = arith.constant 0 : index
    %396 = vector.load %arg3[%c1_382, %c1_383, %c0_384, %c0_385] : memref<2x3x32x32xbf16, #tpu.memory_space<vmem>>, vector<1x1x32x32xbf16>
    %397 = vector.shape_cast %396 : vector<1x1x32x32xbf16> to vector<32x32xbf16>
    %cst_386 = arith.constant dense<0.000000e+00> : vector<8x32xf32>
    %398 = tpu.matmul %388, %397, %cst_386 {dimension_numbers = #tpu.dot_dimension_numbers<[1], [0], [0], [1], [0, 0, 1, 1], [], []>} : vector<8x32xbf16>, vector<32x32xbf16>, vector<8x32xf32> -> vector<8x32xf32>
    %c1_387 = arith.constant 1 : index
    %c1_388 = arith.constant 1 : index
    %c0_389 = arith.constant 0 : index
    %c0_390 = arith.constant 0 : index
    %399 = vector.load %arg4[%c1_387, %c1_388, %c0_389, %c0_390] : memref<2x3x1x32xf32, #tpu.memory_space<vmem>>, vector<1x1x1x32xf32>
    %400 = vector.shape_cast %399 : vector<1x1x1x32xf32> to vector<1x32xf32>
    %401 = vector.broadcast %400 : vector<1x32xf32> to vector<8x32xf32>
    %402 = arith.addf %398, %401 : vector<8x32xf32>
    %c1_391 = arith.constant 1 : index
    %c2_392 = arith.constant 2 : index
    %c0_393 = arith.constant 0 : index
    %c0_394 = arith.constant 0 : index
    %403 = vector.load %arg3[%c1_391, %c2_392, %c0_393, %c0_394] : memref<2x3x32x32xbf16, #tpu.memory_space<vmem>>, vector<1x1x32x32xbf16>
    %404 = vector.shape_cast %403 : vector<1x1x32x32xbf16> to vector<32x32xbf16>
    %cst_395 = arith.constant dense<0.000000e+00> : vector<8x32xf32>
    %405 = tpu.matmul %388, %404, %cst_395 {dimension_numbers = #tpu.dot_dimension_numbers<[1], [0], [0], [1], [0, 0, 1, 1], [], []>} : vector<8x32xbf16>, vector<32x32xbf16>, vector<8x32xf32> -> vector<8x32xf32>
    %c1_396 = arith.constant 1 : index
    %c2_397 = arith.constant 2 : index
    %c0_398 = arith.constant 0 : index
    %c0_399 = arith.constant 0 : index
    %406 = vector.load %arg4[%c1_396, %c2_397, %c0_398, %c0_399] : memref<2x3x1x32xf32, #tpu.memory_space<vmem>>, vector<1x1x1x32xf32>
    %407 = vector.shape_cast %406 : vector<1x1x1x32xf32> to vector<1x32xf32>
    %408 = vector.broadcast %407 : vector<1x32xf32> to vector<8x32xf32>
    %409 = arith.addf %405, %408 : vector<8x32xf32>
    %410 = arith.addf %382, %395 : vector<8x32xf32>
    %411 = arith.negf %410 : vector<8x32xf32>
    %412 = math.exp %411 : vector<8x32xf32>
    %cst_400 = arith.constant 1.000000e+00 : f32
    %413 = vector.broadcast %cst_400 : f32 to vector<8x32xf32>
    %414 = arith.addf %413, %412 : vector<8x32xf32>
    %415 = arith.divf %413, %414 : vector<8x32xf32>
    %416 = arith.addf %384, %402 : vector<8x32xf32>
    %417 = arith.negf %416 : vector<8x32xf32>
    %418 = math.exp %417 : vector<8x32xf32>
    %cst_401 = arith.constant 1.000000e+00 : f32
    %419 = vector.broadcast %cst_401 : f32 to vector<8x32xf32>
    %420 = arith.addf %419, %418 : vector<8x32xf32>
    %421 = arith.divf %419, %420 : vector<8x32xf32>
    %422 = arith.mulf %415, %409 : vector<8x32xf32>
    %423 = arith.addf %386, %422 : vector<8x32xf32>
    %424 = math.tanh %423 : vector<8x32xf32>
    %cst_402 = arith.constant 1.000000e+00 : f32
    %425 = vector.broadcast %cst_402 : f32 to vector<8x32xf32>
    %426 = arith.subf %425, %421 : vector<8x32xf32>
    %427 = arith.mulf %426, %424 : vector<8x32xf32>
    %428 = arith.mulf %421, %387 : vector<8x32xf32>
    %429 = arith.addf %427, %428 : vector<8x32xf32>
    %c0_403 = arith.constant 0 : index
    %c0_404 = arith.constant 0 : index
    %430 = vector.load %arg8[%c0_403, %c0_404] : memref<8x32xf32, #tpu.memory_space<vmem>>, vector<8x32xf32>
    tpu.vector_store %arg8[%c0_403, %c0_404], %429 {strides = array<i32>} : memref<8x32xf32, #tpu.memory_space<vmem>>, vector<8x32xf32>,
    %431 = arith.truncf %429 : vector<8x32xf32> to vector<8x32xbf16>
    %c4_405 = arith.constant 4 : index
    %c0_406 = arith.constant 0 : index
    %c0_407 = arith.constant 0 : index
    %432 = vector.load %arg6[%c4_405, %c0_406, %c0_407] : memref<8x8x32xbf16, #tpu.memory_space<vmem>>, vector<1x8x32xbf16>
    %433 = vector.shape_cast %432 : vector<1x8x32xbf16> to vector<8x32xbf16>
    %434 = vector.shape_cast %431 : vector<8x32xbf16> to vector<1x8x32xbf16>
    tpu.vector_store %arg6[%c4_405, %c0_406, %c0_407], %434 {strides = array<i32>} : memref<8x8x32xbf16, #tpu.memory_space<vmem>>, vector<1x8x32xbf16>,
    %c0_408 = arith.constant 0 : index
    %c0_409 = arith.constant 0 : index
    %c4_410 = arith.constant 4 : index
    %c0_411 = arith.constant 0 : index
    %c0_412 = arith.constant 0 : index
    %435 = vector.load %arg1[%c0_408, %c0_409, %c4_410, %c0_411, %c0_412] : memref<1x3x8x8x32xf32, #tpu.memory_space<vmem>>, vector<1x1x1x8x32xf32>
    %436 = vector.shape_cast %435 : vector<1x1x1x8x32xf32> to vector<8x32xf32>
    %c0_413 = arith.constant 0 : index
    %c1_414 = arith.constant 1 : index
    %c4_415 = arith.constant 4 : index
    %c0_416 = arith.constant 0 : index
    %c0_417 = arith.constant 0 : index
    %437 = vector.load %arg1[%c0_413, %c1_414, %c4_415, %c0_416, %c0_417] : memref<1x3x8x8x32xf32, #tpu.memory_space<vmem>>, vector<1x1x1x8x32xf32>
    %438 = vector.shape_cast %437 : vector<1x1x1x8x32xf32> to vector<8x32xf32>
    %c0_418 = arith.constant 0 : index
    %c2_419 = arith.constant 2 : index
    %c4_420 = arith.constant 4 : index
    %c0_421 = arith.constant 0 : index
    %c0_422 = arith.constant 0 : index
    %439 = vector.load %arg1[%c0_418, %c2_419, %c4_420, %c0_421, %c0_422] : memref<1x3x8x8x32xf32, #tpu.memory_space<vmem>>, vector<1x1x1x8x32xf32>
    %440 = vector.shape_cast %439 : vector<1x1x1x8x32xf32> to vector<8x32xf32>
    %c0_423 = arith.constant 0 : index
    %c0_424 = arith.constant 0 : index
    %441 = vector.load %arg7[%c0_423, %c0_424] : memref<8x32xf32, #tpu.memory_space<vmem>>, vector<8x32xf32>
    %442 = arith.truncf %441 : vector<8x32xf32> to vector<8x32xbf16>
    %c0_425 = arith.constant 0 : index
    %c0_426 = arith.constant 0 : index
    %c0_427 = arith.constant 0 : index
    %c0_428 = arith.constant 0 : index
    %443 = vector.load %arg3[%c0_425, %c0_426, %c0_427, %c0_428] : memref<2x3x32x32xbf16, #tpu.memory_space<vmem>>, vector<1x1x32x32xbf16>
    %444 = vector.shape_cast %443 : vector<1x1x32x32xbf16> to vector<32x32xbf16>
    %cst_429 = arith.constant dense<0.000000e+00> : vector<8x32xf32>
    %445 = tpu.matmul %442, %444, %cst_429 {dimension_numbers = #tpu.dot_dimension_numbers<[1], [0], [0], [1], [0, 0, 1, 1], [], []>} : vector<8x32xbf16>, vector<32x32xbf16>, vector<8x32xf32> -> vector<8x32xf32>
    %c0_430 = arith.constant 0 : index
    %c0_431 = arith.constant 0 : index
    %c0_432 = arith.constant 0 : index
    %c0_433 = arith.constant 0 : index
    %446 = vector.load %arg4[%c0_430, %c0_431, %c0_432, %c0_433] : memref<2x3x1x32xf32, #tpu.memory_space<vmem>>, vector<1x1x1x32xf32>
    %447 = vector.shape_cast %446 : vector<1x1x1x32xf32> to vector<1x32xf32>
    %448 = vector.broadcast %447 : vector<1x32xf32> to vector<8x32xf32>
    %449 = arith.addf %445, %448 : vector<8x32xf32>
    %c0_434 = arith.constant 0 : index
    %c1_435 = arith.constant 1 : index
    %c0_436 = arith.constant 0 : index
    %c0_437 = arith.constant 0 : index
    %450 = vector.load %arg3[%c0_434, %c1_435, %c0_436, %c0_437] : memref<2x3x32x32xbf16, #tpu.memory_space<vmem>>, vector<1x1x32x32xbf16>
    %451 = vector.shape_cast %450 : vector<1x1x32x32xbf16> to vector<32x32xbf16>
    %cst_438 = arith.constant dense<0.000000e+00> : vector<8x32xf32>
    %452 = tpu.matmul %442, %451, %cst_438 {dimension_numbers = #tpu.dot_dimension_numbers<[1], [0], [0], [1], [0, 0, 1, 1], [], []>} : vector<8x32xbf16>, vector<32x32xbf16>, vector<8x32xf32> -> vector<8x32xf32>
    %c0_439 = arith.constant 0 : index
    %c1_440 = arith.constant 1 : index
    %c0_441 = arith.constant 0 : index
    %c0_442 = arith.constant 0 : index
    %453 = vector.load %arg4[%c0_439, %c1_440, %c0_441, %c0_442] : memref<2x3x1x32xf32, #tpu.memory_space<vmem>>, vector<1x1x1x32xf32>
    %454 = vector.shape_cast %453 : vector<1x1x1x32xf32> to vector<1x32xf32>
    %455 = vector.broadcast %454 : vector<1x32xf32> to vector<8x32xf32>
    %456 = arith.addf %452, %455 : vector<8x32xf32>
    %c0_443 = arith.constant 0 : index
    %c2_444 = arith.constant 2 : index
    %c0_445 = arith.constant 0 : index
    %c0_446 = arith.constant 0 : index
    %457 = vector.load %arg3[%c0_443, %c2_444, %c0_445, %c0_446] : memref<2x3x32x32xbf16, #tpu.memory_space<vmem>>, vector<1x1x32x32xbf16>
    %458 = vector.shape_cast %457 : vector<1x1x32x32xbf16> to vector<32x32xbf16>
    %cst_447 = arith.constant dense<0.000000e+00> : vector<8x32xf32>
    %459 = tpu.matmul %442, %458, %cst_447 {dimension_numbers = #tpu.dot_dimension_numbers<[1], [0], [0], [1], [0, 0, 1, 1], [], []>} : vector<8x32xbf16>, vector<32x32xbf16>, vector<8x32xf32> -> vector<8x32xf32>
    %c0_448 = arith.constant 0 : index
    %c2_449 = arith.constant 2 : index
    %c0_450 = arith.constant 0 : index
    %c0_451 = arith.constant 0 : index
    %460 = vector.load %arg4[%c0_448, %c2_449, %c0_450, %c0_451] : memref<2x3x1x32xf32, #tpu.memory_space<vmem>>, vector<1x1x1x32xf32>
    %461 = vector.shape_cast %460 : vector<1x1x1x32xf32> to vector<1x32xf32>
    %462 = vector.broadcast %461 : vector<1x32xf32> to vector<8x32xf32>
    %463 = arith.addf %459, %462 : vector<8x32xf32>
    %464 = arith.addf %436, %449 : vector<8x32xf32>
    %465 = arith.negf %464 : vector<8x32xf32>
    %466 = math.exp %465 : vector<8x32xf32>
    %cst_452 = arith.constant 1.000000e+00 : f32
    %467 = vector.broadcast %cst_452 : f32 to vector<8x32xf32>
    %468 = arith.addf %467, %466 : vector<8x32xf32>
    %469 = arith.divf %467, %468 : vector<8x32xf32>
    %470 = arith.addf %438, %456 : vector<8x32xf32>
    %471 = arith.negf %470 : vector<8x32xf32>
    %472 = math.exp %471 : vector<8x32xf32>
    %cst_453 = arith.constant 1.000000e+00 : f32
    %473 = vector.broadcast %cst_453 : f32 to vector<8x32xf32>
    %474 = arith.addf %473, %472 : vector<8x32xf32>
    %475 = arith.divf %473, %474 : vector<8x32xf32>
    %476 = arith.mulf %469, %463 : vector<8x32xf32>
    %477 = arith.addf %440, %476 : vector<8x32xf32>
    %478 = math.tanh %477 : vector<8x32xf32>
    %cst_454 = arith.constant 1.000000e+00 : f32
    %479 = vector.broadcast %cst_454 : f32 to vector<8x32xf32>
    %480 = arith.subf %479, %475 : vector<8x32xf32>
    %481 = arith.mulf %480, %478 : vector<8x32xf32>
    %482 = arith.mulf %475, %441 : vector<8x32xf32>
    %483 = arith.addf %481, %482 : vector<8x32xf32>
    %c0_455 = arith.constant 0 : index
    %c0_456 = arith.constant 0 : index
    %484 = vector.load %arg7[%c0_455, %c0_456] : memref<8x32xf32, #tpu.memory_space<vmem>>, vector<8x32xf32>
    tpu.vector_store %arg7[%c0_455, %c0_456], %483 {strides = array<i32>} : memref<8x32xf32, #tpu.memory_space<vmem>>, vector<8x32xf32>,
    %485 = arith.truncf %483 : vector<8x32xf32> to vector<8x32xbf16>
    %c4_457 = arith.constant 4 : index
    %c0_458 = arith.constant 0 : index
    %c0_459 = arith.constant 0 : index
    %486 = vector.load %arg5[%c4_457, %c0_458, %c0_459] : memref<8x8x32xbf16, #tpu.memory_space<vmem>>, vector<1x8x32xbf16>
    %487 = vector.shape_cast %486 : vector<1x8x32xbf16> to vector<8x32xbf16>
    %488 = vector.shape_cast %485 : vector<8x32xbf16> to vector<1x8x32xbf16>
    tpu.vector_store %arg5[%c4_457, %c0_458, %c0_459], %488 {strides = array<i32>} : memref<8x8x32xbf16, #tpu.memory_space<vmem>>, vector<1x8x32xbf16>,
    %c0_460 = arith.constant 0 : index
    %c0_461 = arith.constant 0 : index
    %c3_462 = arith.constant 3 : index
    %c0_463 = arith.constant 0 : index
    %c0_464 = arith.constant 0 : index
    %489 = vector.load %arg2[%c0_460, %c0_461, %c3_462, %c0_463, %c0_464] : memref<1x3x8x8x32xf32, #tpu.memory_space<vmem>>, vector<1x1x1x8x32xf32>
    %490 = vector.shape_cast %489 : vector<1x1x1x8x32xf32> to vector<8x32xf32>
    %c0_465 = arith.constant 0 : index
    %c1_466 = arith.constant 1 : index
    %c3_467 = arith.constant 3 : index
    %c0_468 = arith.constant 0 : index
    %c0_469 = arith.constant 0 : index
    %491 = vector.load %arg2[%c0_465, %c1_466, %c3_467, %c0_468, %c0_469] : memref<1x3x8x8x32xf32, #tpu.memory_space<vmem>>, vector<1x1x1x8x32xf32>
    %492 = vector.shape_cast %491 : vector<1x1x1x8x32xf32> to vector<8x32xf32>
    %c0_470 = arith.constant 0 : index
    %c2_471 = arith.constant 2 : index
    %c3_472 = arith.constant 3 : index
    %c0_473 = arith.constant 0 : index
    %c0_474 = arith.constant 0 : index
    %493 = vector.load %arg2[%c0_470, %c2_471, %c3_472, %c0_473, %c0_474] : memref<1x3x8x8x32xf32, #tpu.memory_space<vmem>>, vector<1x1x1x8x32xf32>
    %494 = vector.shape_cast %493 : vector<1x1x1x8x32xf32> to vector<8x32xf32>
    %c0_475 = arith.constant 0 : index
    %c0_476 = arith.constant 0 : index
    %495 = vector.load %arg8[%c0_475, %c0_476] : memref<8x32xf32, #tpu.memory_space<vmem>>, vector<8x32xf32>
    %496 = arith.truncf %495 : vector<8x32xf32> to vector<8x32xbf16>
    %c1_477 = arith.constant 1 : index
    %c0_478 = arith.constant 0 : index
    %c0_479 = arith.constant 0 : index
    %c0_480 = arith.constant 0 : index
    %497 = vector.load %arg3[%c1_477, %c0_478, %c0_479, %c0_480] : memref<2x3x32x32xbf16, #tpu.memory_space<vmem>>, vector<1x1x32x32xbf16>
    %498 = vector.shape_cast %497 : vector<1x1x32x32xbf16> to vector<32x32xbf16>
    %cst_481 = arith.constant dense<0.000000e+00> : vector<8x32xf32>
    %499 = tpu.matmul %496, %498, %cst_481 {dimension_numbers = #tpu.dot_dimension_numbers<[1], [0], [0], [1], [0, 0, 1, 1], [], []>} : vector<8x32xbf16>, vector<32x32xbf16>, vector<8x32xf32> -> vector<8x32xf32>
    %c1_482 = arith.constant 1 : index
    %c0_483 = arith.constant 0 : index
    %c0_484 = arith.constant 0 : index
    %c0_485 = arith.constant 0 : index
    %500 = vector.load %arg4[%c1_482, %c0_483, %c0_484, %c0_485] : memref<2x3x1x32xf32, #tpu.memory_space<vmem>>, vector<1x1x1x32xf32>
    %501 = vector.shape_cast %500 : vector<1x1x1x32xf32> to vector<1x32xf32>
    %502 = vector.broadcast %501 : vector<1x32xf32> to vector<8x32xf32>
    %503 = arith.addf %499, %502 : vector<8x32xf32>
    %c1_486 = arith.constant 1 : index
    %c1_487 = arith.constant 1 : index
    %c0_488 = arith.constant 0 : index
    %c0_489 = arith.constant 0 : index
    %504 = vector.load %arg3[%c1_486, %c1_487, %c0_488, %c0_489] : memref<2x3x32x32xbf16, #tpu.memory_space<vmem>>, vector<1x1x32x32xbf16>
    %505 = vector.shape_cast %504 : vector<1x1x32x32xbf16> to vector<32x32xbf16>
    %cst_490 = arith.constant dense<0.000000e+00> : vector<8x32xf32>
    %506 = tpu.matmul %496, %505, %cst_490 {dimension_numbers = #tpu.dot_dimension_numbers<[1], [0], [0], [1], [0, 0, 1, 1], [], []>} : vector<8x32xbf16>, vector<32x32xbf16>, vector<8x32xf32> -> vector<8x32xf32>
    %c1_491 = arith.constant 1 : index
    %c1_492 = arith.constant 1 : index
    %c0_493 = arith.constant 0 : index
    %c0_494 = arith.constant 0 : index
    %507 = vector.load %arg4[%c1_491, %c1_492, %c0_493, %c0_494] : memref<2x3x1x32xf32, #tpu.memory_space<vmem>>, vector<1x1x1x32xf32>
    %508 = vector.shape_cast %507 : vector<1x1x1x32xf32> to vector<1x32xf32>
    %509 = vector.broadcast %508 : vector<1x32xf32> to vector<8x32xf32>
    %510 = arith.addf %506, %509 : vector<8x32xf32>
    %c1_495 = arith.constant 1 : index
    %c2_496 = arith.constant 2 : index
    %c0_497 = arith.constant 0 : index
    %c0_498 = arith.constant 0 : index
    %511 = vector.load %arg3[%c1_495, %c2_496, %c0_497, %c0_498] : memref<2x3x32x32xbf16, #tpu.memory_space<vmem>>, vector<1x1x32x32xbf16>
    %512 = vector.shape_cast %511 : vector<1x1x32x32xbf16> to vector<32x32xbf16>
    %cst_499 = arith.constant dense<0.000000e+00> : vector<8x32xf32>
    %513 = tpu.matmul %496, %512, %cst_499 {dimension_numbers = #tpu.dot_dimension_numbers<[1], [0], [0], [1], [0, 0, 1, 1], [], []>} : vector<8x32xbf16>, vector<32x32xbf16>, vector<8x32xf32> -> vector<8x32xf32>
    %c1_500 = arith.constant 1 : index
    %c2_501 = arith.constant 2 : index
    %c0_502 = arith.constant 0 : index
    %c0_503 = arith.constant 0 : index
    %514 = vector.load %arg4[%c1_500, %c2_501, %c0_502, %c0_503] : memref<2x3x1x32xf32, #tpu.memory_space<vmem>>, vector<1x1x1x32xf32>
    %515 = vector.shape_cast %514 : vector<1x1x1x32xf32> to vector<1x32xf32>
    %516 = vector.broadcast %515 : vector<1x32xf32> to vector<8x32xf32>
    %517 = arith.addf %513, %516 : vector<8x32xf32>
    %518 = arith.addf %490, %503 : vector<8x32xf32>
    %519 = arith.negf %518 : vector<8x32xf32>
    %520 = math.exp %519 : vector<8x32xf32>
    %cst_504 = arith.constant 1.000000e+00 : f32
    %521 = vector.broadcast %cst_504 : f32 to vector<8x32xf32>
    %522 = arith.addf %521, %520 : vector<8x32xf32>
    %523 = arith.divf %521, %522 : vector<8x32xf32>
    %524 = arith.addf %492, %510 : vector<8x32xf32>
    %525 = arith.negf %524 : vector<8x32xf32>
    %526 = math.exp %525 : vector<8x32xf32>
    %cst_505 = arith.constant 1.000000e+00 : f32
    %527 = vector.broadcast %cst_505 : f32 to vector<8x32xf32>
    %528 = arith.addf %527, %526 : vector<8x32xf32>
    %529 = arith.divf %527, %528 : vector<8x32xf32>
    %530 = arith.mulf %523, %517 : vector<8x32xf32>
    %531 = arith.addf %494, %530 : vector<8x32xf32>
    %532 = math.tanh %531 : vector<8x32xf32>
    %cst_506 = arith.constant 1.000000e+00 : f32
    %533 = vector.broadcast %cst_506 : f32 to vector<8x32xf32>
    %534 = arith.subf %533, %529 : vector<8x32xf32>
    %535 = arith.mulf %534, %532 : vector<8x32xf32>
    %536 = arith.mulf %529, %495 : vector<8x32xf32>
    %537 = arith.addf %535, %536 : vector<8x32xf32>
    %c0_507 = arith.constant 0 : index
    %c0_508 = arith.constant 0 : index
    %538 = vector.load %arg8[%c0_507, %c0_508] : memref<8x32xf32, #tpu.memory_space<vmem>>, vector<8x32xf32>
    tpu.vector_store %arg8[%c0_507, %c0_508], %537 {strides = array<i32>} : memref<8x32xf32, #tpu.memory_space<vmem>>, vector<8x32xf32>,
    %539 = arith.truncf %537 : vector<8x32xf32> to vector<8x32xbf16>
    %c3_509 = arith.constant 3 : index
    %c0_510 = arith.constant 0 : index
    %c0_511 = arith.constant 0 : index
    %540 = vector.load %arg6[%c3_509, %c0_510, %c0_511] : memref<8x8x32xbf16, #tpu.memory_space<vmem>>, vector<1x8x32xbf16>
    %541 = vector.shape_cast %540 : vector<1x8x32xbf16> to vector<8x32xbf16>
    %542 = vector.shape_cast %539 : vector<8x32xbf16> to vector<1x8x32xbf16>
    tpu.vector_store %arg6[%c3_509, %c0_510, %c0_511], %542 {strides = array<i32>} : memref<8x8x32xbf16, #tpu.memory_space<vmem>>, vector<1x8x32xbf16>,
    %c0_512 = arith.constant 0 : index
    %c0_513 = arith.constant 0 : index
    %c5_514 = arith.constant 5 : index
    %c0_515 = arith.constant 0 : index
    %c0_516 = arith.constant 0 : index
    %543 = vector.load %arg1[%c0_512, %c0_513, %c5_514, %c0_515, %c0_516] : memref<1x3x8x8x32xf32, #tpu.memory_space<vmem>>, vector<1x1x1x8x32xf32>
    %544 = vector.shape_cast %543 : vector<1x1x1x8x32xf32> to vector<8x32xf32>
    %c0_517 = arith.constant 0 : index
    %c1_518 = arith.constant 1 : index
    %c5_519 = arith.constant 5 : index
    %c0_520 = arith.constant 0 : index
    %c0_521 = arith.constant 0 : index
    %545 = vector.load %arg1[%c0_517, %c1_518, %c5_519, %c0_520, %c0_521] : memref<1x3x8x8x32xf32, #tpu.memory_space<vmem>>, vector<1x1x1x8x32xf32>
    %546 = vector.shape_cast %545 : vector<1x1x1x8x32xf32> to vector<8x32xf32>
    %c0_522 = arith.constant 0 : index
    %c2_523 = arith.constant 2 : index
    %c5_524 = arith.constant 5 : index
    %c0_525 = arith.constant 0 : index
    %c0_526 = arith.constant 0 : index
    %547 = vector.load %arg1[%c0_522, %c2_523, %c5_524, %c0_525, %c0_526] : memref<1x3x8x8x32xf32, #tpu.memory_space<vmem>>, vector<1x1x1x8x32xf32>
    %548 = vector.shape_cast %547 : vector<1x1x1x8x32xf32> to vector<8x32xf32>
    %c0_527 = arith.constant 0 : index
    %c0_528 = arith.constant 0 : index
    %549 = vector.load %arg7[%c0_527, %c0_528] : memref<8x32xf32, #tpu.memory_space<vmem>>, vector<8x32xf32>
    %550 = arith.truncf %549 : vector<8x32xf32> to vector<8x32xbf16>
    %c0_529 = arith.constant 0 : index
    %c0_530 = arith.constant 0 : index
    %c0_531 = arith.constant 0 : index
    %c0_532 = arith.constant 0 : index
    %551 = vector.load %arg3[%c0_529, %c0_530, %c0_531, %c0_532] : memref<2x3x32x32xbf16, #tpu.memory_space<vmem>>, vector<1x1x32x32xbf16>
    %552 = vector.shape_cast %551 : vector<1x1x32x32xbf16> to vector<32x32xbf16>
    %cst_533 = arith.constant dense<0.000000e+00> : vector<8x32xf32>
    %553 = tpu.matmul %550, %552, %cst_533 {dimension_numbers = #tpu.dot_dimension_numbers<[1], [0], [0], [1], [0, 0, 1, 1], [], []>} : vector<8x32xbf16>, vector<32x32xbf16>, vector<8x32xf32> -> vector<8x32xf32>
    %c0_534 = arith.constant 0 : index
    %c0_535 = arith.constant 0 : index
    %c0_536 = arith.constant 0 : index
    %c0_537 = arith.constant 0 : index
    %554 = vector.load %arg4[%c0_534, %c0_535, %c0_536, %c0_537] : memref<2x3x1x32xf32, #tpu.memory_space<vmem>>, vector<1x1x1x32xf32>
    %555 = vector.shape_cast %554 : vector<1x1x1x32xf32> to vector<1x32xf32>
    %556 = vector.broadcast %555 : vector<1x32xf32> to vector<8x32xf32>
    %557 = arith.addf %553, %556 : vector<8x32xf32>
    %c0_538 = arith.constant 0 : index
    %c1_539 = arith.constant 1 : index
    %c0_540 = arith.constant 0 : index
    %c0_541 = arith.constant 0 : index
    %558 = vector.load %arg3[%c0_538, %c1_539, %c0_540, %c0_541] : memref<2x3x32x32xbf16, #tpu.memory_space<vmem>>, vector<1x1x32x32xbf16>
    %559 = vector.shape_cast %558 : vector<1x1x32x32xbf16> to vector<32x32xbf16>
    %cst_542 = arith.constant dense<0.000000e+00> : vector<8x32xf32>
    %560 = tpu.matmul %550, %559, %cst_542 {dimension_numbers = #tpu.dot_dimension_numbers<[1], [0], [0], [1], [0, 0, 1, 1], [], []>} : vector<8x32xbf16>, vector<32x32xbf16>, vector<8x32xf32> -> vector<8x32xf32>
    %c0_543 = arith.constant 0 : index
    %c1_544 = arith.constant 1 : index
    %c0_545 = arith.constant 0 : index
    %c0_546 = arith.constant 0 : index
    %561 = vector.load %arg4[%c0_543, %c1_544, %c0_545, %c0_546] : memref<2x3x1x32xf32, #tpu.memory_space<vmem>>, vector<1x1x1x32xf32>
    %562 = vector.shape_cast %561 : vector<1x1x1x32xf32> to vector<1x32xf32>
    %563 = vector.broadcast %562 : vector<1x32xf32> to vector<8x32xf32>
    %564 = arith.addf %560, %563 : vector<8x32xf32>
    %c0_547 = arith.constant 0 : index
    %c2_548 = arith.constant 2 : index
    %c0_549 = arith.constant 0 : index
    %c0_550 = arith.constant 0 : index
    %565 = vector.load %arg3[%c0_547, %c2_548, %c0_549, %c0_550] : memref<2x3x32x32xbf16, #tpu.memory_space<vmem>>, vector<1x1x32x32xbf16>
    %566 = vector.shape_cast %565 : vector<1x1x32x32xbf16> to vector<32x32xbf16>
    %cst_551 = arith.constant dense<0.000000e+00> : vector<8x32xf32>
    %567 = tpu.matmul %550, %566, %cst_551 {dimension_numbers = #tpu.dot_dimension_numbers<[1], [0], [0], [1], [0, 0, 1, 1], [], []>} : vector<8x32xbf16>, vector<32x32xbf16>, vector<8x32xf32> -> vector<8x32xf32>
    %c0_552 = arith.constant 0 : index
    %c2_553 = arith.constant 2 : index
    %c0_554 = arith.constant 0 : index
    %c0_555 = arith.constant 0 : index
    %568 = vector.load %arg4[%c0_552, %c2_553, %c0_554, %c0_555] : memref<2x3x1x32xf32, #tpu.memory_space<vmem>>, vector<1x1x1x32xf32>
    %569 = vector.shape_cast %568 : vector<1x1x1x32xf32> to vector<1x32xf32>
    %570 = vector.broadcast %569 : vector<1x32xf32> to vector<8x32xf32>
    %571 = arith.addf %567, %570 : vector<8x32xf32>
    %572 = arith.addf %544, %557 : vector<8x32xf32>
    %573 = arith.negf %572 : vector<8x32xf32>
    %574 = math.exp %573 : vector<8x32xf32>
    %cst_556 = arith.constant 1.000000e+00 : f32
    %575 = vector.broadcast %cst_556 : f32 to vector<8x32xf32>
    %576 = arith.addf %575, %574 : vector<8x32xf32>
    %577 = arith.divf %575, %576 : vector<8x32xf32>
    %578 = arith.addf %546, %564 : vector<8x32xf32>
    %579 = arith.negf %578 : vector<8x32xf32>
    %580 = math.exp %579 : vector<8x32xf32>
    %cst_557 = arith.constant 1.000000e+00 : f32
    %581 = vector.broadcast %cst_557 : f32 to vector<8x32xf32>
    %582 = arith.addf %581, %580 : vector<8x32xf32>
    %583 = arith.divf %581, %582 : vector<8x32xf32>
    %584 = arith.mulf %577, %571 : vector<8x32xf32>
    %585 = arith.addf %548, %584 : vector<8x32xf32>
    %586 = math.tanh %585 : vector<8x32xf32>
    %cst_558 = arith.constant 1.000000e+00 : f32
    %587 = vector.broadcast %cst_558 : f32 to vector<8x32xf32>
    %588 = arith.subf %587, %583 : vector<8x32xf32>
    %589 = arith.mulf %588, %586 : vector<8x32xf32>
    %590 = arith.mulf %583, %549 : vector<8x32xf32>
    %591 = arith.addf %589, %590 : vector<8x32xf32>
    %c0_559 = arith.constant 0 : index
    %c0_560 = arith.constant 0 : index
    %592 = vector.load %arg7[%c0_559, %c0_560] : memref<8x32xf32, #tpu.memory_space<vmem>>, vector<8x32xf32>
    tpu.vector_store %arg7[%c0_559, %c0_560], %591 {strides = array<i32>} : memref<8x32xf32, #tpu.memory_space<vmem>>, vector<8x32xf32>,
    %593 = arith.truncf %591 : vector<8x32xf32> to vector<8x32xbf16>
    %c5_561 = arith.constant 5 : index
    %c0_562 = arith.constant 0 : index
    %c0_563 = arith.constant 0 : index
    %594 = vector.load %arg5[%c5_561, %c0_562, %c0_563] : memref<8x8x32xbf16, #tpu.memory_space<vmem>>, vector<1x8x32xbf16>
    %595 = vector.shape_cast %594 : vector<1x8x32xbf16> to vector<8x32xbf16>
    %596 = vector.shape_cast %593 : vector<8x32xbf16> to vector<1x8x32xbf16>
    tpu.vector_store %arg5[%c5_561, %c0_562, %c0_563], %596 {strides = array<i32>} : memref<8x8x32xbf16, #tpu.memory_space<vmem>>, vector<1x8x32xbf16>,
    %c0_564 = arith.constant 0 : index
    %c0_565 = arith.constant 0 : index
    %c2_566 = arith.constant 2 : index
    %c0_567 = arith.constant 0 : index
    %c0_568 = arith.constant 0 : index
    %597 = vector.load %arg2[%c0_564, %c0_565, %c2_566, %c0_567, %c0_568] : memref<1x3x8x8x32xf32, #tpu.memory_space<vmem>>, vector<1x1x1x8x32xf32>
    %598 = vector.shape_cast %597 : vector<1x1x1x8x32xf32> to vector<8x32xf32>
    %c0_569 = arith.constant 0 : index
    %c1_570 = arith.constant 1 : index
    %c2_571 = arith.constant 2 : index
    %c0_572 = arith.constant 0 : index
    %c0_573 = arith.constant 0 : index
    %599 = vector.load %arg2[%c0_569, %c1_570, %c2_571, %c0_572, %c0_573] : memref<1x3x8x8x32xf32, #tpu.memory_space<vmem>>, vector<1x1x1x8x32xf32>
    %600 = vector.shape_cast %599 : vector<1x1x1x8x32xf32> to vector<8x32xf32>
    %c0_574 = arith.constant 0 : index
    %c2_575 = arith.constant 2 : index
    %c2_576 = arith.constant 2 : index
    %c0_577 = arith.constant 0 : index
    %c0_578 = arith.constant 0 : index
    %601 = vector.load %arg2[%c0_574, %c2_575, %c2_576, %c0_577, %c0_578] : memref<1x3x8x8x32xf32, #tpu.memory_space<vmem>>, vector<1x1x1x8x32xf32>
    %602 = vector.shape_cast %601 : vector<1x1x1x8x32xf32> to vector<8x32xf32>
    %c0_579 = arith.constant 0 : index
    %c0_580 = arith.constant 0 : index
    %603 = vector.load %arg8[%c0_579, %c0_580] : memref<8x32xf32, #tpu.memory_space<vmem>>, vector<8x32xf32>
    %604 = arith.truncf %603 : vector<8x32xf32> to vector<8x32xbf16>
    %c1_581 = arith.constant 1 : index
    %c0_582 = arith.constant 0 : index
    %c0_583 = arith.constant 0 : index
    %c0_584 = arith.constant 0 : index
    %605 = vector.load %arg3[%c1_581, %c0_582, %c0_583, %c0_584] : memref<2x3x32x32xbf16, #tpu.memory_space<vmem>>, vector<1x1x32x32xbf16>
    %606 = vector.shape_cast %605 : vector<1x1x32x32xbf16> to vector<32x32xbf16>
    %cst_585 = arith.constant dense<0.000000e+00> : vector<8x32xf32>
    %607 = tpu.matmul %604, %606, %cst_585 {dimension_numbers = #tpu.dot_dimension_numbers<[1], [0], [0], [1], [0, 0, 1, 1], [], []>} : vector<8x32xbf16>, vector<32x32xbf16>, vector<8x32xf32> -> vector<8x32xf32>
    %c1_586 = arith.constant 1 : index
    %c0_587 = arith.constant 0 : index
    %c0_588 = arith.constant 0 : index
    %c0_589 = arith.constant 0 : index
    %608 = vector.load %arg4[%c1_586, %c0_587, %c0_588, %c0_589] : memref<2x3x1x32xf32, #tpu.memory_space<vmem>>, vector<1x1x1x32xf32>
    %609 = vector.shape_cast %608 : vector<1x1x1x32xf32> to vector<1x32xf32>
    %610 = vector.broadcast %609 : vector<1x32xf32> to vector<8x32xf32>
    %611 = arith.addf %607, %610 : vector<8x32xf32>
    %c1_590 = arith.constant 1 : index
    %c1_591 = arith.constant 1 : index
    %c0_592 = arith.constant 0 : index
    %c0_593 = arith.constant 0 : index
    %612 = vector.load %arg3[%c1_590, %c1_591, %c0_592, %c0_593] : memref<2x3x32x32xbf16, #tpu.memory_space<vmem>>, vector<1x1x32x32xbf16>
    %613 = vector.shape_cast %612 : vector<1x1x32x32xbf16> to vector<32x32xbf16>
    %cst_594 = arith.constant dense<0.000000e+00> : vector<8x32xf32>
    %614 = tpu.matmul %604, %613, %cst_594 {dimension_numbers = #tpu.dot_dimension_numbers<[1], [0], [0], [1], [0, 0, 1, 1], [], []>} : vector<8x32xbf16>, vector<32x32xbf16>, vector<8x32xf32> -> vector<8x32xf32>
    %c1_595 = arith.constant 1 : index
    %c1_596 = arith.constant 1 : index
    %c0_597 = arith.constant 0 : index
    %c0_598 = arith.constant 0 : index
    %615 = vector.load %arg4[%c1_595, %c1_596, %c0_597, %c0_598] : memref<2x3x1x32xf32, #tpu.memory_space<vmem>>, vector<1x1x1x32xf32>
    %616 = vector.shape_cast %615 : vector<1x1x1x32xf32> to vector<1x32xf32>
    %617 = vector.broadcast %616 : vector<1x32xf32> to vector<8x32xf32>
    %618 = arith.addf %614, %617 : vector<8x32xf32>
    %c1_599 = arith.constant 1 : index
    %c2_600 = arith.constant 2 : index
    %c0_601 = arith.constant 0 : index
    %c0_602 = arith.constant 0 : index
    %619 = vector.load %arg3[%c1_599, %c2_600, %c0_601, %c0_602] : memref<2x3x32x32xbf16, #tpu.memory_space<vmem>>, vector<1x1x32x32xbf16>
    %620 = vector.shape_cast %619 : vector<1x1x32x32xbf16> to vector<32x32xbf16>
    %cst_603 = arith.constant dense<0.000000e+00> : vector<8x32xf32>
    %621 = tpu.matmul %604, %620, %cst_603 {dimension_numbers = #tpu.dot_dimension_numbers<[1], [0], [0], [1], [0, 0, 1, 1], [], []>} : vector<8x32xbf16>, vector<32x32xbf16>, vector<8x32xf32> -> vector<8x32xf32>
    %c1_604 = arith.constant 1 : index
    %c2_605 = arith.constant 2 : index
    %c0_606 = arith.constant 0 : index
    %c0_607 = arith.constant 0 : index
    %622 = vector.load %arg4[%c1_604, %c2_605, %c0_606, %c0_607] : memref<2x3x1x32xf32, #tpu.memory_space<vmem>>, vector<1x1x1x32xf32>
    %623 = vector.shape_cast %622 : vector<1x1x1x32xf32> to vector<1x32xf32>
    %624 = vector.broadcast %623 : vector<1x32xf32> to vector<8x32xf32>
    %625 = arith.addf %621, %624 : vector<8x32xf32>
    %626 = arith.addf %598, %611 : vector<8x32xf32>
    %627 = arith.negf %626 : vector<8x32xf32>
    %628 = math.exp %627 : vector<8x32xf32>
    %cst_608 = arith.constant 1.000000e+00 : f32
    %629 = vector.broadcast %cst_608 : f32 to vector<8x32xf32>
    %630 = arith.addf %629, %628 : vector<8x32xf32>
    %631 = arith.divf %629, %630 : vector<8x32xf32>
    %632 = arith.addf %600, %618 : vector<8x32xf32>
    %633 = arith.negf %632 : vector<8x32xf32>
    %634 = math.exp %633 : vector<8x32xf32>
    %cst_609 = arith.constant 1.000000e+00 : f32
    %635 = vector.broadcast %cst_609 : f32 to vector<8x32xf32>
    %636 = arith.addf %635, %634 : vector<8x32xf32>
    %637 = arith.divf %635, %636 : vector<8x32xf32>
    %638 = arith.mulf %631, %625 : vector<8x32xf32>
    %639 = arith.addf %602, %638 : vector<8x32xf32>
    %640 = math.tanh %639 : vector<8x32xf32>
    %cst_610 = arith.constant 1.000000e+00 : f32
    %641 = vector.broadcast %cst_610 : f32 to vector<8x32xf32>
    %642 = arith.subf %641, %637 : vector<8x32xf32>
    %643 = arith.mulf %642, %640 : vector<8x32xf32>
    %644 = arith.mulf %637, %603 : vector<8x32xf32>
    %645 = arith.addf %643, %644 : vector<8x32xf32>
    %c0_611 = arith.constant 0 : index
    %c0_612 = arith.constant 0 : index
    %646 = vector.load %arg8[%c0_611, %c0_612] : memref<8x32xf32, #tpu.memory_space<vmem>>, vector<8x32xf32>
    tpu.vector_store %arg8[%c0_611, %c0_612], %645 {strides = array<i32>} : memref<8x32xf32, #tpu.memory_space<vmem>>, vector<8x32xf32>,
    %647 = arith.truncf %645 : vector<8x32xf32> to vector<8x32xbf16>
    %c2_613 = arith.constant 2 : index
    %c0_614 = arith.constant 0 : index
    %c0_615 = arith.constant 0 : index
    %648 = vector.load %arg6[%c2_613, %c0_614, %c0_615] : memref<8x8x32xbf16, #tpu.memory_space<vmem>>, vector<1x8x32xbf16>
    %649 = vector.shape_cast %648 : vector<1x8x32xbf16> to vector<8x32xbf16>
    %650 = vector.shape_cast %647 : vector<8x32xbf16> to vector<1x8x32xbf16>
    tpu.vector_store %arg6[%c2_613, %c0_614, %c0_615], %650 {strides = array<i32>} : memref<8x8x32xbf16, #tpu.memory_space<vmem>>, vector<1x8x32xbf16>,
    %c0_616 = arith.constant 0 : index
    %c0_617 = arith.constant 0 : index
    %c6_618 = arith.constant 6 : index
    %c0_619 = arith.constant 0 : index
    %c0_620 = arith.constant 0 : index
    %651 = vector.load %arg1[%c0_616, %c0_617, %c6_618, %c0_619, %c0_620] : memref<1x3x8x8x32xf32, #tpu.memory_space<vmem>>, vector<1x1x1x8x32xf32>
    %652 = vector.shape_cast %651 : vector<1x1x1x8x32xf32> to vector<8x32xf32>
    %c0_621 = arith.constant 0 : index
    %c1_622 = arith.constant 1 : index
    %c6_623 = arith.constant 6 : index
    %c0_624 = arith.constant 0 : index
    %c0_625 = arith.constant 0 : index
    %653 = vector.load %arg1[%c0_621, %c1_622, %c6_623, %c0_624, %c0_625] : memref<1x3x8x8x32xf32, #tpu.memory_space<vmem>>, vector<1x1x1x8x32xf32>
    %654 = vector.shape_cast %653 : vector<1x1x1x8x32xf32> to vector<8x32xf32>
    %c0_626 = arith.constant 0 : index
    %c2_627 = arith.constant 2 : index
    %c6_628 = arith.constant 6 : index
    %c0_629 = arith.constant 0 : index
    %c0_630 = arith.constant 0 : index
    %655 = vector.load %arg1[%c0_626, %c2_627, %c6_628, %c0_629, %c0_630] : memref<1x3x8x8x32xf32, #tpu.memory_space<vmem>>, vector<1x1x1x8x32xf32>
    %656 = vector.shape_cast %655 : vector<1x1x1x8x32xf32> to vector<8x32xf32>
    %c0_631 = arith.constant 0 : index
    %c0_632 = arith.constant 0 : index
    %657 = vector.load %arg7[%c0_631, %c0_632] : memref<8x32xf32, #tpu.memory_space<vmem>>, vector<8x32xf32>
    %658 = arith.truncf %657 : vector<8x32xf32> to vector<8x32xbf16>
    %c0_633 = arith.constant 0 : index
    %c0_634 = arith.constant 0 : index
    %c0_635 = arith.constant 0 : index
    %c0_636 = arith.constant 0 : index
    %659 = vector.load %arg3[%c0_633, %c0_634, %c0_635, %c0_636] : memref<2x3x32x32xbf16, #tpu.memory_space<vmem>>, vector<1x1x32x32xbf16>
    %660 = vector.shape_cast %659 : vector<1x1x32x32xbf16> to vector<32x32xbf16>
    %cst_637 = arith.constant dense<0.000000e+00> : vector<8x32xf32>
    %661 = tpu.matmul %658, %660, %cst_637 {dimension_numbers = #tpu.dot_dimension_numbers<[1], [0], [0], [1], [0, 0, 1, 1], [], []>} : vector<8x32xbf16>, vector<32x32xbf16>, vector<8x32xf32> -> vector<8x32xf32>
    %c0_638 = arith.constant 0 : index
    %c0_639 = arith.constant 0 : index
    %c0_640 = arith.constant 0 : index
    %c0_641 = arith.constant 0 : index
    %662 = vector.load %arg4[%c0_638, %c0_639, %c0_640, %c0_641] : memref<2x3x1x32xf32, #tpu.memory_space<vmem>>, vector<1x1x1x32xf32>
    %663 = vector.shape_cast %662 : vector<1x1x1x32xf32> to vector<1x32xf32>
    %664 = vector.broadcast %663 : vector<1x32xf32> to vector<8x32xf32>
    %665 = arith.addf %661, %664 : vector<8x32xf32>
    %c0_642 = arith.constant 0 : index
    %c1_643 = arith.constant 1 : index
    %c0_644 = arith.constant 0 : index
    %c0_645 = arith.constant 0 : index
    %666 = vector.load %arg3[%c0_642, %c1_643, %c0_644, %c0_645] : memref<2x3x32x32xbf16, #tpu.memory_space<vmem>>, vector<1x1x32x32xbf16>
    %667 = vector.shape_cast %666 : vector<1x1x32x32xbf16> to vector<32x32xbf16>
    %cst_646 = arith.constant dense<0.000000e+00> : vector<8x32xf32>
    %668 = tpu.matmul %658, %667, %cst_646 {dimension_numbers = #tpu.dot_dimension_numbers<[1], [0], [0], [1], [0, 0, 1, 1], [], []>} : vector<8x32xbf16>, vector<32x32xbf16>, vector<8x32xf32> -> vector<8x32xf32>
    %c0_647 = arith.constant 0 : index
    %c1_648 = arith.constant 1 : index
    %c0_649 = arith.constant 0 : index
    %c0_650 = arith.constant 0 : index
    %669 = vector.load %arg4[%c0_647, %c1_648, %c0_649, %c0_650] : memref<2x3x1x32xf32, #tpu.memory_space<vmem>>, vector<1x1x1x32xf32>
    %670 = vector.shape_cast %669 : vector<1x1x1x32xf32> to vector<1x32xf32>
    %671 = vector.broadcast %670 : vector<1x32xf32> to vector<8x32xf32>
    %672 = arith.addf %668, %671 : vector<8x32xf32>
    %c0_651 = arith.constant 0 : index
    %c2_652 = arith.constant 2 : index
    %c0_653 = arith.constant 0 : index
    %c0_654 = arith.constant 0 : index
    %673 = vector.load %arg3[%c0_651, %c2_652, %c0_653, %c0_654] : memref<2x3x32x32xbf16, #tpu.memory_space<vmem>>, vector<1x1x32x32xbf16>
    %674 = vector.shape_cast %673 : vector<1x1x32x32xbf16> to vector<32x32xbf16>
    %cst_655 = arith.constant dense<0.000000e+00> : vector<8x32xf32>
    %675 = tpu.matmul %658, %674, %cst_655 {dimension_numbers = #tpu.dot_dimension_numbers<[1], [0], [0], [1], [0, 0, 1, 1], [], []>} : vector<8x32xbf16>, vector<32x32xbf16>, vector<8x32xf32> -> vector<8x32xf32>
    %c0_656 = arith.constant 0 : index
    %c2_657 = arith.constant 2 : index
    %c0_658 = arith.constant 0 : index
    %c0_659 = arith.constant 0 : index
    %676 = vector.load %arg4[%c0_656, %c2_657, %c0_658, %c0_659] : memref<2x3x1x32xf32, #tpu.memory_space<vmem>>, vector<1x1x1x32xf32>
    %677 = vector.shape_cast %676 : vector<1x1x1x32xf32> to vector<1x32xf32>
    %678 = vector.broadcast %677 : vector<1x32xf32> to vector<8x32xf32>
    %679 = arith.addf %675, %678 : vector<8x32xf32>
    %680 = arith.addf %652, %665 : vector<8x32xf32>
    %681 = arith.negf %680 : vector<8x32xf32>
    %682 = math.exp %681 : vector<8x32xf32>
    %cst_660 = arith.constant 1.000000e+00 : f32
    %683 = vector.broadcast %cst_660 : f32 to vector<8x32xf32>
    %684 = arith.addf %683, %682 : vector<8x32xf32>
    %685 = arith.divf %683, %684 : vector<8x32xf32>
    %686 = arith.addf %654, %672 : vector<8x32xf32>
    %687 = arith.negf %686 : vector<8x32xf32>
    %688 = math.exp %687 : vector<8x32xf32>
    %cst_661 = arith.constant 1.000000e+00 : f32
    %689 = vector.broadcast %cst_661 : f32 to vector<8x32xf32>
    %690 = arith.addf %689, %688 : vector<8x32xf32>
    %691 = arith.divf %689, %690 : vector<8x32xf32>
    %692 = arith.mulf %685, %679 : vector<8x32xf32>
    %693 = arith.addf %656, %692 : vector<8x32xf32>
    %694 = math.tanh %693 : vector<8x32xf32>
    %cst_662 = arith.constant 1.000000e+00 : f32
    %695 = vector.broadcast %cst_662 : f32 to vector<8x32xf32>
    %696 = arith.subf %695, %691 : vector<8x32xf32>
    %697 = arith.mulf %696, %694 : vector<8x32xf32>
    %698 = arith.mulf %691, %657 : vector<8x32xf32>
    %699 = arith.addf %697, %698 : vector<8x32xf32>
    %c0_663 = arith.constant 0 : index
    %c0_664 = arith.constant 0 : index
    %700 = vector.load %arg7[%c0_663, %c0_664] : memref<8x32xf32, #tpu.memory_space<vmem>>, vector<8x32xf32>
    tpu.vector_store %arg7[%c0_663, %c0_664], %699 {strides = array<i32>} : memref<8x32xf32, #tpu.memory_space<vmem>>, vector<8x32xf32>,
    %701 = arith.truncf %699 : vector<8x32xf32> to vector<8x32xbf16>
    %c6_665 = arith.constant 6 : index
    %c0_666 = arith.constant 0 : index
    %c0_667 = arith.constant 0 : index
    %702 = vector.load %arg5[%c6_665, %c0_666, %c0_667] : memref<8x8x32xbf16, #tpu.memory_space<vmem>>, vector<1x8x32xbf16>
    %703 = vector.shape_cast %702 : vector<1x8x32xbf16> to vector<8x32xbf16>
    %704 = vector.shape_cast %701 : vector<8x32xbf16> to vector<1x8x32xbf16>
    tpu.vector_store %arg5[%c6_665, %c0_666, %c0_667], %704 {strides = array<i32>} : memref<8x8x32xbf16, #tpu.memory_space<vmem>>, vector<1x8x32xbf16>,
    %c0_668 = arith.constant 0 : index
    %c0_669 = arith.constant 0 : index
    %c1_670 = arith.constant 1 : index
    %c0_671 = arith.constant 0 : index
    %c0_672 = arith.constant 0 : index
    %705 = vector.load %arg2[%c0_668, %c0_669, %c1_670, %c0_671, %c0_672] : memref<1x3x8x8x32xf32, #tpu.memory_space<vmem>>, vector<1x1x1x8x32xf32>
    %706 = vector.shape_cast %705 : vector<1x1x1x8x32xf32> to vector<8x32xf32>
    %c0_673 = arith.constant 0 : index
    %c1_674 = arith.constant 1 : index
    %c1_675 = arith.constant 1 : index
    %c0_676 = arith.constant 0 : index
    %c0_677 = arith.constant 0 : index
    %707 = vector.load %arg2[%c0_673, %c1_674, %c1_675, %c0_676, %c0_677] : memref<1x3x8x8x32xf32, #tpu.memory_space<vmem>>, vector<1x1x1x8x32xf32>
    %708 = vector.shape_cast %707 : vector<1x1x1x8x32xf32> to vector<8x32xf32>
    %c0_678 = arith.constant 0 : index
    %c2_679 = arith.constant 2 : index
    %c1_680 = arith.constant 1 : index
    %c0_681 = arith.constant 0 : index
    %c0_682 = arith.constant 0 : index
    %709 = vector.load %arg2[%c0_678, %c2_679, %c1_680, %c0_681, %c0_682] : memref<1x3x8x8x32xf32, #tpu.memory_space<vmem>>, vector<1x1x1x8x32xf32>
    %710 = vector.shape_cast %709 : vector<1x1x1x8x32xf32> to vector<8x32xf32>
    %c0_683 = arith.constant 0 : index
    %c0_684 = arith.constant 0 : index
    %711 = vector.load %arg8[%c0_683, %c0_684] : memref<8x32xf32, #tpu.memory_space<vmem>>, vector<8x32xf32>
    %712 = arith.truncf %711 : vector<8x32xf32> to vector<8x32xbf16>
    %c1_685 = arith.constant 1 : index
    %c0_686 = arith.constant 0 : index
    %c0_687 = arith.constant 0 : index
    %c0_688 = arith.constant 0 : index
    %713 = vector.load %arg3[%c1_685, %c0_686, %c0_687, %c0_688] : memref<2x3x32x32xbf16, #tpu.memory_space<vmem>>, vector<1x1x32x32xbf16>
    %714 = vector.shape_cast %713 : vector<1x1x32x32xbf16> to vector<32x32xbf16>
    %cst_689 = arith.constant dense<0.000000e+00> : vector<8x32xf32>
    %715 = tpu.matmul %712, %714, %cst_689 {dimension_numbers = #tpu.dot_dimension_numbers<[1], [0], [0], [1], [0, 0, 1, 1], [], []>} : vector<8x32xbf16>, vector<32x32xbf16>, vector<8x32xf32> -> vector<8x32xf32>
    %c1_690 = arith.constant 1 : index
    %c0_691 = arith.constant 0 : index
    %c0_692 = arith.constant 0 : index
    %c0_693 = arith.constant 0 : index
    %716 = vector.load %arg4[%c1_690, %c0_691, %c0_692, %c0_693] : memref<2x3x1x32xf32, #tpu.memory_space<vmem>>, vector<1x1x1x32xf32>
    %717 = vector.shape_cast %716 : vector<1x1x1x32xf32> to vector<1x32xf32>
    %718 = vector.broadcast %717 : vector<1x32xf32> to vector<8x32xf32>
    %719 = arith.addf %715, %718 : vector<8x32xf32>
    %c1_694 = arith.constant 1 : index
    %c1_695 = arith.constant 1 : index
    %c0_696 = arith.constant 0 : index
    %c0_697 = arith.constant 0 : index
    %720 = vector.load %arg3[%c1_694, %c1_695, %c0_696, %c0_697] : memref<2x3x32x32xbf16, #tpu.memory_space<vmem>>, vector<1x1x32x32xbf16>
    %721 = vector.shape_cast %720 : vector<1x1x32x32xbf16> to vector<32x32xbf16>
    %cst_698 = arith.constant dense<0.000000e+00> : vector<8x32xf32>
    %722 = tpu.matmul %712, %721, %cst_698 {dimension_numbers = #tpu.dot_dimension_numbers<[1], [0], [0], [1], [0, 0, 1, 1], [], []>} : vector<8x32xbf16>, vector<32x32xbf16>, vector<8x32xf32> -> vector<8x32xf32>
    %c1_699 = arith.constant 1 : index
    %c1_700 = arith.constant 1 : index
    %c0_701 = arith.constant 0 : index
    %c0_702 = arith.constant 0 : index
    %723 = vector.load %arg4[%c1_699, %c1_700, %c0_701, %c0_702] : memref<2x3x1x32xf32, #tpu.memory_space<vmem>>, vector<1x1x1x32xf32>
    %724 = vector.shape_cast %723 : vector<1x1x1x32xf32> to vector<1x32xf32>
    %725 = vector.broadcast %724 : vector<1x32xf32> to vector<8x32xf32>
    %726 = arith.addf %722, %725 : vector<8x32xf32>
    %c1_703 = arith.constant 1 : index
    %c2_704 = arith.constant 2 : index
    %c0_705 = arith.constant 0 : index
    %c0_706 = arith.constant 0 : index
    %727 = vector.load %arg3[%c1_703, %c2_704, %c0_705, %c0_706] : memref<2x3x32x32xbf16, #tpu.memory_space<vmem>>, vector<1x1x32x32xbf16>
    %728 = vector.shape_cast %727 : vector<1x1x32x32xbf16> to vector<32x32xbf16>
    %cst_707 = arith.constant dense<0.000000e+00> : vector<8x32xf32>
    %729 = tpu.matmul %712, %728, %cst_707 {dimension_numbers = #tpu.dot_dimension_numbers<[1], [0], [0], [1], [0, 0, 1, 1], [], []>} : vector<8x32xbf16>, vector<32x32xbf16>, vector<8x32xf32> -> vector<8x32xf32>
    %c1_708 = arith.constant 1 : index
    %c2_709 = arith.constant 2 : index
    %c0_710 = arith.constant 0 : index
    %c0_711 = arith.constant 0 : index
    %730 = vector.load %arg4[%c1_708, %c2_709, %c0_710, %c0_711] : memref<2x3x1x32xf32, #tpu.memory_space<vmem>>, vector<1x1x1x32xf32>
    %731 = vector.shape_cast %730 : vector<1x1x1x32xf32> to vector<1x32xf32>
    %732 = vector.broadcast %731 : vector<1x32xf32> to vector<8x32xf32>
    %733 = arith.addf %729, %732 : vector<8x32xf32>
    %734 = arith.addf %706, %719 : vector<8x32xf32>
    %735 = arith.negf %734 : vector<8x32xf32>
    %736 = math.exp %735 : vector<8x32xf32>
    %cst_712 = arith.constant 1.000000e+00 : f32
    %737 = vector.broadcast %cst_712 : f32 to vector<8x32xf32>
    %738 = arith.addf %737, %736 : vector<8x32xf32>
    %739 = arith.divf %737, %738 : vector<8x32xf32>
    %740 = arith.addf %708, %726 : vector<8x32xf32>
    %741 = arith.negf %740 : vector<8x32xf32>
    %742 = math.exp %741 : vector<8x32xf32>
    %cst_713 = arith.constant 1.000000e+00 : f32
    %743 = vector.broadcast %cst_713 : f32 to vector<8x32xf32>
    %744 = arith.addf %743, %742 : vector<8x32xf32>
    %745 = arith.divf %743, %744 : vector<8x32xf32>
    %746 = arith.mulf %739, %733 : vector<8x32xf32>
    %747 = arith.addf %710, %746 : vector<8x32xf32>
    %748 = math.tanh %747 : vector<8x32xf32>
    %cst_714 = arith.constant 1.000000e+00 : f32
    %749 = vector.broadcast %cst_714 : f32 to vector<8x32xf32>
    %750 = arith.subf %749, %745 : vector<8x32xf32>
    %751 = arith.mulf %750, %748 : vector<8x32xf32>
    %752 = arith.mulf %745, %711 : vector<8x32xf32>
    %753 = arith.addf %751, %752 : vector<8x32xf32>
    %c0_715 = arith.constant 0 : index
    %c0_716 = arith.constant 0 : index
    %754 = vector.load %arg8[%c0_715, %c0_716] : memref<8x32xf32, #tpu.memory_space<vmem>>, vector<8x32xf32>
    tpu.vector_store %arg8[%c0_715, %c0_716], %753 {strides = array<i32>} : memref<8x32xf32, #tpu.memory_space<vmem>>, vector<8x32xf32>,
    %755 = arith.truncf %753 : vector<8x32xf32> to vector<8x32xbf16>
    %c1_717 = arith.constant 1 : index
    %c0_718 = arith.constant 0 : index
    %c0_719 = arith.constant 0 : index
    %756 = vector.load %arg6[%c1_717, %c0_718, %c0_719] : memref<8x8x32xbf16, #tpu.memory_space<vmem>>, vector<1x8x32xbf16>
    %757 = vector.shape_cast %756 : vector<1x8x32xbf16> to vector<8x32xbf16>
    %758 = vector.shape_cast %755 : vector<8x32xbf16> to vector<1x8x32xbf16>
    tpu.vector_store %arg6[%c1_717, %c0_718, %c0_719], %758 {strides = array<i32>} : memref<8x8x32xbf16, #tpu.memory_space<vmem>>, vector<1x8x32xbf16>,
    %c0_720 = arith.constant 0 : index
    %c0_721 = arith.constant 0 : index
    %c7_722 = arith.constant 7 : index
    %c0_723 = arith.constant 0 : index
    %c0_724 = arith.constant 0 : index
    %759 = vector.load %arg1[%c0_720, %c0_721, %c7_722, %c0_723, %c0_724] : memref<1x3x8x8x32xf32, #tpu.memory_space<vmem>>, vector<1x1x1x8x32xf32>
    %760 = vector.shape_cast %759 : vector<1x1x1x8x32xf32> to vector<8x32xf32>
    %c0_725 = arith.constant 0 : index
    %c1_726 = arith.constant 1 : index
    %c7_727 = arith.constant 7 : index
    %c0_728 = arith.constant 0 : index
    %c0_729 = arith.constant 0 : index
    %761 = vector.load %arg1[%c0_725, %c1_726, %c7_727, %c0_728, %c0_729] : memref<1x3x8x8x32xf32, #tpu.memory_space<vmem>>, vector<1x1x1x8x32xf32>
    %762 = vector.shape_cast %761 : vector<1x1x1x8x32xf32> to vector<8x32xf32>
    %c0_730 = arith.constant 0 : index
    %c2_731 = arith.constant 2 : index
    %c7_732 = arith.constant 7 : index
    %c0_733 = arith.constant 0 : index
    %c0_734 = arith.constant 0 : index
    %763 = vector.load %arg1[%c0_730, %c2_731, %c7_732, %c0_733, %c0_734] : memref<1x3x8x8x32xf32, #tpu.memory_space<vmem>>, vector<1x1x1x8x32xf32>
    %764 = vector.shape_cast %763 : vector<1x1x1x8x32xf32> to vector<8x32xf32>
    %c0_735 = arith.constant 0 : index
    %c0_736 = arith.constant 0 : index
    %765 = vector.load %arg7[%c0_735, %c0_736] : memref<8x32xf32, #tpu.memory_space<vmem>>, vector<8x32xf32>
    %766 = arith.truncf %765 : vector<8x32xf32> to vector<8x32xbf16>
    %c0_737 = arith.constant 0 : index
    %c0_738 = arith.constant 0 : index
    %c0_739 = arith.constant 0 : index
    %c0_740 = arith.constant 0 : index
    %767 = vector.load %arg3[%c0_737, %c0_738, %c0_739, %c0_740] : memref<2x3x32x32xbf16, #tpu.memory_space<vmem>>, vector<1x1x32x32xbf16>
    %768 = vector.shape_cast %767 : vector<1x1x32x32xbf16> to vector<32x32xbf16>
    %cst_741 = arith.constant dense<0.000000e+00> : vector<8x32xf32>
    %769 = tpu.matmul %766, %768, %cst_741 {dimension_numbers = #tpu.dot_dimension_numbers<[1], [0], [0], [1], [0, 0, 1, 1], [], []>} : vector<8x32xbf16>, vector<32x32xbf16>, vector<8x32xf32> -> vector<8x32xf32>
    %c0_742 = arith.constant 0 : index
    %c0_743 = arith.constant 0 : index
    %c0_744 = arith.constant 0 : index
    %c0_745 = arith.constant 0 : index
    %770 = vector.load %arg4[%c0_742, %c0_743, %c0_744, %c0_745] : memref<2x3x1x32xf32, #tpu.memory_space<vmem>>, vector<1x1x1x32xf32>
    %771 = vector.shape_cast %770 : vector<1x1x1x32xf32> to vector<1x32xf32>
    %772 = vector.broadcast %771 : vector<1x32xf32> to vector<8x32xf32>
    %773 = arith.addf %769, %772 : vector<8x32xf32>
    %c0_746 = arith.constant 0 : index
    %c1_747 = arith.constant 1 : index
    %c0_748 = arith.constant 0 : index
    %c0_749 = arith.constant 0 : index
    %774 = vector.load %arg3[%c0_746, %c1_747, %c0_748, %c0_749] : memref<2x3x32x32xbf16, #tpu.memory_space<vmem>>, vector<1x1x32x32xbf16>
    %775 = vector.shape_cast %774 : vector<1x1x32x32xbf16> to vector<32x32xbf16>
    %cst_750 = arith.constant dense<0.000000e+00> : vector<8x32xf32>
    %776 = tpu.matmul %766, %775, %cst_750 {dimension_numbers = #tpu.dot_dimension_numbers<[1], [0], [0], [1], [0, 0, 1, 1], [], []>} : vector<8x32xbf16>, vector<32x32xbf16>, vector<8x32xf32> -> vector<8x32xf32>
    %c0_751 = arith.constant 0 : index
    %c1_752 = arith.constant 1 : index
    %c0_753 = arith.constant 0 : index
    %c0_754 = arith.constant 0 : index
    %777 = vector.load %arg4[%c0_751, %c1_752, %c0_753, %c0_754] : memref<2x3x1x32xf32, #tpu.memory_space<vmem>>, vector<1x1x1x32xf32>
    %778 = vector.shape_cast %777 : vector<1x1x1x32xf32> to vector<1x32xf32>
    %779 = vector.broadcast %778 : vector<1x32xf32> to vector<8x32xf32>
    %780 = arith.addf %776, %779 : vector<8x32xf32>
    %c0_755 = arith.constant 0 : index
    %c2_756 = arith.constant 2 : index
    %c0_757 = arith.constant 0 : index
    %c0_758 = arith.constant 0 : index
    %781 = vector.load %arg3[%c0_755, %c2_756, %c0_757, %c0_758] : memref<2x3x32x32xbf16, #tpu.memory_space<vmem>>, vector<1x1x32x32xbf16>
    %782 = vector.shape_cast %781 : vector<1x1x32x32xbf16> to vector<32x32xbf16>
    %cst_759 = arith.constant dense<0.000000e+00> : vector<8x32xf32>
    %783 = tpu.matmul %766, %782, %cst_759 {dimension_numbers = #tpu.dot_dimension_numbers<[1], [0], [0], [1], [0, 0, 1, 1], [], []>} : vector<8x32xbf16>, vector<32x32xbf16>, vector<8x32xf32> -> vector<8x32xf32>
    %c0_760 = arith.constant 0 : index
    %c2_761 = arith.constant 2 : index
    %c0_762 = arith.constant 0 : index
    %c0_763 = arith.constant 0 : index
    %784 = vector.load %arg4[%c0_760, %c2_761, %c0_762, %c0_763] : memref<2x3x1x32xf32, #tpu.memory_space<vmem>>, vector<1x1x1x32xf32>
    %785 = vector.shape_cast %784 : vector<1x1x1x32xf32> to vector<1x32xf32>
    %786 = vector.broadcast %785 : vector<1x32xf32> to vector<8x32xf32>
    %787 = arith.addf %783, %786 : vector<8x32xf32>
    %788 = arith.addf %760, %773 : vector<8x32xf32>
    %789 = arith.negf %788 : vector<8x32xf32>
    %790 = math.exp %789 : vector<8x32xf32>
    %cst_764 = arith.constant 1.000000e+00 : f32
    %791 = vector.broadcast %cst_764 : f32 to vector<8x32xf32>
    %792 = arith.addf %791, %790 : vector<8x32xf32>
    %793 = arith.divf %791, %792 : vector<8x32xf32>
    %794 = arith.addf %762, %780 : vector<8x32xf32>
    %795 = arith.negf %794 : vector<8x32xf32>
    %796 = math.exp %795 : vector<8x32xf32>
    %cst_765 = arith.constant 1.000000e+00 : f32
    %797 = vector.broadcast %cst_765 : f32 to vector<8x32xf32>
    %798 = arith.addf %797, %796 : vector<8x32xf32>
    %799 = arith.divf %797, %798 : vector<8x32xf32>
    %800 = arith.mulf %793, %787 : vector<8x32xf32>
    %801 = arith.addf %764, %800 : vector<8x32xf32>
    %802 = math.tanh %801 : vector<8x32xf32>
    %cst_766 = arith.constant 1.000000e+00 : f32
    %803 = vector.broadcast %cst_766 : f32 to vector<8x32xf32>
    %804 = arith.subf %803, %799 : vector<8x32xf32>
    %805 = arith.mulf %804, %802 : vector<8x32xf32>
    %806 = arith.mulf %799, %765 : vector<8x32xf32>
    %807 = arith.addf %805, %806 : vector<8x32xf32>
    %c0_767 = arith.constant 0 : index
    %c0_768 = arith.constant 0 : index
    %808 = vector.load %arg7[%c0_767, %c0_768] : memref<8x32xf32, #tpu.memory_space<vmem>>, vector<8x32xf32>
    tpu.vector_store %arg7[%c0_767, %c0_768], %807 {strides = array<i32>} : memref<8x32xf32, #tpu.memory_space<vmem>>, vector<8x32xf32>,
    %809 = arith.truncf %807 : vector<8x32xf32> to vector<8x32xbf16>
    %c7_769 = arith.constant 7 : index
    %c0_770 = arith.constant 0 : index
    %c0_771 = arith.constant 0 : index
    %810 = vector.load %arg5[%c7_769, %c0_770, %c0_771] : memref<8x8x32xbf16, #tpu.memory_space<vmem>>, vector<1x8x32xbf16>
    %811 = vector.shape_cast %810 : vector<1x8x32xbf16> to vector<8x32xbf16>
    %812 = vector.shape_cast %809 : vector<8x32xbf16> to vector<1x8x32xbf16>
    tpu.vector_store %arg5[%c7_769, %c0_770, %c0_771], %812 {strides = array<i32>} : memref<8x8x32xbf16, #tpu.memory_space<vmem>>, vector<1x8x32xbf16>,
    %c0_772 = arith.constant 0 : index
    %c0_773 = arith.constant 0 : index
    %c0_774 = arith.constant 0 : index
    %c0_775 = arith.constant 0 : index
    %c0_776 = arith.constant 0 : index
    %813 = vector.load %arg2[%c0_772, %c0_773, %c0_774, %c0_775, %c0_776] : memref<1x3x8x8x32xf32, #tpu.memory_space<vmem>>, vector<1x1x1x8x32xf32>
    %814 = vector.shape_cast %813 : vector<1x1x1x8x32xf32> to vector<8x32xf32>
    %c0_777 = arith.constant 0 : index
    %c1_778 = arith.constant 1 : index
    %c0_779 = arith.constant 0 : index
    %c0_780 = arith.constant 0 : index
    %c0_781 = arith.constant 0 : index
    %815 = vector.load %arg2[%c0_777, %c1_778, %c0_779, %c0_780, %c0_781] : memref<1x3x8x8x32xf32, #tpu.memory_space<vmem>>, vector<1x1x1x8x32xf32>
    %816 = vector.shape_cast %815 : vector<1x1x1x8x32xf32> to vector<8x32xf32>
    %c0_782 = arith.constant 0 : index
    %c2_783 = arith.constant 2 : index
    %c0_784 = arith.constant 0 : index
    %c0_785 = arith.constant 0 : index
    %c0_786 = arith.constant 0 : index
    %817 = vector.load %arg2[%c0_782, %c2_783, %c0_784, %c0_785, %c0_786] : memref<1x3x8x8x32xf32, #tpu.memory_space<vmem>>, vector<1x1x1x8x32xf32>
    %818 = vector.shape_cast %817 : vector<1x1x1x8x32xf32> to vector<8x32xf32>
    %c0_787 = arith.constant 0 : index
    %c0_788 = arith.constant 0 : index
    %819 = vector.load %arg8[%c0_787, %c0_788] : memref<8x32xf32, #tpu.memory_space<vmem>>, vector<8x32xf32>
    %820 = arith.truncf %819 : vector<8x32xf32> to vector<8x32xbf16>
    %c1_789 = arith.constant 1 : index
    %c0_790 = arith.constant 0 : index
    %c0_791 = arith.constant 0 : index
    %c0_792 = arith.constant 0 : index
    %821 = vector.load %arg3[%c1_789, %c0_790, %c0_791, %c0_792] : memref<2x3x32x32xbf16, #tpu.memory_space<vmem>>, vector<1x1x32x32xbf16>
    %822 = vector.shape_cast %821 : vector<1x1x32x32xbf16> to vector<32x32xbf16>
    %cst_793 = arith.constant dense<0.000000e+00> : vector<8x32xf32>
    %823 = tpu.matmul %820, %822, %cst_793 {dimension_numbers = #tpu.dot_dimension_numbers<[1], [0], [0], [1], [0, 0, 1, 1], [], []>} : vector<8x32xbf16>, vector<32x32xbf16>, vector<8x32xf32> -> vector<8x32xf32>
    %c1_794 = arith.constant 1 : index
    %c0_795 = arith.constant 0 : index
    %c0_796 = arith.constant 0 : index
    %c0_797 = arith.constant 0 : index
    %824 = vector.load %arg4[%c1_794, %c0_795, %c0_796, %c0_797] : memref<2x3x1x32xf32, #tpu.memory_space<vmem>>, vector<1x1x1x32xf32>
    %825 = vector.shape_cast %824 : vector<1x1x1x32xf32> to vector<1x32xf32>
    %826 = vector.broadcast %825 : vector<1x32xf32> to vector<8x32xf32>
    %827 = arith.addf %823, %826 : vector<8x32xf32>
    %c1_798 = arith.constant 1 : index
    %c1_799 = arith.constant 1 : index
    %c0_800 = arith.constant 0 : index
    %c0_801 = arith.constant 0 : index
    %828 = vector.load %arg3[%c1_798, %c1_799, %c0_800, %c0_801] : memref<2x3x32x32xbf16, #tpu.memory_space<vmem>>, vector<1x1x32x32xbf16>
    %829 = vector.shape_cast %828 : vector<1x1x32x32xbf16> to vector<32x32xbf16>
    %cst_802 = arith.constant dense<0.000000e+00> : vector<8x32xf32>
    %830 = tpu.matmul %820, %829, %cst_802 {dimension_numbers = #tpu.dot_dimension_numbers<[1], [0], [0], [1], [0, 0, 1, 1], [], []>} : vector<8x32xbf16>, vector<32x32xbf16>, vector<8x32xf32> -> vector<8x32xf32>
    %c1_803 = arith.constant 1 : index
    %c1_804 = arith.constant 1 : index
    %c0_805 = arith.constant 0 : index
    %c0_806 = arith.constant 0 : index
    %831 = vector.load %arg4[%c1_803, %c1_804, %c0_805, %c0_806] : memref<2x3x1x32xf32, #tpu.memory_space<vmem>>, vector<1x1x1x32xf32>
    %832 = vector.shape_cast %831 : vector<1x1x1x32xf32> to vector<1x32xf32>
    %833 = vector.broadcast %832 : vector<1x32xf32> to vector<8x32xf32>
    %834 = arith.addf %830, %833 : vector<8x32xf32>
    %c1_807 = arith.constant 1 : index
    %c2_808 = arith.constant 2 : index
    %c0_809 = arith.constant 0 : index
    %c0_810 = arith.constant 0 : index
    %835 = vector.load %arg3[%c1_807, %c2_808, %c0_809, %c0_810] : memref<2x3x32x32xbf16, #tpu.memory_space<vmem>>, vector<1x1x32x32xbf16>
    %836 = vector.shape_cast %835 : vector<1x1x32x32xbf16> to vector<32x32xbf16>
    %cst_811 = arith.constant dense<0.000000e+00> : vector<8x32xf32>
    %837 = tpu.matmul %820, %836, %cst_811 {dimension_numbers = #tpu.dot_dimension_numbers<[1], [0], [0], [1], [0, 0, 1, 1], [], []>} : vector<8x32xbf16>, vector<32x32xbf16>, vector<8x32xf32> -> vector<8x32xf32>
    %c1_812 = arith.constant 1 : index
    %c2_813 = arith.constant 2 : index
    %c0_814 = arith.constant 0 : index
    %c0_815 = arith.constant 0 : index
    %838 = vector.load %arg4[%c1_812, %c2_813, %c0_814, %c0_815] : memref<2x3x1x32xf32, #tpu.memory_space<vmem>>, vector<1x1x1x32xf32>
    %839 = vector.shape_cast %838 : vector<1x1x1x32xf32> to vector<1x32xf32>
    %840 = vector.broadcast %839 : vector<1x32xf32> to vector<8x32xf32>
    %841 = arith.addf %837, %840 : vector<8x32xf32>
    %842 = arith.addf %814, %827 : vector<8x32xf32>
    %843 = arith.negf %842 : vector<8x32xf32>
    %844 = math.exp %843 : vector<8x32xf32>
    %cst_816 = arith.constant 1.000000e+00 : f32
    %845 = vector.broadcast %cst_816 : f32 to vector<8x32xf32>
    %846 = arith.addf %845, %844 : vector<8x32xf32>
    %847 = arith.divf %845, %846 : vector<8x32xf32>
    %848 = arith.addf %816, %834 : vector<8x32xf32>
    %849 = arith.negf %848 : vector<8x32xf32>
    %850 = math.exp %849 : vector<8x32xf32>
    %cst_817 = arith.constant 1.000000e+00 : f32
    %851 = vector.broadcast %cst_817 : f32 to vector<8x32xf32>
    %852 = arith.addf %851, %850 : vector<8x32xf32>
    %853 = arith.divf %851, %852 : vector<8x32xf32>
    %854 = arith.mulf %847, %841 : vector<8x32xf32>
    %855 = arith.addf %818, %854 : vector<8x32xf32>
    %856 = math.tanh %855 : vector<8x32xf32>
    %cst_818 = arith.constant 1.000000e+00 : f32
    %857 = vector.broadcast %cst_818 : f32 to vector<8x32xf32>
    %858 = arith.subf %857, %853 : vector<8x32xf32>
    %859 = arith.mulf %858, %856 : vector<8x32xf32>
    %860 = arith.mulf %853, %819 : vector<8x32xf32>
    %861 = arith.addf %859, %860 : vector<8x32xf32>
    %c0_819 = arith.constant 0 : index
    %c0_820 = arith.constant 0 : index
    %862 = vector.load %arg8[%c0_819, %c0_820] : memref<8x32xf32, #tpu.memory_space<vmem>>, vector<8x32xf32>
    tpu.vector_store %arg8[%c0_819, %c0_820], %861 {strides = array<i32>} : memref<8x32xf32, #tpu.memory_space<vmem>>, vector<8x32xf32>,
    %863 = arith.truncf %861 : vector<8x32xf32> to vector<8x32xbf16>
    %c0_821 = arith.constant 0 : index
    %c0_822 = arith.constant 0 : index
    %c0_823 = arith.constant 0 : index
    %864 = vector.load %arg6[%c0_821, %c0_822, %c0_823] : memref<8x8x32xbf16, #tpu.memory_space<vmem>>, vector<1x8x32xbf16>
    %865 = vector.shape_cast %864 : vector<1x8x32xbf16> to vector<8x32xbf16>
    %866 = vector.shape_cast %863 : vector<8x32xbf16> to vector<1x8x32xbf16>
    tpu.vector_store %arg6[%c0_821, %c0_822, %c0_823], %866 {strides = array<i32>} : memref<8x8x32xbf16, #tpu.memory_space<vmem>>, vector<1x8x32xbf16>,
    return
  }
  func.func @transform_0(%arg0: i32) -> (i32, i32, i32, i32, i32) {
    %c0_i32 = arith.constant 0 : i32
    %c0_i32_0 = arith.constant 0 : i32
    %c0_i32_1 = arith.constant 0 : i32
    %c0_i32_2 = arith.constant 0 : i32
    %c0_i32_3 = arith.constant 0 : i32
    return %c0_i32, %c0_i32_0, %arg0, %c0_i32_1, %c0_i32_2 : i32, i32, i32, i32, i32
  }
  func.func @transform_1(%arg0: i32) -> (i32, i32, i32, i32, i32) {
    %c0_i32 = arith.constant 0 : i32
    %0 = arith.subi %c0_i32, %arg0 : i32
    %c1_i32 = arith.constant 1 : i32
    %c0_i32_0 = arith.constant 0 : i32
    %c0_i32_1 = arith.constant 0 : i32
    %c0_i32_2 = arith.constant 0 : i32
    %c0_i32_3 = arith.constant 0 : i32
    return %c1_i32, %c0_i32_0, %0, %c0_i32_1, %c0_i32_2 : i32, i32, i32, i32, i32
  }
  func.func @transform_2(%arg0: i32) -> (i32, i32, i32, i32) {
    %c0_i32 = arith.constant 0 : i32
    %c0_i32_0 = arith.constant 0 : i32
    %c0_i32_1 = arith.constant 0 : i32
    %c0_i32_2 = arith.constant 0 : i32
    %c0_i32_3 = arith.constant 0 : i32
    return %c0_i32, %c0_i32_0, %c0_i32_1, %c0_i32_2 : i32, i32, i32, i32
  }
  func.func @transform_3(%arg0: i32) -> (i32, i32, i32, i32) {
    %c0_i32 = arith.constant 0 : i32
    %c0_i32_0 = arith.constant 0 : i32
    %c0_i32_1 = arith.constant 0 : i32
    %c0_i32_2 = arith.constant 0 : i32
    %c0_i32_3 = arith.constant 0 : i32
    return %c0_i32, %c0_i32_0, %c0_i32_1, %c0_i32_2 : i32, i32, i32, i32
  }
  func.func @transform_4(%arg0: i32) -> (i32, i32, i32) {
    %c0_i32 = arith.constant 0 : i32
    %c0_i32_0 = arith.constant 0 : i32
    %c0_i32_1 = arith.constant 0 : i32
    return %arg0, %c0_i32, %c0_i32_0 : i32, i32, i32
  }
  func.func @transform_5(%arg0: i32) -> (i32, i32, i32) {
    %c0_i32 = arith.constant 0 : i32
    %0 = arith.subi %c0_i32, %arg0 : i32
    %c0_i32_0 = arith.constant 0 : i32
    %c0_i32_1 = arith.constant 0 : i32
    %c0_i32_2 = arith.constant 0 : i32
    return %0, %c0_i32_0, %c0_i32_1 : i32, i32, i32
  }
}

module attributes {stable_mosaic.version = 11 : i64} {
  func.func @linear_dual_kernel(%arg0: i32, %arg1: memref<64x32xbf16, #tpu.memory_space<vmem>>, %arg2: memref<64x32xbf16, #tpu.memory_space<vmem>>, %arg3: memref<2x32x32xbf16, #tpu.memory_space<vmem>>, %arg4: memref<1x32xf32, #tpu.memory_space<vmem>>, %arg5: memref<64x32xf32, #tpu.memory_space<vmem>>) attributes {dimension_semantics = [#tpu.dimension_semantics<parallel>], iteration_bounds = array<i64: 1>, scalar_prefetch = 0 : i64, scratch_operands = 0 : i64, tpu.core_type = #tpu.core_type<tc>, window_params = [{transform_indices = @transform_0, window_bounds = array<i64: 64, 32>}, {transform_indices = @transform_1, window_bounds = array<i64: 64, 32>}, {pipeline_mode = #tpu.pipeline_mode<synchronous>, transform_indices = @transform_2, window_bounds = array<i64: 2, 32, 32>}, {pipeline_mode = #tpu.pipeline_mode<synchronous>, transform_indices = @transform_3, window_bounds = array<i64: 1, 32>}, {transform_indices = @transform_4, window_bounds = array<i64: 64, 32>}]} {
    %c0 = arith.constant 0 : index
    %c0_0 = arith.constant 0 : index
    %0 = vector.load %arg1[%c0, %c0_0] : memref<64x32xbf16, #tpu.memory_space<vmem>>, vector<64x32xbf16>
    %c0_1 = arith.constant 0 : index
    %c0_2 = arith.constant 0 : index
    %c0_3 = arith.constant 0 : index
    %1 = vector.load %arg3[%c0_1, %c0_2, %c0_3] : memref<2x32x32xbf16, #tpu.memory_space<vmem>>, vector<1x32x32xbf16>
    %2 = vector.shape_cast %1 : vector<1x32x32xbf16> to vector<32x32xbf16>
    %cst = arith.constant dense<0.000000e+00> : vector<64x32xf32>
    %3 = tpu.matmul %0, %2, %cst {dimension_numbers = #tpu.dot_dimension_numbers<[1], [0], [0], [1], [0, 0, 1, 1], [], []>} : vector<64x32xbf16>, vector<32x32xbf16>, vector<64x32xf32> -> vector<64x32xf32>
    %c0_4 = arith.constant 0 : index
    %c0_5 = arith.constant 0 : index
    %4 = vector.load %arg2[%c0_4, %c0_5] : memref<64x32xbf16, #tpu.memory_space<vmem>>, vector<64x32xbf16>
    %c1 = arith.constant 1 : index
    %c0_6 = arith.constant 0 : index
    %c0_7 = arith.constant 0 : index
    %5 = vector.load %arg3[%c1, %c0_6, %c0_7] : memref<2x32x32xbf16, #tpu.memory_space<vmem>>, vector<1x32x32xbf16>
    %6 = vector.shape_cast %5 : vector<1x32x32xbf16> to vector<32x32xbf16>
    %cst_8 = arith.constant dense<0.000000e+00> : vector<64x32xf32>
    %7 = tpu.matmul %4, %6, %cst_8 {dimension_numbers = #tpu.dot_dimension_numbers<[1], [0], [0], [1], [0, 0, 1, 1], [], []>} : vector<64x32xbf16>, vector<32x32xbf16>, vector<64x32xf32> -> vector<64x32xf32>
    %8 = arith.addf %3, %7 : vector<64x32xf32>
    %c0_9 = arith.constant 0 : index
    %c0_10 = arith.constant 0 : index
    %9 = vector.load %arg4[%c0_9, %c0_10] : memref<1x32xf32, #tpu.memory_space<vmem>>, vector<1x32xf32>
    %10 = vector.broadcast %9 : vector<1x32xf32> to vector<64x32xf32>
    %11 = arith.addf %8, %10 : vector<64x32xf32>
    %c0_11 = arith.constant 0 : index
    %c0_12 = arith.constant 0 : index
    %12 = vector.load %arg5[%c0_11, %c0_12] : memref<64x32xf32, #tpu.memory_space<vmem>>, vector<64x32xf32>
    tpu.vector_store %arg5[%c0_11, %c0_12], %11 {strides = array<i32>} : memref<64x32xf32, #tpu.memory_space<vmem>>, vector<64x32xf32>,
    return
  }
  func.func @transform_0(%arg0: i32) -> (i32, i32) {
    %c0_i32 = arith.constant 0 : i32
    %c0_i32_0 = arith.constant 0 : i32
    return %arg0, %c0_i32 : i32, i32
  }
  func.func @transform_1(%arg0: i32) -> (i32, i32) {
    %c0_i32 = arith.constant 0 : i32
    %c0_i32_0 = arith.constant 0 : i32
    return %arg0, %c0_i32 : i32, i32
  }
  func.func @transform_2(%arg0: i32) -> (i32, i32, i32) {
    %c0_i32 = arith.constant 0 : i32
    %c0_i32_0 = arith.constant 0 : i32
    %c0_i32_1 = arith.constant 0 : i32
    %c0_i32_2 = arith.constant 0 : i32
    return %c0_i32, %c0_i32_0, %c0_i32_1 : i32, i32, i32
  }
  func.func @transform_3(%arg0: i32) -> (i32, i32) {
    %c0_i32 = arith.constant 0 : i32
    %c0_i32_0 = arith.constant 0 : i32
    %c0_i32_1 = arith.constant 0 : i32
    return %c0_i32, %c0_i32_0 : i32, i32
  }
  func.func @transform_4(%arg0: i32) -> (i32, i32) {
    %c0_i32 = arith.constant 0 : i32
    %c0_i32_0 = arith.constant 0 : i32
    return %arg0, %c0_i32 : i32, i32
  }
}

</mosaic_0001>

<bundles_post_ra>
// kernel: encoder_forward.7
= control target key start
LH: loop header
LB: loop body
LE: loop exit
PB: predicated region body
PF: predicated region fallthrough
CT: control target
= control target key end

     0   :  { %8 = vsyncpa [#allocation3], 0  ;;  %s924_s0 = inlined_call_operand.vmem [shape: bf16[64,32], index: 0, kind: input, shape index: {}]   ;;  %s925_s1 = inlined_call_operand.hbm [shape: bf16[2,3,32,32], index: 1, kind: input, shape index: {}]   ;;  %s926_s2 = inlined_call_operand.vmem [shape: f32[2,3,1,32], index: 2, kind: input, shape index: {}]   ;;  %s927_s3 = inlined_call_operand.vmem [shape: f32[2,3,64,32], index: 3, kind: output, shape index: {}]  }
   0x1   :  { %10 = vsyncpa [#allocation3 + $0x1], 0  ;;  %s784_s12 = smov 0   ;;  %s786_s13 = smov 0  }
   0x2   :  { %s788_s14 = smov 0   ;;  %s790_s15 = smov 0  }
   0x3   :  { %s792_s16 = smov 0   ;;  %s794_s17 = smov 0  }
   0x4   :  { %s796_s18 = smov 0   ;;  %s798_s19 = smov 0  }
   0x5 LB: > { %s533_s20 = sadd.s32 4294967295, %s760_s19   ;;  %s31_s21 = sadd.s32 1, %s752_s17  ;;  %s760_s19 = sphi %s798_s19, %s16_s19   ;;  %s756_s18 = sphi %s796_s18, %s936_s18   ;;  %s752_s17 = sphi %s794_s17, %s935_s17   ;;  %s748_s16 = sphi %s792_s16, %s934_s16   ;;  %s744_s15 = sphi %s790_s15, %s933_s15   ;;  %s740_s14 = sphi %s788_s14, %s932_s14   ;;  %s736_s13 = sphi %s786_s13, %s931_s13   ;;  %s732_s12 = sphi %s784_s12, %s930_s12  }
   0x6   : > { %p33_p0 = scmp.ge.s32.totalorder %s31_s21, 3  ;;  %s35_s22 = sadd.s32 1, %s756_s18 }
   0x7   : > { %s70_s23 = sadd.s32 1, %s740_s14  ;;  %p77_p1 = scmp.ne.s32.totalorder %s740_s14, %s736_s13 }
   0x8   : > { %s938_s21 = smov (%p33_p0, %s31_s21), 0  ;;  %s940_s22 = smov (!%p33_p0, %s35_s22), %s756_s18 }
   0x9   : > { %s66_s24 = ssub.s32 %s752_s17, %s938_s21  ;;  %p78_p2 = scmp.eq.s32.totalorder %s760_s19, 0 }
   0xa   : > { %p37_p3 = scmp.ge.s32.totalorder %s940_s22, 2  ;;  %p83_p4 = scmp.ne.s32.totalorder %s736_s13, %s732_s12 }
   0xb   : > { %p835_p5 = por %p78_p2, %p77_p1  ;;  %p84_p6 = scmp.eq.s32.totalorder %s533_s20, 0 }
   0xc   : > { %s942_s22 = smov (%p37_p3, %s940_s22), 0  ;;  %p596_p8 = scmp.lt.s32.totalorder %s760_s19, 6 }
   0xd   : > { %p841_p7 = por %p84_p6, %p83_p4  ;;  %s65_s27 = ssub.s32 %s756_s18, %s942_s22 }
   0xe   : > { %s67_s28 = sor.u32 %s66_s24, %s65_s27  ;;  %s174_s29 = sand.u32 1, %s740_s14  }
   0xf   : > { %p68_p9 = scmp.eq.s32.totalorder %s67_s28, 0  ;;  %s538_s30 = sshll.u32 %s174_s29, 4 }
  0x10   : > { %s539_s4 = sshll.u32 %s752_s17, 2  ;;  %s587_s6 = smul.u32 12, %s756_s18 }
  0x11   : > { %s851_s5 = scalar_select %p68_p9, %s740_s14, %s70_s23  }
  0x12   : > { %s178_s7 = scalar_lea.vmem [#allocation2], %s538_s30  ;;  %p593_p10 = pnand %p596_p8, %p835_p5 }
  0x13   : > { %s188_s8 = sshll.u32 %s178_s7, 4  ;;  %s183_s9 = sadd.s32 %s587_s6, %s539_s4  ;;  %s189_s8 = int_to_ptr.vmem [resolvable:$true] %s188_s8 }
  0x14   : > { %s540_s10 = sshll.u32 %s183_s9, 2  ;;  %p541_p11 = scmp.ge.s32.totalorder %s760_s19, 1 }
  0x15   : > { %s185_s20 = scalar_lea.hbm %s925_s1, %s540_s10  ;;  %s175_s27 = scalar_lea.sflag [#allocation3], %s174_s29 }
  0x16   : > { %s186_s24 = sshll.u32 %s185_s20, 4  ;;  %s762_s28 = smov 64   ;;  %s187_s24 = int_to_ptr.hbm [resolvable:$true] %s186_s24 }
  0x17   : > { %s763_s23 = smov 4   ;;  %p206_p12 = scmp.lt.s32.totalorder %s760_s19, 7 }
  0x18   : > { %595 = dma.hbm_to_vmem [thread:$0]  (!%p593_p10), %s187_s24, 256, %s189_s8, %s175_s27, %s762_s28, %s762_s28, %s763_s23  }
  0x19   : > { %p207_p13 = pnand %p541_p11, %p206_p12 }
  0x1a   : > { %s212_s25 = sand.u32 (!%p207_p13), 1, %s736_s13  }
  0x1b   : > { %210 = sbr.rel (%p207_p13) target bundleno = 186 (0xba), region = 32  ;;  %s542_s30 = sshll.u32 (!%p207_p13), %s212_s25, 4 }
  0x1c   : > { %s213_s4 = scalar_lea.sflag (!%p207_p13), [#allocation3], %s212_s25  ;;  %s216_s6 = scalar_lea.vmem (!%p207_p13), [#allocation2], %s542_s30 }
  0x20   : > { %727 = dma.done.wait (%p841_p7), %s213_s4, 256  }
  0x21   : > { %729 = vsyncadd (%p841_p7), %s213_s4, 4294967040  ;;  %p266_p0 = scmp.lt.s32.totalorder %s748_s16, 1  ;;  %p268_p1 = scmp.lt.s32.totalorder %s744_s15, 2  ;;  %v580_v0 = vld [vmem:[%s216_s6 + $0x8] sm:$0xff]  ;;  %v579_v1 = vld [vmem:[%s216_s6] sm:$0xff]  ;;  %vm336_vm0 = vcmask 261120  }
  0x22   : > { %355 = vmatpush.bf16.msra.mxu0 %v580_v0  ;;  %581 = vmatpush.bf16.msra.mxu1 %v580_v0  ;;  %v575_v2 = vld [vmem:[%s924_s0] sm:$0xff]  ;;  %v576_v3 = vld [vmem:[%s924_s0 + $0x8] sm:$0xff]  ;;  %v577_v4 = vld [vmem:[%s924_s0 + $0x10] sm:$0xff] }
  0x23   : > { %s944_s16 = smov (!%p266_p0, %s748_s16), 1  ;;  %s946_s15 = smov (!%p268_p1, %s744_s15), 2  ;;  %582 = vmatpush.bf16.msra.mxu2 %v580_v0  ;;  %583 = vmatpush.bf16.msra.mxu3 %v580_v0  ;;  %v578_v5 = vld [vmem:[%s924_s0 + $0x18] sm:$0xff] }
  0x24   : > { %s588_s29 = smul.u32 3, %s944_s16  ;;  %s543_s7 = sshll.u32 %s946_s15, 3 }
  0x25   : > { %s589_s8 = smul.u32 24, %s944_s16 }
  0x26   : > { %s271_s9 = sadd.s32 %s588_s29, %s946_s15  ;;  %356 = vmatpush.bf16.msra.mxu0 %v579_v1  ;;  %584 = vmatpush.bf16.msra.mxu1 %v579_v1 }
  0x27   : > { %s283_s10 = sadd.s32 %s589_s8, %s543_s7  ;;  %s272_s20 = scalar_lea.vmem %s926_s2, %s271_s9  ;;  %585 = vmatpush.bf16.msra.mxu2 %v579_v1  ;;  %586 = vmatpush.bf16.msra.mxu3 %v579_v1 }
  0x28   : > { %s544_s30 = sshll.u32 %s283_s10, 3  ;;  %v663_v6 = vld [vmem:[%s272_s20] ss:$0 sm:$0xff] }
  0x29   : > { %569 = vmatmul.msk.bf16.vlgmr.msra.gmra.mxu0 %vm336_vm0, %v575_v2  ;;  %570 = vmatmul.msk.bf16.vlgmr.msra.gmra.mxu1 %vm336_vm0, %v576_v3  ;;  %s285_s29 = scalar_lea.vmem %s927_s3, %s544_s30 }
  0x2a   : > { %571 = vmatmul.msk.bf16.vlgmr.msra.gmra.mxu2 %vm336_vm0, %v577_v4  ;;  %572 = vmatmul.msk.bf16.vlgmr.msra.gmra.mxu3 %vm336_vm0, %v578_v5 }
  0xa6   : > { %v358_v7 = vpop.f32.mrf.mxu0  ;;  %v363_v8 = vpop.f32.mrf.mxu1 }
  0xa7   : > { %v359_v9 = vadd.f32 %v663_v6, %v358_v7  ;;  %v364_v10 = vadd.f32 %v663_v6, %v363_v8 }
  0xa9   : > { %378 = vst.msk [vmem:[%s285_s29] sm:$0xff] %vm336_vm0, %v359_v9 }
  0xaa   : > { %380 = vst.msk [vmem:[%s285_s29 + $0x10] sm:$0xff] %vm336_vm0, %v364_v10 }
  0xad   : > { %v368_v11 = vpop.f32.mrf.mxu2  ;;  %v373_v12 = vpop.f32.mrf.mxu3 }
  0xae   : > { %v369_v13 = vadd.f32 %v663_v6, %v368_v11  ;;  %v374_v14 = vadd.f32 %v663_v6, %v373_v12  ;;  %v360_v15 = vpop.f32.mrf.mxu0  ;;  %v365_v16 = vpop.f32.mrf.mxu1 }
  0xaf   : > { %v361_v17 = vadd.f32 %v663_v6, %v360_v15  ;;  %v366_v18 = vadd.f32 %v663_v6, %v365_v16 }
  0xb0   : > { %382 = vst.msk [vmem:[%s285_s29 + $0x20] sm:$0xff] %vm336_vm0, %v369_v13 }
  0xb1   : > { %384 = vst.msk [vmem:[%s285_s29 + $0x30] sm:$0xff] %vm336_vm0, %v374_v14 }
  0xb2   : > { %379 = vst.msk [vmem:[%s285_s29 + $0x8] sm:$0xff] %vm336_vm0, %v361_v17 }
  0xb3   : > { %381 = vst.msk [vmem:[%s285_s29 + $0x18] sm:$0xff] %vm336_vm0, %v366_v18 }
  0xb5   : > { %v370_v19 = vpop.f32.mrf.mxu2  ;;  %v375_v20 = vpop.f32.mrf.mxu3 }
  0xb6   : > { %v371_v21 = vadd.f32 %v663_v6, %v370_v19  ;;  %v376_v22 = vadd.f32 %v663_v6, %v375_v20 }
  0xb8   : > { %383 = vst.msk [vmem:[%s285_s29 + $0x28] sm:$0xff] %vm336_vm0, %v371_v21 }
  0xb9   : > { %385 = vst.msk [vmem:[%s285_s29 + $0x38] sm:$0xff] %vm336_vm0, %v376_v22 }
  0xba PF: > { %s16_s19 = sadd.s32 1, %s760_s19   ;;  %s930_s12 = smov %s736_s13 }
  0xbb   : > { %p13_p2 = scmp.ge.s32.totalorder %s16_s19, 8   ;;  %s931_s13 = smov %s740_s14 }
  0xbc   : > { %s932_s14 = smov %s851_s5  ;;  %s933_s15 = smov %s752_s17 }
  0xbd   : > { %s934_s16 = smov %s756_s18  ;;  %s935_s17 = smov %s938_s21 }
  0xbe   : > { %s936_s18 = smov %s942_s22  ;;  %15 = sbr.rel (!%p13_p2) target bundleno = 5 (0x5), region = 78 }
  0xc3   :  { %424 = vsyncpa [#allocation3], 1 }
  0xc4   :  { %426 = vsyncpa [#allocation3 + $0x1], 1 }

// kernel: encoder_forward.9
= control target key start
LH: loop header
LB: loop body
LE: loop exit
PB: predicated region body
PF: predicated region fallthrough
CT: control target
= control target key end

     0   :  { %9 = vsyncpa [#allocation3], 0  ;;  %s1150_s0 = inlined_call_operand.vmem [shape: bf16[64,32], index: 0, kind: input, shape index: {}]   ;;  %s1151_s1 = inlined_call_operand.vmem [shape: bf16[64,32], index: 1, kind: input, shape index: {}]   ;;  %s1152_s2 = inlined_call_operand.vmem [shape: bf16[2,3,2,32,32], index: 2, kind: input, shape index: {}]   ;;  %s1153_s3 = inlined_call_operand.hbm [shape: f32[2,3,1,32], index: 3, kind: input, shape index: {}]   ;;  %s1154_s4 = inlined_call_operand.vmem [shape: f32[2,3,64,32], index: 4, kind: output, shape index: {}]  }
   0x1   :  { %11 = vsyncpa [#allocation3 + $0x1], 0  ;;  %s977_s15 = smov 0   ;;  %s979_s16 = smov 0  }
   0x2   :  { %s981_s17 = smov 0   ;;  %s983_s18 = smov 0  }
   0x3   :  { %s985_s19 = smov 0   ;;  %s987_s20 = smov 0  }
   0x4   :  { %s989_s21 = smov 0   ;;  %s991_s22 = smov 0  }
   0x5 LB: > { %s691_s23 = sadd.s32 4294967295, %s950_s22   ;;  %s32_s24 = sadd.s32 1, %s942_s20  ;;  %s950_s22 = sphi %s991_s22, %s17_s22   ;;  %s946_s21 = sphi %s989_s21, %s1163_s21   ;;  %s942_s20 = sphi %s987_s20, %s1162_s20   ;;  %s938_s19 = sphi %s985_s19, %s1161_s19   ;;  %s934_s18 = sphi %s983_s18, %s1160_s18   ;;  %s930_s17 = sphi %s981_s17, %s1159_s17   ;;  %s926_s16 = sphi %s979_s16, %s1158_s16   ;;  %s922_s15 = sphi %s977_s15, %s1157_s15  }
   0x6   : > { %p34_p0 = scmp.ge.s32.totalorder %s32_s24, 3  ;;  %s36_s25 = sadd.s32 1, %s946_s21 }
   0x7   : > { %s125_s26 = sadd.s32 1, %s930_s17  ;;  %p132_p1 = scmp.ne.s32.totalorder %s930_s17, %s926_s16 }
   0x8   : > { %s1165_s24 = smov (%p34_p0, %s32_s24), 0  ;;  %s1167_s25 = smov (!%p34_p0, %s36_s25), %s946_s21 }
   0x9   : > { %s121_s27 = ssub.s32 %s942_s20, %s1165_s24  ;;  %p133_p2 = scmp.eq.s32.totalorder %s950_s22, 0 }
   0xa   : > { %p38_p3 = scmp.ge.s32.totalorder %s1167_s25, 2  ;;  %p138_p4 = scmp.ne.s32.totalorder %s926_s16, %s922_s15 }
   0xb   : > { %p1028_p5 = por %p133_p2, %p132_p1  ;;  %p139_p6 = scmp.eq.s32.totalorder %s691_s23, 0 }
   0xc   : > { %s1169_s25 = smov (%p38_p3, %s1167_s25), 0  ;;  %p788_p8 = scmp.lt.s32.totalorder %s950_s22, 6 }
   0xd   : > { %p1034_p7 = por %p139_p6, %p138_p4  ;;  %s120_s30 = ssub.s32 %s946_s21, %s1169_s25 }
   0xe   : > { %s122_s5 = sor.u32 %s121_s27, %s120_s30  ;;  %s222_s6 = sand.u32 1, %s930_s17  }
   0xf   : > { %p123_p9 = scmp.eq.s32.totalorder %s122_s5, 0  ;;  %s780_s7 = smul.u32 3, %s946_s21 }
  0x10   : > { %s225_s10 = scalar_lea.vmem [#allocation2], %s222_s6  ;;  %p785_p10 = pnand %p788_p8, %p1028_p5 }
  0x11   : > { %s1044_s8 = scalar_select %p123_p9, %s930_s17, %s125_s26  }
  0x12   : > { %s229_s9 = sadd.s32 %s942_s20, %s780_s7  ;;  %s234_s11 = sshll.u32 %s225_s10, 4  ;;  %s235_s11 = int_to_ptr.vmem [resolvable:$true] %s234_s11 }
  0x13   : > { %s230_s14 = scalar_lea.hbm %s1153_s3, %s229_s9  ;;  %p697_p11 = scmp.ge.s32.totalorder %s950_s22, 1 }
  0x14   : > { %s232_s15 = sshll.u32 %s230_s14, 4  ;;  %p239_p12 = scmp.lt.s32.totalorder %s950_s22, 7  ;;  %s233_s15 = int_to_ptr.hbm [resolvable:$true] %s232_s15 }
  0x15   : > { %s223_s23 = scalar_lea.sflag [#allocation3], %s222_s6 }
  0x16   : > { %787 = dma.hbm_to_vmem [thread:$0]  (!%p785_p10), %s233_s15, 16, %s235_s11, %s223_s23  }
  0x17   : > { %p240_p13 = pnand %p697_p11, %p239_p12 }
  0x18   : > { %s245_s26 = sand.u32 (!%p240_p13), 1, %s926_s16  }
  0x19   : > { %243 = sbr.rel (%p240_p13) target bundleno = 209 (0xd1), region = 36  ;;  %s246_s27 = scalar_lea.sflag (!%p240_p13), [#allocation3], %s245_s26 }
  0x1a   : > { %s1055_s30 = scalar_lea.vmem (!%p240_p13), [#allocation2], %s245_s26 }
  0x1e   : > { %917 = dma.done.wait (%p1034_p7), %s246_s27, 16  }
  0x1f   : > { %919 = vsyncadd (%p1034_p7), %s246_s27, 4294967280  ;;  %p312_p0 = scmp.lt.s32.totalorder %s938_s19, 1  ;;  %p314_p1 = scmp.lt.s32.totalorder %s934_s18, 2  ;;  %v770_v4 = vld [vmem:[%s1151_s1] sm:$0xff]  ;;  %v772_v5 = vld [vmem:[%s1151_s1 + $0x10] sm:$0xff]  ;;  %vm393_vm0 = vcmask 261120  }
  0x20   : > { %v764_v6 = vld [vmem:[%s1150_s0] sm:$0xff]  ;;  %v766_v7 = vld [vmem:[%s1150_s0 + $0x10] sm:$0xff]  ;;  %v771_v8 = vld [vmem:[%s1151_s1 + $0x8] sm:$0xff] }
  0x21   : > { %s1171_s19 = smov (!%p312_p0, %s938_s19), 1  ;;  %s1173_s18 = smov (!%p314_p1, %s934_s18), 2  ;;  %v773_v9 = vld [vmem:[%s1151_s1 + $0x18] sm:$0xff]  ;;  %v765_v10 = vld [vmem:[%s1150_s0 + $0x8] sm:$0xff]  ;;  %v853_v13 = vld [vmem:[%s1055_s30] ss:$0 sm:$0xff] }
  0x22   : > { %s781_s28 = smul.u32 24, %s1171_s19  ;;  %s698_s5 = sshll.u32 %s1173_s18, 3  ;;  %v767_v11 = vld [vmem:[%s1150_s0 + $0x18] sm:$0xff] }
  0x24   : > { %s1065_s6 = sadd.s32 %s781_s28, %s698_s5 }
  0x25   : > { %s699_s7 = sshll.u32 %s1065_s6, 2  ;;  %s701_s29 = sshll.u32 %s1065_s6, 3 }
  0x26   : > { %s320_s11 = scalar_lea.vmem %s1152_s2, %s699_s7  ;;  %s1108_s19 = scalar_lea.vmem %s1154_s4, %s701_s29 }
  0x27   : > { %v775_v0 = vld [vmem:[%s320_s11 + $0x18] sm:$0xff]  ;;  %v769_v1 = vld [vmem:[%s320_s11 + $0x8] sm:$0xff]  ;;  %v774_v2 = vld [vmem:[%s320_s11 + $0x10] sm:$0xff] }
  0x28   : > { %412 = vmatpush.bf16.msra.mxu0 %v775_v0  ;;  %776 = vmatpush.bf16.msra.mxu2 %v775_v0  ;;  %v768_v3 = vld [vmem:[%s320_s11] sm:$0xff] }
  0x29   : > { %485 = vmatpush.bf16.msra.mxu1 %v769_v1  ;;  %778 = vmatpush.bf16.msra.mxu3 %v769_v1 }
  0x2c   : > { %413 = vmatpush.bf16.msra.mxu0 %v774_v2  ;;  %777 = vmatpush.bf16.msra.mxu2 %v774_v2 }
  0x2d   : > { %486 = vmatpush.bf16.msra.mxu1 %v768_v3  ;;  %779 = vmatpush.bf16.msra.mxu3 %v768_v3 }
  0x2f   : > { %730 = vmatmul.msk.bf16.vlgmr.msra.gmra.mxu0 %vm393_vm0, %v770_v4  ;;  %732 = vmatmul.msk.bf16.vlgmr.msra.gmra.mxu2 %vm393_vm0, %v772_v5 }
  0x30   : > { %758 = vmatmul.msk.bf16.vlgmr.msra.gmra.mxu1 %vm393_vm0, %v764_v6  ;;  %760 = vmatmul.msk.bf16.vlgmr.msra.gmra.mxu3 %vm393_vm0, %v766_v7 }
  0x3f   : > { %731 = vmatmul.msk.bf16.gmra.mxu0 %vm393_vm0, %v771_v8  ;;  %733 = vmatmul.msk.bf16.gmra.mxu2 %vm393_vm0, %v773_v9 }
  0x40   : > { %759 = vmatmul.msk.bf16.gmra.mxu1 %vm393_vm0, %v765_v10  ;;  %761 = vmatmul.msk.bf16.gmra.mxu3 %vm393_vm0, %v767_v11 }
  0xac   : > { %v415_v12 = vpop.f32.mrf.mxu0 }
  0xad   : > { %v488_v14 = vpop.f32.mrf.mxu1 }
  0xae   : > { %v489_v15 = vadd.f32 %v488_v14, %v415_v12 }
  0xb0   : > { %v512_v16 = vadd.f32 %v853_v13, %v489_v15 }
  0xb2   : > { %520 = vst.msk [vmem:[%s1108_s19] sm:$0xff] %vm393_vm0, %v512_v16  ;;  %v425_v17 = vpop.f32.mrf.mxu2 }
  0xb3   : > { %v498_v18 = vpop.f32.mrf.mxu3 }
  0xb4   : > { %v499_v19 = vadd.f32 %v498_v18, %v425_v17  ;;  %v417_v20 = vpop.f32.mrf.mxu0 }
  0xb5   : > { %v490_v21 = vpop.f32.mrf.mxu1 }
  0xb6   : > { %v516_v22 = vadd.f32 %v853_v13, %v499_v19  ;;  %v491_v23 = vadd.f32 %v490_v21, %v417_v20 }
  0xb8   : > { %524 = vst.msk [vmem:[%s1108_s19 + $0x20] sm:$0xff] %vm393_vm0, %v516_v22  ;;  %v513_v24 = vadd.f32 %v853_v13, %v491_v23 }
  0xba   : > { %521 = vst.msk [vmem:[%s1108_s19 + $0x8] sm:$0xff] %vm393_vm0, %v513_v24  ;;  %v427_v25 = vpop.f32.mrf.mxu2 }
  0xbb   : > { %v500_v26 = vpop.f32.mrf.mxu3 }
  0xbc   : > { %v501_v27 = vadd.f32 %v500_v26, %v427_v25  ;;  %v420_v28 = vpop.f32.mrf.mxu0 }
  0xbd   : > { %v493_v29 = vpop.f32.mrf.mxu1 }
  0xbe   : > { %v517_v30 = vadd.f32 %v853_v13, %v501_v27  ;;  %v494_v31 = vadd.f32 %v493_v29, %v420_v28 }
  0xc0   : > { %525 = vst.msk [vmem:[%s1108_s19 + $0x28] sm:$0xff] %vm393_vm0, %v517_v30  ;;  %v514_v32 = vadd.f32 %v853_v13, %v494_v31 }
  0xc2   : > { %522 = vst.msk [vmem:[%s1108_s19 + $0x10] sm:$0xff] %vm393_vm0, %v514_v32  ;;  %v430_v33 = vpop.f32.mrf.mxu2 }
  0xc3   : > { %v503_v34 = vpop.f32.mrf.mxu3 }
  0xc4   : > { %v504_v35 = vadd.f32 %v503_v34, %v430_v33  ;;  %v422_v36 = vpop.f32.mrf.mxu0 }
  0xc5   : > { %v495_v37 = vpop.f32.mrf.mxu1 }
  0xc6   : > { %v518_v38 = vadd.f32 %v853_v13, %v504_v35  ;;  %v496_v39 = vadd.f32 %v495_v37, %v422_v36 }
  0xc8   : > { %526 = vst.msk [vmem:[%s1108_s19 + $0x30] sm:$0xff] %vm393_vm0, %v518_v38  ;;  %v515_v40 = vadd.f32 %v853_v13, %v496_v39 }
  0xca   : > { %523 = vst.msk [vmem:[%s1108_s19 + $0x18] sm:$0xff] %vm393_vm0, %v515_v40  ;;  %v432_v41 = vpop.f32.mrf.mxu2 }
  0xcb   : > { %v505_v42 = vpop.f32.mrf.mxu3 }
  0xcc   : > { %v506_v43 = vadd.f32 %v505_v42, %v432_v41 }
  0xce   : > { %v519_v44 = vadd.f32 %v853_v13, %v506_v43 }
  0xd0   : > { %527 = vst.msk [vmem:[%s1108_s19 + $0x38] sm:$0xff] %vm393_vm0, %v519_v44 }
  0xd1 PF: > { %s17_s22 = sadd.s32 1, %s950_s22   ;;  %s1157_s15 = smov %s926_s16 }
  0xd2   : > { %p14_p2 = scmp.ge.s32.totalorder %s17_s22, 8   ;;  %s1158_s16 = smov %s930_s17 }
  0xd3   : > { %s1159_s17 = smov %s1044_s8  ;;  %s1160_s18 = smov %s942_s20 }
  0xd4   : > { %s1161_s19 = smov %s946_s21  ;;  %s1162_s20 = smov %s1165_s24 }
  0xd5   : > { %s1163_s21 = smov %s1169_s25  ;;  %16 = sbr.rel (!%p14_p2) target bundleno = 5 (0x5), region = 86 }
  0xda   :  { %566 = vsyncpa [#allocation3], 1 }
  0xdb   :  { %568 = vsyncpa [#allocation3 + $0x1], 1 }

// kernel: encoder_forward.13
= control target key start
LH: loop header
LB: loop body
LE: loop exit
PB: predicated region body
PF: predicated region fallthrough
CT: control target
= control target key end

     0   :  { %vm75_vm0 = vcmask 261120   ;;  %s395_s2 = inlined_call_operand.vmem [shape: bf16[2,32,32], index: 2, kind: input, shape index: {}]   ;;  %s396_s1 = inlined_call_operand.vmem [shape: bf16[64,32], index: 1, kind: input, shape index: {}]   ;;  %s397_s0 = inlined_call_operand.vmem [shape: bf16[64,32], index: 0, kind: input, shape index: {}]   ;;  %s398_s3 = inlined_call_operand.vmem [shape: f32[1,32], index: 3, kind: input, shape index: {}]   ;;  %s399_s4 = inlined_call_operand.vmem [shape: f32[64,32], index: 4, kind: output, shape index: {}]  }
   0x1   :  { %v285_v0 = vld [vmem:[%s395_s2 + $0x18] sm:$0xff]  ;;  %v279_v1 = vld [vmem:[%s395_s2 + $0x8] sm:$0xff]  ;;  %v284_v2 = vld [vmem:[%s395_s2 + $0x10] sm:$0xff] }
   0x2   :  { %94 = vmatpush.bf16.msra.mxu0 %v285_v0  ;;  %286 = vmatpush.bf16.msra.mxu2 %v285_v0  ;;  %v278_v3 = vld [vmem:[%s395_s2] sm:$0xff]  ;;  %v282_v5 = vld [vmem:[%s396_s1 + $0x10] sm:$0xff]  ;;  %v281_v8 = vld [vmem:[%s396_s1 + $0x8] sm:$0xff] }
   0x3   :  { %167 = vmatpush.bf16.msra.mxu1 %v279_v1  ;;  %288 = vmatpush.bf16.msra.mxu3 %v279_v1  ;;  %v280_v4 = vld [vmem:[%s396_s1] sm:$0xff]  ;;  %v276_v7 = vld [vmem:[%s397_s0 + $0x10] sm:$0xff]  ;;  %v283_v9 = vld [vmem:[%s396_s1 + $0x18] sm:$0xff] }
   0x4   :  { %v274_v6 = vld [vmem:[%s397_s0] sm:$0xff]  ;;  %v275_v10 = vld [vmem:[%s397_s0 + $0x8] sm:$0xff]  ;;  %v277_v11 = vld [vmem:[%s397_s0 + $0x18] sm:$0xff] }
   0x5   :  { %v290_v13 = vld [vmem:[%s398_s3] ss:$0 sm:$0xff] }
   0x6   :  { %95 = vmatpush.bf16.msra.mxu0 %v284_v2  ;;  %287 = vmatpush.bf16.msra.mxu2 %v284_v2 }
   0x7   :  { %168 = vmatpush.bf16.msra.mxu1 %v278_v3  ;;  %289 = vmatpush.bf16.msra.mxu3 %v278_v3 }
   0x9   :  { %242 = vmatmul.msk.bf16.vlgmr.msra.gmra.mxu0 %vm75_vm0, %v280_v4  ;;  %244 = vmatmul.msk.bf16.vlgmr.msra.gmra.mxu2 %vm75_vm0, %v282_v5 }
   0xa   :  { %270 = vmatmul.msk.bf16.vlgmr.msra.gmra.mxu1 %vm75_vm0, %v274_v6  ;;  %272 = vmatmul.msk.bf16.vlgmr.msra.gmra.mxu3 %vm75_vm0, %v276_v7 }
  0x19   :  { %243 = vmatmul.msk.bf16.gmra.mxu0 %vm75_vm0, %v281_v8  ;;  %245 = vmatmul.msk.bf16.gmra.mxu2 %vm75_vm0, %v283_v9 }
  0x1a   :  { %271 = vmatmul.msk.bf16.gmra.mxu1 %vm75_vm0, %v275_v10  ;;  %273 = vmatmul.msk.bf16.gmra.mxu3 %vm75_vm0, %v277_v11 }
  0x86   :  { %v97_v12 = vpop.f32.mrf.mxu0 }
  0x87   :  { %v170_v14 = vpop.f32.mrf.mxu1 }
  0x88   :  { %v171_v15 = vadd.f32 %v170_v14, %v97_v12 }
  0x8a   :  { %v194_v16 = vadd.f32 %v290_v13, %v171_v15 }
  0x8c   :  { %202 = vst.msk [vmem:[%s399_s4] sm:$0xff] %vm75_vm0, %v194_v16  ;;  %v107_v17 = vpop.f32.mrf.mxu2 }
  0x8d   :  { %v180_v18 = vpop.f32.mrf.mxu3 }
  0x8e   :  { %v181_v19 = vadd.f32 %v180_v18, %v107_v17  ;;  %v99_v20 = vpop.f32.mrf.mxu0 }
  0x8f   :  { %v172_v21 = vpop.f32.mrf.mxu1 }
  0x90   :  { %v198_v22 = vadd.f32 %v290_v13, %v181_v19  ;;  %v173_v23 = vadd.f32 %v172_v21, %v99_v20 }
  0x92   :  { %206 = vst.msk [vmem:[%s399_s4 + $0x20] sm:$0xff] %vm75_vm0, %v198_v22  ;;  %v195_v24 = vadd.f32 %v290_v13, %v173_v23 }
  0x94   :  { %203 = vst.msk [vmem:[%s399_s4 + $0x8] sm:$0xff] %vm75_vm0, %v195_v24  ;;  %v109_v25 = vpop.f32.mrf.mxu2 }
  0x95   :  { %v182_v26 = vpop.f32.mrf.mxu3 }
  0x96   :  { %v183_v27 = vadd.f32 %v182_v26, %v109_v25  ;;  %v102_v28 = vpop.f32.mrf.mxu0 }
  0x97   :  { %v175_v29 = vpop.f32.mrf.mxu1 }
  0x98   :  { %v199_v30 = vadd.f32 %v290_v13, %v183_v27  ;;  %v176_v31 = vadd.f32 %v175_v29, %v102_v28 }
  0x9a   :  { %207 = vst.msk [vmem:[%s399_s4 + $0x28] sm:$0xff] %vm75_vm0, %v199_v30  ;;  %v196_v32 = vadd.f32 %v290_v13, %v176_v31 }
  0x9c   :  { %204 = vst.msk [vmem:[%s399_s4 + $0x10] sm:$0xff] %vm75_vm0, %v196_v32  ;;  %v112_v33 = vpop.f32.mrf.mxu2 }
  0x9d   :  { %v185_v34 = vpop.f32.mrf.mxu3 }
  0x9e   :  { %v186_v35 = vadd.f32 %v185_v34, %v112_v33  ;;  %v104_v36 = vpop.f32.mrf.mxu0 }
  0x9f   :  { %v177_v37 = vpop.f32.mrf.mxu1 }
  0xa0   :  { %v200_v38 = vadd.f32 %v290_v13, %v186_v35  ;;  %v178_v39 = vadd.f32 %v177_v37, %v104_v36 }
  0xa2   :  { %208 = vst.msk [vmem:[%s399_s4 + $0x30] sm:$0xff] %vm75_vm0, %v200_v38  ;;  %v197_v40 = vadd.f32 %v290_v13, %v178_v39 }
  0xa4   :  { %205 = vst.msk [vmem:[%s399_s4 + $0x18] sm:$0xff] %vm75_vm0, %v197_v40  ;;  %v114_v41 = vpop.f32.mrf.mxu2 }
  0xa5   :  { %v187_v42 = vpop.f32.mrf.mxu3 }
  0xa6   :  { %v188_v43 = vadd.f32 %v187_v42, %v114_v41 }
  0xa8   :  { %v201_v44 = vadd.f32 %v290_v13, %v188_v43 }
  0xaa   :  { %209 = vst.msk [vmem:[%s399_s4 + $0x38] sm:$0xff] %vm75_vm0, %v201_v44 }

// kernel: encoder_forward.8
= control target key start
LH: loop header
LB: loop body
LE: loop exit
PB: predicated region body
PF: predicated region fallthrough
CT: control target
= control target key end

     0   :  { %11 = vsyncpa [#allocation5], 0  ;;  %s3628_s21 = smov [#allocation4]   ;;  %s3629_s23 = smov 64   ;;  %s4379_s0 = inlined_call_operand.vmem [shape: f32[2,3,8,8,32], index: 0, kind: input, shape index: {}, may-alias: {0,1}]   ;;  %s4380_s1 = inlined_call_operand.vmem [shape: f32[2,3,8,8,32], index: 1, kind: input, shape index: {}, may-alias: {0,1}]   ;;  %s4381_s2 = inlined_call_operand.hbm [shape: bf16[2,3,32,32], index: 2, kind: input, shape index: {}]   ;;  %s4382_s3 = inlined_call_operand.vmem [shape: f32[2,3,1,32], index: 3, kind: input, shape index: {}]   ;;  %s4383_s4 = inlined_call_operand.vmem [shape: bf16[8,8,32], index: 4, kind: output, shape index: {0}]   ;;  %s4384_s5 = inlined_call_operand.vmem [shape: bf16[8,8,32], index: 5, kind: output, shape index: {1}]  }
   0x1   :  { %s29_s20 = sshll.u32 %s4381_s2, 4  ;;  %s31_s22 = sshll.u32 %s3628_s21, 4  ;;  %s30_s20 = int_to_ptr.hbm [resolvable:$true] %s29_s20  ;;  %s32_s22 = int_to_ptr.vmem [resolvable:$true] %s31_s22 }
   0x2   :  { %s3630_s24 = smov 4  }
   0x3   :  { %37 = dma.hbm_to_vmem [thread:$0]  %s30_s20, 1536, %s32_s22, [#allocation5], %s3629_s23, %s3629_s23, %s3630_s24  }
   0x4   :  { %3626 = dma.done.wait [#allocation5], 1536  }
   0x5   :  { %3627 = vsyncadd [#allocation5], 4294965760  ;;  %vm79_vm0 = vcmask 261120   ;;  %v3631_v0 = vmov 0.0   ;;  %v3295_v1 = vld [vmem:[#allocation4 + $0x8] sm:$0xff]  ;;  %v3297_v2 = vld [vmem:[#allocation4 + $0x18] sm:$0xff] }
   0x6   :  { %80 = vst.msk [vmem:[#allocation2] sm:$0xff] %vm79_vm0, %v3631_v0  ;;  %v3301_v3 = vld [vmem:[#allocation4 + $0x38] sm:$0xff]  ;;  %v3294_v4 = vld [vmem:[#allocation4] sm:$0xff]  ;;  %119 = vmatpush.bf16.msra.mxu0 %v3295_v1  ;;  %154 = vmatpush.bf16.msra.mxu1 %v3297_v2  ;;  %v3296_v5 = vld [vmem:[#allocation4 + $0x10] sm:$0xff] }
   0x7   :  { %81 = vst.msk [vmem:[#allocation3] sm:$0xff] %vm79_vm0, %v3631_v0  ;;  %v3300_v6 = vld [vmem:[#allocation4 + $0x30] sm:$0xff]  ;;  %286 = vmatpush.bf16.msra.mxu3 %v3301_v3  ;;  %v3303_v9 = vld [vmem:[#allocation4 + $0x48] sm:$0xff]  ;;  %v3298_v11 = vld [vmem:[#allocation4 + $0x20] sm:$0xff] }
   0x8   :  { %v3299_v10 = vld [vmem:[#allocation4 + $0x28] sm:$0xff]  ;;  %v3305_v12 = vld [vmem:[#allocation4 + $0x58] sm:$0xff]  ;;  %v3302_v14 = vld [vmem:[#allocation4 + $0x40] sm:$0xff] }
   0x9   :  { %189 = vmatpush.bf16.msra.mxu2 %v3299_v10  ;;  %v3304_v16 = vld [vmem:[#allocation4 + $0x50] sm:$0xff]  ;;  %v2762_v30 = vld [vmem:[%s4380_s1 + $0xf8] sm:$0xff]  ;;  %v3309_v51 = vld [vmem:[#allocation4 + $0x18] sm:$0xff] }
   0xa   :  { %120 = vmatpush.bf16.msra.mxu0 %v3294_v4  ;;  %155 = vmatpush.bf16.msra.mxu1 %v3296_v5  ;;  %v3394_v17 = vld [vmem:[%s4382_s3] ss:$0 sm:$0xff]  ;;  %v3395_v18 = vld [vmem:[%s4382_s3 + $0x1] ss:$0 sm:$0xff]  ;;  %v3396_v27 = vld [vmem:[%s4382_s3 + $0x3] ss:$0 sm:$0xff] }
   0xb   :  { %287 = vmatpush.bf16.msra.mxu3 %v3300_v6  ;;  %v82_v19 = vld [vmem:[%s4379_s0] sm:$0xff]  ;;  %v2763_v44 = vld [vmem:[%s4380_s1 + $0x138] sm:$0xff]  ;;  %v3306_v57 = vld [vmem:[#allocation4] sm:$0xff] }
   0xc   :  { %v2729_v21 = vld [vmem:[%s4379_s0 + $0x40] sm:$0xff]  ;;  %v3307_v49 = vld [vmem:[#allocation4 + $0x8] sm:$0xff]  ;;  %v3310_v59 = vld [vmem:[#allocation4 + $0x20] sm:$0xff] }
   0xd   :  { %v3667_v7 = vld [vmem:[#allocation2] sm:$0xff]  ;;  %190 = vmatpush.bf16.msra.mxu2 %v3298_v11  ;;  %v3311_v52 = vld [vmem:[#allocation4 + $0x28] sm:$0xff]  ;;  %v3313_v2 = vld [vmem:[#allocation4 + $0x38] sm:$0xff] }
   0xe   :  { %v3669_v8 = vld [vmem:[#allocation3] sm:$0xff]  ;;  %v88_v13 = vpack.c.bf16 %v3667_v7, %v3667_v7  ;;  %321 = vmatpush.bf16.msrb.mxu0 %v3303_v9  ;;  %356 = vmatpush.bf16.msrb.mxu1 %v3305_v12  ;;  %v3397_v39 = vld [vmem:[%s4382_s3 + $0x4] ss:$0 sm:$0xff]  ;;  %v3398_v4 = vld [vmem:[%s4382_s3 + $0x2] ss:$0 sm:$0xff] }
   0xf   :  { %v254_v15 = vpack.c.bf16 %v3669_v8, %v3669_v8  ;;  %484 = vmatpush.bf16.msrb.mxu3 %v3309_v51  ;;  %v3308_v58 = vld [vmem:[#allocation4 + $0x10] sm:$0xff]  ;;  %v3315_v10 = vld [vmem:[#allocation4 + $0x48] sm:$0xff] }
  0x10   :  { %2739 = vmatmul.msk.bf16.vlgmr.msra.gmra.mxu0 %vm79_vm0, %v88_v13  ;;  %2749 = vmatmul.msk.bf16.vlgmr.msra.gmra.mxu1 %vm79_vm0, %v88_v13  ;;  %v3312_v11 = vld [vmem:[#allocation4 + $0x30] sm:$0xff] }
  0x11   :  { %2774 = vmatmul.msk.bf16.vlgmr.msra.gmra.mxu3 %vm79_vm0, %v254_v15  ;;  %2759 = vmatmul.msk.bf16.vlgmr.msra.gmra.mxu2 %vm79_vm0, %v88_v13 }
  0x12   :  { %322 = vmatpush.bf16.msrb.mxu0 %v3302_v14  ;;  %357 = vmatpush.bf16.msrb.mxu1 %v3304_v16 }
  0x13   :  { %451 = vmatpush.bf16.msrb.mxu2 %v3307_v49  ;;  %485 = vmatpush.bf16.msrb.mxu3 %v3308_v58 }
  0x16   :  { %517 = vmatpush.bf16.msra.mxu0 %v3311_v52  ;;  %612 = vmatpush.bf16.msra.mxu1 %v3313_v2 }
  0x17   :  { %452 = vmatpush.bf16.msrb.mxu2 %v3306_v57 }
  0x1a   :  { %518 = vmatpush.bf16.msra.mxu0 %v3310_v59  ;;  %613 = vmatpush.bf16.msra.mxu1 %v3312_v11  ;;  %v3401_v11 = vld [vmem:[%s4382_s3] ss:$0 sm:$0xff] }
  0x1b   :  { %645 = vmatpush.bf16.msra.mxu2 %v3315_v10 }
  0x20   :  { %2784 = vmatmul.msk.bf16.vlgmr.msrb.gmra.mxu0 %vm79_vm0, %v254_v15  ;;  %2794 = vmatmul.msk.bf16.vlgmr.msrb.gmra.mxu1 %vm79_vm0, %v254_v15 }
  0x8d   :  { %v122_v20 = vpop.f32.mrf.mxu0  ;;  %v157_v22 = vpop.f32.mrf.mxu1 }
  0x8e   :  { %v123_v23 = vadd.f32 %v3394_v17, %v122_v20  ;;  %v158_v24 = vadd.f32 %v3395_v18, %v157_v22 }
  0x90   :  { %v196_v25 = vadd.f32 %v123_v23, %v82_v19  ;;  %v216_v26 = vadd.f32 %v2729_v21, %v158_v24  ;;  %v3399_v23 = vld [vmem:[%s4382_s3 + $0x5] ss:$0 sm:$0xff] }
  0x92   :  { %v2760_v28 = vmul.f32 -1.442695, %v196_v25  ;;  %v2761_v29 = vmul.f32 -1.442695, %v216_v26  ;;  %v2730_v25 = vld [vmem:[%s4379_s0 + $0x80] sm:$0xff] }
  0x94   :  { %3442 = vpow2.f32 %v2760_v28  ;;  %v289_v31 = vpop.f32.mrf.mxu3  ;;  %v192_v36 = vpop.f32.mrf.mxu2 }
  0x95   :  { %3444 = vpow2.f32 %v2761_v29  ;;  %v290_v32 = vadd.f32 %v3396_v27, %v289_v31  ;;  %v124_v33 = vpop.f32.mrf.mxu0  ;;  %v159_v34 = vpop.f32.mrf.mxu1  ;;  %v193_v16 = vadd.f32 %v3398_v4, %v192_v36  ;;  %v3314_v31 = vld [vmem:[#allocation4 + $0x40] sm:$0xff] }
  0x96   :  { %646 = vmatpush.bf16.msra.mxu2 %v3314_v31 }
  0x97   :  { %v363_v35 = vadd.f32 %v2762_v30, %v290_v32  ;;  %v3317_v32 = vld [vmem:[#allocation4 + $0x58] sm:$0xff] }
  0x98   :  { %678 = vmatpush.bf16.msra.mxu3 %v3317_v32 }
  0x99   :  { %v2795_v37 = vmul.f32 -1.442695, %v363_v35 }
  0x9a   :  { %v3443_v38 = vpop.eup %3442 }
  0x9b   :  { %v3445_v40 = vpop.eup %3444  ;;  %v200_v41 = vadd.f32 1.0, %v3443_v38  ;;  %3446 = vpow2.f32 %v2795_v37  ;;  %v3316_v38 = vld [vmem:[#allocation4 + $0x50] sm:$0xff] }
  0x9c   :  { %v3702_v42 = vadd.f32 1.0, %v3445_v40  ;;  %v291_v43 = vpop.f32.mrf.mxu3  ;;  %v194_v48 = vpop.f32.mrf.mxu2  ;;  %679 = vmatpush.bf16.msra.mxu3 %v3316_v38 }
  0x9d   :  { %3448 = vrcp.f32 %v200_v41  ;;  %v324_v45 = vpop.f32.mrf.mxu0  ;;  %v3707_v46 = vpop.f32.mrf.mxu1  ;;  %v212_v5 = vand.u32 2147483648, %v200_v41  ;;  %v210_v9 = vand.u32 2147483647, %v200_v41  ;;  %vm206_vm2 = vweird.f32 %v200_v41 }
  0x9e   :  { %3450 = vrcp.f32 %v3702_v42  ;;  %v325_v47 = vadd.f32 %v3397_v39, %v324_v45  ;;  %vm226_vm4 = vweird.f32 %v3702_v42  ;;  %v232_v21 = vand.u32 2147483648, %v3702_v42 }
  0x9f   :  { %v213_v17 = vor.u32 1.1754944e-38, %v212_v5  ;;  %vm211_vm5 = vcmp.eq.f32.partialorder %v210_v9, 8.507059e+37  ;;  %v230_v33 = vand.u32 2147483647, %v3702_v42  ;;  %v360_v36 = vadd.f32 %v3399_v23, %v3707_v46 }
  0xa0   :  { %v383_v50 = vadd.f32 %v2763_v44, %v325_v47  ;;  %v2764_v44 = vld [vmem:[%s4380_s1 + $0x178] sm:$0xff] }
  0xa1   :  { %v3447_v53 = vpop.eup %3446  ;;  %vm231_vm12 = vcmp.eq.f32.partialorder %v230_v33, 8.507059e+37 }
  0xa2   :  { %v3710_v54 = vadd.f32 1.0, %v3447_v53  ;;  %v2796_v55 = vmul.f32 -1.442695, %v383_v50 }
  0xa3   :  { %v3449_v56 = vpop.eup %3448 }
  0xa4   :  { %v3712_v60 = vpop.eup %3450  ;;  %3452 = vrcp.f32 %v3710_v54  ;;  %v202_v61 = vmul.f32 %v3449_v56, %v200_v41  ;;  %vm207_vm1 = vweird.f32 %v3449_v56  ;;  %vm373_vm6 = vweird.f32 %v3710_v54 }
  0xa5   :  { %v222_v62 = vmul.f32 %v3712_v60, %v3702_v42  ;;  %3454 = vpow2.f32 %v2796_v55  ;;  %v326_v63 = vpop.f32.mrf.mxu0  ;;  %v361_v0 = vpop.f32.mrf.mxu1  ;;  %vm208_vm3 = vmor %vm206_vm2, %vm207_vm1  ;;  %vm227_vm7 = vweird.f32 %v3712_v60  ;;  %v379_v27 = vand.u32 2147483648, %v3710_v54 }
  0xa6   :  { %v203_v1 = vsub.f32 1.0, %v202_v61  ;;  %v377_v30 = vand.u32 2147483647, %v3710_v54  ;;  %vm3738_vm9 = vmor %vm226_vm4, %vm227_vm7  ;;  %v233_v41 = vor.u32 1.1754944e-38, %v232_v21  ;;  %vm245_vm1 = vcmask 257024  }
  0xa7   :  { %v223_v3 = vsub.f32 1.0, %v222_v62  ;;  %v380_v40 = vor.u32 1.1754944e-38, %v379_v27 }
  0xa8   :  { %v204_v6 = vmul.f32 %v3449_v56, %v203_v1  ;;  %vm378_vm11 = vcmp.eq.f32.partialorder %v377_v30, 8.507059e+37 }
  0xa9   :  { %v224_v13 = vmul.f32 %v3712_v60, %v223_v3 }
  0xaa   :  { %v3453_v12 = vpop.eup %3452  ;;  %v205_v14 = vadd.f32 %v3449_v56, %v204_v6 }
  0xab   :  { %v3455_v15 = vpop.eup %3454  ;;  %v369_v18 = vmul.f32 %v3453_v12, %v3710_v54  ;;  %v225_v26 = vadd.f32 %v3712_v60, %v224_v13  ;;  %vm374_vm8 = vweird.f32 %v3453_v12  ;;  %v3403_v13 = vld [vmem:[%s4382_s3 + $0x3] ss:$0 sm:$0xff] }
  0xac   :  { %v387_v19 = vadd.f32 1.0, %v3455_v15  ;;  %v209_v20 = vsel %vm208_vm3, %v3449_v56, %v205_v14  ;;  %vm375_vm10 = vmor %vm373_vm6, %vm374_vm8  ;;  %v2798_v14 = vld [vmem:[%s4379_s0 + $0x8] sm:$0xff] }
  0xad   :  { %v214_v22 = vsel %vm211_vm5, %v213_v17, %v209_v20  ;;  %v370_v24 = vsub.f32 1.0, %v369_v18  ;;  %v229_v39 = vsel %vm3738_vm9, %v3712_v60, %v225_v26  ;;  %v2833_v20 = vld [vmem:[%s4380_s1 + $0xf0] sm:$0xff] }
  0xae   :  { %3456 = vrcp.f32 %v387_v19  ;;  %v236_v28 = vmul.f32 %v214_v22, %v193_v16  ;;  %v234_v47 = vsel %vm231_vm12, %v233_v41, %v229_v39  ;;  %vm393_vm13 = vweird.f32 %v387_v19  ;;  %v2799_v16 = vld [vmem:[%s4379_s0 + $0x48] sm:$0xff]  ;;  %v2834_v41 = vld [vmem:[%s4380_s1 + $0x130] sm:$0xff] }
  0xaf   :  { %v371_v29 = vmul.f32 %v3453_v12, %v370_v24  ;;  %v399_v51 = vand.u32 2147483648, %v387_v19  ;;  %v239_v52 = vsub.f32 1.0, %v234_v47  ;;  %v397_v55 = vand.u32 2147483647, %v387_v19 }
  0xb0   :  { %v237_v35 = vadd.f32 %v2730_v25, %v236_v28  ;;  %v241_v57 = vmul.f32 %v234_v47, %v3667_v7  ;;  %v3323_v47 = vld [vmem:[#allocation4 + $0x28] sm:$0xff] }
  0xb1   :  { %v372_v37 = vadd.f32 %v3453_v12, %v371_v29  ;;  %v400_v59 = vor.u32 1.1754944e-38, %v399_v51  ;;  %vm398_vm2 = vcmp.eq.f32.partialorder %v397_v55, 8.507059e+37  ;;  %v3400_v55 = vld [vmem:[%s4382_s3 + $0x2] ss:$0 sm:$0xff] }
  0xb2   :  { %3458 = vtanh.f32 %v237_v35 }
  0xb3   :  { %v376_v42 = vsel %vm375_vm10, %v3453_v12, %v372_v37  ;;  %v3402_v12 = vld [vmem:[%s4382_s3 + $0x1] ss:$0 sm:$0xff] }
  0xb4   :  { %v3457_v43 = vpop.eup %3456  ;;  %v381_v45 = vsel %vm378_vm11, %v380_v40, %v376_v42 }
  0xb5   :  { %v389_v46 = vmul.f32 %v3457_v43, %v387_v19  ;;  %v403_v48 = vmul.f32 %v381_v45, %v360_v36  ;;  %vm394_vm14 = vweird.f32 %v3457_v43  ;;  %v3404_v36 = vld [vmem:[%s4382_s3 + $0x4] ss:$0 sm:$0xff]  ;;  %v3319_v45 = vld [vmem:[#allocation4 + $0x8] sm:$0xff] }
  0xb6   :  { %vm395_vm15 = vmor %vm393_vm13, %vm394_vm14  ;;  %773 = vmatpush.bf16.msrb.mxu0 %v3319_v45 }
  0xb7   :  { %v390_v49 = vsub.f32 1.0, %v389_v46  ;;  %v404_v50 = vadd.f32 %v2764_v44, %v403_v48  ;;  %v3321_v46 = vld [vmem:[#allocation4 + $0x18] sm:$0xff] }
  0xb8   :  { %v3459_v53 = vpop.eup %3458  ;;  %806 = vmatpush.bf16.msrb.mxu1 %v3321_v46 }
  0xb9   :  { %v391_v54 = vmul.f32 %v3457_v43, %v390_v49  ;;  %3460 = vtanh.f32 %v404_v50  ;;  %v240_v56 = vmul.f32 %v3459_v53, %v239_v52 }
  0xbb   :  { %v392_v58 = vadd.f32 %v3457_v43, %v391_v54  ;;  %v242_v60 = vadd.f32 %v241_v57, %v240_v56  ;;  %v3318_v57 = vld [vmem:[#allocation4] sm:$0xff] }
  0xbc   :  { %774 = vmatpush.bf16.msrb.mxu0 %v3318_v57 }
  0xbd   :  { %v396_v61 = vsel %vm395_vm15, %v3457_v43, %v392_v58  ;;  %243 = vst.msk [vmem:[#allocation2] sm:$0xff] %vm79_vm0, %v242_v60  ;;  %v244_v62 = vpack.c.bf16 %v242_v60, %v242_v60  ;;  %v3320_v58 = vld [vmem:[#allocation4 + $0x10] sm:$0xff] }
  0xbe   :  { %v401_v63 = vsel %vm398_vm2, %v400_v59, %v396_v61  ;;  %807 = vmatpush.bf16.msrb.mxu1 %v3320_v58 }
  0xbf   :  { %v3461_v0 = vpop.eup %3460  ;;  %v406_v1 = vsub.f32 1.0, %v401_v63  ;;  %246 = vst.msk [vmem:[%s4383_s4] sm:$0xf] %vm245_vm1, %v244_v62  ;;  %v408_v7 = vmul.f32 %v401_v63, %v3669_v8  ;;  %v3325_v63 = vld [vmem:[#allocation4 + $0x38] sm:$0xff] }
  0xc1   :  { %v407_v2 = vmul.f32 %v3461_v0, %v406_v1  ;;  %v3322_v0 = vld [vmem:[#allocation4 + $0x20] sm:$0xff] }
  0xc3   :  { %v409_v3 = vadd.f32 %v408_v7, %v407_v2  ;;  %v3327_v7 = vld [vmem:[#allocation4 + $0x48] sm:$0xff] }
  0xc4   :  { %v3759_v5 = vld [vmem:[#allocation2] sm:$0xff] }
  0xc5   :  { %410 = vst.msk [vmem:[#allocation3] sm:$0xff] %vm79_vm0, %v409_v3  ;;  %v411_v4 = vpack.c.bf16 %v409_v3, %v409_v3  ;;  %v421_v6 = vpack.c.bf16 %v3759_v5, %v3759_v5 }
  0xc7   :  { %2797 = vst.msk [vmem:[%s4384_s5 + $0x1c] sm:$0xf] %vm245_vm1, %v411_v4  ;;  %2809 = vmatmul.msk.bf16.vlgmr.msrb.gmra.mxu2 %vm79_vm0, %v421_v6  ;;  %2819 = vmatmul.msk.bf16.vlgmr.msrb.gmra.mxu3 %vm79_vm0, %v421_v6  ;;  %v3324_v4 = vld [vmem:[#allocation4 + $0x30] sm:$0xff] }
  0xc8   :  { %2829 = vmatmul.msk.bf16.vlgmr.msra.gmra.mxu0 %vm79_vm0, %v421_v6  ;;  %839 = vmatpush.bf16.msrb.mxu2 %v3323_v47 }
  0xc9   :  { %934 = vmatpush.bf16.msrb.mxu3 %v3325_v63  ;;  %967 = vmatpush.bf16.msra.mxu0 %v3327_v7  ;;  %v2869_v7 = vld [vmem:[%s4379_s0 + $0x10] sm:$0xff] }
  0xcc   :  { %v3770_v8 = vld [vmem:[#allocation3] sm:$0xff]  ;;  %840 = vmatpush.bf16.msrb.mxu2 %v3322_v0 }
  0xcd   :  { %v582_v9 = vpack.c.bf16 %v3770_v8, %v3770_v8  ;;  %935 = vmatpush.bf16.msrb.mxu3 %v3324_v4  ;;  %v2870_v4 = vld [vmem:[%s4379_s0 + $0x50] sm:$0xff] }
  0xcf   :  { %2845 = vmatmul.msk.bf16.vlgmr.msra.gmra.mxu1 %vm79_vm0, %v582_v9 }
  0xd7   :  { %2855 = vmatmul.msk.bf16.vlgmr.msra.gmra.mxu2 %vm79_vm0, %v582_v9  ;;  %2865 = vmatmul.msk.bf16.vlgmr.msra.gmra.mxu3 %vm79_vm0, %v582_v9 }
 0x145   :  { %v3777_v10 = vpop.f32.mrf.mxu0 }
 0x14a   :  { %v454_v15 = vpop.f32.mrf.mxu2  ;;  %v487_v17 = vpop.f32.mrf.mxu3 }
 0x14b   :  { %v455_v18 = vadd.f32 %v3401_v11, %v454_v15  ;;  %v488_v19 = vadd.f32 %v3402_v12, %v487_v17  ;;  %v521_v12 = vadd.f32 %v3400_v55, %v3777_v10  ;;  %v3405_v10 = vld [vmem:[%s4382_s3 + $0x5] ss:$0 sm:$0xff] }
 0x14c   :  { %v615_v21 = vpop.f32.mrf.mxu1 }
 0x14d   :  { %v616_v22 = vadd.f32 %v3403_v13, %v615_v21  ;;  %v524_v23 = vadd.f32 %v2798_v14, %v455_v18  ;;  %v544_v24 = vadd.f32 %v2799_v16, %v488_v19  ;;  %v522_v25 = vpop.f32.mrf.mxu0  ;;  %v2800_v18 = vld [vmem:[%s4379_s0 + $0x88] sm:$0xff] }
 0x14f   :  { %v685_v26 = vadd.f32 %v2833_v20, %v616_v22  ;;  %v2830_v27 = vmul.f32 -1.442695, %v524_v23  ;;  %v2831_v28 = vmul.f32 -1.442695, %v544_v24 }
 0x151   :  { %v2866_v29 = vmul.f32 -1.442695, %v685_v26  ;;  %3462 = vpow2.f32 %v2830_v27  ;;  %v3329_v27 = vld [vmem:[#allocation4 + $0x58] sm:$0xff] }
 0x152   :  { %3464 = vpow2.f32 %v2831_v28  ;;  %v456_v30 = vpop.f32.mrf.mxu2  ;;  %v489_v31 = vpop.f32.mrf.mxu3  ;;  %v3326_v28 = vld [vmem:[#allocation4 + $0x40] sm:$0xff]  ;;  %1000 = vmatpush.bf16.msra.mxu1 %v3329_v27 }
 0x153   :  { %3466 = vpow2.f32 %v2866_v29  ;;  %968 = vmatpush.bf16.msra.mxu0 %v3326_v28 }
 0x154   :  { %v617_v32 = vpop.f32.mrf.mxu1 }
 0x157   :  { %v3463_v33 = vpop.eup %3462 }
 0x158   :  { %v3465_v34 = vpop.eup %3464  ;;  %v528_v35 = vadd.f32 1.0, %v3463_v33 }
 0x159   :  { %v3467_v37 = vpop.eup %3466  ;;  %v3800_v38 = vadd.f32 1.0, %v3465_v34  ;;  %v3328_v34 = vld [vmem:[#allocation4 + $0x50] sm:$0xff] }
 0x15a   :  { %3468 = vrcp.f32 %v528_v35  ;;  %v648_v39 = vpop.f32.mrf.mxu2  ;;  %v3802_v40 = vpop.f32.mrf.mxu3  ;;  %v3808_v42 = vadd.f32 1.0, %v3467_v37  ;;  %v538_v60 = vand.u32 2147483647, %v528_v35  ;;  %v540_v61 = vand.u32 2147483648, %v528_v35  ;;  %v2835_v37 = vld [vmem:[%s4380_s1 + $0x170] sm:$0xff]  ;;  %1001 = vmatpush.bf16.msra.mxu1 %v3328_v34 }
 0x15b   :  { %3470 = vrcp.f32 %v3800_v38  ;;  %v649_v43 = vadd.f32 %v3404_v36, %v648_v39  ;;  %vm534_vm4 = vweird.f32 %v528_v35  ;;  %vm554_vm9 = vweird.f32 %v3800_v38 }
 0x15c   :  { %3472 = vrcp.f32 %v3808_v42  ;;  %vm539_vm6 = vcmp.eq.f32.partialorder %v538_v60, 8.507059e+37  ;;  %v541_v13 = vor.u32 1.1754944e-38, %v540_v61  ;;  %v701_v14 = vand.u32 2147483648, %v3808_v42 }
 0x15d   :  { %v705_v44 = vadd.f32 %v2834_v41, %v649_v43  ;;  %v699_v21 = vand.u32 2147483647, %v3808_v42  ;;  %v560_v23 = vand.u32 2147483648, %v3800_v38  ;;  %v558_v25 = vand.u32 2147483647, %v3800_v38 }
 0x15e   :  { %vm695_vm11 = vweird.f32 %v3808_v42  ;;  %v702_v30 = vor.u32 1.1754944e-38, %v701_v14  ;;  %v682_v32 = vadd.f32 %v3405_v10, %v3802_v40 }
 0x15f   :  { %v2867_v49 = vmul.f32 -1.442695, %v705_v44  ;;  %vm700_vm13 = vcmp.eq.f32.partialorder %v699_v21, 8.507059e+37  ;;  %vm559_vm14 = vcmp.eq.f32.partialorder %v558_v25, 8.507059e+37  ;;  %v2904_v25 = vld [vmem:[%s4380_s1 + $0xe8] sm:$0xff] }
 0x160   :  { %v3469_v48 = vpop.eup %3468 }
 0x161   :  { %v3811_v50 = vpop.eup %3470  ;;  %v530_v51 = vmul.f32 %v3469_v48, %v528_v35  ;;  %3474 = vpow2.f32 %v2867_v49  ;;  %vm535_vm3 = vweird.f32 %v3469_v48  ;;  %v561_v35 = vor.u32 1.1754944e-38, %v560_v23  ;;  %v3410_v23 = vld [vmem:[%s4382_s3 + $0x4] ss:$0 sm:$0xff] }
 0x162   :  { %v550_v52 = vmul.f32 %v3811_v50, %v3800_v38  ;;  %v650_v53 = vpop.f32.mrf.mxu2  ;;  %v683_v54 = vpop.f32.mrf.mxu3  ;;  %vm536_vm5 = vmor %vm534_vm4, %vm535_vm3  ;;  %vm555_vm7 = vweird.f32 %v3811_v50 }
 0x163   :  { %v531_v56 = vsub.f32 1.0, %v530_v51  ;;  %v3473_v59 = vpop.eup %3472  ;;  %vm3834_vm10 = vmor %vm554_vm9, %vm555_vm7 }
 0x164   :  { %v551_v62 = vsub.f32 1.0, %v550_v52  ;;  %v691_v2 = vmul.f32 %v3473_v59, %v3808_v42  ;;  %vm696_vm8 = vweird.f32 %v3473_v59 }
 0x165   :  { %v532_v1 = vmul.f32 %v3469_v48, %v531_v56  ;;  %vm697_vm12 = vmor %vm695_vm11, %vm696_vm8 }
 0x166   :  { %v552_v3 = vmul.f32 %v3811_v50, %v551_v62  ;;  %v692_v9 = vsub.f32 1.0, %v691_v2  ;;  %v3407_v2 = vld [vmem:[%s4382_s3 + $0x1] ss:$0 sm:$0xff] }
 0x167   :  { %v533_v6 = vadd.f32 %v3469_v48, %v532_v1  ;;  %v3475_v11 = vpop.eup %3474  ;;  %v3406_v1 = vld [vmem:[%s4382_s3] ss:$0 sm:$0xff] }
 0x168   :  { %v709_v16 = vadd.f32 1.0, %v3475_v11  ;;  %v693_v17 = vmul.f32 %v3473_v59, %v692_v9  ;;  %v553_v20 = vadd.f32 %v3811_v50, %v552_v3 }
 0x169   :  { %v537_v15 = vsel %vm536_vm5, %v3469_v48, %v533_v6 }
 0x16a   :  { %v542_v19 = vsel %vm539_vm6, %v541_v13, %v537_v15  ;;  %3476 = vrcp.f32 %v709_v16  ;;  %v694_v26 = vadd.f32 %v3473_v59, %v693_v17  ;;  %v557_v31 = vsel %vm3834_vm10, %v3811_v50, %v553_v20 }
 0x16b   :  { %v564_v22 = vmul.f32 %v542_v19, %v521_v12  ;;  %v562_v41 = vsel %vm559_vm14, %v561_v35, %v557_v31  ;;  %v721_v47 = vand.u32 2147483648, %v709_v16  ;;  %v719_v50 = vand.u32 2147483647, %v709_v16  ;;  %v3409_v19 = vld [vmem:[%s4382_s3 + $0x3] ss:$0 sm:$0xff]  ;;  %v3331_v35 = vld [vmem:[#allocation4 + $0x8] sm:$0xff] }
 0x16c   :  { %v698_v33 = vsel %vm697_vm12, %v3473_v59, %v694_v26  ;;  %v567_v40 = vsub.f32 1.0, %v562_v41  ;;  %v569_v46 = vmul.f32 %v562_v41, %v3759_v5  ;;  %vm715_vm2 = vweird.f32 %v709_v16  ;;  %1095 = vmatpush.bf16.msra.mxu2 %v3331_v35 }
 0x16d   :  { %v565_v29 = vadd.f32 %v2800_v18, %v564_v22  ;;  %v703_v36 = vsel %vm700_vm13, %v702_v30, %v698_v33  ;;  %v722_v53 = vor.u32 1.1754944e-38, %v721_v47  ;;  %vm720_vm4 = vcmp.eq.f32.partialorder %v719_v50, 8.507059e+37  ;;  %v2905_v30 = vld [vmem:[%s4380_s1 + $0x128] sm:$0xff]  ;;  %v3330_v47 = vld [vmem:[#allocation4] sm:$0xff]  ;;  %v3408_v50 = vld [vmem:[%s4382_s3 + $0x2] ss:$0 sm:$0xff] }
 0x16e   :  { %v725_v38 = vmul.f32 %v703_v36, %v682_v32  ;;  %v3333_v36 = vld [vmem:[#allocation4 + $0x18] sm:$0xff] }
 0x16f   :  { %3478 = vtanh.f32 %v565_v29  ;;  %1128 = vmatpush.bf16.msra.mxu3 %v3333_v36 }
 0x170   :  { %v3477_v39 = vpop.eup %3476  ;;  %v726_v43 = vadd.f32 %v2835_v37, %v725_v38  ;;  %v3335_v37 = vld [vmem:[#allocation4 + $0x28] sm:$0xff]  ;;  %1096 = vmatpush.bf16.msra.mxu2 %v3330_v47 }
 0x171   :  { %v711_v42 = vmul.f32 %v3477_v39, %v709_v16  ;;  %vm716_vm15 = vweird.f32 %v3477_v39 }
 0x172   :  { %3480 = vtanh.f32 %v726_v43  ;;  %vm717_vm3 = vmor %vm715_vm2, %vm716_vm15 }
 0x173   :  { %v712_v44 = vsub.f32 1.0, %v711_v42 }
 0x175   :  { %v3479_v45 = vpop.eup %3478  ;;  %v713_v49 = vmul.f32 %v3477_v39, %v712_v44 }
 0x176   :  { %v568_v48 = vmul.f32 %v3479_v45, %v567_v40 }
 0x177   :  { %v714_v52 = vadd.f32 %v3477_v39, %v713_v49 }
 0x178   :  { %v570_v51 = vadd.f32 %v569_v46, %v568_v48  ;;  %v3481_v57 = vpop.eup %3480  ;;  %v3332_v48 = vld [vmem:[#allocation4 + $0x10] sm:$0xff] }
 0x179   :  { %v718_v55 = vsel %vm717_vm3, %v3477_v39, %v714_v52  ;;  %v3334_v52 = vld [vmem:[#allocation4 + $0x20] sm:$0xff]  ;;  %1129 = vmatpush.bf16.msra.mxu3 %v3332_v48 }
 0x17a   :  { %571 = vst.msk [vmem:[#allocation2] sm:$0xff] %vm79_vm0, %v570_v51  ;;  %v572_v54 = vpack.c.bf16 %v570_v51, %v570_v51  ;;  %v723_v56 = vsel %vm720_vm4, %v722_v53, %v718_v55 }
 0x17b   :  { %v728_v5 = vsub.f32 1.0, %v723_v56  ;;  %v730_v59 = vmul.f32 %v723_v56, %v3770_v8 }
 0x17c   :  { %2832 = vst.msk [vmem:[%s4383_s4 + $0x4] sm:$0xf] %vm245_vm1, %v572_v54 }
 0x17d   :  { %v729_v58 = vmul.f32 %v3481_v57, %v728_v5 }
 0x17f   :  { %v731_v60 = vadd.f32 %v730_v59, %v729_v58 }
 0x181   :  { %v3854_v61 = vld [vmem:[#allocation2] sm:$0xff]  ;;  %732 = vst.msk [vmem:[#allocation3] sm:$0xff] %vm79_vm0, %v731_v60  ;;  %v733_v62 = vpack.c.bf16 %v731_v60, %v731_v60 }
 0x182   :  { %v743_v63 = vpack.c.bf16 %v3854_v61, %v3854_v61 }
 0x183   :  { %2868 = vst.msk [vmem:[%s4384_s5 + $0x18] sm:$0xf] %vm245_vm1, %v733_v62 }
 0x184   :  { %2880 = vmatmul.msk.bf16.vlgmr.msrb.gmra.mxu0 %vm79_vm0, %v743_v63  ;;  %2890 = vmatmul.msk.bf16.vlgmr.msrb.gmra.mxu1 %vm79_vm0, %v743_v63 }
 0x185   :  { %2900 = vmatmul.msk.bf16.vlgmr.msrb.gmra.mxu2 %vm79_vm0, %v743_v63  ;;  %1161 = vmatpush.bf16.msrb.mxu0 %v3335_v37 }
 0x188   :  { %v3866_v8 = vld [vmem:[#allocation3] sm:$0xff] }
 0x189   :  { %v904_v0 = vpack.c.bf16 %v3866_v8, %v3866_v8  ;;  %1162 = vmatpush.bf16.msrb.mxu0 %v3334_v52 }
 0x18b   :  { %2916 = vmatmul.msk.bf16.vlgmr.msrb.gmra.mxu3 %vm79_vm0, %v904_v0 }
 0x194   :  { %2926 = vmatmul.msk.bf16.vlgmr.msra.gmra.mxu0 %vm79_vm0, %v904_v0  ;;  %2936 = vmatmul.msk.bf16.vlgmr.msra.gmra.mxu1 %vm79_vm0, %v904_v0  ;;  %v2871_v0 = vld [vmem:[%s4379_s0 + $0x90] sm:$0xff] }
 0x201   :  { %v776_v3 = vpop.f32.mrf.mxu0  ;;  %v809_v6 = vpop.f32.mrf.mxu1 }
 0x202   :  { %v777_v9 = vadd.f32 %v3406_v1, %v776_v3  ;;  %v810_v11 = vadd.f32 %v3407_v2, %v809_v6  ;;  %v3339_v6 = vld [vmem:[#allocation4 + $0x48] sm:$0xff] }
 0x203   :  { %1289 = vmatpush.bf16.msrb.mxu2 %v3339_v6 }
 0x204   :  { %v846_v12 = vadd.f32 %v2869_v7, %v777_v9  ;;  %v866_v13 = vadd.f32 %v2870_v4, %v810_v11  ;;  %v3337_v4 = vld [vmem:[#allocation4 + $0x38] sm:$0xff] }
 0x205   :  { %v3341_v11 = vld [vmem:[#allocation4 + $0x58] sm:$0xff]  ;;  %1256 = vmatpush.bf16.msrb.mxu1 %v3337_v4 }
 0x206   :  { %v2901_v14 = vmul.f32 -1.442695, %v846_v12  ;;  %v2902_v15 = vmul.f32 -1.442695, %v866_v13  ;;  %v3336_v13 = vld [vmem:[#allocation4 + $0x30] sm:$0xff]  ;;  %1322 = vmatpush.bf16.msrb.mxu3 %v3341_v11 }
 0x208   :  { %3482 = vpow2.f32 %v2901_v14  ;;  %v842_v16 = vpop.f32.mrf.mxu2  ;;  %v3338_v14 = vld [vmem:[#allocation4 + $0x40] sm:$0xff] }
 0x209   :  { %3484 = vpow2.f32 %v2902_v15  ;;  %v778_v17 = vpop.f32.mrf.mxu0  ;;  %v811_v18 = vpop.f32.mrf.mxu1  ;;  %v843_v59 = vadd.f32 %v3408_v50, %v842_v16  ;;  %1257 = vmatpush.bf16.msrb.mxu1 %v3336_v13  ;;  %1290 = vmatpush.bf16.msrb.mxu2 %v3338_v14  ;;  %v2975_v13 = vld [vmem:[%s4380_s1 + $0xe0] sm:$0xff] }
 0x20e   :  { %v3483_v20 = vpop.eup %3482  ;;  %v937_v22 = vpop.f32.mrf.mxu3 }
 0x20f   :  { %v3485_v10 = vpop.eup %3484  ;;  %v850_v21 = vadd.f32 1.0, %v3483_v20  ;;  %v938_v26 = vadd.f32 %v3409_v19, %v937_v22 }
 0x210   :  { %v3891_v24 = vadd.f32 1.0, %v3485_v10  ;;  %v844_v27 = vpop.f32.mrf.mxu2 }
 0x211   :  { %3486 = vrcp.f32 %v850_v21  ;;  %v970_v28 = vpop.f32.mrf.mxu0  ;;  %v3896_v29 = vpop.f32.mrf.mxu1  ;;  %v1007_v31 = vadd.f32 %v2904_v25, %v938_v26  ;;  %v862_v51 = vand.u32 2147483648, %v850_v21  ;;  %v860_v54 = vand.u32 2147483647, %v850_v21  ;;  %v3411_v27 = vld [vmem:[%s4382_s3 + $0x5] ss:$0 sm:$0xff] }
 0x212   :  { %3488 = vrcp.f32 %v3891_v24  ;;  %v971_v32 = vadd.f32 %v3410_v23, %v970_v28  ;;  %vm856_vm6 = vweird.f32 %v850_v21  ;;  %v882_v7 = vand.u32 2147483648, %v3891_v24 }
 0x213   :  { %v2937_v33 = vmul.f32 -1.442695, %v1007_v31  ;;  %v863_v60 = vor.u32 1.1754944e-38, %v862_v51  ;;  %vm861_vm8 = vcmp.eq.f32.partialorder %v860_v54, 8.507059e+37  ;;  %vm876_vm10 = vweird.f32 %v3891_v24 }
 0x214   :  { %v1027_v34 = vadd.f32 %v2905_v30, %v971_v32  ;;  %v880_v9 = vand.u32 2147483647, %v3891_v24  ;;  %v883_v17 = vor.u32 1.1754944e-38, %v882_v7  ;;  %v1004_v37 = vadd.f32 %v3411_v27, %v3896_v29 }
 0x215   :  { %3490 = vpow2.f32 %v2937_v33 }
 0x216   :  { %v2938_v39 = vmul.f32 -1.442695, %v1027_v34  ;;  %v939_v41 = vpop.f32.mrf.mxu3  ;;  %vm881_vm12 = vcmp.eq.f32.partialorder %v880_v9, 8.507059e+37  ;;  %v3415_v9 = vld [vmem:[%s4382_s3 + $0x3] ss:$0 sm:$0xff] }
 0x217   :  { %v3487_v38 = vpop.eup %3486 }
 0x218   :  { %v3902_v42 = vpop.eup %3488  ;;  %v852_v43 = vmul.f32 %v3487_v38, %v850_v21  ;;  %3492 = vpow2.f32 %v2938_v39  ;;  %vm857_vm5 = vweird.f32 %v3487_v38  ;;  %v2906_v39 = vld [vmem:[%s4380_s1 + $0x168] sm:$0xff] }
 0x219   :  { %v872_v40 = vmul.f32 %v3902_v42, %v3891_v24  ;;  %v972_v44 = vpop.f32.mrf.mxu0  ;;  %v1005_v45 = vpop.f32.mrf.mxu1  ;;  %vm858_vm7 = vmor %vm856_vm6, %vm857_vm5  ;;  %vm877_vm9 = vweird.f32 %v3902_v42  ;;  %v3340_v24 = vld [vmem:[#allocation4 + $0x50] sm:$0xff] }
 0x21a   :  { %v853_v46 = vsub.f32 1.0, %v852_v43  ;;  %vm878_vm11 = vmor %vm876_vm10, %vm877_vm9  ;;  %1323 = vmatpush.bf16.msrb.mxu3 %v3340_v24 }
 0x21b   :  { %v873_v49 = vsub.f32 1.0, %v872_v40  ;;  %v3491_v55 = vpop.eup %3490 }
 0x21c   :  { %v854_v53 = vmul.f32 %v3487_v38, %v853_v46  ;;  %v1011_v57 = vadd.f32 1.0, %v3491_v55 }
 0x21d   :  { %v874_v56 = vmul.f32 %v3902_v42, %v873_v49 }
 0x21e   :  { %v855_v5 = vadd.f32 %v3487_v38, %v854_v53  ;;  %v3493_v58 = vpop.eup %3492  ;;  %3494 = vrcp.f32 %v1011_v57  ;;  %v1021_v22 = vand.u32 2147483647, %v1011_v57  ;;  %v1023_v23 = vand.u32 2147483648, %v1011_v57 }
 0x21f   :  { %v3910_v63 = vadd.f32 1.0, %v3493_v58  ;;  %v875_v2 = vadd.f32 %v3902_v42, %v874_v56  ;;  %vm1017_vm14 = vweird.f32 %v1011_v57  ;;  %v3414_v58 = vld [vmem:[%s4382_s3 + $0x1] ss:$0 sm:$0xff] }
 0x220   :  { %v859_v62 = vsel %vm858_vm7, %v3487_v38, %v855_v5  ;;  %v1024_v35 = vor.u32 1.1754944e-38, %v1023_v23  ;;  %vm1022_vm2 = vcmp.eq.f32.partialorder %v1021_v22, 8.507059e+37 }
 0x221   :  { %v864_v1 = vsel %vm861_vm8, %v863_v60, %v859_v62  ;;  %3496 = vrcp.f32 %v3910_v63  ;;  %v879_v15 = vsel %vm878_vm11, %v3902_v42, %v875_v2  ;;  %vm1037_vm4 = vweird.f32 %v3910_v63  ;;  %v2941_v62 = vld [vmem:[%s4379_s0 + $0x58] sm:$0xff] }
 0x222   :  { %v886_v3 = vmul.f32 %v864_v1, %v843_v59  ;;  %v884_v20 = vsel %vm881_vm12, %v883_v17, %v879_v15  ;;  %v1041_v44 = vand.u32 2147483647, %v3910_v63  ;;  %v2940_v59 = vld [vmem:[%s4379_s0 + $0x18] sm:$0xff] }
 0x223   :  { %v889_v25 = vsub.f32 1.0, %v884_v20  ;;  %v891_v32 = vmul.f32 %v884_v20, %v3854_v61  ;;  %v1043_v61 = vand.u32 2147483648, %v3910_v63 }
 0x224   :  { %v887_v12 = vadd.f32 %v2871_v0, %v886_v3  ;;  %v3495_v16 = vpop.eup %3494  ;;  %vm1042_vm6 = vcmp.eq.f32.partialorder %v1041_v44, 8.507059e+37  ;;  %v3344_v44 = vld [vmem:[#allocation4 + $0x10] sm:$0xff] }
 0x225   :  { %v1013_v18 = vmul.f32 %v3495_v16, %v1011_v57  ;;  %vm1018_vm13 = vweird.f32 %v3495_v16  ;;  %v1044_v46 = vor.u32 1.1754944e-38, %v1043_v61  ;;  %v3413_v57 = vld [vmem:[%s4382_s3] ss:$0 sm:$0xff] }
 0x226   :  { %3498 = vtanh.f32 %v887_v12  ;;  %vm1019_vm15 = vmor %vm1017_vm14, %vm1018_vm13 }
 0x227   :  { %v3497_v19 = vpop.eup %3496  ;;  %v1014_v21 = vsub.f32 1.0, %v1013_v18 }
 0x228   :  { %v1033_v10 = vmul.f32 %v3497_v19, %v3910_v63  ;;  %vm1038_vm3 = vweird.f32 %v3497_v19 }
 0x229   :  { %v1015_v28 = vmul.f32 %v3495_v16, %v1014_v21  ;;  %vm1039_vm5 = vmor %vm1037_vm4, %vm1038_vm3 }
 0x22a   :  { %v1034_v26 = vsub.f32 1.0, %v1033_v10  ;;  %v3416_v10 = vld [vmem:[%s4382_s3 + $0x4] ss:$0 sm:$0xff] }
 0x22b   :  { %v1016_v34 = vadd.f32 %v3495_v16, %v1015_v28 }
 0x22c   :  { %v3499_v30 = vpop.eup %3498  ;;  %v1035_v33 = vmul.f32 %v3497_v19, %v1034_v26 }
 0x22d   :  { %v890_v31 = vmul.f32 %v3499_v30, %v889_v25  ;;  %v1020_v38 = vsel %vm1019_vm15, %v3495_v16, %v1016_v34  ;;  %v2976_v25 = vld [vmem:[%s4380_s1 + $0x120] sm:$0xff] }
 0x22e   :  { %v1025_v41 = vsel %vm1022_vm2, %v1024_v35, %v1020_v38  ;;  %v1036_v42 = vadd.f32 %v3497_v19, %v1035_v33  ;;  %v3347_v33 = vld [vmem:[#allocation4 + $0x28] sm:$0xff] }
 0x22f   :  { %v892_v36 = vadd.f32 %v891_v32, %v890_v31  ;;  %v1047_v40 = vmul.f32 %v1025_v41, %v1004_v37  ;;  %v3343_v31 = vld [vmem:[#allocation4 + $0x8] sm:$0xff]  ;;  %v3345_v32 = vld [vmem:[#allocation4 + $0x18] sm:$0xff] }
 0x230   :  { %v1040_v45 = vsel %vm1039_vm5, %v3497_v19, %v1036_v42  ;;  %1417 = vmatpush.bf16.msra.mxu0 %v3343_v31  ;;  %1450 = vmatpush.bf16.msra.mxu1 %v3345_v32  ;;  %v2977_v31 = vld [vmem:[%s4380_s1 + $0x160] sm:$0xff] }
 0x231   :  { %893 = vst.msk [vmem:[#allocation2] sm:$0xff] %vm79_vm0, %v892_v36  ;;  %v894_v43 = vpack.c.bf16 %v892_v36, %v892_v36  ;;  %v1048_v29 = vadd.f32 %v2906_v39, %v1047_v40  ;;  %v1045_v47 = vsel %vm1042_vm6, %v1044_v46, %v1040_v45  ;;  %v3342_v40 = vld [vmem:[#allocation4] sm:$0xff]  ;;  %v3412_v45 = vld [vmem:[%s4382_s3 + $0x2] ss:$0 sm:$0xff] }
 0x232   :  { %v1050_v50 = vsub.f32 1.0, %v1045_v47  ;;  %v1052_v53 = vmul.f32 %v1045_v47, %v3866_v8 }
 0x233   :  { %2903 = vst.msk [vmem:[%s4383_s4 + $0x8] sm:$0xf] %vm245_vm1, %v894_v43  ;;  %3500 = vtanh.f32 %v1048_v29  ;;  %v3346_v29 = vld [vmem:[#allocation4 + $0x20] sm:$0xff] }
 0x234   :  { %1418 = vmatpush.bf16.msra.mxu0 %v3342_v40  ;;  %1451 = vmatpush.bf16.msra.mxu1 %v3344_v44 }
 0x238   :  { %v3939_v48 = vld [vmem:[#allocation2] sm:$0xff] }
 0x239   :  { %v1065_v49 = vpack.c.bf16 %v3939_v48, %v3939_v48  ;;  %v3501_v51 = vpop.eup %3500 }
 0x23a   :  { %v1051_v52 = vmul.f32 %v3501_v51, %v1050_v50  ;;  %v3349_v51 = vld [vmem:[#allocation4 + $0x38] sm:$0xff] }
 0x23b   :  { %2951 = vmatmul.msk.bf16.vlgmr.msra.gmra.mxu2 %vm79_vm0, %v1065_v49  ;;  %2961 = vmatmul.msk.bf16.vlgmr.msra.gmra.mxu3 %vm79_vm0, %v1065_v49 }
 0x23c   :  { %2971 = vmatmul.msk.bf16.vlgmr.msrb.gmra.mxu0 %vm79_vm0, %v1065_v49  ;;  %v1053_v54 = vadd.f32 %v1052_v53, %v1051_v52  ;;  %1483 = vmatpush.bf16.msra.mxu2 %v3347_v33  ;;  %v3351_v52 = vld [vmem:[#allocation4 + $0x48] sm:$0xff] }
 0x23d   :  { %1578 = vmatpush.bf16.msra.mxu3 %v3349_v51  ;;  %1611 = vmatpush.bf16.msrb.mxu0 %v3351_v52  ;;  %v3419_v51 = vld [vmem:[%s4382_s3 + $0x1] ss:$0 sm:$0xff] }
 0x23e   :  { %1054 = vst.msk [vmem:[#allocation3] sm:$0xff] %vm79_vm0, %v1053_v54  ;;  %v1055_v55 = vpack.c.bf16 %v1053_v54, %v1053_v54  ;;  %v3011_v52 = vld [vmem:[%s4379_s0 + $0x20] sm:$0xff] }
 0x240   :  { %2939 = vst.msk [vmem:[%s4384_s5 + $0x14] sm:$0xf] %vm245_vm1, %v1055_v55  ;;  %1484 = vmatpush.bf16.msra.mxu2 %v3346_v29 }
 0x245   :  { %v3952_v56 = vld [vmem:[#allocation3] sm:$0xff] }
 0x246   :  { %v1226_v5 = vpack.c.bf16 %v3952_v56, %v3952_v56 }
 0x248   :  { %2987 = vmatmul.msk.bf16.vlgmr.msrb.gmra.mxu1 %vm79_vm0, %v1226_v5 }
 0x24b   :  { %2997 = vmatmul.msk.bf16.vlgmr.msrb.gmra.mxu2 %vm79_vm0, %v1226_v5  ;;  %3007 = vmatmul.msk.bf16.vlgmr.msrb.gmra.mxu3 %vm79_vm0, %v1226_v5 }
 0x2b9   :  { %v3959_v8 = vpop.f32.mrf.mxu0 }
 0x2ba   :  { %v1165_v55 = vadd.f32 %v3412_v45, %v3959_v8 }
 0x2be   :  { %v1098_v60 = vpop.f32.mrf.mxu2  ;;  %v1131_v63 = vpop.f32.mrf.mxu3 }
 0x2bf   :  { %v1099_v0 = vadd.f32 %v3413_v57, %v1098_v60  ;;  %v1132_v1 = vadd.f32 %v3414_v58, %v1131_v63  ;;  %v3348_v58 = vld [vmem:[#allocation4 + $0x30] sm:$0xff] }
 0x2c0   :  { %1579 = vmatpush.bf16.msra.mxu3 %v3348_v58 }
 0x2c1   :  { %v1168_v2 = vadd.f32 %v2940_v59, %v1099_v0  ;;  %v1188_v7 = vadd.f32 %v2941_v62, %v1132_v1  ;;  %v1166_v3 = vpop.f32.mrf.mxu0  ;;  %v2942_v59 = vld [vmem:[%s4379_s0 + $0x98] sm:$0xff] }
 0x2c2   :  { %v3421_v3 = vld [vmem:[%s4382_s3 + $0x3] ss:$0 sm:$0xff] }
 0x2c3   :  { %v2972_v4 = vmul.f32 -1.442695, %v1168_v2  ;;  %v2973_v6 = vmul.f32 -1.442695, %v1188_v7 }
 0x2c5   :  { %3502 = vpow2.f32 %v2972_v4  ;;  %v1259_v14 = vpop.f32.mrf.mxu1 }
 0x2c6   :  { %3504 = vpow2.f32 %v2973_v6  ;;  %v1100_v11 = vpop.f32.mrf.mxu2  ;;  %v1133_v12 = vpop.f32.mrf.mxu3  ;;  %v1260_v15 = vadd.f32 %v3415_v9, %v1259_v14  ;;  %v3350_v14 = vld [vmem:[#allocation4 + $0x40] sm:$0xff] }
 0x2c7   :  { %v3417_v11 = vld [vmem:[%s4382_s3 + $0x5] ss:$0 sm:$0xff]  ;;  %1612 = vmatpush.bf16.msrb.mxu0 %v3350_v14 }
 0x2c8   :  { %v1329_v16 = vadd.f32 %v2975_v13, %v1260_v15  ;;  %v3353_v13 = vld [vmem:[#allocation4 + $0x58] sm:$0xff] }
 0x2c9   :  { %1644 = vmatpush.bf16.msrb.mxu1 %v3353_v13  ;;  %v3046_v13 = vld [vmem:[%s4380_s1 + $0xd8] sm:$0xff] }
 0x2ca   :  { %v3008_v20 = vmul.f32 -1.442695, %v1329_v16 }
 0x2cb   :  { %v3503_v17 = vpop.eup %3502 }
 0x2cc   :  { %v3505_v18 = vpop.eup %3504  ;;  %v1172_v19 = vadd.f32 1.0, %v3503_v17 }
 0x2cd   :  { %v3982_v21 = vadd.f32 1.0, %v3505_v18  ;;  %v1261_v24 = vpop.f32.mrf.mxu1 }
 0x2ce   :  { %3506 = vrcp.f32 %v1172_v19  ;;  %v1292_v22 = vpop.f32.mrf.mxu2  ;;  %v3984_v23 = vpop.f32.mrf.mxu3  ;;  %v1184_v43 = vand.u32 2147483648, %v1172_v19  ;;  %v1182_v47 = vand.u32 2147483647, %v1172_v19  ;;  %vm1178_vm8 = vweird.f32 %v1172_v19 }
 0x2cf   :  { %3508 = vrcp.f32 %v3982_v21  ;;  %v1293_v26 = vadd.f32 %v3416_v10, %v1292_v22  ;;  %v1204_v8 = vand.u32 2147483648, %v3982_v21  ;;  %vm1198_vm12 = vweird.f32 %v3982_v21 }
 0x2d0   :  { %3510 = vpow2.f32 %v3008_v20  ;;  %v1185_v54 = vor.u32 1.1754944e-38, %v1184_v43  ;;  %vm1183_vm10 = vcmp.eq.f32.partialorder %v1182_v47, 8.507059e+37  ;;  %v1202_v1 = vand.u32 2147483647, %v3982_v21 }
 0x2d1   :  { %v1349_v27 = vadd.f32 %v2976_v25, %v1293_v26  ;;  %v1205_v9 = vor.u32 1.1754944e-38, %v1204_v8 }
 0x2d2   :  { %vm1203_vm14 = vcmp.eq.f32.partialorder %v1202_v1, 8.507059e+37 }
 0x2d3   :  { %v3009_v30 = vmul.f32 -1.442695, %v1349_v27 }
 0x2d4   :  { %v3507_v28 = vpop.eup %3506 }
 0x2d5   :  { %v3990_v34 = vpop.eup %3508  ;;  %v1174_v35 = vmul.f32 %v3507_v28, %v1172_v19  ;;  %3512 = vpow2.f32 %v3009_v30  ;;  %vm1179_vm7 = vweird.f32 %v3507_v28  ;;  %v3352_v19 = vld [vmem:[#allocation4 + $0x50] sm:$0xff] }
 0x2d6   :  { %v3511_v36 = vpop.eup %3510  ;;  %v1194_v37 = vmul.f32 %v3990_v34, %v3982_v21  ;;  %v1294_v38 = vpop.f32.mrf.mxu2  ;;  %vm1180_vm9 = vmor %vm1178_vm8, %vm1179_vm7  ;;  %vm1199_vm11 = vweird.f32 %v3990_v34  ;;  %v1326_v21 = vadd.f32 %v3417_v11, %v3984_v23  ;;  %1645 = vmatpush.bf16.msrb.mxu1 %v3352_v19 }
 0x2d7   :  { %v1327_v39 = vpop.f32.mrf.mxu3  ;;  %v1175_v41 = vsub.f32 1.0, %v1174_v35  ;;  %v3994_v42 = vadd.f32 1.0, %v3511_v36  ;;  %vm4014_vm13 = vmor %vm1198_vm12, %vm1199_vm11 }
 0x2d8   :  { %v1195_v61 = vsub.f32 1.0, %v1194_v37 }
 0x2d9   :  { %v1176_v46 = vmul.f32 %v3507_v28, %v1175_v41  ;;  %3514 = vrcp.f32 %v3994_v42  ;;  %v1345_v12 = vand.u32 2147483648, %v3994_v42  ;;  %v1343_v16 = vand.u32 2147483647, %v3994_v42 }
 0x2da   :  { %v1196_v49 = vmul.f32 %v3990_v34, %v1195_v61  ;;  %vm1339_vm2 = vweird.f32 %v3994_v42 }
 0x2db   :  { %v1177_v50 = vadd.f32 %v3507_v28, %v1176_v46  ;;  %v3513_v53 = vpop.eup %3512  ;;  %v1346_v22 = vor.u32 1.1754944e-38, %v1345_v12  ;;  %vm1344_vm4 = vcmp.eq.f32.partialorder %v1343_v16, 8.507059e+37 }
 0x2dc   :  { %v4002_v57 = vadd.f32 1.0, %v3513_v53  ;;  %v1197_v62 = vadd.f32 %v3990_v34, %v1196_v49 }
 0x2dd   :  { %v1181_v5 = vsel %vm1180_vm9, %v3507_v28, %v1177_v50  ;;  %v3418_v50 = vld [vmem:[%s4382_s3] ss:$0 sm:$0xff] }
 0x2de   :  { %v1186_v60 = vsel %vm1183_vm10, %v1185_v54, %v1181_v5  ;;  %3516 = vrcp.f32 %v4002_v57  ;;  %v1201_v4 = vsel %vm4014_vm13, %v3990_v34, %v1197_v62  ;;  %v1365_v30 = vand.u32 2147483648, %v4002_v57  ;;  %v3012_v54 = vld [vmem:[%s4379_s0 + $0x60] sm:$0xff] }
 0x2df   :  { %v3515_v63 = vpop.eup %3514  ;;  %v1208_v0 = vmul.f32 %v1186_v60, %v1165_v55  ;;  %v1206_v18 = vsel %vm1203_vm14, %v1205_v9, %v1201_v4  ;;  %v1363_v33 = vand.u32 2147483647, %v4002_v57  ;;  %vm1359_vm6 = vweird.f32 %v4002_v57  ;;  %v3422_v4 = vld [vmem:[%s4382_s3 + $0x4] ss:$0 sm:$0xff] }
 0x2e0   :  { %v1335_v2 = vmul.f32 %v3515_v63, %v3994_v42  ;;  %vm1340_vm15 = vweird.f32 %v3515_v63  ;;  %v1211_v24 = vsub.f32 1.0, %v1206_v18  ;;  %v1213_v28 = vmul.f32 %v1206_v18, %v3939_v48 }
 0x2e1   :  { %v1209_v7 = vadd.f32 %v2942_v59, %v1208_v0  ;;  %vm1341_vm3 = vmor %vm1339_vm2, %vm1340_vm15  ;;  %v1366_v48 = vor.u32 1.1754944e-38, %v1365_v30  ;;  %vm1364_vm8 = vcmp.eq.f32.partialorder %v1363_v33, 8.507059e+37 }
 0x2e2   :  { %v1336_v6 = vsub.f32 1.0, %v1335_v2 }
 0x2e3   :  { %3518 = vtanh.f32 %v1209_v7 }
 0x2e4   :  { %v1337_v15 = vmul.f32 %v3515_v63, %v1336_v6  ;;  %v3517_v17 = vpop.eup %3516 }
 0x2e5   :  { %v1355_v20 = vmul.f32 %v3517_v17, %v4002_v57  ;;  %vm1360_vm5 = vweird.f32 %v3517_v17 }
 0x2e6   :  { %v1338_v10 = vadd.f32 %v3515_v63, %v1337_v15  ;;  %vm1361_vm7 = vmor %vm1359_vm6, %vm1360_vm5  ;;  %v3047_v15 = vld [vmem:[%s4380_s1 + $0x118] sm:$0xff] }
 0x2e7   :  { %v1356_v25 = vsub.f32 1.0, %v1355_v20 }
 0x2e8   :  { %v1342_v26 = vsel %vm1341_vm3, %v3515_v63, %v1338_v10 }
 0x2e9   :  { %v3519_v27 = vpop.eup %3518  ;;  %v1347_v32 = vsel %vm1344_vm4, %v1346_v22, %v1342_v26  ;;  %v1357_v34 = vmul.f32 %v3517_v17, %v1356_v25  ;;  %v3355_v25 = vld [vmem:[#allocation4 + $0x8] sm:$0xff]  ;;  %v3357_v26 = vld [vmem:[#allocation4 + $0x18] sm:$0xff] }
 0x2ea   :  { %v1212_v23 = vmul.f32 %v3519_v27, %v1211_v24  ;;  %v1369_v35 = vmul.f32 %v1347_v32, %v1326_v21  ;;  %v3359_v27 = vld [vmem:[#allocation4 + $0x28] sm:$0xff]  ;;  %1739 = vmatpush.bf16.msrb.mxu2 %v3355_v25  ;;  %1772 = vmatpush.bf16.msrb.mxu3 %v3357_v26 }
 0x2eb   :  { %v1358_v37 = vadd.f32 %v3517_v17, %v1357_v34  ;;  %v3420_v34 = vld [vmem:[%s4382_s3 + $0x2] ss:$0 sm:$0xff]  ;;  %v3048_v26 = vld [vmem:[%s4380_s1 + $0x158] sm:$0xff] }
 0x2ec   :  { %v1214_v36 = vadd.f32 %v1213_v28, %v1212_v23  ;;  %v1370_v38 = vadd.f32 %v2977_v31, %v1369_v35 }
 0x2ed   :  { %v1362_v41 = vsel %vm1361_vm7, %v3517_v17, %v1358_v37 }
 0x2ee   :  { %1215 = vst.msk [vmem:[#allocation2] sm:$0xff] %vm79_vm0, %v1214_v36  ;;  %v1216_v39 = vpack.c.bf16 %v1214_v36, %v1214_v36  ;;  %3520 = vtanh.f32 %v1370_v38  ;;  %v1367_v42 = vsel %vm1364_vm8, %v1366_v48, %v1362_v41  ;;  %v3354_v38 = vld [vmem:[#allocation4] sm:$0xff]  ;;  %v3356_v48 = vld [vmem:[#allocation4 + $0x10] sm:$0xff] }
 0x2ef   :  { %v1372_v43 = vsub.f32 1.0, %v1367_v42  ;;  %v1374_v44 = vmul.f32 %v1367_v42, %v3952_v56  ;;  %1740 = vmatpush.bf16.msrb.mxu2 %v3354_v38  ;;  %1773 = vmatpush.bf16.msrb.mxu3 %v3356_v48 }
 0x2f0   :  { %2974 = vst.msk [vmem:[%s4383_s4 + $0xc] sm:$0xf] %vm245_vm1, %v1216_v39  ;;  %v3358_v39 = vld [vmem:[#allocation4 + $0x20] sm:$0xff] }
 0x2f4   :  { %v3521_v61 = vpop.eup %3520 }
 0x2f5   :  { %v1373_v40 = vmul.f32 %v3521_v61, %v1372_v43  ;;  %v4042_v29 = vld [vmem:[#allocation2] sm:$0xff] }
 0x2f6   :  { %v1387_v45 = vpack.c.bf16 %v4042_v29, %v4042_v29 }
 0x2f7   :  { %v1375_v46 = vadd.f32 %v1374_v44, %v1373_v40 }
 0x2f8   :  { %3022 = vmatmul.msk.bf16.vlgmr.msra.gmra.mxu0 %vm79_vm0, %v1387_v45  ;;  %3032 = vmatmul.msk.bf16.vlgmr.msra.gmra.mxu1 %vm79_vm0, %v1387_v45 }
 0x2f9   :  { %1376 = vst.msk [vmem:[#allocation3] sm:$0xff] %vm79_vm0, %v1375_v46  ;;  %v1377_v47 = vpack.c.bf16 %v1375_v46, %v1375_v46  ;;  %3042 = vmatmul.msk.bf16.vlgmr.msra.gmra.mxu2 %vm79_vm0, %v1387_v45  ;;  %1805 = vmatpush.bf16.msra.mxu0 %v3359_v27 }
 0x2fb   :  { %3010 = vst.msk [vmem:[%s4384_s5 + $0x10] sm:$0xf] %vm245_vm1, %v1377_v47  ;;  %v3013_v47 = vld [vmem:[%s4379_s0 + $0xa0] sm:$0xff] }
 0x2fd   :  { %1806 = vmatpush.bf16.msra.mxu0 %v3358_v39 }
 0x300   :  { %v4054_v56 = vld [vmem:[#allocation3] sm:$0xff] }
 0x301   :  { %v1548_v49 = vpack.c.bf16 %v4054_v56, %v4054_v56 }
 0x303   :  { %3058 = vmatmul.msk.bf16.vlgmr.msra.gmra.mxu3 %vm79_vm0, %v1548_v49 }
 0x308   :  { %3068 = vmatmul.msk.bf16.vlgmr.msrb.gmra.mxu0 %vm79_vm0, %v1548_v49  ;;  %3078 = vmatmul.msk.bf16.vlgmr.msrb.gmra.mxu1 %vm79_vm0, %v1548_v49 }
 0x375   :  { %v1420_v53 = vpop.f32.mrf.mxu0  ;;  %v1453_v55 = vpop.f32.mrf.mxu1 }
 0x376   :  { %v1421_v5 = vadd.f32 %v3418_v50, %v1420_v53  ;;  %v1454_v57 = vadd.f32 %v3419_v51, %v1453_v55 }
 0x378   :  { %v1490_v58 = vadd.f32 %v3011_v52, %v1421_v5  ;;  %v1510_v59 = vadd.f32 %v3012_v54, %v1454_v57  ;;  %v3361_v57 = vld [vmem:[#allocation4 + $0x38] sm:$0xff] }
 0x379   :  { %1900 = vmatpush.bf16.msra.mxu1 %v3361_v57  ;;  %v3427_v57 = vld [vmem:[%s4382_s3 + $0x3] ss:$0 sm:$0xff] }
 0x37a   :  { %v3043_v60 = vmul.f32 -1.442695, %v1490_v58  ;;  %v3044_v62 = vmul.f32 -1.442695, %v1510_v59  ;;  %v3363_v58 = vld [vmem:[#allocation4 + $0x48] sm:$0xff] }
 0x37b   :  { %1933 = vmatpush.bf16.msra.mxu2 %v3363_v58 }
 0x37c   :  { %3522 = vpow2.f32 %v3043_v60  ;;  %v1486_v63 = vpop.f32.mrf.mxu2  ;;  %v3365_v60 = vld [vmem:[#allocation4 + $0x58] sm:$0xff] }
 0x37d   :  { %3524 = vpow2.f32 %v3044_v62  ;;  %v1422_v0 = vpop.f32.mrf.mxu0  ;;  %v1455_v8 = vpop.f32.mrf.mxu1  ;;  %v1487_v44 = vadd.f32 %v3420_v34, %v1486_v63  ;;  %v3360_v63 = vld [vmem:[#allocation4 + $0x30] sm:$0xff]  ;;  %1966 = vmatpush.bf16.msra.mxu3 %v3365_v60  ;;  %v3117_v60 = vld [vmem:[%s4380_s1 + $0xd0] sm:$0xff] }
 0x37e   :  { %v3362_v0 = vld [vmem:[#allocation4 + $0x40] sm:$0xff]  ;;  %1901 = vmatpush.bf16.msra.mxu1 %v3360_v63 }
 0x37f   :  { %1934 = vmatpush.bf16.msra.mxu2 %v3362_v0 }
 0x382   :  { %v3523_v1 = vpop.eup %3522 }
 0x383   :  { %v3525_v2 = vpop.eup %3524  ;;  %v1494_v7 = vadd.f32 1.0, %v3523_v1 }
 0x384   :  { %v4079_v6 = vadd.f32 1.0, %v3525_v2  ;;  %v1488_v9 = vpop.f32.mrf.mxu2 }
 0x385   :  { %3526 = vrcp.f32 %v1494_v7  ;;  %v1614_v11 = vpop.f32.mrf.mxu0  ;;  %v4081_v12 = vpop.f32.mrf.mxu1  ;;  %v1506_v35 = vand.u32 2147483648, %v1494_v7  ;;  %v1504_v37 = vand.u32 2147483647, %v1494_v7  ;;  %vm1500_vm10 = vweird.f32 %v1494_v7 }
 0x386   :  { %3528 = vrcp.f32 %v4079_v6  ;;  %v1581_v14 = vpop.f32.mrf.mxu3  ;;  %v1615_v17 = vadd.f32 %v3422_v4, %v1614_v11  ;;  %v1526_v52 = vand.u32 2147483648, %v4079_v6  ;;  %vm1520_vm14 = vweird.f32 %v4079_v6 }
 0x387   :  { %v1582_v16 = vadd.f32 %v3421_v3, %v1581_v14  ;;  %v1507_v61 = vor.u32 1.1754944e-38, %v1506_v35  ;;  %vm1505_vm12 = vcmp.eq.f32.partialorder %v1504_v37, 8.507059e+37  ;;  %v1524_v54 = vand.u32 2147483647, %v4079_v6 }
 0x388   :  { %v1671_v19 = vadd.f32 %v3047_v15, %v1615_v17  ;;  %v1527_v62 = vor.u32 1.1754944e-38, %v1526_v52  ;;  %v3364_v15 = vld [vmem:[#allocation4 + $0x50] sm:$0xff] }
 0x389   :  { %v1651_v18 = vadd.f32 %v3046_v13, %v1582_v16  ;;  %vm1525_vm2 = vcmp.eq.f32.partialorder %v1524_v54, 8.507059e+37  ;;  %v3423_v17 = vld [vmem:[%s4382_s3 + $0x5] ss:$0 sm:$0xff]  ;;  %1967 = vmatpush.bf16.msra.mxu3 %v3364_v15 }
 0x38a   :  { %v3080_v21 = vmul.f32 -1.442695, %v1671_v19 }
 0x38b   :  { %v3527_v20 = vpop.eup %3526  ;;  %v3079_v10 = vmul.f32 -1.442695, %v1651_v18 }
 0x38c   :  { %v4090_v22 = vpop.eup %3528  ;;  %v1496_v24 = vmul.f32 %v3527_v20, %v1494_v7  ;;  %vm1501_vm9 = vweird.f32 %v3527_v20 }
 0x38d   :  { %v1516_v28 = vmul.f32 %v4090_v22, %v4079_v6  ;;  %3530 = vpow2.f32 %v3079_v10  ;;  %v1616_v30 = vpop.f32.mrf.mxu0  ;;  %v1649_v31 = vpop.f32.mrf.mxu1  ;;  %vm1502_vm11 = vmor %vm1500_vm10, %vm1501_vm9  ;;  %vm1521_vm13 = vweird.f32 %v4090_v22 }
 0x38e   :  { %v1497_v32 = vsub.f32 1.0, %v1496_v24  ;;  %3532 = vpow2.f32 %v3080_v21  ;;  %v1583_v33 = vpop.f32.mrf.mxu3  ;;  %vm4109_vm15 = vmor %vm1520_vm14, %vm1521_vm13  ;;  %v1648_v24 = vadd.f32 %v3423_v17, %v4081_v12 }
 0x38f   :  { %v1517_v23 = vsub.f32 1.0, %v1516_v28 }
 0x390   :  { %v1498_v36 = vmul.f32 %v3527_v20, %v1497_v32 }
 0x391   :  { %v1518_v41 = vmul.f32 %v4090_v22, %v1517_v23 }
 0x392   :  { %v1499_v42 = vadd.f32 %v3527_v20, %v1498_v36 }
 0x393   :  { %v3531_v43 = vpop.eup %3530  ;;  %v1519_v50 = vadd.f32 %v4090_v22, %v1518_v41 }
 0x394   :  { %v3533_v40 = vpop.eup %3532  ;;  %v1503_v45 = vsel %vm1502_vm11, %v3527_v20, %v1499_v42  ;;  %v1655_v46 = vadd.f32 1.0, %v3531_v43 }
 0x395   :  { %v1508_v49 = vsel %vm1505_vm12, %v1507_v61, %v1503_v45  ;;  %v4103_v51 = vadd.f32 1.0, %v3533_v40  ;;  %v1523_v59 = vsel %vm4109_vm15, %v4090_v22, %v1519_v50  ;;  %v3425_v40 = vld [vmem:[%s4382_s3] ss:$0 sm:$0xff]  ;;  %v3082_v45 = vld [vmem:[%s4379_s0 + $0x28] sm:$0xff] }
 0x396   :  { %v1530_v53 = vmul.f32 %v1508_v49, %v1487_v44  ;;  %3534 = vrcp.f32 %v1655_v46  ;;  %v1528_v1 = vsel %vm1525_vm2, %v1527_v62, %v1523_v59  ;;  %v1667_v14 = vand.u32 2147483648, %v1655_v46  ;;  %v3426_v44 = vld [vmem:[%s4382_s3 + $0x1] ss:$0 sm:$0xff] }
 0x397   :  { %3536 = vrcp.f32 %v4103_v51  ;;  %v1533_v4 = vsub.f32 1.0, %v1528_v1  ;;  %v1535_v11 = vmul.f32 %v1528_v1, %v4042_v29  ;;  %v1665_v19 = vand.u32 2147483647, %v1655_v46 }
 0x398   :  { %v1531_v5 = vadd.f32 %v3013_v47, %v1530_v53  ;;  %vm1661_vm4 = vweird.f32 %v1655_v46  ;;  %v1668_v22 = vor.u32 1.1754944e-38, %v1667_v14  ;;  %v1687_v30 = vand.u32 2147483648, %v4103_v51  ;;  %v3083_v47 = vld [vmem:[%s4379_s0 + $0x68] sm:$0xff] }
 0x399   :  { %vm1666_vm6 = vcmp.eq.f32.partialorder %v1665_v19, 8.507059e+37  ;;  %vm1681_vm8 = vweird.f32 %v4103_v51  ;;  %v1685_v12 = vand.u32 2147483647, %v4103_v51 }
 0x39a   :  { %3538 = vtanh.f32 %v1531_v5  ;;  %v1688_v23 = vor.u32 1.1754944e-38, %v1687_v30  ;;  %v3424_v30 = vld [vmem:[%s4382_s3 + $0x2] ss:$0 sm:$0xff] }
 0x39b   :  { %vm1686_vm10 = vcmp.eq.f32.partialorder %v1685_v12, 8.507059e+37 }
 0x39c   :  { %v3535_v8 = vpop.eup %3534 }
 0x39d   :  { %v3537_v2 = vpop.eup %3536  ;;  %v1657_v7 = vmul.f32 %v3535_v8, %v1655_v46  ;;  %vm1662_vm3 = vweird.f32 %v3535_v8 }
 0x39e   :  { %v1677_v3 = vmul.f32 %v3537_v2, %v4103_v51  ;;  %vm1663_vm5 = vmor %vm1661_vm4, %vm1662_vm3  ;;  %vm1682_vm7 = vweird.f32 %v3537_v2 }
 0x39f   :  { %v1658_v6 = vsub.f32 1.0, %v1657_v7  ;;  %vm1683_vm9 = vmor %vm1681_vm8, %vm1682_vm7  ;;  %v3428_v7 = vld [vmem:[%s4382_s3 + $0x4] ss:$0 sm:$0xff] }
 0x3a0   :  { %v3539_v9 = vpop.eup %3538  ;;  %v1678_v13 = vsub.f32 1.0, %v1677_v3 }
 0x3a1   :  { %v1534_v16 = vmul.f32 %v3539_v9, %v1533_v4  ;;  %v1659_v18 = vmul.f32 %v3535_v8, %v1658_v6  ;;  %v3118_v4 = vld [vmem:[%s4380_s1 + $0x110] sm:$0xff] }
 0x3a2   :  { %v1679_v20 = vmul.f32 %v3537_v2, %v1678_v13 }
 0x3a3   :  { %v1536_v10 = vadd.f32 %v1535_v11, %v1534_v16  ;;  %v1660_v21 = vadd.f32 %v3535_v8, %v1659_v18 }
 0x3a4   :  { %v1680_v28 = vadd.f32 %v3537_v2, %v1679_v20 }
 0x3a5   :  { %1537 = vst.msk [vmem:[#allocation2] sm:$0xff] %vm79_vm0, %v1536_v10  ;;  %v1538_v29 = vpack.c.bf16 %v1536_v10, %v1536_v10  ;;  %v1664_v25 = vsel %vm1663_vm5, %v3535_v8, %v1660_v21  ;;  %v3367_v10 = vld [vmem:[#allocation4 + $0x8] sm:$0xff]  ;;  %v3369_v21 = vld [vmem:[#allocation4 + $0x18] sm:$0xff] }
 0x3a6   :  { %v1669_v27 = vsel %vm1666_vm6, %v1668_v22, %v1664_v25  ;;  %v1684_v33 = vsel %vm1683_vm9, %v3537_v2, %v1680_v28  ;;  %2061 = vmatpush.bf16.msrb.mxu0 %v3367_v10  ;;  %2094 = vmatpush.bf16.msrb.mxu1 %v3369_v21 }
 0x3a7   :  { %3045 = vst.msk [vmem:[%s4383_s4 + $0x10] sm:$0xf] %vm245_vm1, %v1538_v29  ;;  %v1691_v31 = vmul.f32 %v1669_v27, %v1648_v24  ;;  %v1689_v35 = vsel %vm1686_vm10, %v1688_v23, %v1684_v33  ;;  %v3371_v24 = vld [vmem:[#allocation4 + $0x28] sm:$0xff]  ;;  %v3366_v23 = vld [vmem:[#allocation4] sm:$0xff] }
 0x3a8   :  { %v1694_v37 = vsub.f32 1.0, %v1689_v35  ;;  %v1696_v39 = vmul.f32 %v1689_v35, %v4054_v56  ;;  %v3368_v35 = vld [vmem:[#allocation4 + $0x10] sm:$0xff] }
 0x3a9   :  { %v1692_v32 = vadd.f32 %v3048_v26, %v1691_v31 }
 0x3aa   :  { %2062 = vmatpush.bf16.msrb.mxu0 %v3366_v23  ;;  %2095 = vmatpush.bf16.msrb.mxu1 %v3368_v35 }
 0x3ab   :  { %3540 = vtanh.f32 %v1692_v32 }
 0x3ac   :  { %v4133_v34 = vld [vmem:[#allocation2] sm:$0xff] }
 0x3ad   :  { %v1709_v36 = vpack.c.bf16 %v4133_v34, %v4133_v34 }
 0x3af   :  { %3093 = vmatmul.msk.bf16.vlgmr.msrb.gmra.mxu2 %vm79_vm0, %v1709_v36  ;;  %3103 = vmatmul.msk.bf16.vlgmr.msrb.gmra.mxu3 %vm79_vm0, %v1709_v36 }
 0x3b0   :  { %3113 = vmatmul.msk.bf16.vlgmr.msra.gmra.mxu0 %vm79_vm0, %v1709_v36  ;;  %2127 = vmatpush.bf16.msrb.mxu2 %v3371_v24  ;;  %v3370_v36 = vld [vmem:[#allocation4 + $0x20] sm:$0xff] }
 0x3b1   :  { %v3541_v38 = vpop.eup %3540 }
 0x3b2   :  { %v1695_v48 = vmul.f32 %v3541_v38, %v1694_v37 }
 0x3b4   :  { %v1697_v41 = vadd.f32 %v1696_v39, %v1695_v48  ;;  %2128 = vmatpush.bf16.msrb.mxu2 %v3370_v36  ;;  %v3430_v36 = vld [vmem:[%s4382_s3] ss:$0 sm:$0xff] }
 0x3b6   :  { %1698 = vst.msk [vmem:[#allocation3] sm:$0xff] %vm79_vm0, %v1697_v41  ;;  %v1699_v42 = vpack.c.bf16 %v1697_v41, %v1697_v41 }
 0x3b8   :  { %3081 = vst.msk [vmem:[%s4384_s5 + $0xc] sm:$0xf] %vm245_vm1, %v1699_v42 }
 0x3bd   :  { %v4146_v43 = vld [vmem:[#allocation3] sm:$0xff] }
 0x3be   :  { %v1870_v61 = vpack.c.bf16 %v4146_v43, %v4146_v43 }
 0x3c0   :  { %3129 = vmatmul.msk.bf16.vlgmr.msra.gmra.mxu1 %vm79_vm0, %v1870_v61  ;;  %3139 = vmatmul.msk.bf16.vlgmr.msra.gmra.mxu2 %vm79_vm0, %v1870_v61 }
 0x3c1   :  { %3149 = vmatmul.msk.bf16.vlgmr.msra.gmra.mxu3 %vm79_vm0, %v1870_v61  ;;  %v3373_v61 = vld [vmem:[#allocation4 + $0x38] sm:$0xff] }
 0x3c2   :  { %2222 = vmatpush.bf16.msrb.mxu3 %v3373_v61 }
 0x42d   :  { %v4153_v56 = vpop.f32.mrf.mxu0 }
 0x42e   :  { %v1809_v39 = vadd.f32 %v3424_v30, %v4153_v56  ;;  %v3372_v56 = vld [vmem:[#allocation4 + $0x30] sm:$0xff] }
 0x42f   :  { %2223 = vmatpush.bf16.msrb.mxu3 %v3372_v56 }
 0x432   :  { %v1742_v46 = vpop.f32.mrf.mxu2  ;;  %v1775_v49 = vpop.f32.mrf.mxu3 }
 0x433   :  { %v1743_v50 = vadd.f32 %v3425_v40, %v1742_v46  ;;  %v1776_v51 = vadd.f32 %v3426_v44, %v1775_v49  ;;  %v3375_v40 = vld [vmem:[#allocation4 + $0x48] sm:$0xff]  ;;  %v3084_v44 = vld [vmem:[%s4379_s0 + $0xa8] sm:$0xff] }
 0x434   :  { %2255 = vmatpush.bf16.msra.mxu0 %v3375_v40 }
 0x435   :  { %v1812_v52 = vadd.f32 %v3082_v45, %v1743_v50  ;;  %v1832_v53 = vadd.f32 %v3083_v47, %v1776_v51  ;;  %v1810_v54 = vpop.f32.mrf.mxu0 }
 0x437   :  { %v3114_v55 = vmul.f32 -1.442695, %v1812_v52  ;;  %v3115_v5 = vmul.f32 -1.442695, %v1832_v53 }
 0x439   :  { %3542 = vpow2.f32 %v3114_v55 }
 0x43a   :  { %3544 = vpow2.f32 %v3115_v5  ;;  %v1744_v58 = vpop.f32.mrf.mxu2  ;;  %v1777_v59 = vpop.f32.mrf.mxu3  ;;  %v3429_v5 = vld [vmem:[%s4382_s3 + $0x5] ss:$0 sm:$0xff] }
 0x43d   :  { %v1903_v62 = vpop.f32.mrf.mxu1 }
 0x43e   :  { %v1904_v63 = vadd.f32 %v3427_v57, %v1903_v62 }
 0x43f   :  { %v3543_v0 = vpop.eup %3542 }
 0x440   :  { %v3545_v8 = vpop.eup %3544  ;;  %v1816_v1 = vadd.f32 1.0, %v3543_v0  ;;  %v1973_v2 = vadd.f32 %v3117_v60, %v1904_v63  ;;  %v3377_v63 = vld [vmem:[#allocation4 + $0x58] sm:$0xff]  ;;  %v3374_v0 = vld [vmem:[#allocation4 + $0x40] sm:$0xff] }
 0x441   :  { %v4176_v3 = vadd.f32 1.0, %v3545_v8  ;;  %2288 = vmatpush.bf16.msra.mxu1 %v3377_v63  ;;  %2256 = vmatpush.bf16.msra.mxu0 %v3374_v0 }
 0x442   :  { %3546 = vrcp.f32 %v1816_v1  ;;  %v3150_v9 = vmul.f32 -1.442695, %v1973_v2  ;;  %v1828_v26 = vand.u32 2147483648, %v1816_v1  ;;  %v1826_v12 = vand.u32 2147483647, %v1816_v1 }
 0x443   :  { %3548 = vrcp.f32 %v4176_v3  ;;  %v1936_v6 = vpop.f32.mrf.mxu2  ;;  %vm1822_vm12 = vweird.f32 %v1816_v1  ;;  %v1848_v49 = vand.u32 2147483648, %v4176_v3  ;;  %vm1842_vm2 = vweird.f32 %v4176_v3 }
 0x444   :  { %v1937_v11 = vadd.f32 %v3428_v7, %v1936_v6  ;;  %v4182_v13 = vpop.f32.mrf.mxu3  ;;  %3550 = vpow2.f32 %v3150_v9  ;;  %v1829_v48 = vor.u32 1.1754944e-38, %v1828_v26  ;;  %vm1827_vm14 = vcmp.eq.f32.partialorder %v1826_v12, 8.507059e+37  ;;  %v3376_v7 = vld [vmem:[#allocation4 + $0x50] sm:$0xff] }
 0x445   :  { %v1905_v14 = vpop.f32.mrf.mxu1  ;;  %v1846_v50 = vand.u32 2147483647, %v4176_v3  ;;  %v1849_v55 = vor.u32 1.1754944e-38, %v1848_v49  ;;  %v1970_v2 = vadd.f32 %v3429_v5, %v4182_v13  ;;  %2289 = vmatpush.bf16.msra.mxu1 %v3376_v7  ;;  %v3433_v5 = vld [vmem:[%s4382_s3 + $0x3] ss:$0 sm:$0xff] }
 0x446   :  { %v1993_v15 = vadd.f32 %v3118_v4, %v1937_v11 }
 0x447   :  { %vm1847_vm4 = vcmp.eq.f32.partialorder %v1846_v50, 8.507059e+37 }
 0x448   :  { %v3547_v16 = vpop.eup %3546  ;;  %v3151_v17 = vmul.f32 -1.442695, %v1993_v15 }
 0x449   :  { %v4184_v18 = vpop.eup %3548  ;;  %v1818_v19 = vmul.f32 %v3547_v16, %v1816_v1  ;;  %vm1823_vm11 = vweird.f32 %v3547_v16 }
 0x44a   :  { %v1838_v20 = vmul.f32 %v4184_v18, %v4176_v3  ;;  %3552 = vpow2.f32 %v3151_v17  ;;  %v3551_v25 = vpop.eup %3550  ;;  %vm1824_vm13 = vmor %vm1822_vm12, %vm1823_vm11  ;;  %vm1843_vm15 = vweird.f32 %v4184_v18 }
 0x44b   :  { %v1819_v22 = vsub.f32 1.0, %v1818_v19  ;;  %v1938_v29 = vpop.f32.mrf.mxu2  ;;  %v4191_v32 = vadd.f32 1.0, %v3551_v25  ;;  %vm1844_vm3 = vmor %vm1842_vm2, %vm1843_vm15 }
 0x44c   :  { %v1839_v27 = vsub.f32 1.0, %v1838_v20  ;;  %v1971_v28 = vpop.f32.mrf.mxu3 }
 0x44d   :  { %v1820_v31 = vmul.f32 %v3547_v16, %v1819_v22  ;;  %3554 = vrcp.f32 %v4191_v32  ;;  %v1987_v60 = vand.u32 2147483647, %v4191_v32  ;;  %v1989_v62 = vand.u32 2147483648, %v4191_v32 }
 0x44e   :  { %v1840_v33 = vmul.f32 %v4184_v18, %v1839_v27  ;;  %vm1983_vm6 = vweird.f32 %v4191_v32 }
 0x44f   :  { %v1821_v37 = vadd.f32 %v3547_v16, %v1820_v31  ;;  %vm1988_vm8 = vcmp.eq.f32.partialorder %v1987_v60, 8.507059e+37  ;;  %v1990_v15 = vor.u32 1.1754944e-38, %v1989_v62  ;;  %v3188_v62 = vld [vmem:[%s4380_s1 + $0xc8] sm:$0xff] }
 0x450   :  { %v3553_v38 = vpop.eup %3552  ;;  %v1841_v46 = vadd.f32 %v4184_v18, %v1840_v33 }
 0x451   :  { %v1825_v41 = vsel %vm1824_vm13, %v3547_v16, %v1821_v37  ;;  %v4196_v42 = vadd.f32 1.0, %v3553_v38  ;;  %v3431_v37 = vld [vmem:[%s4382_s3 + $0x1] ss:$0 sm:$0xff]  ;;  %v3153_v38 = vld [vmem:[%s4379_s0 + $0x30] sm:$0xff] }
 0x452   :  { %v1830_v45 = vsel %vm1827_vm14, %v1829_v48, %v1825_v41  ;;  %v1845_v53 = vsel %vm1844_vm3, %v4184_v18, %v1841_v46  ;;  %v3119_v18 = vld [vmem:[%s4380_s1 + $0x150] sm:$0xff] }
 0x453   :  { %v1852_v47 = vmul.f32 %v1830_v45, %v1809_v39  ;;  %3556 = vrcp.f32 %v4196_v42  ;;  %v3555_v51 = vpop.eup %3554  ;;  %v1850_v59 = vsel %vm1847_vm4, %v1849_v55, %v1845_v53  ;;  %v2009_v14 = vand.u32 2147483648, %v4196_v42  ;;  %v3154_v39 = vld [vmem:[%s4379_s0 + $0x70] sm:$0xff]  ;;  %v3434_v53 = vld [vmem:[%s4382_s3 + $0x4] ss:$0 sm:$0xff] }
 0x454   :  { %v1979_v54 = vmul.f32 %v3555_v51, %v4191_v32  ;;  %vm1984_vm5 = vweird.f32 %v3555_v51  ;;  %v1855_v3 = vsub.f32 1.0, %v1850_v59  ;;  %v1857_v11 = vmul.f32 %v1850_v59, %v4133_v34  ;;  %v3189_v59 = vld [vmem:[%s4380_s1 + $0x108] sm:$0xff] }
 0x455   :  { %v1853_v52 = vadd.f32 %v3084_v44, %v1852_v47  ;;  %vm1985_vm7 = vmor %vm1983_vm6, %vm1984_vm5  ;;  %v2007_v20 = vand.u32 2147483647, %v4196_v42  ;;  %vm2003_vm10 = vweird.f32 %v4196_v42  ;;  %v2010_v29 = vor.u32 1.1754944e-38, %v2009_v14 }
 0x456   :  { %v1980_v57 = vsub.f32 1.0, %v1979_v54 }
 0x457   :  { %3558 = vtanh.f32 %v1853_v52  ;;  %vm2008_vm12 = vcmp.eq.f32.partialorder %v2007_v20, 8.507059e+37  ;;  %v3432_v20 = vld [vmem:[%s4382_s3 + $0x2] ss:$0 sm:$0xff] }
 0x458   :  { %v1981_v1 = vmul.f32 %v3555_v51, %v1980_v57 }
 0x459   :  { %v3557_v58 = vpop.eup %3556 }
 0x45a   :  { %v1999_v8 = vmul.f32 %v3557_v58, %v4196_v42  ;;  %v1982_v6 = vadd.f32 %v3555_v51, %v1981_v1  ;;  %vm2004_vm9 = vweird.f32 %v3557_v58 }
 0x45b   :  { %vm2005_vm11 = vmor %vm2003_vm10, %vm2004_vm9 }
 0x45c   :  { %v2000_v4 = vsub.f32 1.0, %v1999_v8  ;;  %v1986_v13 = vsel %vm1985_vm7, %v3555_v51, %v1982_v6 }
 0x45d   :  { %v3559_v9 = vpop.eup %3558  ;;  %v1991_v19 = vsel %vm1988_vm8, %v1990_v15, %v1986_v13  ;;  %v3379_v15 = vld [vmem:[#allocation4 + $0x8] sm:$0xff] }
 0x45e   :  { %v1856_v16 = vmul.f32 %v3559_v9, %v1855_v3  ;;  %v2001_v17 = vmul.f32 %v3557_v58, %v2000_v4  ;;  %v2013_v21 = vmul.f32 %v1991_v19, %v1970_v2  ;;  %v3383_v13 = vld [vmem:[#allocation4 + $0x28] sm:$0xff]  ;;  %2383 = vmatpush.bf16.msra.mxu2 %v3379_v15 }
 0x460   :  { %v1858_v10 = vadd.f32 %v1857_v11, %v1856_v16  ;;  %v2002_v34 = vadd.f32 %v3557_v58, %v2001_v17  ;;  %v2014_v25 = vadd.f32 %v3119_v18, %v2013_v21  ;;  %v3381_v16 = vld [vmem:[#allocation4 + $0x18] sm:$0xff] }
 0x461   :  { %2416 = vmatpush.bf16.msra.mxu3 %v3381_v16 }
 0x462   :  { %1859 = vst.msk [vmem:[#allocation2] sm:$0xff] %vm79_vm0, %v1858_v10  ;;  %v1860_v22 = vpack.c.bf16 %v1858_v10, %v1858_v10  ;;  %v2006_v24 = vsel %vm2005_vm11, %v3557_v58, %v2002_v34  ;;  %3560 = vtanh.f32 %v2014_v25  ;;  %v3382_v25 = vld [vmem:[#allocation4 + $0x20] sm:$0xff] }
 0x463   :  { %v2011_v26 = vsel %vm2008_vm12, %v2010_v29, %v2006_v24  ;;  %v3378_v29 = vld [vmem:[#allocation4] sm:$0xff]  ;;  %v3380_v24 = vld [vmem:[#allocation4 + $0x10] sm:$0xff] }
 0x464   :  { %3116 = vst.msk [vmem:[%s4383_s4 + $0x14] sm:$0xf] %vm245_vm1, %v1860_v22  ;;  %v2016_v27 = vsub.f32 1.0, %v2011_v26  ;;  %v2018_v32 = vmul.f32 %v2011_v26, %v4146_v43  ;;  %2384 = vmatpush.bf16.msra.mxu2 %v3378_v29 }
 0x465   :  { %2417 = vmatpush.bf16.msra.mxu3 %v3380_v24 }
 0x468   :  { %v3561_v30 = vpop.eup %3560 }
 0x469   :  { %v4229_v28 = vld [vmem:[#allocation2] sm:$0xff]  ;;  %v2017_v12 = vmul.f32 %v3561_v30, %v2016_v27 }
 0x46a   :  { %v2031_v31 = vpack.c.bf16 %v4229_v28, %v4229_v28 }
 0x46b   :  { %v2019_v33 = vadd.f32 %v2018_v32, %v2017_v12 }
 0x46c   :  { %3164 = vmatmul.msk.bf16.vlgmr.msrb.gmra.mxu0 %vm79_vm0, %v2031_v31  ;;  %3174 = vmatmul.msk.bf16.vlgmr.msrb.gmra.mxu1 %vm79_vm0, %v2031_v31 }
 0x46d   :  { %3184 = vmatmul.msk.bf16.vlgmr.msrb.gmra.mxu2 %vm79_vm0, %v2031_v31  ;;  %2020 = vst.msk [vmem:[#allocation3] sm:$0xff] %vm79_vm0, %v2019_v33  ;;  %v2021_v23 = vpack.c.bf16 %v2019_v33, %v2019_v33  ;;  %2449 = vmatpush.bf16.msrb.mxu0 %v3383_v13 }
 0x46f   :  { %3152 = vst.msk [vmem:[%s4384_s5 + $0x8] sm:$0xf] %vm245_vm1, %v2021_v23  ;;  %v3155_v23 = vld [vmem:[%s4379_s0 + $0xb0] sm:$0xff] }
 0x471   :  { %2450 = vmatpush.bf16.msrb.mxu0 %v3382_v25 }
 0x474   :  { %v4242_v35 = vld [vmem:[#allocation3] sm:$0xff] }
 0x475   :  { %v2192_v43 = vpack.c.bf16 %v4242_v35, %v4242_v35 }
 0x477   :  { %3200 = vmatmul.msk.bf16.vlgmr.msrb.gmra.mxu3 %vm79_vm0, %v2192_v43 }
 0x47c   :  { %3210 = vmatmul.msk.bf16.vlgmr.msra.gmra.mxu0 %vm79_vm0, %v2192_v43  ;;  %3220 = vmatmul.msk.bf16.vlgmr.msra.gmra.mxu1 %vm79_vm0, %v2192_v43 }
 0x4e9   :  { %v2064_v48 = vpop.f32.mrf.mxu0  ;;  %v2097_v41 = vpop.f32.mrf.mxu1 }
 0x4ea   :  { %v2065_v42 = vadd.f32 %v3430_v36, %v2064_v48  ;;  %v2098_v61 = vadd.f32 %v3431_v37, %v2097_v41 }
 0x4ec   :  { %v2134_v40 = vadd.f32 %v3153_v38, %v2065_v42  ;;  %v2154_v44 = vadd.f32 %v3154_v39, %v2098_v61 }
 0x4ee   :  { %v3185_v45 = vmul.f32 -1.442695, %v2134_v40  ;;  %v3186_v46 = vmul.f32 -1.442695, %v2154_v44  ;;  %v3385_v40 = vld [vmem:[#allocation4 + $0x38] sm:$0xff]  ;;  %v3387_v44 = vld [vmem:[#allocation4 + $0x48] sm:$0xff] }
 0x4ef   :  { %2543 = vmatpush.bf16.msrb.mxu1 %v3385_v40  ;;  %2576 = vmatpush.bf16.msrb.mxu2 %v3387_v44  ;;  %v3439_v40 = vld [vmem:[%s4382_s3 + $0x3] ss:$0 sm:$0xff] }
 0x4f0   :  { %3562 = vpow2.f32 %v3185_v45  ;;  %v2130_v47 = vpop.f32.mrf.mxu2  ;;  %v3389_v45 = vld [vmem:[#allocation4 + $0x58] sm:$0xff] }
 0x4f1   :  { %3564 = vpow2.f32 %v3186_v46  ;;  %v2066_v49 = vpop.f32.mrf.mxu0  ;;  %v2099_v56 = vpop.f32.mrf.mxu1  ;;  %v2131_v31 = vadd.f32 %v3432_v20, %v2130_v47  ;;  %2609 = vmatpush.bf16.msrb.mxu3 %v3389_v45 }
 0x4f2   :  { %v3384_v49 = vld [vmem:[#allocation4 + $0x30] sm:$0xff]  ;;  %v3386_v56 = vld [vmem:[#allocation4 + $0x40] sm:$0xff] }
 0x4f3   :  { %2544 = vmatpush.bf16.msrb.mxu1 %v3384_v49  ;;  %2577 = vmatpush.bf16.msrb.mxu2 %v3386_v56 }
 0x4f6   :  { %v3563_v50 = vpop.eup %3562 }
 0x4f7   :  { %v3565_v51 = vpop.eup %3564  ;;  %v2138_v52 = vadd.f32 1.0, %v3563_v50 }
 0x4f8   :  { %v4264_v54 = vadd.f32 1.0, %v3565_v51  ;;  %v2132_v55 = vpop.f32.mrf.mxu2 }
 0x4f9   :  { %3566 = vrcp.f32 %v2138_v52  ;;  %v2258_v57 = vpop.f32.mrf.mxu0  ;;  %v4269_v58 = vpop.f32.mrf.mxu1  ;;  %v2150_v19 = vand.u32 2147483648, %v2138_v52  ;;  %v2148_v34 = vand.u32 2147483647, %v2138_v52  ;;  %vm2144_vm14 = vweird.f32 %v2138_v52 }
 0x4fa   :  { %3568 = vrcp.f32 %v4264_v54  ;;  %v2259_v60 = vadd.f32 %v3434_v53, %v2258_v57  ;;  %v2225_v63 = vpop.f32.mrf.mxu3  ;;  %v2170_v37 = vand.u32 2147483648, %v4264_v54  ;;  %vm2164_vm4 = vweird.f32 %v4264_v54 }
 0x4fb   :  { %v2226_v0 = vadd.f32 %v3433_v5, %v2225_v63  ;;  %v2151_v30 = vor.u32 1.1754944e-38, %v2150_v19  ;;  %vm2149_vm2 = vcmp.eq.f32.partialorder %v2148_v34, 8.507059e+37  ;;  %v2168_v39 = vand.u32 2147483647, %v4264_v54 }
 0x4fc   :  { %v2315_v8 = vadd.f32 %v3189_v59, %v2259_v60  ;;  %v2171_v61 = vor.u32 1.1754944e-38, %v2170_v37  ;;  %v3388_v60 = vld [vmem:[#allocation4 + $0x50] sm:$0xff] }
 0x4fd   :  { %v2295_v2 = vadd.f32 %v3188_v62, %v2226_v0  ;;  %vm2169_vm6 = vcmp.eq.f32.partialorder %v2168_v39, 8.507059e+37  ;;  %v3435_v0 = vld [vmem:[%s4382_s3 + $0x5] ss:$0 sm:$0xff]  ;;  %2610 = vmatpush.bf16.msrb.mxu3 %v3388_v60 }
 0x4fe   :  { %v3222_v7 = vmul.f32 -1.442695, %v2315_v8 }
 0x4ff   :  { %v3567_v1 = vpop.eup %3566  ;;  %v3221_v9 = vmul.f32 -1.442695, %v2295_v2 }
 0x500   :  { %v3569_v3 = vpop.eup %3568  ;;  %v2140_v4 = vmul.f32 %v3567_v1, %v2138_v52  ;;  %3570 = vpow2.f32 %v3222_v7  ;;  %vm2145_vm13 = vweird.f32 %v3567_v1 }
 0x501   :  { %v2160_v6 = vmul.f32 %v3569_v3, %v4264_v54  ;;  %v2260_v11 = vpop.f32.mrf.mxu0  ;;  %v2293_v14 = vpop.f32.mrf.mxu1  ;;  %3572 = vpow2.f32 %v3221_v9  ;;  %vm2146_vm15 = vmor %vm2144_vm14, %vm2145_vm13  ;;  %vm2165_vm3 = vweird.f32 %v3569_v3  ;;  %v3190_v9 = vld [vmem:[%s4380_s1 + $0x148] sm:$0xff] }
 0x502   :  { %v2141_v17 = vsub.f32 1.0, %v2140_v4  ;;  %v2227_v21 = vpop.f32.mrf.mxu3  ;;  %vm2166_vm5 = vmor %vm2164_vm4, %vm2165_vm3  ;;  %v2292_v4 = vadd.f32 %v3435_v0, %v4269_v58 }
 0x503   :  { %v2161_v18 = vsub.f32 1.0, %v2160_v6 }
 0x504   :  { %v2142_v10 = vmul.f32 %v3567_v1, %v2141_v17 }
 0x505   :  { %v2162_v22 = vmul.f32 %v3569_v3, %v2161_v18 }
 0x506   :  { %v2143_v26 = vadd.f32 %v3567_v1, %v2142_v10  ;;  %v3571_v27 = vpop.eup %3570 }
 0x507   :  { %v4282_v32 = vadd.f32 1.0, %v3571_v27  ;;  %v3573_v33 = vpop.eup %3572  ;;  %v2163_v36 = vadd.f32 %v3569_v3, %v2162_v22 }
 0x508   :  { %v2147_v12 = vsel %vm2146_vm15, %v3567_v1, %v2143_v26  ;;  %v2299_v48 = vadd.f32 1.0, %v3573_v33  ;;  %v3225_v33 = vld [vmem:[%s4379_s0 + $0x78] sm:$0xff] }
 0x509   :  { %v2152_v43 = vsel %vm2149_vm2, %v2151_v30, %v2147_v12  ;;  %3574 = vrcp.f32 %v4282_v32  ;;  %v2167_v42 = vsel %vm2166_vm5, %v3569_v3, %v2163_v36  ;;  %v2331_v15 = vand.u32 2147483648, %v4282_v32  ;;  %v3437_v30 = vld [vmem:[%s4382_s3] ss:$0 sm:$0xff]  ;;  %v3224_v12 = vld [vmem:[%s4379_s0 + $0x38] sm:$0xff] }
 0x50a   :  { %v2174_v38 = vmul.f32 %v2152_v43, %v2131_v31  ;;  %3576 = vrcp.f32 %v2299_v48  ;;  %v2172_v47 = vsel %vm2169_vm6, %v2171_v61, %v2167_v42  ;;  %v2311_v62 = vand.u32 2147483648, %v2299_v48  ;;  %v3438_v31 = vld [vmem:[%s4382_s3 + $0x1] ss:$0 sm:$0xff] }
 0x50b   :  { %v2177_v52 = vsub.f32 1.0, %v2172_v47  ;;  %v2179_v57 = vmul.f32 %v2172_v47, %v4229_v28  ;;  %v2309_v1 = vand.u32 2147483647, %v2299_v48  ;;  %vm2305_vm8 = vweird.f32 %v2299_v48 }
 0x50c   :  { %v2175_v41 = vadd.f32 %v3155_v23, %v2174_v38  ;;  %v2312_v28 = vor.u32 1.1754944e-38, %v2311_v62  ;;  %vm2325_vm12 = vweird.f32 %v4282_v32  ;;  %v2329_v17 = vand.u32 2147483647, %v4282_v32 }
 0x50d   :  { %vm2310_vm10 = vcmp.eq.f32.partialorder %v2309_v1, 8.507059e+37  ;;  %v2332_v19 = vor.u32 1.1754944e-38, %v2331_v15 }
 0x50e   :  { %3578 = vtanh.f32 %v2175_v41  ;;  %vm2330_vm14 = vcmp.eq.f32.partialorder %v2329_v17, 8.507059e+37 }
 0x50f   :  { %v3575_v46 = vpop.eup %3574 }
 0x510   :  { %v2321_v50 = vmul.f32 %v3575_v46, %v4282_v32  ;;  %v3577_v51 = vpop.eup %3576  ;;  %vm2326_vm11 = vweird.f32 %v3575_v46 }
 0x511   :  { %v2301_v53 = vmul.f32 %v3577_v51, %v2299_v48  ;;  %vm2306_vm7 = vweird.f32 %v3577_v51  ;;  %vm2327_vm13 = vmor %vm2325_vm12, %vm2326_vm11 }
 0x512   :  { %v2322_v55 = vsub.f32 1.0, %v2321_v50  ;;  %vm2307_vm9 = vmor %vm2305_vm8, %vm2306_vm7  ;;  %v3259_v50 = vld [vmem:[%s4380_s1 + $0xc0] sm:$0xff] }
 0x513   :  { %v2302_v59 = vsub.f32 1.0, %v2301_v53  ;;  %v3260_v53 = vld [vmem:[%s4380_s1 + $0x100] sm:$0xff] }
 0x514   :  { %v3579_v54 = vpop.eup %3578  ;;  %v2323_v2 = vmul.f32 %v3575_v46, %v2322_v55 }
 0x515   :  { %v2178_v5 = vmul.f32 %v3579_v54, %v2177_v52  ;;  %v2303_v8 = vmul.f32 %v3577_v51, %v2302_v59 }
 0x516   :  { %v2324_v14 = vadd.f32 %v3575_v46, %v2323_v2 }
 0x517   :  { %v2180_v63 = vadd.f32 %v2179_v57, %v2178_v5  ;;  %v2304_v3 = vadd.f32 %v3577_v51, %v2303_v8 }
 0x518   :  { %v2328_v18 = vsel %vm2327_vm13, %v3575_v46, %v2324_v14 }
 0x519   :  { %2181 = vst.msk [vmem:[#allocation2] sm:$0xff] %vm79_vm0, %v2180_v63  ;;  %v2182_v7 = vpack.c.bf16 %v2180_v63, %v2180_v63  ;;  %v2308_v6 = vsel %vm2307_vm9, %v3577_v51, %v2304_v3  ;;  %v2333_v10 = vsel %vm2330_vm14, %v2332_v19, %v2328_v18  ;;  %v3440_v51 = vld [vmem:[%s4382_s3 + $0x4] ss:$0 sm:$0xff] }
 0x51a   :  { %v2313_v11 = vsel %vm2310_vm10, %v2312_v28, %v2308_v6  ;;  %v2338_v34 = vsub.f32 1.0, %v2333_v10  ;;  %v2340_v29 = vmul.f32 %v2333_v10, %v4242_v35  ;;  %v3436_v28 = vld [vmem:[%s4382_s3 + $0x2] ss:$0 sm:$0xff]  ;;  %v3226_v10 = vld [vmem:[%s4379_s0 + $0xb8] sm:$0xff] }
 0x51b   :  { %3187 = vst.msk [vmem:[%s4383_s4 + $0x18] sm:$0xf] %vm245_vm1, %v2182_v7  ;;  %v2335_v16 = vmul.f32 %v2313_v11, %v2292_v4 }
 0x51d   :  { %v2336_v13 = vadd.f32 %v3190_v9, %v2335_v16 }
 0x51f   :  { %3580 = vtanh.f32 %v2336_v13 }
 0x520   :  { %v4308_v58 = vld [vmem:[#allocation2] sm:$0xff] }
 0x521   :  { %v2353_v20 = vpack.c.bf16 %v4308_v58, %v4308_v58 }
 0x523   :  { %3235 = vmatmul.msk.bf16.vlgmr.msra.gmra.mxu2 %vm79_vm0, %v2353_v20  ;;  %3245 = vmatmul.msk.bf16.vlgmr.msra.gmra.mxu3 %vm79_vm0, %v2353_v20 }
 0x524   :  { %3255 = vmatmul.msk.bf16.vlgmr.msrb.gmra.mxu0 %vm79_vm0, %v2353_v20 }
 0x525   :  { %v3581_v21 = vpop.eup %3580 }
 0x526   :  { %v2339_v22 = vmul.f32 %v3581_v21, %v2338_v34 }
 0x528   :  { %v2341_v24 = vadd.f32 %v2340_v29, %v2339_v22 }
 0x52a   :  { %2342 = vst.msk [vmem:[#allocation3] sm:$0xff] %vm79_vm0, %v2341_v24  ;;  %v2343_v25 = vpack.c.bf16 %v2341_v24, %v2341_v24 }
 0x52c   :  { %3223 = vst.msk [vmem:[%s4384_s5 + $0x4] sm:$0xf] %vm245_vm1, %v2343_v25 }
 0x531   :  { %v4321_v26 = vld [vmem:[#allocation3] sm:$0xff] }
 0x532   :  { %v2513_v27 = vpack.c.bf16 %v4321_v26, %v4321_v26 }
 0x534   :  { %3271 = vmatmul.msk.bf16.vlgmr.msrb.gmra.mxu1 %vm79_vm0, %v2513_v27  ;;  %3281 = vmatmul.msk.bf16.vlgmr.msrb.gmra.mxu2 %vm79_vm0, %v2513_v27 }
 0x535   :  { %3291 = vmatmul.msk.bf16.vlgmr.msrb.gmra.mxu3 %vm79_vm0, %v2513_v27 }
 0x5a1   :  { %v2452_v35 = vpop.f32.mrf.mxu0 }
 0x5a2   :  { %v2453_v18 = vadd.f32 %v3436_v28, %v2452_v35 }
 0x5a6   :  { %v2386_v32 = vpop.f32.mrf.mxu2  ;;  %v2419_v23 = vpop.f32.mrf.mxu3 }
 0x5a7   :  { %v2387_v43 = vadd.f32 %v3437_v30, %v2386_v32  ;;  %v2420_v36 = vadd.f32 %v3438_v31, %v2419_v23 }
 0x5a9   :  { %v2456_v37 = vadd.f32 %v3224_v12, %v2387_v43  ;;  %v2476_v38 = vadd.f32 %v3225_v33, %v2420_v36  ;;  %v2454_v48 = vpop.f32.mrf.mxu0  ;;  %v3441_v43 = vld [vmem:[%s4382_s3 + $0x5] ss:$0 sm:$0xff] }
 0x5ab   :  { %v3256_v39 = vmul.f32 -1.442695, %v2456_v37  ;;  %v3257_v41 = vmul.f32 -1.442695, %v2476_v38 }
 0x5ad   :  { %3582 = vpow2.f32 %v3256_v39 }
 0x5ae   :  { %3584 = vpow2.f32 %v3257_v41  ;;  %v2388_v42 = vpop.f32.mrf.mxu2  ;;  %v2421_v61 = vpop.f32.mrf.mxu3 }
 0x5b1   :  { %v2546_v45 = vpop.f32.mrf.mxu1 }
 0x5b2   :  { %v2547_v49 = vadd.f32 %v3439_v40, %v2546_v45 }
 0x5b3   :  { %v3583_v44 = vpop.eup %3582 }
 0x5b4   :  { %v3585_v46 = vpop.eup %3584  ;;  %v2460_v47 = vadd.f32 1.0, %v3583_v44  ;;  %v2616_v52 = vadd.f32 %v3259_v50, %v2547_v49 }
 0x5b5   :  { %v2480_v56 = vadd.f32 1.0, %v3585_v46 }
 0x5b6   :  { %3586 = vrcp.f32 %v2460_v47  ;;  %v3292_v55 = vmul.f32 -1.442695, %v2616_v52  ;;  %v2472_v7 = vand.u32 2147483648, %v2460_v47  ;;  %v2470_v6 = vand.u32 2147483647, %v2460_v47 }
 0x5b7   :  { %3588 = vrcp.f32 %v2480_v56  ;;  %v2579_v54 = vpop.f32.mrf.mxu2  ;;  %vm2466_vm2 = vweird.f32 %v2460_v47  ;;  %v2492_v29 = vand.u32 2147483648, %v2480_v56  ;;  %vm2486_vm6 = vweird.f32 %v2480_v56 }
 0x5b8   :  { %v2580_v5 = vadd.f32 %v3440_v51, %v2579_v54  ;;  %v4352_v57 = vpop.f32.mrf.mxu3  ;;  %3590 = vpow2.f32 %v3292_v55  ;;  %v2473_v13 = vor.u32 1.1754944e-38, %v2472_v7  ;;  %vm2471_vm4 = vcmp.eq.f32.partialorder %v2470_v6, 8.507059e+37  ;;  %v3261_v51 = vld [vmem:[%s4380_s1 + $0x140] sm:$0xff] }
 0x5b9   :  { %v2548_v59 = vpop.f32.mrf.mxu1  ;;  %v2490_v25 = vand.u32 2147483647, %v2480_v56  ;;  %v2493_v31 = vor.u32 1.1754944e-38, %v2492_v29  ;;  %v2613_v46 = vadd.f32 %v3441_v43, %v4352_v57 }
 0x5ba   :  { %v2636_v62 = vadd.f32 %v3260_v53, %v2580_v5 }
 0x5bb   :  { %vm2491_vm8 = vcmp.eq.f32.partialorder %v2490_v25, 8.507059e+37 }
 0x5bc   :  { %v3587_v60 = vpop.eup %3586  ;;  %v3293_v1 = vmul.f32 -1.442695, %v2636_v62 }
 0x5bd   :  { %v3589_v63 = vpop.eup %3588  ;;  %v2462_v0 = vmul.f32 %v3587_v60, %v2460_v47  ;;  %vm2467_vm15 = vweird.f32 %v3587_v60 }
 0x5be   :  { %v2482_v8 = vmul.f32 %v3589_v63, %v2480_v56  ;;  %3592 = vpow2.f32 %v3293_v1  ;;  %v3591_v11 = vpop.eup %3590  ;;  %vm2468_vm3 = vmor %vm2466_vm2, %vm2467_vm15  ;;  %vm2487_vm5 = vweird.f32 %v3589_v63 }
 0x5bf   :  { %v2463_v2 = vsub.f32 1.0, %v2462_v0  ;;  %v2581_v9 = vpop.f32.mrf.mxu2  ;;  %v2620_v17 = vadd.f32 1.0, %v3591_v11  ;;  %vm2488_vm7 = vmor %vm2486_vm6, %vm2487_vm5 }
 0x5c0   :  { %v2483_v3 = vsub.f32 1.0, %v2482_v8  ;;  %v2614_v15 = vpop.f32.mrf.mxu3 }
 0x5c1   :  { %v2464_v4 = vmul.f32 %v3587_v60, %v2463_v2  ;;  %3594 = vrcp.f32 %v2620_v17  ;;  %v2630_v36 = vand.u32 2147483647, %v2620_v17  ;;  %v2632_v37 = vand.u32 2147483648, %v2620_v17 }
 0x5c2   :  { %v2484_v14 = vmul.f32 %v3589_v63, %v2483_v3  ;;  %vm2626_vm10 = vweird.f32 %v2620_v17 }
 0x5c3   :  { %v2465_v16 = vadd.f32 %v3587_v60, %v2464_v4  ;;  %vm2631_vm12 = vcmp.eq.f32.partialorder %v2630_v36, 8.507059e+37  ;;  %v2633_v47 = vor.u32 1.1754944e-38, %v2632_v37 }
 0x5c4   :  { %v3593_v20 = vpop.eup %3592  ;;  %v2485_v21 = vadd.f32 %v3589_v63, %v2484_v14 }
 0x5c5   :  { %v2469_v19 = vsel %vm2468_vm3, %v3587_v60, %v2465_v16  ;;  %v2640_v24 = vadd.f32 1.0, %v3593_v20 }
 0x5c6   :  { %v2474_v34 = vsel %vm2471_vm4, %v2473_v13, %v2469_v19  ;;  %v2489_v35 = vsel %vm2488_vm7, %v3589_v63, %v2485_v21 }
 0x5c7   :  { %v2496_v22 = vmul.f32 %v2474_v34, %v2453_v18  ;;  %3596 = vrcp.f32 %v2640_v24  ;;  %v3595_v30 = vpop.eup %3594  ;;  %v2494_v32 = vsel %vm2491_vm8, %v2493_v31, %v2489_v35  ;;  %v2652_v45 = vand.u32 2147483648, %v2640_v24 }
 0x5c8   :  { %v2622_v12 = vmul.f32 %v3595_v30, %v2620_v17  ;;  %v2499_v38 = vsub.f32 1.0, %v2494_v32  ;;  %vm2627_vm9 = vweird.f32 %v3595_v30  ;;  %v2501_v61 = vmul.f32 %v2494_v32, %v4308_v58 }
 0x5c9   :  { %v2497_v27 = vadd.f32 %v3226_v10, %v2496_v22  ;;  %vm2628_vm11 = vmor %vm2626_vm10, %vm2627_vm9  ;;  %v2650_v53 = vand.u32 2147483647, %v2640_v24  ;;  %vm2646_vm14 = vweird.f32 %v2640_v24  ;;  %v2653_v5 = vor.u32 1.1754944e-38, %v2652_v45 }
 0x5ca   :  { %v2623_v33 = vsub.f32 1.0, %v2622_v12 }
 0x5cb   :  { %3598 = vtanh.f32 %v2497_v27  ;;  %vm2651_vm2 = vcmp.eq.f32.partialorder %v2650_v53, 8.507059e+37 }
 0x5cc   :  { %v2624_v39 = vmul.f32 %v3595_v30, %v2623_v33 }
 0x5cd   :  { %v3597_v23 = vpop.eup %3596 }
 0x5ce   :  { %v2642_v48 = vmul.f32 %v3597_v23, %v2640_v24  ;;  %v2625_v44 = vadd.f32 %v3595_v30, %v2624_v39  ;;  %vm2647_vm13 = vweird.f32 %v3597_v23 }
 0x5cf   :  { %vm2648_vm15 = vmor %vm2646_vm14, %vm2647_vm13 }
 0x5d0   :  { %v2643_v40 = vsub.f32 1.0, %v2642_v48  ;;  %v2629_v50 = vsel %vm2628_vm11, %v3595_v30, %v2625_v44 }
 0x5d1   :  { %v3599_v41 = vpop.eup %3598  ;;  %v2634_v52 = vsel %vm2631_vm12, %v2633_v47, %v2629_v50 }
 0x5d2   :  { %v2500_v42 = vmul.f32 %v3599_v41, %v2499_v38  ;;  %v2644_v56 = vmul.f32 %v3597_v23, %v2643_v40  ;;  %v2656_v55 = vmul.f32 %v2634_v52, %v2613_v46 }
 0x5d4   :  { %v2502_v49 = vadd.f32 %v2501_v61, %v2500_v42  ;;  %v2645_v54 = vadd.f32 %v3597_v23, %v2644_v56  ;;  %v2657_v59 = vadd.f32 %v3261_v51, %v2656_v55 }
 0x5d6   :  { %2503 = vst.msk [vmem:[#allocation2] sm:$0xff] %vm79_vm0, %v2502_v49  ;;  %v2504_v58 = vpack.c.bf16 %v2502_v49, %v2502_v49  ;;  %v2649_v57 = vsel %vm2648_vm15, %v3597_v23, %v2645_v54  ;;  %3600 = vtanh.f32 %v2657_v59 }
 0x5d7   :  { %v2654_v60 = vsel %vm2651_vm2, %v2653_v5, %v2649_v57 }
 0x5d8   :  { %3258 = vst.msk [vmem:[%s4383_s4 + $0x1c] sm:$0xf] %vm245_vm1, %v2504_v58  ;;  %v2659_v62 = vsub.f32 1.0, %v2654_v60  ;;  %v2661_v8 = vmul.f32 %v2654_v60, %v4321_v26 }
 0x5dc   :  { %v3601_v63 = vpop.eup %3600 }
 0x5dd   :  { %v2660_v0 = vmul.f32 %v3601_v63, %v2659_v62 }
 0x5df   :  { %v2662_v1 = vadd.f32 %v2661_v8, %v2660_v0 }
 0x5e1   :  { %2663 = vst.msk [vmem:[#allocation3] sm:$0xff] %vm79_vm0, %v2662_v1  ;;  %v2664_v2 = vpack.c.bf16 %v2662_v1, %v2662_v1 }
 0x5e3   :  { %2665 = vst.msk [vmem:[%s4384_s5] sm:$0xf] %vm245_vm1, %v2664_v2 }
 0x5e4   :  { %2688 = vsyncpa [#allocation5], 1 }

// kernel: encoder_forward.10
= control target key start
LH: loop header
LB: loop body
LE: loop exit
PB: predicated region body
PF: predicated region fallthrough
CT: control target
= control target key end

     0   :  { %11 = vsyncpa [#allocation5], 0  ;;  %s4247_s0 = inlined_call_operand.vmem [shape: f32[2,3,8,8,32], index: 0, kind: input, shape index: {}, may-alias: {0,1}]   ;;  %s4248_s1 = inlined_call_operand.vmem [shape: f32[2,3,8,8,32], index: 1, kind: input, shape index: {}, may-alias: {0,1}]   ;;  %s4249_s2 = inlined_call_operand.hbm [shape: bf16[2,3,32,32], index: 2, kind: input, shape index: {}]   ;;  %s4250_s3 = inlined_call_operand.hbm [shape: f32[2,3,1,32], index: 3, kind: input, shape index: {}]   ;;  %s4251_s4 = inlined_call_operand.vmem [shape: bf16[8,8,32], index: 4, kind: output, shape index: {0}]   ;;  %s4252_s5 = inlined_call_operand.vmem [shape: bf16[8,8,32], index: 5, kind: output, shape index: {1}]  }
   0x1   :  { %s30_s20 = sshll.u32 %s4249_s2, 4  ;;  %s31_s20 = int_to_ptr.hbm [resolvable:$true] %s30_s20 }
   0x2   :  { %12 = vsyncpa [#allocation7], 0  ;;  %s3634_s21 = smov [#allocation4]   ;;  %s43_s25 = sshll.u32 %s4250_s3, 4  ;;  %s44_s25 = int_to_ptr.hbm [resolvable:$true] %s43_s25 }
   0x3   :  { %s32_s22 = sshll.u32 %s3634_s21, 4  ;;  %s3635_s26 = smov 64   ;;  %s33_s22 = int_to_ptr.vmem [resolvable:$true] %s32_s22 }
   0x4   :  { %s3636_s27 = smov 4   ;;  %s3637_s28 = smov [#allocation6]  }
   0x5   :  { %38 = dma.hbm_to_vmem [thread:$0]  %s31_s20, 1536, %s33_s22, [#allocation5], %s3635_s26, %s3635_s26, %s3636_s27  }
   0x6   :  { %s45_s29 = sshll.u32 %s3637_s28, 4  ;;  %s3638_s30 = smov 16   ;;  %s46_s29 = int_to_ptr.vmem [resolvable:$true] %s45_s29 }
   0x7   :  { %s3639_s6 = smov 1  }
   0x8   :  { %51 = dma.hbm_to_vmem [thread:$0]  %s44_s25, 96, %s46_s29, [#allocation7], %s3638_s30, %s3638_s30, %s3639_s6  }
   0x9   :  { %3630 = dma.done.wait [#allocation5], 1536  }
   0xa   :  { %3631 = vsyncadd [#allocation5], 4294965760 }
   0xb   :  { %3632 = dma.done.wait [#allocation7], 96  }
   0xc   :  { %3633 = vsyncadd [#allocation7], 4294967200  ;;  %vm95_vm0 = vcmask 261120   ;;  %v3640_v0 = vmov 0.0   ;;  %v3272_v1 = vld [vmem:[#allocation4 + $0x8] sm:$0xff]  ;;  %v3274_v2 = vld [vmem:[#allocation4 + $0x18] sm:$0xff] }
   0xd   :  { %96 = vst.msk [vmem:[#allocation2] sm:$0xff] %vm95_vm0, %v3640_v0  ;;  %v3278_v3 = vld [vmem:[#allocation4 + $0x38] sm:$0xff]  ;;  %v3271_v4 = vld [vmem:[#allocation4] sm:$0xff]  ;;  %135 = vmatpush.bf16.msra.mxu0 %v3272_v1  ;;  %170 = vmatpush.bf16.msra.mxu1 %v3274_v2  ;;  %v3273_v5 = vld [vmem:[#allocation4 + $0x10] sm:$0xff] }
   0xe   :  { %97 = vst.msk [vmem:[#allocation3] sm:$0xff] %vm95_vm0, %v3640_v0  ;;  %v3277_v6 = vld [vmem:[#allocation4 + $0x30] sm:$0xff]  ;;  %302 = vmatpush.bf16.msra.mxu3 %v3278_v3  ;;  %v3280_v9 = vld [vmem:[#allocation4 + $0x48] sm:$0xff]  ;;  %v3275_v11 = vld [vmem:[#allocation4 + $0x20] sm:$0xff] }
   0xf   :  { %v3276_v10 = vld [vmem:[#allocation4 + $0x28] sm:$0xff]  ;;  %v3282_v12 = vld [vmem:[#allocation4 + $0x58] sm:$0xff]  ;;  %v3279_v14 = vld [vmem:[#allocation4 + $0x40] sm:$0xff] }
  0x10   :  { %205 = vmatpush.bf16.msra.mxu2 %v3276_v10  ;;  %v3281_v16 = vld [vmem:[#allocation4 + $0x50] sm:$0xff]  ;;  %v3374_v17 = vld [vmem:[#allocation6] ss:$0 sm:$0xff]  ;;  %v3375_v18 = vld [vmem:[#allocation6 + $0x1] ss:$0 sm:$0xff] }
  0x11   :  { %136 = vmatpush.bf16.msra.mxu0 %v3271_v4  ;;  %171 = vmatpush.bf16.msra.mxu1 %v3273_v5  ;;  %v98_v19 = vld [vmem:[%s4247_s0] sm:$0xff]  ;;  %v3376_v27 = vld [vmem:[#allocation6 + $0x3] ss:$0 sm:$0xff]  ;;  %v2777_v30 = vld [vmem:[%s4248_s1 + $0xf8] sm:$0xff] }
  0x12   :  { %303 = vmatpush.bf16.msra.mxu3 %v3277_v6  ;;  %v2746_v21 = vld [vmem:[%s4247_s0 + $0x40] sm:$0xff]  ;;  %v3377_v39 = vld [vmem:[#allocation6 + $0x4] ss:$0 sm:$0xff]  ;;  %v2778_v44 = vld [vmem:[%s4248_s1 + $0x138] sm:$0xff] }
  0x13   :  { %v3284_v49 = vld [vmem:[#allocation4 + $0x8] sm:$0xff]  ;;  %v3286_v51 = vld [vmem:[#allocation4 + $0x18] sm:$0xff]  ;;  %v3283_v57 = vld [vmem:[#allocation4] sm:$0xff] }
  0x14   :  { %v3679_v7 = vld [vmem:[#allocation2] sm:$0xff]  ;;  %206 = vmatpush.bf16.msra.mxu2 %v3275_v11  ;;  %v3288_v52 = vld [vmem:[#allocation4 + $0x28] sm:$0xff]  ;;  %v3287_v59 = vld [vmem:[#allocation4 + $0x20] sm:$0xff] }
  0x15   :  { %v3681_v8 = vld [vmem:[#allocation3] sm:$0xff]  ;;  %v104_v13 = vpack.c.bf16 %v3679_v7, %v3679_v7  ;;  %337 = vmatpush.bf16.msrb.mxu0 %v3280_v9  ;;  %372 = vmatpush.bf16.msrb.mxu1 %v3282_v12  ;;  %v3285_v58 = vld [vmem:[#allocation4 + $0x10] sm:$0xff]  ;;  %v3378_v4 = vld [vmem:[#allocation6 + $0x2] ss:$0 sm:$0xff] }
  0x16   :  { %v270_v15 = vpack.c.bf16 %v3681_v8, %v3681_v8  ;;  %500 = vmatpush.bf16.msrb.mxu3 %v3286_v51  ;;  %v3290_v2 = vld [vmem:[#allocation4 + $0x38] sm:$0xff]  ;;  %v3292_v10 = vld [vmem:[#allocation4 + $0x48] sm:$0xff]  ;;  %v3289_v11 = vld [vmem:[#allocation4 + $0x30] sm:$0xff] }
  0x17   :  { %2756 = vmatmul.msk.bf16.vlgmr.msra.gmra.mxu0 %vm95_vm0, %v104_v13  ;;  %2765 = vmatmul.msk.bf16.vlgmr.msra.gmra.mxu1 %vm95_vm0, %v104_v13 }
  0x18   :  { %2788 = vmatmul.msk.bf16.vlgmr.msra.gmra.mxu3 %vm95_vm0, %v270_v15  ;;  %2774 = vmatmul.msk.bf16.vlgmr.msra.gmra.mxu2 %vm95_vm0, %v104_v13 }
  0x19   :  { %338 = vmatpush.bf16.msrb.mxu0 %v3279_v14  ;;  %373 = vmatpush.bf16.msrb.mxu1 %v3281_v16 }
  0x1a   :  { %467 = vmatpush.bf16.msrb.mxu2 %v3284_v49  ;;  %501 = vmatpush.bf16.msrb.mxu3 %v3285_v58 }
  0x1d   :  { %533 = vmatpush.bf16.msra.mxu0 %v3288_v52  ;;  %628 = vmatpush.bf16.msra.mxu1 %v3290_v2 }
  0x1e   :  { %468 = vmatpush.bf16.msrb.mxu2 %v3283_v57 }
  0x21   :  { %534 = vmatpush.bf16.msra.mxu0 %v3287_v59  ;;  %629 = vmatpush.bf16.msra.mxu1 %v3289_v11  ;;  %v3381_v11 = vld [vmem:[#allocation6] ss:$0 sm:$0xff] }
  0x22   :  { %661 = vmatpush.bf16.msra.mxu2 %v3292_v10 }
  0x27   :  { %2797 = vmatmul.msk.bf16.vlgmr.msrb.gmra.mxu0 %vm95_vm0, %v270_v15  ;;  %2806 = vmatmul.msk.bf16.vlgmr.msrb.gmra.mxu1 %vm95_vm0, %v270_v15 }
  0x94   :  { %v138_v20 = vpop.f32.mrf.mxu0  ;;  %v173_v22 = vpop.f32.mrf.mxu1 }
  0x95   :  { %v139_v23 = vadd.f32 %v3374_v17, %v138_v20  ;;  %v174_v24 = vadd.f32 %v3375_v18, %v173_v22 }
  0x97   :  { %v212_v25 = vadd.f32 %v139_v23, %v98_v19  ;;  %v232_v26 = vadd.f32 %v2746_v21, %v174_v24  ;;  %v3379_v23 = vld [vmem:[#allocation6 + $0x5] ss:$0 sm:$0xff] }
  0x99   :  { %v2775_v28 = vmul.f32 -1.442695, %v212_v25  ;;  %v2776_v29 = vmul.f32 -1.442695, %v232_v26  ;;  %v2747_v25 = vld [vmem:[%s4247_s0 + $0x80] sm:$0xff] }
  0x9b   :  { %3422 = vpow2.f32 %v2775_v28  ;;  %v305_v31 = vpop.f32.mrf.mxu3  ;;  %v208_v36 = vpop.f32.mrf.mxu2 }
  0x9c   :  { %3424 = vpow2.f32 %v2776_v29  ;;  %v306_v32 = vadd.f32 %v3376_v27, %v305_v31  ;;  %v140_v33 = vpop.f32.mrf.mxu0  ;;  %v175_v34 = vpop.f32.mrf.mxu1  ;;  %v209_v16 = vadd.f32 %v3378_v4, %v208_v36  ;;  %v3291_v31 = vld [vmem:[#allocation4 + $0x40] sm:$0xff] }
  0x9d   :  { %662 = vmatpush.bf16.msra.mxu2 %v3291_v31 }
  0x9e   :  { %v379_v35 = vadd.f32 %v2777_v30, %v306_v32  ;;  %v3294_v32 = vld [vmem:[#allocation4 + $0x58] sm:$0xff] }
  0x9f   :  { %694 = vmatpush.bf16.msra.mxu3 %v3294_v32 }
  0xa0   :  { %v2807_v37 = vmul.f32 -1.442695, %v379_v35 }
  0xa1   :  { %v3423_v38 = vpop.eup %3422 }
  0xa2   :  { %v3425_v40 = vpop.eup %3424  ;;  %v216_v41 = vadd.f32 1.0, %v3423_v38  ;;  %3426 = vpow2.f32 %v2807_v37  ;;  %v3293_v38 = vld [vmem:[#allocation4 + $0x50] sm:$0xff] }
  0xa3   :  { %v3702_v42 = vadd.f32 1.0, %v3425_v40  ;;  %v307_v43 = vpop.f32.mrf.mxu3  ;;  %v210_v48 = vpop.f32.mrf.mxu2  ;;  %695 = vmatpush.bf16.msra.mxu3 %v3293_v38 }
  0xa4   :  { %3428 = vrcp.f32 %v216_v41  ;;  %v340_v45 = vpop.f32.mrf.mxu0  ;;  %v3707_v46 = vpop.f32.mrf.mxu1  ;;  %v228_v5 = vand.u32 2147483648, %v216_v41  ;;  %v226_v9 = vand.u32 2147483647, %v216_v41  ;;  %vm222_vm2 = vweird.f32 %v216_v41 }
  0xa5   :  { %3430 = vrcp.f32 %v3702_v42  ;;  %v341_v47 = vadd.f32 %v3377_v39, %v340_v45  ;;  %vm242_vm4 = vweird.f32 %v3702_v42  ;;  %v248_v21 = vand.u32 2147483648, %v3702_v42 }
  0xa6   :  { %v229_v17 = vor.u32 1.1754944e-38, %v228_v5  ;;  %vm227_vm5 = vcmp.eq.f32.partialorder %v226_v9, 8.507059e+37  ;;  %v246_v33 = vand.u32 2147483647, %v3702_v42  ;;  %v376_v36 = vadd.f32 %v3379_v23, %v3707_v46 }
  0xa7   :  { %v399_v50 = vadd.f32 %v2778_v44, %v341_v47  ;;  %v2779_v44 = vld [vmem:[%s4248_s1 + $0x178] sm:$0xff] }
  0xa8   :  { %v3427_v53 = vpop.eup %3426  ;;  %vm247_vm12 = vcmp.eq.f32.partialorder %v246_v33, 8.507059e+37 }
  0xa9   :  { %v3710_v54 = vadd.f32 1.0, %v3427_v53  ;;  %v2808_v55 = vmul.f32 -1.442695, %v399_v50 }
  0xaa   :  { %v3429_v56 = vpop.eup %3428 }
  0xab   :  { %v3712_v60 = vpop.eup %3430  ;;  %3432 = vrcp.f32 %v3710_v54  ;;  %v218_v61 = vmul.f32 %v3429_v56, %v216_v41  ;;  %vm223_vm1 = vweird.f32 %v3429_v56  ;;  %vm389_vm6 = vweird.f32 %v3710_v54 }
  0xac   :  { %v238_v62 = vmul.f32 %v3712_v60, %v3702_v42  ;;  %3434 = vpow2.f32 %v2808_v55  ;;  %v342_v63 = vpop.f32.mrf.mxu0  ;;  %v377_v0 = vpop.f32.mrf.mxu1  ;;  %vm224_vm3 = vmor %vm222_vm2, %vm223_vm1  ;;  %vm243_vm7 = vweird.f32 %v3712_v60  ;;  %v395_v27 = vand.u32 2147483648, %v3710_v54 }
  0xad   :  { %v219_v1 = vsub.f32 1.0, %v218_v61  ;;  %v393_v30 = vand.u32 2147483647, %v3710_v54  ;;  %vm3732_vm9 = vmor %vm242_vm4, %vm243_vm7  ;;  %v249_v41 = vor.u32 1.1754944e-38, %v248_v21  ;;  %vm261_vm1 = vcmask 257024  }
  0xae   :  { %v239_v3 = vsub.f32 1.0, %v238_v62  ;;  %v396_v40 = vor.u32 1.1754944e-38, %v395_v27 }
  0xaf   :  { %v220_v6 = vmul.f32 %v3429_v56, %v219_v1  ;;  %vm394_vm11 = vcmp.eq.f32.partialorder %v393_v30, 8.507059e+37 }
  0xb0   :  { %v240_v13 = vmul.f32 %v3712_v60, %v239_v3 }
  0xb1   :  { %v3433_v12 = vpop.eup %3432  ;;  %v221_v14 = vadd.f32 %v3429_v56, %v220_v6 }
  0xb2   :  { %v3435_v15 = vpop.eup %3434  ;;  %v385_v18 = vmul.f32 %v3433_v12, %v3710_v54  ;;  %v241_v26 = vadd.f32 %v3712_v60, %v240_v13  ;;  %vm390_vm8 = vweird.f32 %v3433_v12  ;;  %v3383_v13 = vld [vmem:[#allocation6 + $0x3] ss:$0 sm:$0xff] }
  0xb3   :  { %v403_v19 = vadd.f32 1.0, %v3435_v15  ;;  %v225_v20 = vsel %vm224_vm3, %v3429_v56, %v221_v14  ;;  %vm391_vm10 = vmor %vm389_vm6, %vm390_vm8  ;;  %v2810_v14 = vld [vmem:[%s4247_s0 + $0x8] sm:$0xff] }
  0xb4   :  { %v230_v22 = vsel %vm227_vm5, %v229_v17, %v225_v20  ;;  %v386_v24 = vsub.f32 1.0, %v385_v18  ;;  %v245_v39 = vsel %vm3732_vm9, %v3712_v60, %v241_v26  ;;  %v2843_v20 = vld [vmem:[%s4248_s1 + $0xf0] sm:$0xff] }
  0xb5   :  { %3436 = vrcp.f32 %v403_v19  ;;  %v252_v28 = vmul.f32 %v230_v22, %v209_v16  ;;  %v250_v47 = vsel %vm247_vm12, %v249_v41, %v245_v39  ;;  %vm409_vm13 = vweird.f32 %v403_v19  ;;  %v2811_v16 = vld [vmem:[%s4247_s0 + $0x48] sm:$0xff]  ;;  %v2844_v41 = vld [vmem:[%s4248_s1 + $0x130] sm:$0xff] }
  0xb6   :  { %v387_v29 = vmul.f32 %v3433_v12, %v386_v24  ;;  %v415_v51 = vand.u32 2147483648, %v403_v19  ;;  %v255_v52 = vsub.f32 1.0, %v250_v47  ;;  %v413_v55 = vand.u32 2147483647, %v403_v19 }
  0xb7   :  { %v253_v35 = vadd.f32 %v2747_v25, %v252_v28  ;;  %v257_v57 = vmul.f32 %v250_v47, %v3679_v7  ;;  %v3300_v47 = vld [vmem:[#allocation4 + $0x28] sm:$0xff] }
  0xb8   :  { %v388_v37 = vadd.f32 %v3433_v12, %v387_v29  ;;  %v416_v59 = vor.u32 1.1754944e-38, %v415_v51  ;;  %vm414_vm2 = vcmp.eq.f32.partialorder %v413_v55, 8.507059e+37  ;;  %v3380_v55 = vld [vmem:[#allocation6 + $0x2] ss:$0 sm:$0xff] }
  0xb9   :  { %3438 = vtanh.f32 %v253_v35 }
  0xba   :  { %v392_v42 = vsel %vm391_vm10, %v3433_v12, %v388_v37  ;;  %v3382_v12 = vld [vmem:[#allocation6 + $0x1] ss:$0 sm:$0xff] }
  0xbb   :  { %v3437_v43 = vpop.eup %3436  ;;  %v397_v45 = vsel %vm394_vm11, %v396_v40, %v392_v42 }
  0xbc   :  { %v405_v46 = vmul.f32 %v3437_v43, %v403_v19  ;;  %v419_v48 = vmul.f32 %v397_v45, %v376_v36  ;;  %vm410_vm14 = vweird.f32 %v3437_v43  ;;  %v3384_v36 = vld [vmem:[#allocation6 + $0x4] ss:$0 sm:$0xff]  ;;  %v3296_v45 = vld [vmem:[#allocation4 + $0x8] sm:$0xff] }
  0xbd   :  { %vm411_vm15 = vmor %vm409_vm13, %vm410_vm14  ;;  %789 = vmatpush.bf16.msrb.mxu0 %v3296_v45 }
  0xbe   :  { %v406_v49 = vsub.f32 1.0, %v405_v46  ;;  %v420_v50 = vadd.f32 %v2779_v44, %v419_v48  ;;  %v3298_v46 = vld [vmem:[#allocation4 + $0x18] sm:$0xff] }
  0xbf   :  { %v3439_v53 = vpop.eup %3438  ;;  %822 = vmatpush.bf16.msrb.mxu1 %v3298_v46 }
  0xc0   :  { %v407_v54 = vmul.f32 %v3437_v43, %v406_v49  ;;  %3440 = vtanh.f32 %v420_v50  ;;  %v256_v56 = vmul.f32 %v3439_v53, %v255_v52 }
  0xc2   :  { %v408_v58 = vadd.f32 %v3437_v43, %v407_v54  ;;  %v258_v60 = vadd.f32 %v257_v57, %v256_v56  ;;  %v3295_v57 = vld [vmem:[#allocation4] sm:$0xff] }
  0xc3   :  { %790 = vmatpush.bf16.msrb.mxu0 %v3295_v57 }
  0xc4   :  { %v412_v61 = vsel %vm411_vm15, %v3437_v43, %v408_v58  ;;  %259 = vst.msk [vmem:[#allocation2] sm:$0xff] %vm95_vm0, %v258_v60  ;;  %v260_v62 = vpack.c.bf16 %v258_v60, %v258_v60  ;;  %v3297_v58 = vld [vmem:[#allocation4 + $0x10] sm:$0xff] }
  0xc5   :  { %v417_v63 = vsel %vm414_vm2, %v416_v59, %v412_v61  ;;  %823 = vmatpush.bf16.msrb.mxu1 %v3297_v58 }
  0xc6   :  { %v3441_v0 = vpop.eup %3440  ;;  %v422_v1 = vsub.f32 1.0, %v417_v63  ;;  %262 = vst.msk [vmem:[%s4251_s4] sm:$0xf] %vm261_vm1, %v260_v62  ;;  %v424_v7 = vmul.f32 %v417_v63, %v3681_v8  ;;  %v3302_v63 = vld [vmem:[#allocation4 + $0x38] sm:$0xff] }
  0xc8   :  { %v423_v2 = vmul.f32 %v3441_v0, %v422_v1  ;;  %v3299_v0 = vld [vmem:[#allocation4 + $0x20] sm:$0xff] }
  0xca   :  { %v425_v3 = vadd.f32 %v424_v7, %v423_v2  ;;  %v3304_v7 = vld [vmem:[#allocation4 + $0x48] sm:$0xff] }
  0xcb   :  { %v3753_v5 = vld [vmem:[#allocation2] sm:$0xff] }
  0xcc   :  { %426 = vst.msk [vmem:[#allocation3] sm:$0xff] %vm95_vm0, %v425_v3  ;;  %v427_v4 = vpack.c.bf16 %v425_v3, %v425_v3  ;;  %v437_v6 = vpack.c.bf16 %v3753_v5, %v3753_v5 }
  0xce   :  { %2809 = vst.msk [vmem:[%s4252_s5 + $0x1c] sm:$0xf] %vm261_vm1, %v427_v4  ;;  %2821 = vmatmul.msk.bf16.vlgmr.msrb.gmra.mxu2 %vm95_vm0, %v437_v6  ;;  %2830 = vmatmul.msk.bf16.vlgmr.msrb.gmra.mxu3 %vm95_vm0, %v437_v6  ;;  %v3301_v4 = vld [vmem:[#allocation4 + $0x30] sm:$0xff] }
  0xcf   :  { %2839 = vmatmul.msk.bf16.vlgmr.msra.gmra.mxu0 %vm95_vm0, %v437_v6  ;;  %855 = vmatpush.bf16.msrb.mxu2 %v3300_v47 }
  0xd0   :  { %950 = vmatpush.bf16.msrb.mxu3 %v3302_v63  ;;  %983 = vmatpush.bf16.msra.mxu0 %v3304_v7  ;;  %v2876_v7 = vld [vmem:[%s4247_s0 + $0x10] sm:$0xff] }
  0xd3   :  { %v3764_v8 = vld [vmem:[#allocation3] sm:$0xff]  ;;  %856 = vmatpush.bf16.msrb.mxu2 %v3299_v0 }
  0xd4   :  { %v598_v9 = vpack.c.bf16 %v3764_v8, %v3764_v8  ;;  %951 = vmatpush.bf16.msrb.mxu3 %v3301_v4  ;;  %v2877_v4 = vld [vmem:[%s4247_s0 + $0x50] sm:$0xff] }
  0xd6   :  { %2854 = vmatmul.msk.bf16.vlgmr.msra.gmra.mxu1 %vm95_vm0, %v598_v9 }
  0xde   :  { %2863 = vmatmul.msk.bf16.vlgmr.msra.gmra.mxu2 %vm95_vm0, %v598_v9  ;;  %2872 = vmatmul.msk.bf16.vlgmr.msra.gmra.mxu3 %vm95_vm0, %v598_v9 }
 0x14c   :  { %v3771_v10 = vpop.f32.mrf.mxu0 }
 0x151   :  { %v470_v15 = vpop.f32.mrf.mxu2  ;;  %v503_v17 = vpop.f32.mrf.mxu3 }
 0x152   :  { %v471_v18 = vadd.f32 %v3381_v11, %v470_v15  ;;  %v504_v19 = vadd.f32 %v3382_v12, %v503_v17  ;;  %v537_v12 = vadd.f32 %v3380_v55, %v3771_v10 }
 0x153   :  { %v631_v21 = vpop.f32.mrf.mxu1 }
 0x154   :  { %v632_v22 = vadd.f32 %v3383_v13, %v631_v21  ;;  %v540_v23 = vadd.f32 %v2810_v14, %v471_v18  ;;  %v560_v24 = vadd.f32 %v2811_v16, %v504_v19  ;;  %v538_v25 = vpop.f32.mrf.mxu0  ;;  %v2812_v18 = vld [vmem:[%s4247_s0 + $0x88] sm:$0xff]  ;;  %v3385_v21 = vld [vmem:[#allocation6 + $0x5] ss:$0 sm:$0xff] }
 0x156   :  { %v701_v26 = vadd.f32 %v2843_v20, %v632_v22  ;;  %v2840_v27 = vmul.f32 -1.442695, %v540_v23  ;;  %v2841_v28 = vmul.f32 -1.442695, %v560_v24 }
 0x158   :  { %v2873_v29 = vmul.f32 -1.442695, %v701_v26  ;;  %3442 = vpow2.f32 %v2840_v27  ;;  %v3306_v27 = vld [vmem:[#allocation4 + $0x58] sm:$0xff] }
 0x159   :  { %3444 = vpow2.f32 %v2841_v28  ;;  %v472_v30 = vpop.f32.mrf.mxu2  ;;  %v505_v31 = vpop.f32.mrf.mxu3  ;;  %v3303_v28 = vld [vmem:[#allocation4 + $0x40] sm:$0xff]  ;;  %1016 = vmatpush.bf16.msra.mxu1 %v3306_v27 }
 0x15a   :  { %3446 = vpow2.f32 %v2873_v29  ;;  %984 = vmatpush.bf16.msra.mxu0 %v3303_v28 }
 0x15b   :  { %v633_v32 = vpop.f32.mrf.mxu1 }
 0x15e   :  { %v3443_v33 = vpop.eup %3442 }
 0x15f   :  { %v3445_v34 = vpop.eup %3444  ;;  %v544_v35 = vadd.f32 1.0, %v3443_v33 }
 0x160   :  { %v3447_v37 = vpop.eup %3446  ;;  %v3782_v38 = vadd.f32 1.0, %v3445_v34  ;;  %v3305_v34 = vld [vmem:[#allocation4 + $0x50] sm:$0xff] }
 0x161   :  { %3448 = vrcp.f32 %v544_v35  ;;  %v664_v39 = vpop.f32.mrf.mxu2  ;;  %v3784_v40 = vpop.f32.mrf.mxu3  ;;  %v3790_v42 = vadd.f32 1.0, %v3447_v37  ;;  %v554_v60 = vand.u32 2147483647, %v544_v35  ;;  %v556_v61 = vand.u32 2147483648, %v544_v35  ;;  %v2845_v37 = vld [vmem:[%s4248_s1 + $0x170] sm:$0xff]  ;;  %1017 = vmatpush.bf16.msra.mxu1 %v3305_v34 }
 0x162   :  { %3450 = vrcp.f32 %v3782_v38  ;;  %v665_v43 = vadd.f32 %v3384_v36, %v664_v39  ;;  %vm550_vm4 = vweird.f32 %v544_v35  ;;  %vm570_vm9 = vweird.f32 %v3782_v38 }
 0x163   :  { %3452 = vrcp.f32 %v3790_v42  ;;  %vm555_vm6 = vcmp.eq.f32.partialorder %v554_v60, 8.507059e+37  ;;  %v557_v13 = vor.u32 1.1754944e-38, %v556_v61  ;;  %v717_v14 = vand.u32 2147483648, %v3790_v42 }
 0x164   :  { %v721_v44 = vadd.f32 %v2844_v41, %v665_v43  ;;  %v715_v10 = vand.u32 2147483647, %v3790_v42  ;;  %v576_v23 = vand.u32 2147483648, %v3782_v38  ;;  %v574_v25 = vand.u32 2147483647, %v3782_v38 }
 0x165   :  { %vm711_vm11 = vweird.f32 %v3790_v42  ;;  %v718_v30 = vor.u32 1.1754944e-38, %v717_v14  ;;  %v698_v32 = vadd.f32 %v3385_v21, %v3784_v40 }
 0x166   :  { %v2874_v49 = vmul.f32 -1.442695, %v721_v44  ;;  %vm716_vm13 = vcmp.eq.f32.partialorder %v715_v10, 8.507059e+37  ;;  %vm575_vm14 = vcmp.eq.f32.partialorder %v574_v25, 8.507059e+37  ;;  %v2909_v25 = vld [vmem:[%s4248_s1 + $0xe8] sm:$0xff] }
 0x167   :  { %v3449_v48 = vpop.eup %3448 }
 0x168   :  { %v3793_v50 = vpop.eup %3450  ;;  %v546_v51 = vmul.f32 %v3449_v48, %v544_v35  ;;  %3454 = vpow2.f32 %v2874_v49  ;;  %vm551_vm3 = vweird.f32 %v3449_v48  ;;  %v577_v35 = vor.u32 1.1754944e-38, %v576_v23  ;;  %v3390_v23 = vld [vmem:[#allocation6 + $0x4] ss:$0 sm:$0xff] }
 0x169   :  { %v566_v52 = vmul.f32 %v3793_v50, %v3782_v38  ;;  %v666_v53 = vpop.f32.mrf.mxu2  ;;  %v699_v54 = vpop.f32.mrf.mxu3  ;;  %vm552_vm5 = vmor %vm550_vm4, %vm551_vm3  ;;  %vm571_vm7 = vweird.f32 %v3793_v50 }
 0x16a   :  { %v547_v56 = vsub.f32 1.0, %v546_v51  ;;  %v3453_v59 = vpop.eup %3452  ;;  %vm3810_vm10 = vmor %vm570_vm9, %vm571_vm7 }
 0x16b   :  { %v567_v62 = vsub.f32 1.0, %v566_v52  ;;  %v707_v2 = vmul.f32 %v3453_v59, %v3790_v42  ;;  %vm712_vm8 = vweird.f32 %v3453_v59 }
 0x16c   :  { %v548_v1 = vmul.f32 %v3449_v48, %v547_v56  ;;  %vm713_vm12 = vmor %vm711_vm11, %vm712_vm8 }
 0x16d   :  { %v568_v3 = vmul.f32 %v3793_v50, %v567_v62  ;;  %v708_v9 = vsub.f32 1.0, %v707_v2  ;;  %v3387_v2 = vld [vmem:[#allocation6 + $0x1] ss:$0 sm:$0xff] }
 0x16e   :  { %v549_v6 = vadd.f32 %v3449_v48, %v548_v1  ;;  %v3455_v11 = vpop.eup %3454  ;;  %v3386_v1 = vld [vmem:[#allocation6] ss:$0 sm:$0xff] }
 0x16f   :  { %v725_v16 = vadd.f32 1.0, %v3455_v11  ;;  %v709_v17 = vmul.f32 %v3453_v59, %v708_v9  ;;  %v569_v20 = vadd.f32 %v3793_v50, %v568_v3 }
 0x170   :  { %v553_v15 = vsel %vm552_vm5, %v3449_v48, %v549_v6 }
 0x171   :  { %v558_v19 = vsel %vm555_vm6, %v557_v13, %v553_v15  ;;  %3456 = vrcp.f32 %v725_v16  ;;  %v710_v26 = vadd.f32 %v3453_v59, %v709_v17  ;;  %v573_v31 = vsel %vm3810_vm10, %v3793_v50, %v569_v20 }
 0x172   :  { %v580_v22 = vmul.f32 %v558_v19, %v537_v12  ;;  %v578_v41 = vsel %vm575_vm14, %v577_v35, %v573_v31  ;;  %v737_v47 = vand.u32 2147483648, %v725_v16  ;;  %v735_v50 = vand.u32 2147483647, %v725_v16  ;;  %v3389_v19 = vld [vmem:[#allocation6 + $0x3] ss:$0 sm:$0xff]  ;;  %v3308_v35 = vld [vmem:[#allocation4 + $0x8] sm:$0xff] }
 0x173   :  { %v714_v33 = vsel %vm713_vm12, %v3453_v59, %v710_v26  ;;  %v583_v40 = vsub.f32 1.0, %v578_v41  ;;  %v585_v46 = vmul.f32 %v578_v41, %v3753_v5  ;;  %vm731_vm2 = vweird.f32 %v725_v16  ;;  %1111 = vmatpush.bf16.msra.mxu2 %v3308_v35 }
 0x174   :  { %v581_v29 = vadd.f32 %v2812_v18, %v580_v22  ;;  %v719_v36 = vsel %vm716_vm13, %v718_v30, %v714_v33  ;;  %v738_v53 = vor.u32 1.1754944e-38, %v737_v47  ;;  %vm736_vm4 = vcmp.eq.f32.partialorder %v735_v50, 8.507059e+37  ;;  %v2910_v30 = vld [vmem:[%s4248_s1 + $0x128] sm:$0xff]  ;;  %v3307_v47 = vld [vmem:[#allocation4] sm:$0xff] }
 0x175   :  { %v741_v38 = vmul.f32 %v719_v36, %v698_v32  ;;  %v3310_v36 = vld [vmem:[#allocation4 + $0x18] sm:$0xff]  ;;  %v3388_v50 = vld [vmem:[#allocation6 + $0x2] ss:$0 sm:$0xff] }
 0x176   :  { %3458 = vtanh.f32 %v581_v29  ;;  %1144 = vmatpush.bf16.msra.mxu3 %v3310_v36 }
 0x177   :  { %v3457_v39 = vpop.eup %3456  ;;  %v742_v43 = vadd.f32 %v2845_v37, %v741_v38  ;;  %v3312_v37 = vld [vmem:[#allocation4 + $0x28] sm:$0xff]  ;;  %1112 = vmatpush.bf16.msra.mxu2 %v3307_v47 }
 0x178   :  { %v727_v42 = vmul.f32 %v3457_v39, %v725_v16  ;;  %vm732_vm15 = vweird.f32 %v3457_v39 }
 0x179   :  { %3460 = vtanh.f32 %v742_v43  ;;  %vm733_vm3 = vmor %vm731_vm2, %vm732_vm15 }
 0x17a   :  { %v728_v44 = vsub.f32 1.0, %v727_v42 }
 0x17c   :  { %v3459_v45 = vpop.eup %3458  ;;  %v729_v49 = vmul.f32 %v3457_v39, %v728_v44 }
 0x17d   :  { %v584_v48 = vmul.f32 %v3459_v45, %v583_v40 }
 0x17e   :  { %v730_v52 = vadd.f32 %v3457_v39, %v729_v49 }
 0x17f   :  { %v586_v51 = vadd.f32 %v585_v46, %v584_v48  ;;  %v3461_v57 = vpop.eup %3460  ;;  %v3309_v48 = vld [vmem:[#allocation4 + $0x10] sm:$0xff] }
 0x180   :  { %v734_v55 = vsel %vm733_vm3, %v3457_v39, %v730_v52  ;;  %v3311_v52 = vld [vmem:[#allocation4 + $0x20] sm:$0xff]  ;;  %1145 = vmatpush.bf16.msra.mxu3 %v3309_v48 }
 0x181   :  { %587 = vst.msk [vmem:[#allocation2] sm:$0xff] %vm95_vm0, %v586_v51  ;;  %v588_v54 = vpack.c.bf16 %v586_v51, %v586_v51  ;;  %v739_v56 = vsel %vm736_vm4, %v738_v53, %v734_v55 }
 0x182   :  { %v744_v5 = vsub.f32 1.0, %v739_v56  ;;  %v746_v59 = vmul.f32 %v739_v56, %v3764_v8 }
 0x183   :  { %2842 = vst.msk [vmem:[%s4251_s4 + $0x4] sm:$0xf] %vm261_vm1, %v588_v54 }
 0x184   :  { %v745_v58 = vmul.f32 %v3461_v57, %v744_v5 }
 0x186   :  { %v747_v60 = vadd.f32 %v746_v59, %v745_v58 }
 0x188   :  { %v3830_v61 = vld [vmem:[#allocation2] sm:$0xff]  ;;  %748 = vst.msk [vmem:[#allocation3] sm:$0xff] %vm95_vm0, %v747_v60  ;;  %v749_v62 = vpack.c.bf16 %v747_v60, %v747_v60 }
 0x189   :  { %v759_v63 = vpack.c.bf16 %v3830_v61, %v3830_v61 }
 0x18a   :  { %2875 = vst.msk [vmem:[%s4252_s5 + $0x18] sm:$0xf] %vm261_vm1, %v749_v62 }
 0x18b   :  { %2887 = vmatmul.msk.bf16.vlgmr.msrb.gmra.mxu0 %vm95_vm0, %v759_v63  ;;  %2896 = vmatmul.msk.bf16.vlgmr.msrb.gmra.mxu1 %vm95_vm0, %v759_v63 }
 0x18c   :  { %2905 = vmatmul.msk.bf16.vlgmr.msrb.gmra.mxu2 %vm95_vm0, %v759_v63  ;;  %1177 = vmatpush.bf16.msrb.mxu0 %v3312_v37 }
 0x18f   :  { %v3842_v8 = vld [vmem:[#allocation3] sm:$0xff] }
 0x190   :  { %v920_v0 = vpack.c.bf16 %v3842_v8, %v3842_v8  ;;  %1178 = vmatpush.bf16.msrb.mxu0 %v3311_v52 }
 0x192   :  { %2920 = vmatmul.msk.bf16.vlgmr.msrb.gmra.mxu3 %vm95_vm0, %v920_v0 }
 0x19b   :  { %2929 = vmatmul.msk.bf16.vlgmr.msra.gmra.mxu0 %vm95_vm0, %v920_v0  ;;  %2938 = vmatmul.msk.bf16.vlgmr.msra.gmra.mxu1 %vm95_vm0, %v920_v0  ;;  %v2878_v0 = vld [vmem:[%s4247_s0 + $0x90] sm:$0xff] }
 0x208   :  { %v792_v3 = vpop.f32.mrf.mxu0  ;;  %v825_v6 = vpop.f32.mrf.mxu1 }
 0x209   :  { %v793_v9 = vadd.f32 %v3386_v1, %v792_v3  ;;  %v826_v11 = vadd.f32 %v3387_v2, %v825_v6  ;;  %v3316_v6 = vld [vmem:[#allocation4 + $0x48] sm:$0xff] }
 0x20a   :  { %1305 = vmatpush.bf16.msrb.mxu2 %v3316_v6 }
 0x20b   :  { %v862_v12 = vadd.f32 %v2876_v7, %v793_v9  ;;  %v882_v13 = vadd.f32 %v2877_v4, %v826_v11  ;;  %v3314_v4 = vld [vmem:[#allocation4 + $0x38] sm:$0xff] }
 0x20c   :  { %v3318_v11 = vld [vmem:[#allocation4 + $0x58] sm:$0xff]  ;;  %1272 = vmatpush.bf16.msrb.mxu1 %v3314_v4 }
 0x20d   :  { %v2906_v14 = vmul.f32 -1.442695, %v862_v12  ;;  %v2907_v15 = vmul.f32 -1.442695, %v882_v13  ;;  %v3313_v13 = vld [vmem:[#allocation4 + $0x30] sm:$0xff]  ;;  %1338 = vmatpush.bf16.msrb.mxu3 %v3318_v11 }
 0x20f   :  { %3462 = vpow2.f32 %v2906_v14  ;;  %v858_v16 = vpop.f32.mrf.mxu2  ;;  %v3315_v14 = vld [vmem:[#allocation4 + $0x40] sm:$0xff] }
 0x210   :  { %3464 = vpow2.f32 %v2907_v15  ;;  %v794_v17 = vpop.f32.mrf.mxu0  ;;  %v827_v18 = vpop.f32.mrf.mxu1  ;;  %v859_v59 = vadd.f32 %v3388_v50, %v858_v16  ;;  %1273 = vmatpush.bf16.msrb.mxu1 %v3313_v13  ;;  %1306 = vmatpush.bf16.msrb.mxu2 %v3315_v14  ;;  %v2975_v13 = vld [vmem:[%s4248_s1 + $0xe0] sm:$0xff] }
 0x215   :  { %v3463_v20 = vpop.eup %3462  ;;  %v953_v22 = vpop.f32.mrf.mxu3 }
 0x216   :  { %v3465_v21 = vpop.eup %3464  ;;  %v866_v10 = vadd.f32 1.0, %v3463_v20  ;;  %v954_v26 = vadd.f32 %v3389_v19, %v953_v22 }
 0x217   :  { %v3855_v24 = vadd.f32 1.0, %v3465_v21  ;;  %v860_v27 = vpop.f32.mrf.mxu2 }
 0x218   :  { %3466 = vrcp.f32 %v866_v10  ;;  %v986_v28 = vpop.f32.mrf.mxu0  ;;  %v3860_v29 = vpop.f32.mrf.mxu1  ;;  %v1023_v31 = vadd.f32 %v2909_v25, %v954_v26  ;;  %v878_v51 = vand.u32 2147483648, %v866_v10  ;;  %v876_v54 = vand.u32 2147483647, %v866_v10  ;;  %v3391_v27 = vld [vmem:[#allocation6 + $0x5] ss:$0 sm:$0xff] }
 0x219   :  { %3468 = vrcp.f32 %v3855_v24  ;;  %v987_v32 = vadd.f32 %v3390_v23, %v986_v28  ;;  %vm872_vm6 = vweird.f32 %v866_v10  ;;  %v898_v7 = vand.u32 2147483648, %v3855_v24 }
 0x21a   :  { %v2939_v33 = vmul.f32 -1.442695, %v1023_v31  ;;  %v879_v60 = vor.u32 1.1754944e-38, %v878_v51  ;;  %vm877_vm8 = vcmp.eq.f32.partialorder %v876_v54, 8.507059e+37  ;;  %vm892_vm10 = vweird.f32 %v3855_v24 }
 0x21b   :  { %v1043_v34 = vadd.f32 %v2910_v30, %v987_v32  ;;  %v896_v9 = vand.u32 2147483647, %v3855_v24  ;;  %v899_v17 = vor.u32 1.1754944e-38, %v898_v7  ;;  %v1020_v37 = vadd.f32 %v3391_v27, %v3860_v29 }
 0x21c   :  { %3470 = vpow2.f32 %v2939_v33 }
 0x21d   :  { %v2940_v39 = vmul.f32 -1.442695, %v1043_v34  ;;  %v955_v41 = vpop.f32.mrf.mxu3  ;;  %vm897_vm12 = vcmp.eq.f32.partialorder %v896_v9, 8.507059e+37  ;;  %v3395_v9 = vld [vmem:[#allocation6 + $0x3] ss:$0 sm:$0xff] }
 0x21e   :  { %v3467_v38 = vpop.eup %3466 }
 0x21f   :  { %v3866_v42 = vpop.eup %3468  ;;  %v868_v43 = vmul.f32 %v3467_v38, %v866_v10  ;;  %3472 = vpow2.f32 %v2940_v39  ;;  %vm873_vm5 = vweird.f32 %v3467_v38  ;;  %v2911_v39 = vld [vmem:[%s4248_s1 + $0x168] sm:$0xff] }
 0x220   :  { %v888_v40 = vmul.f32 %v3866_v42, %v3855_v24  ;;  %v988_v44 = vpop.f32.mrf.mxu0  ;;  %v1021_v45 = vpop.f32.mrf.mxu1  ;;  %vm874_vm7 = vmor %vm872_vm6, %vm873_vm5  ;;  %vm893_vm9 = vweird.f32 %v3866_v42  ;;  %v3317_v24 = vld [vmem:[#allocation4 + $0x50] sm:$0xff] }
 0x221   :  { %v869_v46 = vsub.f32 1.0, %v868_v43  ;;  %vm894_vm11 = vmor %vm892_vm10, %vm893_vm9  ;;  %1339 = vmatpush.bf16.msrb.mxu3 %v3317_v24 }
 0x222   :  { %v889_v49 = vsub.f32 1.0, %v888_v40  ;;  %v3471_v55 = vpop.eup %3470 }
 0x223   :  { %v870_v53 = vmul.f32 %v3467_v38, %v869_v46  ;;  %v1027_v57 = vadd.f32 1.0, %v3471_v55 }
 0x224   :  { %v890_v56 = vmul.f32 %v3866_v42, %v889_v49 }
 0x225   :  { %v871_v5 = vadd.f32 %v3467_v38, %v870_v53  ;;  %v3473_v58 = vpop.eup %3472  ;;  %3474 = vrcp.f32 %v1027_v57  ;;  %v1037_v22 = vand.u32 2147483647, %v1027_v57  ;;  %v1039_v23 = vand.u32 2147483648, %v1027_v57 }
 0x226   :  { %v3871_v63 = vadd.f32 1.0, %v3473_v58  ;;  %v891_v2 = vadd.f32 %v3866_v42, %v890_v56  ;;  %vm1033_vm14 = vweird.f32 %v1027_v57  ;;  %v3394_v58 = vld [vmem:[#allocation6 + $0x1] ss:$0 sm:$0xff] }
 0x227   :  { %v875_v62 = vsel %vm874_vm7, %v3467_v38, %v871_v5  ;;  %v1040_v35 = vor.u32 1.1754944e-38, %v1039_v23  ;;  %vm1038_vm2 = vcmp.eq.f32.partialorder %v1037_v22, 8.507059e+37 }
 0x228   :  { %v880_v1 = vsel %vm877_vm8, %v879_v60, %v875_v62  ;;  %3476 = vrcp.f32 %v3871_v63  ;;  %v895_v15 = vsel %vm894_vm11, %v3866_v42, %v891_v2  ;;  %vm1053_vm4 = vweird.f32 %v3871_v63  ;;  %v2943_v62 = vld [vmem:[%s4247_s0 + $0x58] sm:$0xff] }
 0x229   :  { %v902_v3 = vmul.f32 %v880_v1, %v859_v59  ;;  %v900_v20 = vsel %vm897_vm12, %v899_v17, %v895_v15  ;;  %v1057_v44 = vand.u32 2147483647, %v3871_v63  ;;  %v2942_v59 = vld [vmem:[%s4247_s0 + $0x18] sm:$0xff] }
 0x22a   :  { %v905_v25 = vsub.f32 1.0, %v900_v20  ;;  %v907_v32 = vmul.f32 %v900_v20, %v3830_v61  ;;  %v1059_v61 = vand.u32 2147483648, %v3871_v63 }
 0x22b   :  { %v903_v12 = vadd.f32 %v2878_v0, %v902_v3  ;;  %v3475_v16 = vpop.eup %3474  ;;  %vm1058_vm6 = vcmp.eq.f32.partialorder %v1057_v44, 8.507059e+37  ;;  %v3321_v44 = vld [vmem:[#allocation4 + $0x10] sm:$0xff] }
 0x22c   :  { %v1029_v18 = vmul.f32 %v3475_v16, %v1027_v57  ;;  %vm1034_vm13 = vweird.f32 %v3475_v16  ;;  %v1060_v46 = vor.u32 1.1754944e-38, %v1059_v61  ;;  %v3393_v57 = vld [vmem:[#allocation6] ss:$0 sm:$0xff] }
 0x22d   :  { %3478 = vtanh.f32 %v903_v12  ;;  %vm1035_vm15 = vmor %vm1033_vm14, %vm1034_vm13 }
 0x22e   :  { %v3477_v19 = vpop.eup %3476  ;;  %v1030_v10 = vsub.f32 1.0, %v1029_v18 }
 0x22f   :  { %v1049_v21 = vmul.f32 %v3477_v19, %v3871_v63  ;;  %vm1054_vm3 = vweird.f32 %v3477_v19 }
 0x230   :  { %v1031_v28 = vmul.f32 %v3475_v16, %v1030_v10  ;;  %vm1055_vm5 = vmor %vm1053_vm4, %vm1054_vm3 }
 0x231   :  { %v1050_v26 = vsub.f32 1.0, %v1049_v21  ;;  %v3396_v21 = vld [vmem:[#allocation6 + $0x4] ss:$0 sm:$0xff] }
 0x232   :  { %v1032_v34 = vadd.f32 %v3475_v16, %v1031_v28 }
 0x233   :  { %v3479_v30 = vpop.eup %3478  ;;  %v1051_v33 = vmul.f32 %v3477_v19, %v1050_v26 }
 0x234   :  { %v906_v31 = vmul.f32 %v3479_v30, %v905_v25  ;;  %v1036_v38 = vsel %vm1035_vm15, %v3475_v16, %v1032_v34  ;;  %v2976_v25 = vld [vmem:[%s4248_s1 + $0x120] sm:$0xff] }
 0x235   :  { %v1041_v41 = vsel %vm1038_vm2, %v1040_v35, %v1036_v38  ;;  %v1052_v42 = vadd.f32 %v3477_v19, %v1051_v33  ;;  %v3324_v33 = vld [vmem:[#allocation4 + $0x28] sm:$0xff] }
 0x236   :  { %v908_v36 = vadd.f32 %v907_v32, %v906_v31  ;;  %v1063_v40 = vmul.f32 %v1041_v41, %v1020_v37  ;;  %v3320_v31 = vld [vmem:[#allocation4 + $0x8] sm:$0xff]  ;;  %v3322_v32 = vld [vmem:[#allocation4 + $0x18] sm:$0xff] }
 0x237   :  { %v1056_v45 = vsel %vm1055_vm5, %v3477_v19, %v1052_v42  ;;  %1433 = vmatpush.bf16.msra.mxu0 %v3320_v31  ;;  %1466 = vmatpush.bf16.msra.mxu1 %v3322_v32  ;;  %v2977_v31 = vld [vmem:[%s4248_s1 + $0x160] sm:$0xff] }
 0x238   :  { %909 = vst.msk [vmem:[#allocation2] sm:$0xff] %vm95_vm0, %v908_v36  ;;  %v910_v43 = vpack.c.bf16 %v908_v36, %v908_v36  ;;  %v1064_v29 = vadd.f32 %v2911_v39, %v1063_v40  ;;  %v1061_v47 = vsel %vm1058_vm6, %v1060_v46, %v1056_v45  ;;  %v3319_v40 = vld [vmem:[#allocation4] sm:$0xff] }
 0x239   :  { %v1066_v50 = vsub.f32 1.0, %v1061_v47  ;;  %v1068_v53 = vmul.f32 %v1061_v47, %v3842_v8  ;;  %v3392_v45 = vld [vmem:[#allocation6 + $0x2] ss:$0 sm:$0xff] }
 0x23a   :  { %2908 = vst.msk [vmem:[%s4251_s4 + $0x8] sm:$0xf] %vm261_vm1, %v910_v43  ;;  %3480 = vtanh.f32 %v1064_v29  ;;  %v3323_v29 = vld [vmem:[#allocation4 + $0x20] sm:$0xff] }
 0x23b   :  { %1434 = vmatpush.bf16.msra.mxu0 %v3319_v40  ;;  %1467 = vmatpush.bf16.msra.mxu1 %v3321_v44 }
 0x23f   :  { %v3897_v48 = vld [vmem:[#allocation2] sm:$0xff] }
 0x240   :  { %v1081_v49 = vpack.c.bf16 %v3897_v48, %v3897_v48  ;;  %v3481_v51 = vpop.eup %3480 }
 0x241   :  { %v1067_v52 = vmul.f32 %v3481_v51, %v1066_v50  ;;  %v3326_v51 = vld [vmem:[#allocation4 + $0x38] sm:$0xff] }
 0x242   :  { %2953 = vmatmul.msk.bf16.vlgmr.msra.gmra.mxu2 %vm95_vm0, %v1081_v49  ;;  %2962 = vmatmul.msk.bf16.vlgmr.msra.gmra.mxu3 %vm95_vm0, %v1081_v49 }
 0x243   :  { %2971 = vmatmul.msk.bf16.vlgmr.msrb.gmra.mxu0 %vm95_vm0, %v1081_v49  ;;  %v1069_v54 = vadd.f32 %v1068_v53, %v1067_v52  ;;  %1499 = vmatpush.bf16.msra.mxu2 %v3324_v33  ;;  %v3328_v52 = vld [vmem:[#allocation4 + $0x48] sm:$0xff] }
 0x244   :  { %1594 = vmatpush.bf16.msra.mxu3 %v3326_v51  ;;  %1627 = vmatpush.bf16.msrb.mxu0 %v3328_v52  ;;  %v3399_v51 = vld [vmem:[#allocation6 + $0x1] ss:$0 sm:$0xff]  ;;  %v3008_v52 = vld [vmem:[%s4247_s0 + $0x20] sm:$0xff] }
 0x245   :  { %1070 = vst.msk [vmem:[#allocation3] sm:$0xff] %vm95_vm0, %v1069_v54  ;;  %v1071_v55 = vpack.c.bf16 %v1069_v54, %v1069_v54 }
 0x247   :  { %2941 = vst.msk [vmem:[%s4252_s5 + $0x14] sm:$0xf] %vm261_vm1, %v1071_v55  ;;  %1500 = vmatpush.bf16.msra.mxu2 %v3323_v29 }
 0x24c   :  { %v3910_v56 = vld [vmem:[#allocation3] sm:$0xff] }
 0x24d   :  { %v1242_v5 = vpack.c.bf16 %v3910_v56, %v3910_v56 }
 0x24f   :  { %2986 = vmatmul.msk.bf16.vlgmr.msrb.gmra.mxu1 %vm95_vm0, %v1242_v5 }
 0x252   :  { %2995 = vmatmul.msk.bf16.vlgmr.msrb.gmra.mxu2 %vm95_vm0, %v1242_v5  ;;  %3004 = vmatmul.msk.bf16.vlgmr.msrb.gmra.mxu3 %vm95_vm0, %v1242_v5 }
 0x2c0   :  { %v3917_v8 = vpop.f32.mrf.mxu0 }
 0x2c1   :  { %v1181_v55 = vadd.f32 %v3392_v45, %v3917_v8 }
 0x2c5   :  { %v1114_v60 = vpop.f32.mrf.mxu2  ;;  %v1147_v63 = vpop.f32.mrf.mxu3 }
 0x2c6   :  { %v1115_v0 = vadd.f32 %v3393_v57, %v1114_v60  ;;  %v1148_v1 = vadd.f32 %v3394_v58, %v1147_v63  ;;  %v3325_v58 = vld [vmem:[#allocation4 + $0x30] sm:$0xff] }
 0x2c7   :  { %1595 = vmatpush.bf16.msra.mxu3 %v3325_v58 }
 0x2c8   :  { %v1184_v2 = vadd.f32 %v2942_v59, %v1115_v0  ;;  %v1204_v7 = vadd.f32 %v2943_v62, %v1148_v1  ;;  %v1182_v3 = vpop.f32.mrf.mxu0  ;;  %v2944_v59 = vld [vmem:[%s4247_s0 + $0x98] sm:$0xff] }
 0x2c9   :  { %v3401_v3 = vld [vmem:[#allocation6 + $0x3] ss:$0 sm:$0xff] }
 0x2ca   :  { %v2972_v4 = vmul.f32 -1.442695, %v1184_v2  ;;  %v2973_v6 = vmul.f32 -1.442695, %v1204_v7 }
 0x2cc   :  { %3482 = vpow2.f32 %v2972_v4  ;;  %v1275_v14 = vpop.f32.mrf.mxu1 }
 0x2cd   :  { %3484 = vpow2.f32 %v2973_v6  ;;  %v1116_v11 = vpop.f32.mrf.mxu2  ;;  %v1149_v12 = vpop.f32.mrf.mxu3  ;;  %v1276_v15 = vadd.f32 %v3395_v9, %v1275_v14  ;;  %v3327_v14 = vld [vmem:[#allocation4 + $0x40] sm:$0xff] }
 0x2ce   :  { %v3397_v11 = vld [vmem:[#allocation6 + $0x5] ss:$0 sm:$0xff]  ;;  %1628 = vmatpush.bf16.msrb.mxu0 %v3327_v14 }
 0x2cf   :  { %v1345_v16 = vadd.f32 %v2975_v13, %v1276_v15  ;;  %v3330_v13 = vld [vmem:[#allocation4 + $0x58] sm:$0xff] }
 0x2d0   :  { %1660 = vmatpush.bf16.msrb.mxu1 %v3330_v13  ;;  %v3041_v13 = vld [vmem:[%s4248_s1 + $0xd8] sm:$0xff] }
 0x2d1   :  { %v3005_v20 = vmul.f32 -1.442695, %v1345_v16 }
 0x2d2   :  { %v3483_v17 = vpop.eup %3482 }
 0x2d3   :  { %v3485_v18 = vpop.eup %3484  ;;  %v1188_v19 = vadd.f32 1.0, %v3483_v17 }
 0x2d4   :  { %v3928_v10 = vadd.f32 1.0, %v3485_v18  ;;  %v1277_v24 = vpop.f32.mrf.mxu1 }
 0x2d5   :  { %3486 = vrcp.f32 %v1188_v19  ;;  %v1308_v22 = vpop.f32.mrf.mxu2  ;;  %v3930_v23 = vpop.f32.mrf.mxu3  ;;  %v1200_v43 = vand.u32 2147483648, %v1188_v19  ;;  %v1198_v47 = vand.u32 2147483647, %v1188_v19  ;;  %vm1194_vm8 = vweird.f32 %v1188_v19 }
 0x2d6   :  { %3488 = vrcp.f32 %v3928_v10  ;;  %v1309_v26 = vadd.f32 %v3396_v21, %v1308_v22  ;;  %v1220_v8 = vand.u32 2147483648, %v3928_v10  ;;  %vm1214_vm12 = vweird.f32 %v3928_v10 }
 0x2d7   :  { %3490 = vpow2.f32 %v3005_v20  ;;  %v1201_v54 = vor.u32 1.1754944e-38, %v1200_v43  ;;  %vm1199_vm10 = vcmp.eq.f32.partialorder %v1198_v47, 8.507059e+37  ;;  %v1218_v1 = vand.u32 2147483647, %v3928_v10 }
 0x2d8   :  { %v1365_v27 = vadd.f32 %v2976_v25, %v1309_v26  ;;  %v1221_v9 = vor.u32 1.1754944e-38, %v1220_v8 }
 0x2d9   :  { %vm1219_vm14 = vcmp.eq.f32.partialorder %v1218_v1, 8.507059e+37 }
 0x2da   :  { %v3006_v30 = vmul.f32 -1.442695, %v1365_v27 }
 0x2db   :  { %v3487_v28 = vpop.eup %3486 }
 0x2dc   :  { %v3936_v34 = vpop.eup %3488  ;;  %v1190_v35 = vmul.f32 %v3487_v28, %v1188_v19  ;;  %3492 = vpow2.f32 %v3006_v30  ;;  %vm1195_vm7 = vweird.f32 %v3487_v28  ;;  %v3329_v19 = vld [vmem:[#allocation4 + $0x50] sm:$0xff] }
 0x2dd   :  { %v3491_v36 = vpop.eup %3490  ;;  %v1210_v37 = vmul.f32 %v3936_v34, %v3928_v10  ;;  %v1310_v38 = vpop.f32.mrf.mxu2  ;;  %vm1196_vm9 = vmor %vm1194_vm8, %vm1195_vm7  ;;  %vm1215_vm11 = vweird.f32 %v3936_v34  ;;  %v1342_v10 = vadd.f32 %v3397_v11, %v3930_v23  ;;  %1661 = vmatpush.bf16.msrb.mxu1 %v3329_v19 }
 0x2de   :  { %v1343_v39 = vpop.f32.mrf.mxu3  ;;  %v1191_v41 = vsub.f32 1.0, %v1190_v35  ;;  %v3940_v42 = vadd.f32 1.0, %v3491_v36  ;;  %vm3957_vm13 = vmor %vm1214_vm12, %vm1215_vm11 }
 0x2df   :  { %v1211_v61 = vsub.f32 1.0, %v1210_v37 }
 0x2e0   :  { %v1192_v46 = vmul.f32 %v3487_v28, %v1191_v41  ;;  %3494 = vrcp.f32 %v3940_v42  ;;  %v1361_v12 = vand.u32 2147483648, %v3940_v42  ;;  %v1359_v16 = vand.u32 2147483647, %v3940_v42 }
 0x2e1   :  { %v1212_v49 = vmul.f32 %v3936_v34, %v1211_v61  ;;  %vm1355_vm2 = vweird.f32 %v3940_v42 }
 0x2e2   :  { %v1193_v50 = vadd.f32 %v3487_v28, %v1192_v46  ;;  %v3493_v53 = vpop.eup %3492  ;;  %v1362_v22 = vor.u32 1.1754944e-38, %v1361_v12  ;;  %vm1360_vm4 = vcmp.eq.f32.partialorder %v1359_v16, 8.507059e+37 }
 0x2e3   :  { %v3945_v57 = vadd.f32 1.0, %v3493_v53  ;;  %v1213_v62 = vadd.f32 %v3936_v34, %v1212_v49 }
 0x2e4   :  { %v1197_v5 = vsel %vm1196_vm9, %v3487_v28, %v1193_v50  ;;  %v3398_v50 = vld [vmem:[#allocation6] ss:$0 sm:$0xff] }
 0x2e5   :  { %v1202_v60 = vsel %vm1199_vm10, %v1201_v54, %v1197_v5  ;;  %3496 = vrcp.f32 %v3945_v57  ;;  %v1217_v4 = vsel %vm3957_vm13, %v3936_v34, %v1213_v62  ;;  %v1381_v30 = vand.u32 2147483648, %v3945_v57  ;;  %v3009_v54 = vld [vmem:[%s4247_s0 + $0x60] sm:$0xff] }
 0x2e6   :  { %v3495_v63 = vpop.eup %3494  ;;  %v1224_v0 = vmul.f32 %v1202_v60, %v1181_v55  ;;  %v1222_v18 = vsel %vm1219_vm14, %v1221_v9, %v1217_v4  ;;  %v1379_v33 = vand.u32 2147483647, %v3945_v57  ;;  %vm1375_vm6 = vweird.f32 %v3945_v57  ;;  %v3402_v4 = vld [vmem:[#allocation6 + $0x4] ss:$0 sm:$0xff] }
 0x2e7   :  { %v1351_v2 = vmul.f32 %v3495_v63, %v3940_v42  ;;  %vm1356_vm15 = vweird.f32 %v3495_v63  ;;  %v1227_v24 = vsub.f32 1.0, %v1222_v18  ;;  %v1229_v28 = vmul.f32 %v1222_v18, %v3897_v48 }
 0x2e8   :  { %v1225_v7 = vadd.f32 %v2944_v59, %v1224_v0  ;;  %vm1357_vm3 = vmor %vm1355_vm2, %vm1356_vm15  ;;  %v1382_v48 = vor.u32 1.1754944e-38, %v1381_v30  ;;  %vm1380_vm8 = vcmp.eq.f32.partialorder %v1379_v33, 8.507059e+37 }
 0x2e9   :  { %v1352_v6 = vsub.f32 1.0, %v1351_v2 }
 0x2ea   :  { %3498 = vtanh.f32 %v1225_v7 }
 0x2eb   :  { %v1353_v15 = vmul.f32 %v3495_v63, %v1352_v6  ;;  %v3497_v17 = vpop.eup %3496 }
 0x2ec   :  { %v1371_v20 = vmul.f32 %v3497_v17, %v3945_v57  ;;  %vm1376_vm5 = vweird.f32 %v3497_v17 }
 0x2ed   :  { %v1354_v21 = vadd.f32 %v3495_v63, %v1353_v15  ;;  %vm1377_vm7 = vmor %vm1375_vm6, %vm1376_vm5  ;;  %v3042_v15 = vld [vmem:[%s4248_s1 + $0x118] sm:$0xff] }
 0x2ee   :  { %v1372_v25 = vsub.f32 1.0, %v1371_v20 }
 0x2ef   :  { %v1358_v26 = vsel %vm1357_vm3, %v3495_v63, %v1354_v21 }
 0x2f0   :  { %v3499_v27 = vpop.eup %3498  ;;  %v1363_v32 = vsel %vm1360_vm4, %v1362_v22, %v1358_v26  ;;  %v1373_v34 = vmul.f32 %v3497_v17, %v1372_v25  ;;  %v3332_v25 = vld [vmem:[#allocation4 + $0x8] sm:$0xff]  ;;  %v3334_v26 = vld [vmem:[#allocation4 + $0x18] sm:$0xff] }
 0x2f1   :  { %v1228_v23 = vmul.f32 %v3499_v27, %v1227_v24  ;;  %v1385_v35 = vmul.f32 %v1363_v32, %v1342_v10  ;;  %v3336_v27 = vld [vmem:[#allocation4 + $0x28] sm:$0xff]  ;;  %1755 = vmatpush.bf16.msrb.mxu2 %v3332_v25  ;;  %1788 = vmatpush.bf16.msrb.mxu3 %v3334_v26 }
 0x2f2   :  { %v1374_v37 = vadd.f32 %v3497_v17, %v1373_v34  ;;  %v3400_v34 = vld [vmem:[#allocation6 + $0x2] ss:$0 sm:$0xff]  ;;  %v3043_v26 = vld [vmem:[%s4248_s1 + $0x158] sm:$0xff] }
 0x2f3   :  { %v1230_v36 = vadd.f32 %v1229_v28, %v1228_v23  ;;  %v1386_v38 = vadd.f32 %v2977_v31, %v1385_v35 }
 0x2f4   :  { %v1378_v41 = vsel %vm1377_vm7, %v3497_v17, %v1374_v37 }
 0x2f5   :  { %1231 = vst.msk [vmem:[#allocation2] sm:$0xff] %vm95_vm0, %v1230_v36  ;;  %v1232_v39 = vpack.c.bf16 %v1230_v36, %v1230_v36  ;;  %3500 = vtanh.f32 %v1386_v38  ;;  %v1383_v42 = vsel %vm1380_vm8, %v1382_v48, %v1378_v41  ;;  %v3331_v38 = vld [vmem:[#allocation4] sm:$0xff]  ;;  %v3333_v48 = vld [vmem:[#allocation4 + $0x10] sm:$0xff] }
 0x2f6   :  { %v1388_v43 = vsub.f32 1.0, %v1383_v42  ;;  %v1390_v44 = vmul.f32 %v1383_v42, %v3910_v56  ;;  %1756 = vmatpush.bf16.msrb.mxu2 %v3331_v38  ;;  %1789 = vmatpush.bf16.msrb.mxu3 %v3333_v48 }
 0x2f7   :  { %2974 = vst.msk [vmem:[%s4251_s4 + $0xc] sm:$0xf] %vm261_vm1, %v1232_v39  ;;  %v3335_v39 = vld [vmem:[#allocation4 + $0x20] sm:$0xff] }
 0x2fb   :  { %v3501_v61 = vpop.eup %3500 }
 0x2fc   :  { %v1389_v40 = vmul.f32 %v3501_v61, %v1388_v43  ;;  %v3982_v29 = vld [vmem:[#allocation2] sm:$0xff] }
 0x2fd   :  { %v1403_v45 = vpack.c.bf16 %v3982_v29, %v3982_v29 }
 0x2fe   :  { %v1391_v46 = vadd.f32 %v1390_v44, %v1389_v40 }
 0x2ff   :  { %3019 = vmatmul.msk.bf16.vlgmr.msra.gmra.mxu0 %vm95_vm0, %v1403_v45  ;;  %3028 = vmatmul.msk.bf16.vlgmr.msra.gmra.mxu1 %vm95_vm0, %v1403_v45 }
 0x300   :  { %1392 = vst.msk [vmem:[#allocation3] sm:$0xff] %vm95_vm0, %v1391_v46  ;;  %v1393_v47 = vpack.c.bf16 %v1391_v46, %v1391_v46  ;;  %3037 = vmatmul.msk.bf16.vlgmr.msra.gmra.mxu2 %vm95_vm0, %v1403_v45  ;;  %1821 = vmatpush.bf16.msra.mxu0 %v3336_v27 }
 0x302   :  { %3007 = vst.msk [vmem:[%s4252_s5 + $0x10] sm:$0xf] %vm261_vm1, %v1393_v47  ;;  %v3010_v47 = vld [vmem:[%s4247_s0 + $0xa0] sm:$0xff] }
 0x304   :  { %1822 = vmatpush.bf16.msra.mxu0 %v3335_v39 }
 0x307   :  { %v3994_v56 = vld [vmem:[#allocation3] sm:$0xff] }
 0x308   :  { %v1564_v49 = vpack.c.bf16 %v3994_v56, %v3994_v56 }
 0x30a   :  { %3052 = vmatmul.msk.bf16.vlgmr.msra.gmra.mxu3 %vm95_vm0, %v1564_v49 }
 0x30f   :  { %3061 = vmatmul.msk.bf16.vlgmr.msrb.gmra.mxu0 %vm95_vm0, %v1564_v49  ;;  %3070 = vmatmul.msk.bf16.vlgmr.msrb.gmra.mxu1 %vm95_vm0, %v1564_v49 }
 0x37c   :  { %v1436_v53 = vpop.f32.mrf.mxu0  ;;  %v1469_v55 = vpop.f32.mrf.mxu1 }
 0x37d   :  { %v1437_v5 = vadd.f32 %v3398_v50, %v1436_v53  ;;  %v1470_v57 = vadd.f32 %v3399_v51, %v1469_v55 }
 0x37f   :  { %v1506_v58 = vadd.f32 %v3008_v52, %v1437_v5  ;;  %v1526_v59 = vadd.f32 %v3009_v54, %v1470_v57  ;;  %v3338_v57 = vld [vmem:[#allocation4 + $0x38] sm:$0xff] }
 0x380   :  { %1916 = vmatpush.bf16.msra.mxu1 %v3338_v57  ;;  %v3407_v57 = vld [vmem:[#allocation6 + $0x3] ss:$0 sm:$0xff] }
 0x381   :  { %v3038_v60 = vmul.f32 -1.442695, %v1506_v58  ;;  %v3039_v62 = vmul.f32 -1.442695, %v1526_v59  ;;  %v3340_v58 = vld [vmem:[#allocation4 + $0x48] sm:$0xff] }
 0x382   :  { %1949 = vmatpush.bf16.msra.mxu2 %v3340_v58 }
 0x383   :  { %3502 = vpow2.f32 %v3038_v60  ;;  %v1502_v63 = vpop.f32.mrf.mxu2  ;;  %v3342_v60 = vld [vmem:[#allocation4 + $0x58] sm:$0xff] }
 0x384   :  { %3504 = vpow2.f32 %v3039_v62  ;;  %v1438_v0 = vpop.f32.mrf.mxu0  ;;  %v1471_v8 = vpop.f32.mrf.mxu1  ;;  %v1503_v44 = vadd.f32 %v3400_v34, %v1502_v63  ;;  %v3337_v63 = vld [vmem:[#allocation4 + $0x30] sm:$0xff]  ;;  %1982 = vmatpush.bf16.msra.mxu3 %v3342_v60  ;;  %v3107_v60 = vld [vmem:[%s4248_s1 + $0xd0] sm:$0xff] }
 0x385   :  { %v3339_v0 = vld [vmem:[#allocation4 + $0x40] sm:$0xff]  ;;  %1917 = vmatpush.bf16.msra.mxu1 %v3337_v63 }
 0x386   :  { %1950 = vmatpush.bf16.msra.mxu2 %v3339_v0 }
 0x389   :  { %v3503_v1 = vpop.eup %3502 }
 0x38a   :  { %v3505_v2 = vpop.eup %3504  ;;  %v1510_v7 = vadd.f32 1.0, %v3503_v1 }
 0x38b   :  { %v4007_v6 = vadd.f32 1.0, %v3505_v2  ;;  %v1504_v9 = vpop.f32.mrf.mxu2 }
 0x38c   :  { %3506 = vrcp.f32 %v1510_v7  ;;  %v1630_v11 = vpop.f32.mrf.mxu0  ;;  %v4009_v12 = vpop.f32.mrf.mxu1  ;;  %v1522_v35 = vand.u32 2147483648, %v1510_v7  ;;  %v1520_v37 = vand.u32 2147483647, %v1510_v7  ;;  %vm1516_vm10 = vweird.f32 %v1510_v7 }
 0x38d   :  { %3508 = vrcp.f32 %v4007_v6  ;;  %v1597_v14 = vpop.f32.mrf.mxu3  ;;  %v1631_v17 = vadd.f32 %v3402_v4, %v1630_v11  ;;  %v1542_v52 = vand.u32 2147483648, %v4007_v6  ;;  %vm1536_vm14 = vweird.f32 %v4007_v6 }
 0x38e   :  { %v1598_v16 = vadd.f32 %v3401_v3, %v1597_v14  ;;  %v1523_v61 = vor.u32 1.1754944e-38, %v1522_v35  ;;  %vm1521_vm12 = vcmp.eq.f32.partialorder %v1520_v37, 8.507059e+37  ;;  %v1540_v54 = vand.u32 2147483647, %v4007_v6 }
 0x38f   :  { %v1687_v19 = vadd.f32 %v3042_v15, %v1631_v17  ;;  %v1543_v62 = vor.u32 1.1754944e-38, %v1542_v52  ;;  %v3341_v15 = vld [vmem:[#allocation4 + $0x50] sm:$0xff]  ;;  %v3403_v17 = vld [vmem:[#allocation6 + $0x5] ss:$0 sm:$0xff] }
 0x390   :  { %v1667_v18 = vadd.f32 %v3041_v13, %v1598_v16  ;;  %vm1541_vm2 = vcmp.eq.f32.partialorder %v1540_v54, 8.507059e+37  ;;  %1983 = vmatpush.bf16.msra.mxu3 %v3341_v15 }
 0x391   :  { %v3072_v10 = vmul.f32 -1.442695, %v1687_v19 }
 0x392   :  { %v3507_v20 = vpop.eup %3506  ;;  %v3071_v21 = vmul.f32 -1.442695, %v1667_v18 }
 0x393   :  { %v4018_v22 = vpop.eup %3508  ;;  %v1512_v24 = vmul.f32 %v3507_v20, %v1510_v7  ;;  %vm1517_vm9 = vweird.f32 %v3507_v20 }
 0x394   :  { %v1532_v28 = vmul.f32 %v4018_v22, %v4007_v6  ;;  %3510 = vpow2.f32 %v3071_v21  ;;  %v1632_v30 = vpop.f32.mrf.mxu0  ;;  %v1665_v31 = vpop.f32.mrf.mxu1  ;;  %vm1518_vm11 = vmor %vm1516_vm10, %vm1517_vm9  ;;  %vm1537_vm13 = vweird.f32 %v4018_v22 }
 0x395   :  { %v1513_v32 = vsub.f32 1.0, %v1512_v24  ;;  %3512 = vpow2.f32 %v3072_v10  ;;  %v1599_v33 = vpop.f32.mrf.mxu3  ;;  %vm4034_vm15 = vmor %vm1536_vm14, %vm1537_vm13 }
 0x396   :  { %v1533_v23 = vsub.f32 1.0, %v1532_v28 }
 0x397   :  { %v1514_v36 = vmul.f32 %v3507_v20, %v1513_v32 }
 0x398   :  { %v1534_v41 = vmul.f32 %v4018_v22, %v1533_v23 }
 0x399   :  { %v1515_v42 = vadd.f32 %v3507_v20, %v1514_v36 }
 0x39a   :  { %v3511_v43 = vpop.eup %3510  ;;  %v1535_v50 = vadd.f32 %v4018_v22, %v1534_v41 }
 0x39b   :  { %v3513_v40 = vpop.eup %3512  ;;  %v1519_v45 = vsel %vm1518_vm11, %v3507_v20, %v1515_v42  ;;  %v1671_v46 = vadd.f32 1.0, %v3511_v43 }
 0x39c   :  { %v1524_v49 = vsel %vm1521_vm12, %v1523_v61, %v1519_v45  ;;  %v4028_v51 = vadd.f32 1.0, %v3513_v40  ;;  %v1539_v59 = vsel %vm4034_vm15, %v4018_v22, %v1535_v50  ;;  %v3405_v40 = vld [vmem:[#allocation6] ss:$0 sm:$0xff]  ;;  %v3074_v45 = vld [vmem:[%s4247_s0 + $0x28] sm:$0xff] }
 0x39d   :  { %v1546_v53 = vmul.f32 %v1524_v49, %v1503_v44  ;;  %3514 = vrcp.f32 %v1671_v46  ;;  %v1544_v1 = vsel %vm1541_vm2, %v1543_v62, %v1539_v59  ;;  %v1683_v14 = vand.u32 2147483648, %v1671_v46  ;;  %v3406_v44 = vld [vmem:[#allocation6 + $0x1] ss:$0 sm:$0xff] }
 0x39e   :  { %3516 = vrcp.f32 %v4028_v51  ;;  %v1549_v4 = vsub.f32 1.0, %v1544_v1  ;;  %v1551_v11 = vmul.f32 %v1544_v1, %v3982_v29  ;;  %v1681_v19 = vand.u32 2147483647, %v1671_v46 }
 0x39f   :  { %v1547_v5 = vadd.f32 %v3010_v47, %v1546_v53  ;;  %vm1677_vm4 = vweird.f32 %v1671_v46  ;;  %v1684_v22 = vor.u32 1.1754944e-38, %v1683_v14  ;;  %v1664_v29 = vadd.f32 %v3403_v17, %v4009_v12  ;;  %v3075_v47 = vld [vmem:[%s4247_s0 + $0x68] sm:$0xff] }
 0x3a0   :  { %vm1682_vm6 = vcmp.eq.f32.partialorder %v1681_v19, 8.507059e+37  ;;  %v1703_v30 = vand.u32 2147483648, %v4028_v51  ;;  %vm1697_vm8 = vweird.f32 %v4028_v51  ;;  %v1701_v12 = vand.u32 2147483647, %v4028_v51 }
 0x3a1   :  { %3518 = vtanh.f32 %v1547_v5 }
 0x3a2   :  { %v1704_v23 = vor.u32 1.1754944e-38, %v1703_v30  ;;  %vm1702_vm10 = vcmp.eq.f32.partialorder %v1701_v12, 8.507059e+37  ;;  %v3404_v30 = vld [vmem:[#allocation6 + $0x2] ss:$0 sm:$0xff] }
 0x3a3   :  { %v3515_v8 = vpop.eup %3514 }
 0x3a4   :  { %v3517_v2 = vpop.eup %3516  ;;  %v1673_v7 = vmul.f32 %v3515_v8, %v1671_v46  ;;  %vm1678_vm3 = vweird.f32 %v3515_v8 }
 0x3a5   :  { %v1693_v3 = vmul.f32 %v3517_v2, %v4028_v51  ;;  %vm1679_vm5 = vmor %vm1677_vm4, %vm1678_vm3  ;;  %vm1698_vm7 = vweird.f32 %v3517_v2 }
 0x3a6   :  { %v1674_v6 = vsub.f32 1.0, %v1673_v7  ;;  %vm1699_vm9 = vmor %vm1697_vm8, %vm1698_vm7  ;;  %v3408_v7 = vld [vmem:[#allocation6 + $0x4] ss:$0 sm:$0xff] }
 0x3a7   :  { %v3519_v9 = vpop.eup %3518  ;;  %v1694_v13 = vsub.f32 1.0, %v1693_v3 }
 0x3a8   :  { %v1550_v16 = vmul.f32 %v3519_v9, %v1549_v4  ;;  %v1675_v18 = vmul.f32 %v3515_v8, %v1674_v6  ;;  %v3108_v4 = vld [vmem:[%s4248_s1 + $0x110] sm:$0xff] }
 0x3a9   :  { %v1695_v20 = vmul.f32 %v3517_v2, %v1694_v13 }
 0x3aa   :  { %v1552_v21 = vadd.f32 %v1551_v11, %v1550_v16  ;;  %v1676_v10 = vadd.f32 %v3515_v8, %v1675_v18 }
 0x3ab   :  { %v1696_v28 = vadd.f32 %v3517_v2, %v1695_v20 }
 0x3ac   :  { %1553 = vst.msk [vmem:[#allocation2] sm:$0xff] %vm95_vm0, %v1552_v21  ;;  %v1554_v24 = vpack.c.bf16 %v1552_v21, %v1552_v21  ;;  %v1680_v25 = vsel %vm1679_vm5, %v3515_v8, %v1676_v10  ;;  %v3344_v21 = vld [vmem:[#allocation4 + $0x8] sm:$0xff]  ;;  %v3346_v10 = vld [vmem:[#allocation4 + $0x18] sm:$0xff] }
 0x3ad   :  { %v1685_v27 = vsel %vm1682_vm6, %v1684_v22, %v1680_v25  ;;  %v1700_v33 = vsel %vm1699_vm9, %v3517_v2, %v1696_v28  ;;  %2077 = vmatpush.bf16.msrb.mxu0 %v3344_v21  ;;  %2110 = vmatpush.bf16.msrb.mxu1 %v3346_v10 }
 0x3ae   :  { %3040 = vst.msk [vmem:[%s4251_s4 + $0x10] sm:$0xf] %vm261_vm1, %v1554_v24  ;;  %v1707_v31 = vmul.f32 %v1685_v27, %v1664_v29  ;;  %v1705_v35 = vsel %vm1702_vm10, %v1704_v23, %v1700_v33  ;;  %v3348_v29 = vld [vmem:[#allocation4 + $0x28] sm:$0xff]  ;;  %v3343_v23 = vld [vmem:[#allocation4] sm:$0xff] }
 0x3af   :  { %v1710_v37 = vsub.f32 1.0, %v1705_v35  ;;  %v1712_v39 = vmul.f32 %v1705_v35, %v3994_v56  ;;  %v3345_v35 = vld [vmem:[#allocation4 + $0x10] sm:$0xff] }
 0x3b0   :  { %v1708_v32 = vadd.f32 %v3043_v26, %v1707_v31 }
 0x3b1   :  { %2078 = vmatpush.bf16.msrb.mxu0 %v3343_v23  ;;  %2111 = vmatpush.bf16.msrb.mxu1 %v3345_v35 }
 0x3b2   :  { %3520 = vtanh.f32 %v1708_v32 }
 0x3b3   :  { %v4055_v34 = vld [vmem:[#allocation2] sm:$0xff] }
 0x3b4   :  { %v1725_v36 = vpack.c.bf16 %v4055_v34, %v4055_v34 }
 0x3b6   :  { %3085 = vmatmul.msk.bf16.vlgmr.msrb.gmra.mxu2 %vm95_vm0, %v1725_v36  ;;  %3094 = vmatmul.msk.bf16.vlgmr.msrb.gmra.mxu3 %vm95_vm0, %v1725_v36 }
 0x3b7   :  { %3103 = vmatmul.msk.bf16.vlgmr.msra.gmra.mxu0 %vm95_vm0, %v1725_v36  ;;  %2143 = vmatpush.bf16.msrb.mxu2 %v3348_v29  ;;  %v3347_v36 = vld [vmem:[#allocation4 + $0x20] sm:$0xff] }
 0x3b8   :  { %v3521_v38 = vpop.eup %3520 }
 0x3b9   :  { %v1711_v48 = vmul.f32 %v3521_v38, %v1710_v37 }
 0x3bb   :  { %v1713_v41 = vadd.f32 %v1712_v39, %v1711_v48  ;;  %2144 = vmatpush.bf16.msrb.mxu2 %v3347_v36  ;;  %v3410_v36 = vld [vmem:[#allocation6] ss:$0 sm:$0xff] }
 0x3bd   :  { %1714 = vst.msk [vmem:[#allocation3] sm:$0xff] %vm95_vm0, %v1713_v41  ;;  %v1715_v42 = vpack.c.bf16 %v1713_v41, %v1713_v41 }
 0x3bf   :  { %3073 = vst.msk [vmem:[%s4252_s5 + $0xc] sm:$0xf] %vm261_vm1, %v1715_v42 }
 0x3c4   :  { %v4068_v43 = vld [vmem:[#allocation3] sm:$0xff] }
 0x3c5   :  { %v1886_v61 = vpack.c.bf16 %v4068_v43, %v4068_v43 }
 0x3c7   :  { %3118 = vmatmul.msk.bf16.vlgmr.msra.gmra.mxu1 %vm95_vm0, %v1886_v61  ;;  %3127 = vmatmul.msk.bf16.vlgmr.msra.gmra.mxu2 %vm95_vm0, %v1886_v61 }
 0x3c8   :  { %3136 = vmatmul.msk.bf16.vlgmr.msra.gmra.mxu3 %vm95_vm0, %v1886_v61  ;;  %v3350_v61 = vld [vmem:[#allocation4 + $0x38] sm:$0xff] }
 0x3c9   :  { %2238 = vmatpush.bf16.msrb.mxu3 %v3350_v61 }
 0x434   :  { %v4075_v56 = vpop.f32.mrf.mxu0 }
 0x435   :  { %v1825_v39 = vadd.f32 %v3404_v30, %v4075_v56  ;;  %v3349_v56 = vld [vmem:[#allocation4 + $0x30] sm:$0xff] }
 0x436   :  { %2239 = vmatpush.bf16.msrb.mxu3 %v3349_v56 }
 0x439   :  { %v1758_v46 = vpop.f32.mrf.mxu2  ;;  %v1791_v49 = vpop.f32.mrf.mxu3 }
 0x43a   :  { %v1759_v50 = vadd.f32 %v3405_v40, %v1758_v46  ;;  %v1792_v51 = vadd.f32 %v3406_v44, %v1791_v49  ;;  %v3352_v40 = vld [vmem:[#allocation4 + $0x48] sm:$0xff]  ;;  %v3076_v44 = vld [vmem:[%s4247_s0 + $0xa8] sm:$0xff] }
 0x43b   :  { %2271 = vmatpush.bf16.msra.mxu0 %v3352_v40 }
 0x43c   :  { %v1828_v52 = vadd.f32 %v3074_v45, %v1759_v50  ;;  %v1848_v53 = vadd.f32 %v3075_v47, %v1792_v51  ;;  %v1826_v54 = vpop.f32.mrf.mxu0 }
 0x43e   :  { %v3104_v55 = vmul.f32 -1.442695, %v1828_v52  ;;  %v3105_v5 = vmul.f32 -1.442695, %v1848_v53 }
 0x440   :  { %3522 = vpow2.f32 %v3104_v55 }
 0x441   :  { %3524 = vpow2.f32 %v3105_v5  ;;  %v1760_v58 = vpop.f32.mrf.mxu2  ;;  %v1793_v59 = vpop.f32.mrf.mxu3  ;;  %v3409_v5 = vld [vmem:[#allocation6 + $0x5] ss:$0 sm:$0xff] }
 0x444   :  { %v1919_v62 = vpop.f32.mrf.mxu1 }
 0x445   :  { %v1920_v63 = vadd.f32 %v3407_v57, %v1919_v62 }
 0x446   :  { %v3523_v0 = vpop.eup %3522 }
 0x447   :  { %v3525_v8 = vpop.eup %3524  ;;  %v1832_v1 = vadd.f32 1.0, %v3523_v0  ;;  %v1989_v2 = vadd.f32 %v3107_v60, %v1920_v63  ;;  %v3354_v63 = vld [vmem:[#allocation4 + $0x58] sm:$0xff]  ;;  %v3351_v0 = vld [vmem:[#allocation4 + $0x40] sm:$0xff] }
 0x448   :  { %v4086_v3 = vadd.f32 1.0, %v3525_v8  ;;  %2304 = vmatpush.bf16.msra.mxu1 %v3354_v63  ;;  %2272 = vmatpush.bf16.msra.mxu0 %v3351_v0 }
 0x449   :  { %3526 = vrcp.f32 %v1832_v1  ;;  %v3137_v9 = vmul.f32 -1.442695, %v1989_v2  ;;  %v1844_v26 = vand.u32 2147483648, %v1832_v1  ;;  %v1842_v12 = vand.u32 2147483647, %v1832_v1 }
 0x44a   :  { %3528 = vrcp.f32 %v4086_v3  ;;  %v1952_v6 = vpop.f32.mrf.mxu2  ;;  %vm1838_vm12 = vweird.f32 %v1832_v1  ;;  %v1864_v49 = vand.u32 2147483648, %v4086_v3  ;;  %vm1858_vm2 = vweird.f32 %v4086_v3 }
 0x44b   :  { %v1953_v11 = vadd.f32 %v3408_v7, %v1952_v6  ;;  %v4092_v13 = vpop.f32.mrf.mxu3  ;;  %3530 = vpow2.f32 %v3137_v9  ;;  %v1845_v48 = vor.u32 1.1754944e-38, %v1844_v26  ;;  %vm1843_vm14 = vcmp.eq.f32.partialorder %v1842_v12, 8.507059e+37  ;;  %v3353_v7 = vld [vmem:[#allocation4 + $0x50] sm:$0xff] }
 0x44c   :  { %v1921_v14 = vpop.f32.mrf.mxu1  ;;  %v1862_v50 = vand.u32 2147483647, %v4086_v3  ;;  %v1865_v55 = vor.u32 1.1754944e-38, %v1864_v49  ;;  %v1986_v2 = vadd.f32 %v3409_v5, %v4092_v13  ;;  %2305 = vmatpush.bf16.msra.mxu1 %v3353_v7  ;;  %v3413_v5 = vld [vmem:[#allocation6 + $0x3] ss:$0 sm:$0xff] }
 0x44d   :  { %v2009_v15 = vadd.f32 %v3108_v4, %v1953_v11 }
 0x44e   :  { %vm1863_vm4 = vcmp.eq.f32.partialorder %v1862_v50, 8.507059e+37 }
 0x44f   :  { %v3527_v16 = vpop.eup %3526  ;;  %v3138_v17 = vmul.f32 -1.442695, %v2009_v15 }
 0x450   :  { %v4094_v18 = vpop.eup %3528  ;;  %v1834_v19 = vmul.f32 %v3527_v16, %v1832_v1  ;;  %vm1839_vm11 = vweird.f32 %v3527_v16 }
 0x451   :  { %v1854_v20 = vmul.f32 %v4094_v18, %v4086_v3  ;;  %3532 = vpow2.f32 %v3138_v17  ;;  %v3531_v25 = vpop.eup %3530  ;;  %vm1840_vm13 = vmor %vm1838_vm12, %vm1839_vm11  ;;  %vm1859_vm15 = vweird.f32 %v4094_v18 }
 0x452   :  { %v1835_v22 = vsub.f32 1.0, %v1834_v19  ;;  %v1954_v24 = vpop.f32.mrf.mxu2  ;;  %v4098_v32 = vadd.f32 1.0, %v3531_v25  ;;  %vm1860_vm3 = vmor %vm1858_vm2, %vm1859_vm15 }
 0x453   :  { %v1855_v27 = vsub.f32 1.0, %v1854_v20  ;;  %v1987_v28 = vpop.f32.mrf.mxu3 }
 0x454   :  { %v1836_v31 = vmul.f32 %v3527_v16, %v1835_v22  ;;  %3534 = vrcp.f32 %v4098_v32  ;;  %v2003_v60 = vand.u32 2147483647, %v4098_v32  ;;  %v2005_v62 = vand.u32 2147483648, %v4098_v32 }
 0x455   :  { %v1856_v33 = vmul.f32 %v4094_v18, %v1855_v27  ;;  %vm1999_vm6 = vweird.f32 %v4098_v32 }
 0x456   :  { %v1837_v37 = vadd.f32 %v3527_v16, %v1836_v31  ;;  %vm2004_vm8 = vcmp.eq.f32.partialorder %v2003_v60, 8.507059e+37  ;;  %v2006_v15 = vor.u32 1.1754944e-38, %v2005_v62  ;;  %v3173_v62 = vld [vmem:[%s4248_s1 + $0xc8] sm:$0xff] }
 0x457   :  { %v3533_v38 = vpop.eup %3532  ;;  %v1857_v46 = vadd.f32 %v4094_v18, %v1856_v33 }
 0x458   :  { %v1841_v41 = vsel %vm1840_vm13, %v3527_v16, %v1837_v37  ;;  %v4103_v42 = vadd.f32 1.0, %v3533_v38  ;;  %v3411_v37 = vld [vmem:[#allocation6 + $0x1] ss:$0 sm:$0xff] }
 0x459   :  { %v1846_v45 = vsel %vm1843_vm14, %v1845_v48, %v1841_v41  ;;  %v1861_v53 = vsel %vm1860_vm3, %v4094_v18, %v1857_v46  ;;  %v3109_v18 = vld [vmem:[%s4248_s1 + $0x150] sm:$0xff] }
 0x45a   :  { %v1868_v47 = vmul.f32 %v1846_v45, %v1825_v39  ;;  %3536 = vrcp.f32 %v4103_v42  ;;  %v3535_v51 = vpop.eup %3534  ;;  %v1866_v59 = vsel %vm1863_vm4, %v1865_v55, %v1861_v53  ;;  %v2025_v14 = vand.u32 2147483648, %v4103_v42  ;;  %v3140_v38 = vld [vmem:[%s4247_s0 + $0x30] sm:$0xff] }
 0x45b   :  { %v1995_v54 = vmul.f32 %v3535_v51, %v4098_v32  ;;  %vm2000_vm5 = vweird.f32 %v3535_v51  ;;  %v1871_v3 = vsub.f32 1.0, %v1866_v59  ;;  %v1873_v11 = vmul.f32 %v1866_v59, %v4055_v34  ;;  %v3141_v39 = vld [vmem:[%s4247_s0 + $0x70] sm:$0xff]  ;;  %v3174_v59 = vld [vmem:[%s4248_s1 + $0x108] sm:$0xff] }
 0x45c   :  { %v1869_v52 = vadd.f32 %v3076_v44, %v1868_v47  ;;  %vm2001_vm7 = vmor %vm1999_vm6, %vm2000_vm5  ;;  %v2023_v20 = vand.u32 2147483647, %v4103_v42  ;;  %vm2019_vm10 = vweird.f32 %v4103_v42  ;;  %v2026_v24 = vor.u32 1.1754944e-38, %v2025_v14  ;;  %v3414_v53 = vld [vmem:[#allocation6 + $0x4] ss:$0 sm:$0xff] }
 0x45d   :  { %v1996_v57 = vsub.f32 1.0, %v1995_v54 }
 0x45e   :  { %3538 = vtanh.f32 %v1869_v52  ;;  %vm2024_vm12 = vcmp.eq.f32.partialorder %v2023_v20, 8.507059e+37  ;;  %v3412_v20 = vld [vmem:[#allocation6 + $0x2] ss:$0 sm:$0xff] }
 0x45f   :  { %v1997_v1 = vmul.f32 %v3535_v51, %v1996_v57 }
 0x460   :  { %v3537_v58 = vpop.eup %3536 }
 0x461   :  { %v2015_v8 = vmul.f32 %v3537_v58, %v4103_v42  ;;  %v1998_v6 = vadd.f32 %v3535_v51, %v1997_v1  ;;  %vm2020_vm9 = vweird.f32 %v3537_v58 }
 0x462   :  { %vm2021_vm11 = vmor %vm2019_vm10, %vm2020_vm9 }
 0x463   :  { %v2016_v4 = vsub.f32 1.0, %v2015_v8  ;;  %v2002_v13 = vsel %vm2001_vm7, %v3535_v51, %v1998_v6 }
 0x464   :  { %v3539_v9 = vpop.eup %3538  ;;  %v2007_v19 = vsel %vm2004_vm8, %v2006_v15, %v2002_v13  ;;  %v3356_v15 = vld [vmem:[#allocation4 + $0x8] sm:$0xff] }
 0x465   :  { %v1872_v16 = vmul.f32 %v3539_v9, %v1871_v3  ;;  %v2017_v17 = vmul.f32 %v3537_v58, %v2016_v4  ;;  %v2029_v10 = vmul.f32 %v2007_v19, %v1986_v2  ;;  %v3360_v13 = vld [vmem:[#allocation4 + $0x28] sm:$0xff]  ;;  %2399 = vmatpush.bf16.msra.mxu2 %v3356_v15 }
 0x467   :  { %v1874_v21 = vadd.f32 %v1873_v11, %v1872_v16  ;;  %v2018_v34 = vadd.f32 %v3537_v58, %v2017_v17  ;;  %v2030_v25 = vadd.f32 %v3109_v18, %v2029_v10  ;;  %v3358_v16 = vld [vmem:[#allocation4 + $0x18] sm:$0xff] }
 0x468   :  { %2432 = vmatpush.bf16.msra.mxu3 %v3358_v16 }
 0x469   :  { %1875 = vst.msk [vmem:[#allocation2] sm:$0xff] %vm95_vm0, %v1874_v21  ;;  %v1876_v22 = vpack.c.bf16 %v1874_v21, %v1874_v21  ;;  %v2022_v29 = vsel %vm2021_vm11, %v3537_v58, %v2018_v34  ;;  %3540 = vtanh.f32 %v2030_v25  ;;  %v3359_v25 = vld [vmem:[#allocation4 + $0x20] sm:$0xff] }
 0x46a   :  { %v2027_v26 = vsel %vm2024_vm12, %v2026_v24, %v2022_v29  ;;  %v3355_v24 = vld [vmem:[#allocation4] sm:$0xff]  ;;  %v3357_v29 = vld [vmem:[#allocation4 + $0x10] sm:$0xff] }
 0x46b   :  { %3106 = vst.msk [vmem:[%s4251_s4 + $0x14] sm:$0xf] %vm261_vm1, %v1876_v22  ;;  %v2032_v27 = vsub.f32 1.0, %v2027_v26  ;;  %v2034_v32 = vmul.f32 %v2027_v26, %v4068_v43  ;;  %2400 = vmatpush.bf16.msra.mxu2 %v3355_v24 }
 0x46c   :  { %2433 = vmatpush.bf16.msra.mxu3 %v3357_v29 }
 0x46f   :  { %v3541_v30 = vpop.eup %3540 }
 0x470   :  { %v4133_v28 = vld [vmem:[#allocation2] sm:$0xff]  ;;  %v2033_v12 = vmul.f32 %v3541_v30, %v2032_v27 }
 0x471   :  { %v2047_v31 = vpack.c.bf16 %v4133_v28, %v4133_v28 }
 0x472   :  { %v2035_v33 = vadd.f32 %v2034_v32, %v2033_v12 }
 0x473   :  { %3151 = vmatmul.msk.bf16.vlgmr.msrb.gmra.mxu0 %vm95_vm0, %v2047_v31  ;;  %3160 = vmatmul.msk.bf16.vlgmr.msrb.gmra.mxu1 %vm95_vm0, %v2047_v31 }
 0x474   :  { %3169 = vmatmul.msk.bf16.vlgmr.msrb.gmra.mxu2 %vm95_vm0, %v2047_v31  ;;  %2036 = vst.msk [vmem:[#allocation3] sm:$0xff] %vm95_vm0, %v2035_v33  ;;  %v2037_v23 = vpack.c.bf16 %v2035_v33, %v2035_v33  ;;  %2465 = vmatpush.bf16.msrb.mxu0 %v3360_v13 }
 0x476   :  { %3139 = vst.msk [vmem:[%s4252_s5 + $0x8] sm:$0xf] %vm261_vm1, %v2037_v23  ;;  %v3142_v23 = vld [vmem:[%s4247_s0 + $0xb0] sm:$0xff] }
 0x478   :  { %2466 = vmatpush.bf16.msrb.mxu0 %v3359_v25 }
 0x47b   :  { %v4146_v35 = vld [vmem:[#allocation3] sm:$0xff] }
 0x47c   :  { %v2208_v43 = vpack.c.bf16 %v4146_v35, %v4146_v35 }
 0x47e   :  { %3184 = vmatmul.msk.bf16.vlgmr.msrb.gmra.mxu3 %vm95_vm0, %v2208_v43 }
 0x483   :  { %3193 = vmatmul.msk.bf16.vlgmr.msra.gmra.mxu0 %vm95_vm0, %v2208_v43  ;;  %3202 = vmatmul.msk.bf16.vlgmr.msra.gmra.mxu1 %vm95_vm0, %v2208_v43 }
 0x4f0   :  { %v2080_v48 = vpop.f32.mrf.mxu0  ;;  %v2113_v41 = vpop.f32.mrf.mxu1 }
 0x4f1   :  { %v2081_v42 = vadd.f32 %v3410_v36, %v2080_v48  ;;  %v2114_v61 = vadd.f32 %v3411_v37, %v2113_v41 }
 0x4f3   :  { %v2150_v40 = vadd.f32 %v3140_v38, %v2081_v42  ;;  %v2170_v44 = vadd.f32 %v3141_v39, %v2114_v61 }
 0x4f5   :  { %v3170_v45 = vmul.f32 -1.442695, %v2150_v40  ;;  %v3171_v46 = vmul.f32 -1.442695, %v2170_v44  ;;  %v3362_v40 = vld [vmem:[#allocation4 + $0x38] sm:$0xff]  ;;  %v3364_v44 = vld [vmem:[#allocation4 + $0x48] sm:$0xff] }
 0x4f6   :  { %2559 = vmatpush.bf16.msrb.mxu1 %v3362_v40  ;;  %2592 = vmatpush.bf16.msrb.mxu2 %v3364_v44  ;;  %v3419_v40 = vld [vmem:[#allocation6 + $0x3] ss:$0 sm:$0xff] }
 0x4f7   :  { %3542 = vpow2.f32 %v3170_v45  ;;  %v2146_v47 = vpop.f32.mrf.mxu2  ;;  %v3366_v45 = vld [vmem:[#allocation4 + $0x58] sm:$0xff] }
 0x4f8   :  { %3544 = vpow2.f32 %v3171_v46  ;;  %v2082_v49 = vpop.f32.mrf.mxu0  ;;  %v2115_v56 = vpop.f32.mrf.mxu1  ;;  %v2147_v31 = vadd.f32 %v3412_v20, %v2146_v47  ;;  %2625 = vmatpush.bf16.msrb.mxu3 %v3366_v45 }
 0x4f9   :  { %v3361_v49 = vld [vmem:[#allocation4 + $0x30] sm:$0xff]  ;;  %v3363_v56 = vld [vmem:[#allocation4 + $0x40] sm:$0xff] }
 0x4fa   :  { %2560 = vmatpush.bf16.msrb.mxu1 %v3361_v49  ;;  %2593 = vmatpush.bf16.msrb.mxu2 %v3363_v56 }
 0x4fd   :  { %v3543_v50 = vpop.eup %3542 }
 0x4fe   :  { %v3545_v51 = vpop.eup %3544  ;;  %v2154_v52 = vadd.f32 1.0, %v3543_v50 }
 0x4ff   :  { %v4159_v54 = vadd.f32 1.0, %v3545_v51  ;;  %v2148_v55 = vpop.f32.mrf.mxu2 }
 0x500   :  { %3546 = vrcp.f32 %v2154_v52  ;;  %v2274_v57 = vpop.f32.mrf.mxu0  ;;  %v4161_v58 = vpop.f32.mrf.mxu1  ;;  %v2166_v19 = vand.u32 2147483648, %v2154_v52  ;;  %v2164_v34 = vand.u32 2147483647, %v2154_v52  ;;  %vm2160_vm14 = vweird.f32 %v2154_v52 }
 0x501   :  { %3548 = vrcp.f32 %v4159_v54  ;;  %v2275_v60 = vadd.f32 %v3414_v53, %v2274_v57  ;;  %v2241_v63 = vpop.f32.mrf.mxu3  ;;  %v2186_v37 = vand.u32 2147483648, %v4159_v54  ;;  %vm2180_vm4 = vweird.f32 %v4159_v54 }
 0x502   :  { %v2242_v0 = vadd.f32 %v3413_v5, %v2241_v63  ;;  %v2167_v30 = vor.u32 1.1754944e-38, %v2166_v19  ;;  %vm2165_vm2 = vcmp.eq.f32.partialorder %v2164_v34, 8.507059e+37  ;;  %v2184_v39 = vand.u32 2147483647, %v4159_v54 }
 0x503   :  { %v2331_v8 = vadd.f32 %v3174_v59, %v2275_v60  ;;  %v2187_v61 = vor.u32 1.1754944e-38, %v2186_v37  ;;  %v3365_v60 = vld [vmem:[#allocation4 + $0x50] sm:$0xff] }
 0x504   :  { %v2311_v2 = vadd.f32 %v3173_v62, %v2242_v0  ;;  %vm2185_vm6 = vcmp.eq.f32.partialorder %v2184_v39, 8.507059e+37  ;;  %v3415_v0 = vld [vmem:[#allocation6 + $0x5] ss:$0 sm:$0xff]  ;;  %2626 = vmatpush.bf16.msrb.mxu3 %v3365_v60 }
 0x505   :  { %v3204_v7 = vmul.f32 -1.442695, %v2331_v8 }
 0x506   :  { %v3547_v1 = vpop.eup %3546  ;;  %v3203_v9 = vmul.f32 -1.442695, %v2311_v2 }
 0x507   :  { %v3549_v3 = vpop.eup %3548  ;;  %v2156_v4 = vmul.f32 %v3547_v1, %v2154_v52  ;;  %3550 = vpow2.f32 %v3204_v7  ;;  %vm2161_vm13 = vweird.f32 %v3547_v1 }
 0x508   :  { %v2176_v6 = vmul.f32 %v3549_v3, %v4159_v54  ;;  %v2276_v11 = vpop.f32.mrf.mxu0  ;;  %v2309_v14 = vpop.f32.mrf.mxu1  ;;  %3552 = vpow2.f32 %v3203_v9  ;;  %vm2162_vm15 = vmor %vm2160_vm14, %vm2161_vm13  ;;  %vm2181_vm3 = vweird.f32 %v3549_v3  ;;  %v3175_v9 = vld [vmem:[%s4248_s1 + $0x148] sm:$0xff] }
 0x509   :  { %v2157_v17 = vsub.f32 1.0, %v2156_v4  ;;  %v2243_v10 = vpop.f32.mrf.mxu3  ;;  %vm2182_vm5 = vmor %vm2180_vm4, %vm2181_vm3 }
 0x50a   :  { %v2177_v18 = vsub.f32 1.0, %v2176_v6 }
 0x50b   :  { %v2158_v21 = vmul.f32 %v3547_v1, %v2157_v17 }
 0x50c   :  { %v2178_v22 = vmul.f32 %v3549_v3, %v2177_v18 }
 0x50d   :  { %v2159_v26 = vadd.f32 %v3547_v1, %v2158_v21  ;;  %v3551_v27 = vpop.eup %3550 }
 0x50e   :  { %v4171_v32 = vadd.f32 1.0, %v3551_v27  ;;  %v3553_v33 = vpop.eup %3552  ;;  %v2179_v36 = vadd.f32 %v3549_v3, %v2178_v22 }
 0x50f   :  { %v2163_v12 = vsel %vm2162_vm15, %v3547_v1, %v2159_v26  ;;  %v2315_v48 = vadd.f32 1.0, %v3553_v33  ;;  %v3207_v33 = vld [vmem:[%s4247_s0 + $0x78] sm:$0xff] }
 0x510   :  { %v2168_v43 = vsel %vm2165_vm2, %v2167_v30, %v2163_v12  ;;  %3554 = vrcp.f32 %v4171_v32  ;;  %v2183_v42 = vsel %vm2182_vm5, %v3549_v3, %v2179_v36  ;;  %v2347_v15 = vand.u32 2147483648, %v4171_v32  ;;  %v3417_v30 = vld [vmem:[#allocation6] ss:$0 sm:$0xff]  ;;  %v3206_v12 = vld [vmem:[%s4247_s0 + $0x38] sm:$0xff] }
 0x511   :  { %v2190_v38 = vmul.f32 %v2168_v43, %v2147_v31  ;;  %3556 = vrcp.f32 %v2315_v48  ;;  %v2188_v47 = vsel %vm2185_vm6, %v2187_v61, %v2183_v42  ;;  %v2327_v62 = vand.u32 2147483648, %v2315_v48  ;;  %v3418_v31 = vld [vmem:[#allocation6 + $0x1] ss:$0 sm:$0xff] }
 0x512   :  { %v2193_v52 = vsub.f32 1.0, %v2188_v47  ;;  %v2195_v57 = vmul.f32 %v2188_v47, %v4133_v28  ;;  %v2325_v1 = vand.u32 2147483647, %v2315_v48  ;;  %vm2321_vm8 = vweird.f32 %v2315_v48 }
 0x513   :  { %v2191_v41 = vadd.f32 %v3142_v23, %v2190_v38  ;;  %v2328_v4 = vor.u32 1.1754944e-38, %v2327_v62  ;;  %v2308_v28 = vadd.f32 %v3415_v0, %v4161_v58  ;;  %vm2341_vm12 = vweird.f32 %v4171_v32 }
 0x514   :  { %vm2326_vm10 = vcmp.eq.f32.partialorder %v2325_v1, 8.507059e+37  ;;  %v2345_v17 = vand.u32 2147483647, %v4171_v32  ;;  %v2348_v19 = vor.u32 1.1754944e-38, %v2347_v15 }
 0x515   :  { %3558 = vtanh.f32 %v2191_v41 }
 0x516   :  { %v3555_v46 = vpop.eup %3554  ;;  %vm2346_vm14 = vcmp.eq.f32.partialorder %v2345_v17, 8.507059e+37 }
 0x517   :  { %v2337_v50 = vmul.f32 %v3555_v46, %v4171_v32  ;;  %v3557_v51 = vpop.eup %3556  ;;  %vm2342_vm11 = vweird.f32 %v3555_v46 }
 0x518   :  { %v2317_v53 = vmul.f32 %v3557_v51, %v2315_v48  ;;  %vm2322_vm7 = vweird.f32 %v3557_v51  ;;  %vm2343_vm13 = vmor %vm2341_vm12, %vm2342_vm11 }
 0x519   :  { %v2338_v55 = vsub.f32 1.0, %v2337_v50  ;;  %vm2323_vm9 = vmor %vm2321_vm8, %vm2322_vm7  ;;  %v3239_v50 = vld [vmem:[%s4248_s1 + $0xc0] sm:$0xff] }
 0x51a   :  { %v2318_v59 = vsub.f32 1.0, %v2317_v53  ;;  %v3240_v53 = vld [vmem:[%s4248_s1 + $0x100] sm:$0xff] }
 0x51b   :  { %v3559_v54 = vpop.eup %3558  ;;  %v2339_v2 = vmul.f32 %v3555_v46, %v2338_v55 }
 0x51c   :  { %v2194_v5 = vmul.f32 %v3559_v54, %v2193_v52  ;;  %v2319_v8 = vmul.f32 %v3557_v51, %v2318_v59 }
 0x51d   :  { %v2340_v14 = vadd.f32 %v3555_v46, %v2339_v2 }
 0x51e   :  { %v2196_v63 = vadd.f32 %v2195_v57, %v2194_v5  ;;  %v2320_v3 = vadd.f32 %v3557_v51, %v2319_v8 }
 0x51f   :  { %v2344_v18 = vsel %vm2343_vm13, %v3555_v46, %v2340_v14 }
 0x520   :  { %2197 = vst.msk [vmem:[#allocation2] sm:$0xff] %vm95_vm0, %v2196_v63  ;;  %v2198_v7 = vpack.c.bf16 %v2196_v63, %v2196_v63  ;;  %v2324_v6 = vsel %vm2323_vm9, %v3557_v51, %v2320_v3  ;;  %v2349_v21 = vsel %vm2346_vm14, %v2348_v19, %v2344_v18  ;;  %v3420_v51 = vld [vmem:[#allocation6 + $0x4] ss:$0 sm:$0xff] }
 0x521   :  { %v2329_v11 = vsel %vm2326_vm10, %v2328_v4, %v2324_v6  ;;  %v2354_v34 = vsub.f32 1.0, %v2349_v21  ;;  %v2356_v24 = vmul.f32 %v2349_v21, %v4146_v35  ;;  %v3416_v4 = vld [vmem:[#allocation6 + $0x2] ss:$0 sm:$0xff]  ;;  %v3208_v21 = vld [vmem:[%s4247_s0 + $0xb8] sm:$0xff] }
 0x522   :  { %3172 = vst.msk [vmem:[%s4251_s4 + $0x18] sm:$0xf] %vm261_vm1, %v2198_v7  ;;  %v2351_v16 = vmul.f32 %v2329_v11, %v2308_v28 }
 0x524   :  { %v2352_v13 = vadd.f32 %v3175_v9, %v2351_v16 }
 0x526   :  { %3560 = vtanh.f32 %v2352_v13 }
 0x527   :  { %v4194_v58 = vld [vmem:[#allocation2] sm:$0xff] }
 0x528   :  { %v2369_v20 = vpack.c.bf16 %v4194_v58, %v4194_v58 }
 0x52a   :  { %3217 = vmatmul.msk.bf16.vlgmr.msra.gmra.mxu2 %vm95_vm0, %v2369_v20  ;;  %3226 = vmatmul.msk.bf16.vlgmr.msra.gmra.mxu3 %vm95_vm0, %v2369_v20 }
 0x52b   :  { %3235 = vmatmul.msk.bf16.vlgmr.msrb.gmra.mxu0 %vm95_vm0, %v2369_v20 }
 0x52c   :  { %v3561_v10 = vpop.eup %3560 }
 0x52d   :  { %v2355_v22 = vmul.f32 %v3561_v10, %v2354_v34 }
 0x52f   :  { %v2357_v29 = vadd.f32 %v2356_v24, %v2355_v22 }
 0x531   :  { %2358 = vst.msk [vmem:[#allocation3] sm:$0xff] %vm95_vm0, %v2357_v29  ;;  %v2359_v25 = vpack.c.bf16 %v2357_v29, %v2357_v29 }
 0x533   :  { %3205 = vst.msk [vmem:[%s4252_s5 + $0x4] sm:$0xf] %vm261_vm1, %v2359_v25 }
 0x538   :  { %v4207_v26 = vld [vmem:[#allocation3] sm:$0xff] }
 0x539   :  { %v2529_v27 = vpack.c.bf16 %v4207_v26, %v4207_v26 }
 0x53b   :  { %3250 = vmatmul.msk.bf16.vlgmr.msrb.gmra.mxu1 %vm95_vm0, %v2529_v27  ;;  %3259 = vmatmul.msk.bf16.vlgmr.msrb.gmra.mxu2 %vm95_vm0, %v2529_v27 }
 0x53c   :  { %3268 = vmatmul.msk.bf16.vlgmr.msrb.gmra.mxu3 %vm95_vm0, %v2529_v27 }
 0x5a8   :  { %v2468_v35 = vpop.f32.mrf.mxu0 }
 0x5a9   :  { %v2469_v18 = vadd.f32 %v3416_v4, %v2468_v35 }
 0x5ad   :  { %v2402_v32 = vpop.f32.mrf.mxu2  ;;  %v2435_v23 = vpop.f32.mrf.mxu3 }
 0x5ae   :  { %v2403_v43 = vadd.f32 %v3417_v30, %v2402_v32  ;;  %v2436_v36 = vadd.f32 %v3418_v31, %v2435_v23 }
 0x5b0   :  { %v2472_v37 = vadd.f32 %v3206_v12, %v2403_v43  ;;  %v2492_v38 = vadd.f32 %v3207_v33, %v2436_v36  ;;  %v2470_v48 = vpop.f32.mrf.mxu0  ;;  %v3421_v43 = vld [vmem:[#allocation6 + $0x5] ss:$0 sm:$0xff] }
 0x5b2   :  { %v3236_v39 = vmul.f32 -1.442695, %v2472_v37  ;;  %v3237_v41 = vmul.f32 -1.442695, %v2492_v38 }
 0x5b4   :  { %3562 = vpow2.f32 %v3236_v39 }
 0x5b5   :  { %3564 = vpow2.f32 %v3237_v41  ;;  %v2404_v42 = vpop.f32.mrf.mxu2  ;;  %v2437_v61 = vpop.f32.mrf.mxu3 }
 0x5b8   :  { %v2562_v45 = vpop.f32.mrf.mxu1 }
 0x5b9   :  { %v2563_v49 = vadd.f32 %v3419_v40, %v2562_v45 }
 0x5ba   :  { %v3563_v44 = vpop.eup %3562 }
 0x5bb   :  { %v3565_v46 = vpop.eup %3564  ;;  %v2476_v47 = vadd.f32 1.0, %v3563_v44  ;;  %v2632_v52 = vadd.f32 %v3239_v50, %v2563_v49 }
 0x5bc   :  { %v2496_v56 = vadd.f32 1.0, %v3565_v46 }
 0x5bd   :  { %3566 = vrcp.f32 %v2476_v47  ;;  %v3269_v55 = vmul.f32 -1.442695, %v2632_v52  ;;  %v2488_v7 = vand.u32 2147483648, %v2476_v47  ;;  %v2486_v6 = vand.u32 2147483647, %v2476_v47 }
 0x5be   :  { %3568 = vrcp.f32 %v2496_v56  ;;  %v2595_v54 = vpop.f32.mrf.mxu2  ;;  %vm2482_vm2 = vweird.f32 %v2476_v47  ;;  %v2508_v24 = vand.u32 2147483648, %v2496_v56  ;;  %vm2502_vm6 = vweird.f32 %v2496_v56 }
 0x5bf   :  { %v2596_v5 = vadd.f32 %v3420_v51, %v2595_v54  ;;  %v4226_v57 = vpop.f32.mrf.mxu3  ;;  %3570 = vpow2.f32 %v3269_v55  ;;  %v2489_v13 = vor.u32 1.1754944e-38, %v2488_v7  ;;  %vm2487_vm4 = vcmp.eq.f32.partialorder %v2486_v6, 8.507059e+37  ;;  %v3241_v51 = vld [vmem:[%s4248_s1 + $0x140] sm:$0xff] }
 0x5c0   :  { %v2564_v59 = vpop.f32.mrf.mxu1  ;;  %v2506_v25 = vand.u32 2147483647, %v2496_v56  ;;  %v2509_v31 = vor.u32 1.1754944e-38, %v2508_v24  ;;  %v2629_v46 = vadd.f32 %v3421_v43, %v4226_v57 }
 0x5c1   :  { %v2652_v62 = vadd.f32 %v3240_v53, %v2596_v5 }
 0x5c2   :  { %vm2507_vm8 = vcmp.eq.f32.partialorder %v2506_v25, 8.507059e+37 }
 0x5c3   :  { %v3567_v60 = vpop.eup %3566  ;;  %v3270_v1 = vmul.f32 -1.442695, %v2652_v62 }
 0x5c4   :  { %v3569_v63 = vpop.eup %3568  ;;  %v2478_v0 = vmul.f32 %v3567_v60, %v2476_v47  ;;  %vm2483_vm15 = vweird.f32 %v3567_v60 }
 0x5c5   :  { %v2498_v8 = vmul.f32 %v3569_v63, %v2496_v56  ;;  %3572 = vpow2.f32 %v3270_v1  ;;  %v3571_v11 = vpop.eup %3570  ;;  %vm2484_vm3 = vmor %vm2482_vm2, %vm2483_vm15  ;;  %vm2503_vm5 = vweird.f32 %v3569_v63 }
 0x5c6   :  { %v2479_v2 = vsub.f32 1.0, %v2478_v0  ;;  %v2597_v9 = vpop.f32.mrf.mxu2  ;;  %v2636_v17 = vadd.f32 1.0, %v3571_v11  ;;  %vm2504_vm7 = vmor %vm2502_vm6, %vm2503_vm5 }
 0x5c7   :  { %v2499_v3 = vsub.f32 1.0, %v2498_v8  ;;  %v2630_v15 = vpop.f32.mrf.mxu3 }
 0x5c8   :  { %v2480_v28 = vmul.f32 %v3567_v60, %v2479_v2  ;;  %3574 = vrcp.f32 %v2636_v17  ;;  %v2646_v36 = vand.u32 2147483647, %v2636_v17  ;;  %v2648_v37 = vand.u32 2147483648, %v2636_v17 }
 0x5c9   :  { %v2500_v14 = vmul.f32 %v3569_v63, %v2499_v3  ;;  %vm2642_vm10 = vweird.f32 %v2636_v17 }
 0x5ca   :  { %v2481_v16 = vadd.f32 %v3567_v60, %v2480_v28  ;;  %vm2647_vm12 = vcmp.eq.f32.partialorder %v2646_v36, 8.507059e+37  ;;  %v2649_v47 = vor.u32 1.1754944e-38, %v2648_v37 }
 0x5cb   :  { %v3573_v20 = vpop.eup %3572  ;;  %v2501_v10 = vadd.f32 %v3569_v63, %v2500_v14 }
 0x5cc   :  { %v2485_v19 = vsel %vm2484_vm3, %v3567_v60, %v2481_v16  ;;  %v2656_v29 = vadd.f32 1.0, %v3573_v20 }
 0x5cd   :  { %v2490_v34 = vsel %vm2487_vm4, %v2489_v13, %v2485_v19  ;;  %v2505_v35 = vsel %vm2504_vm7, %v3569_v63, %v2501_v10 }
 0x5ce   :  { %v2512_v22 = vmul.f32 %v2490_v34, %v2469_v18  ;;  %3576 = vrcp.f32 %v2656_v29  ;;  %v3575_v30 = vpop.eup %3574  ;;  %v2510_v32 = vsel %vm2507_vm8, %v2509_v31, %v2505_v35  ;;  %v2668_v45 = vand.u32 2147483648, %v2656_v29 }
 0x5cf   :  { %v2638_v12 = vmul.f32 %v3575_v30, %v2636_v17  ;;  %v2515_v38 = vsub.f32 1.0, %v2510_v32  ;;  %vm2643_vm9 = vweird.f32 %v3575_v30  ;;  %v2517_v61 = vmul.f32 %v2510_v32, %v4194_v58 }
 0x5d0   :  { %v2513_v27 = vadd.f32 %v3208_v21, %v2512_v22  ;;  %vm2644_vm11 = vmor %vm2642_vm10, %vm2643_vm9  ;;  %v2666_v53 = vand.u32 2147483647, %v2656_v29  ;;  %vm2662_vm14 = vweird.f32 %v2656_v29  ;;  %v2669_v5 = vor.u32 1.1754944e-38, %v2668_v45 }
 0x5d1   :  { %v2639_v33 = vsub.f32 1.0, %v2638_v12 }
 0x5d2   :  { %3578 = vtanh.f32 %v2513_v27  ;;  %vm2667_vm2 = vcmp.eq.f32.partialorder %v2666_v53, 8.507059e+37 }
 0x5d3   :  { %v2640_v39 = vmul.f32 %v3575_v30, %v2639_v33 }
 0x5d4   :  { %v3577_v23 = vpop.eup %3576 }
 0x5d5   :  { %v2658_v48 = vmul.f32 %v3577_v23, %v2656_v29  ;;  %v2641_v44 = vadd.f32 %v3575_v30, %v2640_v39  ;;  %vm2663_vm13 = vweird.f32 %v3577_v23 }
 0x5d6   :  { %vm2664_vm15 = vmor %vm2662_vm14, %vm2663_vm13 }
 0x5d7   :  { %v2659_v40 = vsub.f32 1.0, %v2658_v48  ;;  %v2645_v50 = vsel %vm2644_vm11, %v3575_v30, %v2641_v44 }
 0x5d8   :  { %v3579_v41 = vpop.eup %3578  ;;  %v2650_v52 = vsel %vm2647_vm12, %v2649_v47, %v2645_v50 }
 0x5d9   :  { %v2516_v42 = vmul.f32 %v3579_v41, %v2515_v38  ;;  %v2660_v56 = vmul.f32 %v3577_v23, %v2659_v40  ;;  %v2672_v55 = vmul.f32 %v2650_v52, %v2629_v46 }
 0x5db   :  { %v2518_v49 = vadd.f32 %v2517_v61, %v2516_v42  ;;  %v2661_v54 = vadd.f32 %v3577_v23, %v2660_v56  ;;  %v2673_v59 = vadd.f32 %v3241_v51, %v2672_v55 }
 0x5dd   :  { %2519 = vst.msk [vmem:[#allocation2] sm:$0xff] %vm95_vm0, %v2518_v49  ;;  %v2520_v58 = vpack.c.bf16 %v2518_v49, %v2518_v49  ;;  %v2665_v57 = vsel %vm2664_vm15, %v3577_v23, %v2661_v54  ;;  %3580 = vtanh.f32 %v2673_v59 }
 0x5de   :  { %v2670_v60 = vsel %vm2667_vm2, %v2669_v5, %v2665_v57 }
 0x5df   :  { %3238 = vst.msk [vmem:[%s4251_s4 + $0x1c] sm:$0xf] %vm261_vm1, %v2520_v58  ;;  %v2675_v62 = vsub.f32 1.0, %v2670_v60  ;;  %v2677_v8 = vmul.f32 %v2670_v60, %v4207_v26 }
 0x5e3   :  { %v3581_v63 = vpop.eup %3580 }
 0x5e4   :  { %v2676_v0 = vmul.f32 %v3581_v63, %v2675_v62 }
 0x5e6   :  { %v2678_v1 = vadd.f32 %v2677_v8, %v2676_v0 }
 0x5e8   :  { %2679 = vst.msk [vmem:[#allocation3] sm:$0xff] %vm95_vm0, %v2678_v1  ;;  %v2680_v2 = vpack.c.bf16 %v2678_v1, %v2678_v1 }
 0x5ea   :  { %2681 = vst.msk [vmem:[%s4252_s5] sm:$0xf] %vm261_vm1, %v2680_v2 }
 0x5eb   :  { %2704 = vsyncpa [#allocation5], 1 }
 0x5ec   :  { %2705 = vsyncpa [#allocation7], 1 }

</bundles_post_ra>
